<compile_context>
chip_gen: v7x
topology: tpu7x:2x2x1
jax: 0.10.0
libtpu: 0.0.40
codegen_flags: <defaults>
</compile_context>

<pallas_src>
import functools
from typing import NamedTuple

import jax
import jax.numpy as jnp
from jax import lax
from jax.experimental import pallas as pl
from jax.experimental.pallas import tpu as pltpu


def _round_up(x, m):
    return (x + m - 1) // m * m


# ----------------------------------------------------------------------------
# Weight packing (one-time, NOT in the per-call path)
# ----------------------------------------------------------------------------
def _pack_conv(w, b, cmult=8):
    """(Co,Ci,KD,KH,KW) + (Co,) -> (Co_p, KD*KH*KW*Ci_p) tap-major weight and
    (Co_p, 1) bias, channels zero-padded to multiples of `cmult`."""
    co, ci, kd, kh, kw = w.shape
    co_p, ci_p = _round_up(co, cmult), _round_up(ci, cmult)
    wt = jnp.transpose(w, (2, 3, 4, 0, 1))                      # (KD,KH,KW,Co,Ci)
    wp = jnp.zeros((kd, kh, kw, co_p, ci_p), w.dtype)
    wp = wp.at[:, :, :, :co, :ci].set(wt)
    wp = jnp.transpose(wp, (3, 0, 1, 2, 4)).reshape(co_p, kd * kh * kw * ci_p)
    bp = jnp.zeros((co_p, 1), b.dtype).at[:co, 0].set(b)
    return wp, bp


class EncoderMeta(NamedTuple):
    cin: int
    c10: int
    c11: int
    c2: int
    c30: int
    c31: int
    c32: int
    c33: int
    KD: int
    KH: int
    KW: int
    wsp_rows: tuple          # row offsets of (w11, w31, w32, w33) inside w_sp


def pack_reduction_encoder_params(params, compute_dtype=jnp.bfloat16):
    """Pack the PyTorch-layout Conv3d params once into 3 kernel operands."""
    w10, b10 = params["p1_0"]
    w11, b11 = params["p1_1"]
    w20, b20 = params["p2_0"]
    w30, b30 = params["p3_0"]
    w31, b31 = params["p3_1"]
    w32, b32 = params["p3_2"]
    w33, b33 = params["p3_3"]

    KD, KH, KW = (int(s) for s in w11.shape[2:])
    cin = int(w10.shape[1])
    c10, c11c, c2 = int(w10.shape[0]), int(w11.shape[0]), int(w20.shape[0])
    c30, c31c, c32c, c33c = (int(w.shape[0]) for w in (w30, w31, w32, w33))

    w10p, b10p = _pack_conv(w10, b10)
    w20p, b20p = _pack_conv(w20, b20)
    w30p, b30p = _pack_conv(w30, b30)
    w11p, b11p = _pack_conv(w11, b11)
    w31p, b31p = _pack_conv(w31, b31)
    w32p, b32p = _pack_conv(w32, b32)
    w33p, b33p = _pack_conv(w33, b33)

    # Fused 1x1x1 stem (p1_0 | p2_0 | p3_0) stays f32: it feeds the exact p2
    # branch and the sigmoid, and its streamed operand is only 8 sublanes.
    w_stem = jnp.concatenate([w10p, w20p, w30p], axis=0).astype(jnp.float32)
    # One bias slab, rows in stem | p1_1 | p3_1 | p3_2 | p3_3 order.
    b_all = jnp.concatenate([b10p, b20p, b30p, b11p, b31p, b32p, b33p],
                            axis=0).astype(jnp.float32)

    # One spatial-conv weight slab in the MXU compute dtype.  Each block's row
    # offset is aligned to the compute dtype's sublane tile (16 for bf16) so
    # in-kernel row slices stay tile-aligned.
    ral = 16 if jnp.dtype(compute_dtype).itemsize < 4 else 8
    blocks = [w11p, w31p, w32p, w33p]
    offs, rows = [], 0
    for blk in blocks:
        offs.append(rows)
        rows += _round_up(int(blk.shape[0]), ral)
    cols = max(int(blk.shape[1]) for blk in blocks)
    w_sp = jnp.zeros((rows, cols), compute_dtype)
    for off, blk in zip(offs, blocks):
        w_sp = w_sp.at[off:off + blk.shape[0], 0:blk.shape[1]].set(
            blk.astype(compute_dtype))

    packed = {"w_stem": w_stem, "w_sp": w_sp, "b_all": b_all}
    meta = EncoderMeta(cin=cin, c10=c10, c11=c11c, c2=c2, c30=c30, c31=c31c,
                       c32=c32c, c33=c33c, KD=KD, KH=KH, KW=KW,
                       wsp_rows=tuple(offs))
    return packed, meta


# ----------------------------------------------------------------------------
# Fused kernel: whole Reduction_Encoder forward for ONE batch element.
#
# Layout: channels on sublanes (padded to x8), flattened zero-padded spatial
# volume (flat = d*sD + h*sH + w) on lanes.  A conv tap (kd,kh,kw) is the flat
# lane shift kd*sD + kh*sH + kw, so spatial convs are sums of MXU matmuls
# against statically shifted VMEM windows; taps along one axis are pre-stacked
# into a bf16 slab so they land inside a single contraction.
# ----------------------------------------------------------------------------
def _reduction_encoder_kernel(
        x_ref, mask_ref, wstem_ref, wsp_ref, ball_ref, out_ref,
        h1_ref, h3_ref, t1_ref, t2_ref,
        slab1_ref, slabA_ref, slabB_ref, slabC_ref,
        *, cfg):
    (c10, c2, c30, c11, c31, c32, c33,
     KD, KH, KW, sH, sD, Lc, p2_shift, Ls1, LA, LB,
     r11, r31, r32, r33) = cfg
    f32 = jnp.float32
    cdt = slab1_ref.dtype                      # MXU streaming dtype (bf16)

    x = x_ref[0]                               # (cin_p, Lb) f32
    mask = mask_ref[...]                       # (1, Lb): 1 on interior voxels
    ball = ball_ref[...]                       # (Btot, 1) f32 biases

    # ---- fused 1x1x1 stem: p1_0 | p2_0 | p3_0 in one MXU matmul -------------
    nstem = c10 + c2 + c30
    stem = jnp.dot(wstem_ref[...], x, preferred_element_type=f32) + ball[0:nstem]

    # p1 entry: Sigmoid; the 5x5x5 conv zero-pads, so halo/tail lanes of h1 are
    # forced to exactly zero with the interior mask.
    h1_ref[...] = mask * jax.nn.sigmoid(stem[0:c10])

    # p2 branch finishes here (1x1x1 conv + ReLU); its valid samples sit at a
    # constant flat lane shift of the padded layout.
    p2 = stem[c10:c10 + c2]
    out_ref[0, c11:c11 + c2, :] = jnp.maximum(
        p2[:, p2_shift:p2_shift + Lc], 0.0)

    # p3 entry: Conv3d(1x1x1, padding=2) + ReLU.  Halo value relu(bias) comes
    # for free because x == 0 there in the padded layout.
    h3_ref[...] = jnp.maximum(stem[c10 + c2:nstem], 0.0)

    # ---- p1: 5x5x5 conv (pad 2) via kw-stacked bf16 slab + 25 fused dots ----
    slab1_ref[...] = jnp.concatenate(
        [h1_ref[:, kw:kw + Ls1] for kw in range(KW)], axis=0).astype(cdt)
    ncol1 = KW * c10
    w11 = wsp_ref[r11:r11 + c11, 0:KD * KH * ncol1]           # bf16
    acc1 = jnp.zeros((c11, Lc), f32)
    for kd in range(KD):
        for kh in range(KH):
            t = kd * KH + kh
            off = kd * sD + kh * sH
            acc1 = acc1 + jnp.dot(w11[:, t * ncol1:(t + 1) * ncol1],
                                  slab1_ref[:, off:off + Lc],
                                  preferred_element_type=f32)
    out_ref[0, 0:c11, :] = jnp.maximum(acc1 + ball[nstem:nstem + c11], 0.0)

    # ---- p3 chain: each single-axis conv = tap-stacked slab + ONE dot -------
    # (Tail lanes of h3/t1/t2 beyond the real padded volume hold junk; kept
    #  output voxels (d<D,h<H,w<W) never read them -- see wrapper asserts.)
    ob31 = nstem + c11
    slabA_ref[...] = jnp.concatenate(
        [h3_ref[:, kw:kw + LA] for kw in range(KW)], axis=0).astype(cdt)
    t1 = jnp.dot(wsp_ref[r31:r31 + c31, 0:KW * c30], slabA_ref[...],
                 preferred_element_type=f32) + ball[ob31:ob31 + c31]
    t1_ref[...] = jnp.maximum(t1, 0.0)

    ob32 = ob31 + c31
    slabB_ref[...] = jnp.concatenate(
        [t1_ref[:, kh * sH:kh * sH + LB] for kh in range(KH)],
        axis=0).astype(cdt)
    t2 = jnp.dot(wsp_ref[r32:r32 + c32, 0:KH * c31], slabB_ref[...],
                 preferred_element_type=f32) + ball[ob32:ob32 + c32]
    t2_ref[...] = jnp.maximum(t2, 0.0)

    ob33 = ob32 + c32
    slabC_ref[...] = jnp.concatenate(
        [t2_ref[:, kd * sD:kd * sD + Lc] for kd in range(KD)],
        axis=0).astype(cdt)
    p3 = jnp.dot(wsp_ref[r33:r33 + c33, 0:KD * c32], slabC_ref[...],
                 preferred_element_type=f32) + ball[ob33:ob33 + c33]
    out_ref[0, c11 + c2:c11 + c2 + c33, :] = jnp.maximum(p3, 0.0)


# ----------------------------------------------------------------------------
# Public forward: NCDHW in / NCDHW out, one fused pallas_call inside.
# ----------------------------------------------------------------------------
def reduction_encoder_forward(x, packed, meta, *, crop_output=True):
    N, cin, D, H, W = x.shape
    assert cin == meta.cin
    KD, KH, KW = meta.KD, meta.KH, meta.KW
    PAD = 2                                     # fixed by the module definition
    # "same" conv invariant the whole flat-shift trick rests on:
    assert PAD == (KD - 1) // 2 == (KH - 1) // 2 == (KW - 1) // 2

    cin_p = _round_up(cin, 8)
    c10_p, c2_p, c30_p = (_round_up(c, 8) for c in (meta.c10, meta.c2, meta.c30))
    c11_p, c31_p, c32_p, c33_p = (_round_up(c, 8) for c in
                                  (meta.c11, meta.c31, meta.c32, meta.c33))
    c_out_p = c11_p + c2_p + c33_p

    # NOTE: W stride stays Wp (NOT padded to 128) -- lane occupancy beats
    # window alignment at these shapes (confirmed anti-pattern in review).
    Dp, Hp, Wp = D + 2 * PAD, H + 2 * PAD, W + 2 * PAD
    sH, sD = Wp, Hp * Wp
    Lo = Dp * sD                                # flattened padded volume
    Lc = D * sD                                 # covers every kept output voxel
    halo = (KD - 1) * sD + (KH - 1) * sH + (KW - 1)
    Lb = _round_up(max(Lo, Lc + halo), 128)     # lane-padded working width
    # Invariant: every kept output voxel (d<D, h<H, w<W) only reads flat
    # positions < Lc + halo <= Lb, and those below Lo are true padded-volume
    # voxels; garbage tail lanes of h3/t1/t2 only reach cropped-away outputs.
    assert Lb >= Lc + halo
    Ls1 = LA = Lc + (KD - 1) * sD + (KH - 1) * sH
    LB = Lc + (KD - 1) * sD
    p2_shift = PAD * sD + PAD * sH + PAD

    f32 = jnp.float32
    cdt = packed["w_sp"].dtype                  # bf16 MXU stream dtype

    # ---- per-call glue: pad+flatten input; interior mask is constant-folded -
    xpad = jnp.pad(x.astype(f32),
                   ((0, 0), (0, cin_p - cin),
                    (PAD, PAD), (PAD, PAD), (PAD, PAD)))
    xflat = jnp.pad(xpad.reshape(N, cin_p, Lo), ((0, 0), (0, 0), (0, Lb - Lo)))

    interior = jnp.zeros((Dp, Hp, Wp), f32)
    interior = interior.at[PAD:PAD + D, PAD:PAD + H, PAD:PAD + W].set(1.0)
    mask = jnp.pad(interior.reshape(1, Lo), ((0, 0), (0, Lb - Lo)))

    r11, r31, r32, r33 = meta.wsp_rows
    cfg = (c10_p, c2_p, c30_p, c11_p, c31_p, c32_p, c33_p,
           KD, KH, KW, sH, sD, Lc, p2_shift, Ls1, LA, LB,
           r11, r31, r32, r33)

    def full(arr):
        return pl.BlockSpec(arr.shape, lambda n: (0,) * arr.ndim)

    out = pl.pallas_call(
        functools.partial(_reduction_encoder_kernel, cfg=cfg),
        out_shape=jax.ShapeDtypeStruct((N, c_out_p, Lc), f32),
        grid_spec=pltpu.PrefetchScalarGridSpec(
            num_scalar_prefetch=0,
            grid=(N,),
            in_specs=[
                pl.BlockSpec((1, cin_p, Lb), lambda n: (n, 0, 0)),   # x
                full(mask),                                           # mask
                full(packed["w_stem"]),                               # stem W
                full(packed["w_sp"]),                                 # conv W slab
                full(packed["b_all"]),                                # bias slab
            ],
            out_specs=pl.BlockSpec((1, c_out_p, Lc), lambda n: (n, 0, 0)),
            scratch_shapes=[
                pltpu.VMEM((c10_p, Lb), f32),        # h1 (sigmoid, zero halo)
                pltpu.VMEM((c30_p, Lb), f32),        # h3 (relu, relu(b) halo)
                pltpu.VMEM((c31_p, LA), f32),        # t1
                pltpu.VMEM((c32_p, LB), f32),        # t2
                pltpu.VMEM((KW * c10_p, Ls1), cdt),  # kw-slab for 5x5x5
                pltpu.VMEM((KW * c30_p, LA), cdt),   # tap slab, (1,1,5)
                pltpu.VMEM((KH * c31_p, LB), cdt),   # tap slab, (1,5,1)
                pltpu.VMEM((KD * c32_p, Lc), cdt),   # tap slab, (5,1,1)
            ],
        ),
        compiler_params=pltpu.CompilerParams(
            dimension_semantics=("parallel",)),
    )(xflat, mask, packed["w_stem"], packed["w_sp"], packed["b_all"])

    if not crop_output:
        # Persistent lane-dense inter-layer layout (channel-major, padded-flat
        # spatial with flat = d*sD + h*sH + w); avoids the last-dim-8 relayout.
        return out

    # Crop the padded halo: branches are already concatenated channel-major in
    # the kernel, so reshape + static slice recovers NCDHW with no transpose.
    out = out.reshape(N, c_out_p, D, Hp, Wp)[:, :, :, :H, :W]
    if (c11_p, c2_p, c33_p) == (meta.c11, meta.c2, meta.c33):
        return out[:, :meta.c11 + meta.c2 + meta.c33]
    return jnp.concatenate(
        [out[:, 0:meta.c11],
         out[:, c11_p:c11_p + meta.c2],
         out[:, c11_p + c2_p:c11_p + c2_p + meta.c33]], axis=1)


# ----------------------------------------------------------------------------
# Parameter init (PyTorch Conv3d default init) + pure-JAX reference
# ----------------------------------------------------------------------------
def _init_conv(key, cout, cin, ks):
    kw_, kb_ = jax.random.split(key)
    fan_in = cin * ks[0] * ks[1] * ks[2]
    bound = 1.0 / (fan_in ** 0.5)
    w = jax.random.uniform(kw_, (cout, cin) + tuple(ks), jnp.float32, -bound, bound)
    b = jax.random.uniform(kb_, (cout,), jnp.float32, -bound, bound)
    return w, b


def init_reduction_encoder(key, cin, c1, c2, c3):
    keys = jax.random.split(key, 7)
    return {
        "p1_0": _init_conv(keys[0], c1[0], cin, (1, 1, 1)),
        "p1_1": _init_conv(keys[1], c1[1], c1[0], (5, 5, 5)),
        "p2_0": _init_conv(keys[2], c2, cin, (1, 1, 1)),
        "p3_0": _init_conv(keys[3], c3[0], cin, (1, 1, 1)),
        "p3_1": _init_conv(keys[4], c3[1], c3[0], (1, 1, 5)),
        "p3_2": _init_conv(keys[5], c3[2], c3[1], (1, 5, 1)),
        "p3_3": _init_conv(keys[6], c3[3], c3[2], (5, 1, 1)),
    }


def _conv3d_ref(x, w, b, padding):
    y = lax.conv_general_dilated(
        x, w, window_strides=(1, 1, 1),
        padding=[(p, p) for p in padding],
        dimension_numbers=("NCDHW", "OIDHW", "NCDHW"),
        precision=lax.Precision.HIGHEST)
    return y + b.reshape(1, -1, 1, 1, 1)


def reduction_encoder_ref(x, params):
    w, b = params["p1_0"]
    h1 = jax.nn.sigmoid(_conv3d_ref(x, w, b, (0, 0, 0)))
    w, b = params["p1_1"]
    p1 = jax.nn.relu(_conv3d_ref(h1, w, b, (2, 2, 2)))
    w, b = params["p2_0"]
    p2 = jax.nn.relu(_conv3d_ref(x, w, b, (0, 0, 0)))
    w, b = params["p3_0"]
    h3 = jax.nn.relu(_conv3d_ref(x, w, b, (2, 2, 2)))
    w, b = params["p3_1"]
    h3 = jax.nn.relu(_conv3d_ref(h3, w, b, (0, 0, 0)))
    w, b = params["p3_2"]
    h3 = jax.nn.relu(_conv3d_ref(h3, w, b, (0, 0, 0)))
    w, b = params["p3_3"]
    p3 = jax.nn.relu(_conv3d_ref(h3, w, b, (0, 0, 0)))
    return jnp.concatenate([p1, p2, p3], axis=1)


if __name__ == "__main__":
    # Small shapes consistent with the module: batch=2, in-channels=4, 8^3 vol.
    N, CIN, D, H, W = 2, 4, 8, 8, 8
    C1, C2, C3 = (4, 8), 8, (4, 4, 4, 8)

    key = jax.random.PRNGKey(0)
    kx, kp = jax.random.split(key)
    x = jax.random.normal(kx, (N, CIN, D, H, W), jnp.float32)   # PyTorch NCDHW
    params = init_reduction_encoder(kp, CIN, C1, C2, C3)

    # Pack weights ONCE (hoisted out of the steady-state forward path).
    packed, meta = pack_reduction_encoder_params(params)

    fwd = jax.jit(functools.partial(reduction_encoder_forward, meta=meta))
    out = jax.block_until_ready(fwd(x, packed))

    expected = (N, C1[1] + C2 + C3[3], D, H, W)                 # (2, 24, 8, 8, 8)
    assert out.shape == expected, (out.shape, expected)
    assert out.dtype == jnp.float32

    # Validate against a pure-JAX (XLA conv, HIGHEST precision) reference.
    ref = jax.block_until_ready(jax.jit(reduction_encoder_ref)(x, params))
    err = jnp.abs(out - ref)
    max_err = float(jnp.max(err))
    rms_err = float(jnp.sqrt(jnp.mean(err * err)))
    # MXU operands are bf16 (expected max ~5e-3, RMS ~1e-3); any packing or
    # tap-offset regression shows up as O(0.1 .. 1) errors, far above both.
    assert max_err < 2e-2, f"max abs error vs reference: {max_err}"
    assert rms_err < 5e-3, f"rms error vs reference: {rms_err}"
    print("KERNEL_OK")
</pallas_src>

<mosaic_0001>
module attributes {stable_mosaic.version = 11 : i64} {
  func.func @_reduction_encoder_kernel(%arg0: i32, %arg1: memref<1x8x1792xf32, #tpu.memory_space<vmem>>, %arg2: memref<1x1792xf32, #tpu.memory_space<vmem>>, %arg3: memref<24x8xf32, #tpu.memory_space<vmem>>, %arg4: memref<64x1000xbf16, #tpu.memory_space<vmem>>, %arg5: memref<56x1xf32, #tpu.memory_space<vmem>>, %arg6: memref<1x24x1152xf32, #tpu.memory_space<vmem>>, %arg7: memref<8x1792xf32, #tpu.memory_space<vmem>>, %arg8: memref<8x1792xf32, #tpu.memory_space<vmem>>, %arg9: memref<8x1776xf32, #tpu.memory_space<vmem>>, %arg10: memref<8x1728xf32, #tpu.memory_space<vmem>>, %arg11: memref<40x1776xbf16, #tpu.memory_space<vmem>>, %arg12: memref<40x1776xbf16, #tpu.memory_space<vmem>>, %arg13: memref<40x1728xbf16, #tpu.memory_space<vmem>>, %arg14: memref<40x1152xbf16, #tpu.memory_space<vmem>>) attributes {dimension_semantics = [#tpu.dimension_semantics<parallel>], iteration_bounds = array<i64: 2>, scalar_prefetch = 0 : i64, scratch_operands = 8 : i64, tpu.core_type = #tpu.core_type<tc>, window_params = [{transform_indices = @transform_0, window_bounds = array<i64: 1, 8, 1792>}, {pipeline_mode = #tpu.pipeline_mode<synchronous>, transform_indices = @transform_1, window_bounds = array<i64: 1, 1792>}, {pipeline_mode = #tpu.pipeline_mode<synchronous>, transform_indices = @transform_2, window_bounds = array<i64: 24, 8>}, {pipeline_mode = #tpu.pipeline_mode<synchronous>, transform_indices = @transform_3, window_bounds = array<i64: 64, 1000>}, {pipeline_mode = #tpu.pipeline_mode<synchronous>, transform_indices = @transform_4, window_bounds = array<i64: 56, 1>}, {transform_indices = @transform_5, window_bounds = array<i64: 1, 24, 1152>}]} {
    %c0 = arith.constant 0 : index
    %c0_0 = arith.constant 0 : index
    %c0_1 = arith.constant 0 : index
    %0 = vector.load %arg1[%c0, %c0_0, %c0_1] : memref<1x8x1792xf32, #tpu.memory_space<vmem>>, vector<1x8x1792xf32>
    %1 = vector.shape_cast %0 : vector<1x8x1792xf32> to vector<8x1792xf32>
    %c0_2 = arith.constant 0 : index
    %c0_3 = arith.constant 0 : index
    %2 = vector.load %arg2[%c0_2, %c0_3] : memref<1x1792xf32, #tpu.memory_space<vmem>>, vector<1x1792xf32>
    %c0_4 = arith.constant 0 : index
    %c0_5 = arith.constant 0 : index
    %3 = vector.load %arg5[%c0_4, %c0_5] : memref<56x1xf32, #tpu.memory_space<vmem>>, vector<56x1xf32>
    %c0_6 = arith.constant 0 : index
    %c0_7 = arith.constant 0 : index
    %4 = vector.load %arg3[%c0_6, %c0_7] : memref<24x8xf32, #tpu.memory_space<vmem>>, vector<24x8xf32>
    %cst = arith.constant dense<0.000000e+00> : vector<24x1792xf32>
    %5 = tpu.matmul %4, %1, %cst {dimension_numbers = #tpu.dot_dimension_numbers<[1], [0], [0], [1], [0, 0, 1, 1], [], []>} : vector<24x8xf32>, vector<8x1792xf32>, vector<24x1792xf32> -> vector<24x1792xf32>
    %6 = vector.extract_strided_slice %3 {offsets = [0, 0], sizes = [24, 1], strides = [1, 1]} : vector<56x1xf32> to vector<24x1xf32>
    %7 = vector.broadcast %6 : vector<24x1xf32> to vector<24x1792xf32>
    %8 = arith.addf %5, %7 : vector<24x1792xf32>
    %9 = vector.extract_strided_slice %8 {offsets = [0, 0], sizes = [8, 1792], strides = [1, 1]} : vector<24x1792xf32> to vector<8x1792xf32>
    %10 = arith.negf %9 : vector<8x1792xf32>
    %11 = math.exp %10 : vector<8x1792xf32>
    %cst_8 = arith.constant 1.000000e+00 : f32
    %12 = vector.broadcast %cst_8 : f32 to vector<8x1792xf32>
    %13 = arith.addf %12, %11 : vector<8x1792xf32>
    %14 = arith.divf %12, %13 : vector<8x1792xf32>
    %15 = vector.broadcast %2 : vector<1x1792xf32> to vector<8x1792xf32>
    %16 = arith.mulf %15, %14 : vector<8x1792xf32>
    %c0_9 = arith.constant 0 : index
    %c0_10 = arith.constant 0 : index
    %17 = vector.load %arg7[%c0_9, %c0_10] : memref<8x1792xf32, #tpu.memory_space<vmem>>, vector<8x1792xf32>
    tpu.vector_store %arg7[%c0_9, %c0_10], %16 {strides = array<i32>} : memref<8x1792xf32, #tpu.memory_space<vmem>>, vector<8x1792xf32>,
    %18 = vector.extract_strided_slice %8 {offsets = [8, 0], sizes = [8, 1792], strides = [1, 1]} : vector<24x1792xf32> to vector<8x1792xf32>
    %19 = vector.extract_strided_slice %18 {offsets = [0, 314], sizes = [8, 1152], strides = [1, 1]} : vector<8x1792xf32> to vector<8x1152xf32>
    %cst_11 = arith.constant 0.000000e+00 : f32
    %20 = vector.broadcast %cst_11 : f32 to vector<8x1152xf32>
    %21 = arith.maximumf %19, %20 : vector<8x1152xf32>
    %c0_12 = arith.constant 0 : index
    %c8 = arith.constant 8 : index
    %c0_13 = arith.constant 0 : index
    %22 = vector.load %arg6[%c0_12, %c8, %c0_13] : memref<1x24x1152xf32, #tpu.memory_space<vmem>>, vector<1x8x1152xf32>
    %23 = vector.shape_cast %22 : vector<1x8x1152xf32> to vector<8x1152xf32>
    %24 = vector.shape_cast %21 : vector<8x1152xf32> to vector<1x8x1152xf32>
    tpu.vector_store %arg6[%c0_12, %c8, %c0_13], %24 {strides = array<i32>} : memref<1x24x1152xf32, #tpu.memory_space<vmem>>, vector<1x8x1152xf32>,
    %25 = vector.extract_strided_slice %8 {offsets = [16, 0], sizes = [8, 1792], strides = [1, 1]} : vector<24x1792xf32> to vector<8x1792xf32>
    %cst_14 = arith.constant 0.000000e+00 : f32
    %26 = vector.broadcast %cst_14 : f32 to vector<8x1792xf32>
    %27 = arith.maximumf %25, %26 : vector<8x1792xf32>
    %c0_15 = arith.constant 0 : index
    %c0_16 = arith.constant 0 : index
    %28 = vector.load %arg8[%c0_15, %c0_16] : memref<8x1792xf32, #tpu.memory_space<vmem>>, vector<8x1792xf32>
    tpu.vector_store %arg8[%c0_15, %c0_16], %27 {strides = array<i32>} : memref<8x1792xf32, #tpu.memory_space<vmem>>, vector<8x1792xf32>,
    %c0_17 = arith.constant 0 : index
    %c0_18 = arith.constant 0 : index
    %29 = vector.load %arg7[%c0_17, %c0_18] : memref<8x1792xf32, #tpu.memory_space<vmem>>, vector<8x1776xf32>
    %c0_19 = arith.constant 0 : index
    %c1 = arith.constant 1 : index
    %30 = vector.load %arg7[%c0_19, %c1] : memref<8x1792xf32, #tpu.memory_space<vmem>>, vector<8x1776xf32>
    %c0_20 = arith.constant 0 : index
    %c2 = arith.constant 2 : index
    %31 = vector.load %arg7[%c0_20, %c2] : memref<8x1792xf32, #tpu.memory_space<vmem>>, vector<8x1776xf32>
    %c0_21 = arith.constant 0 : index
    %c3 = arith.constant 3 : index
    %32 = vector.load %arg7[%c0_21, %c3] : memref<8x1792xf32, #tpu.memory_space<vmem>>, vector<8x1776xf32>
    %c0_22 = arith.constant 0 : index
    %c4 = arith.constant 4 : index
    %33 = vector.load %arg7[%c0_22, %c4] : memref<8x1792xf32, #tpu.memory_space<vmem>>, vector<8x1776xf32>
    %34 = tpu.concatenate %29, %30, %31, %32, %33 in 0 : vector<8x1776xf32>, vector<8x1776xf32>, vector<8x1776xf32>, vector<8x1776xf32>, vector<8x1776xf32> -> vector<40x1776xf32>
    %35 = arith.truncf %34 : vector<40x1776xf32> to vector<40x1776xbf16>
    %c0_23 = arith.constant 0 : index
    %c0_24 = arith.constant 0 : index
    %36 = vector.load %arg11[%c0_23, %c0_24] : memref<40x1776xbf16, #tpu.memory_space<vmem>>, vector<40x1776xbf16>
    tpu.vector_store %arg11[%c0_23, %c0_24], %35 {strides = array<i32>} : memref<40x1776xbf16, #tpu.memory_space<vmem>>, vector<40x1776xbf16>,
    %c0_25 = arith.constant 0 : index
    %c0_26 = arith.constant 0 : index
    %37 = vector.load %arg4[%c0_25, %c0_26] : memref<64x1000xbf16, #tpu.memory_space<vmem>>, vector<8x1000xbf16>
    %cst_27 = arith.constant 0.000000e+00 : f32
    %38 = vector.broadcast %cst_27 : f32 to vector<8x1152xf32>
    %39 = vector.extract_strided_slice %37 {offsets = [0, 0], sizes = [8, 40], strides = [1, 1]} : vector<8x1000xbf16> to vector<8x40xbf16>
    %c0_28 = arith.constant 0 : index
    %c0_29 = arith.constant 0 : index
    %40 = vector.load %arg11[%c0_28, %c0_29] : memref<40x1776xbf16, #tpu.memory_space<vmem>>, vector<40x1152xbf16>
    %cst_30 = arith.constant dense<0.000000e+00> : vector<8x1152xf32>
    %41 = tpu.matmul %39, %40, %cst_30 {dimension_numbers = #tpu.dot_dimension_numbers<[1], [0], [0], [1], [0, 0, 1, 1], [], []>} : vector<8x40xbf16>, vector<40x1152xbf16>, vector<8x1152xf32> -> vector<8x1152xf32>
    %42 = arith.addf %38, %41 : vector<8x1152xf32>
    %43 = vector.extract_strided_slice %37 {offsets = [0, 40], sizes = [8, 40], strides = [1, 1]} : vector<8x1000xbf16> to vector<8x40xbf16>
    %c0_31 = arith.constant 0 : index
    %c12 = arith.constant 12 : index
    %44 = vector.load %arg11[%c0_31, %c12] : memref<40x1776xbf16, #tpu.memory_space<vmem>>, vector<40x1152xbf16>
    %cst_32 = arith.constant dense<0.000000e+00> : vector<8x1152xf32>
    %45 = tpu.matmul %43, %44, %cst_32 {dimension_numbers = #tpu.dot_dimension_numbers<[1], [0], [0], [1], [0, 0, 1, 1], [], []>} : vector<8x40xbf16>, vector<40x1152xbf16>, vector<8x1152xf32> -> vector<8x1152xf32>
    %46 = arith.addf %42, %45 : vector<8x1152xf32>
    %47 = vector.extract_strided_slice %37 {offsets = [0, 80], sizes = [8, 40], strides = [1, 1]} : vector<8x1000xbf16> to vector<8x40xbf16>
    %c0_33 = arith.constant 0 : index
    %c24 = arith.constant 24 : index
    %48 = vector.load %arg11[%c0_33, %c24] : memref<40x1776xbf16, #tpu.memory_space<vmem>>, vector<40x1152xbf16>
    %cst_34 = arith.constant dense<0.000000e+00> : vector<8x1152xf32>
    %49 = tpu.matmul %47, %48, %cst_34 {dimension_numbers = #tpu.dot_dimension_numbers<[1], [0], [0], [1], [0, 0, 1, 1], [], []>} : vector<8x40xbf16>, vector<40x1152xbf16>, vector<8x1152xf32> -> vector<8x1152xf32>
    %50 = arith.addf %46, %49 : vector<8x1152xf32>
    %51 = vector.extract_strided_slice %37 {offsets = [0, 120], sizes = [8, 40], strides = [1, 1]} : vector<8x1000xbf16> to vector<8x40xbf16>
    %c0_35 = arith.constant 0 : index
    %c36 = arith.constant 36 : index
    %52 = vector.load %arg11[%c0_35, %c36] : memref<40x1776xbf16, #tpu.memory_space<vmem>>, vector<40x1152xbf16>
    %cst_36 = arith.constant dense<0.000000e+00> : vector<8x1152xf32>
    %53 = tpu.matmul %51, %52, %cst_36 {dimension_numbers = #tpu.dot_dimension_numbers<[1], [0], [0], [1], [0, 0, 1, 1], [], []>} : vector<8x40xbf16>, vector<40x1152xbf16>, vector<8x1152xf32> -> vector<8x1152xf32>
    %54 = arith.addf %50, %53 : vector<8x1152xf32>
    %55 = vector.extract_strided_slice %37 {offsets = [0, 160], sizes = [8, 40], strides = [1, 1]} : vector<8x1000xbf16> to vector<8x40xbf16>
    %c0_37 = arith.constant 0 : index
    %c48 = arith.constant 48 : index
    %56 = vector.load %arg11[%c0_37, %c48] : memref<40x1776xbf16, #tpu.memory_space<vmem>>, vector<40x1152xbf16>
    %cst_38 = arith.constant dense<0.000000e+00> : vector<8x1152xf32>
    %57 = tpu.matmul %55, %56, %cst_38 {dimension_numbers = #tpu.dot_dimension_numbers<[1], [0], [0], [1], [0, 0, 1, 1], [], []>} : vector<8x40xbf16>, vector<40x1152xbf16>, vector<8x1152xf32> -> vector<8x1152xf32>
    %58 = arith.addf %54, %57 : vector<8x1152xf32>
    %59 = vector.extract_strided_slice %37 {offsets = [0, 200], sizes = [8, 40], strides = [1, 1]} : vector<8x1000xbf16> to vector<8x40xbf16>
    %c0_39 = arith.constant 0 : index
    %c144 = arith.constant 144 : index
    %60 = vector.load %arg11[%c0_39, %c144] : memref<40x1776xbf16, #tpu.memory_space<vmem>>, vector<40x1152xbf16>
    %cst_40 = arith.constant dense<0.000000e+00> : vector<8x1152xf32>
    %61 = tpu.matmul %59, %60, %cst_40 {dimension_numbers = #tpu.dot_dimension_numbers<[1], [0], [0], [1], [0, 0, 1, 1], [], []>} : vector<8x40xbf16>, vector<40x1152xbf16>, vector<8x1152xf32> -> vector<8x1152xf32>
    %62 = arith.addf %58, %61 : vector<8x1152xf32>
    %63 = vector.extract_strided_slice %37 {offsets = [0, 240], sizes = [8, 40], strides = [1, 1]} : vector<8x1000xbf16> to vector<8x40xbf16>
    %c0_41 = arith.constant 0 : index
    %c156 = arith.constant 156 : index
    %64 = vector.load %arg11[%c0_41, %c156] : memref<40x1776xbf16, #tpu.memory_space<vmem>>, vector<40x1152xbf16>
    %cst_42 = arith.constant dense<0.000000e+00> : vector<8x1152xf32>
    %65 = tpu.matmul %63, %64, %cst_42 {dimension_numbers = #tpu.dot_dimension_numbers<[1], [0], [0], [1], [0, 0, 1, 1], [], []>} : vector<8x40xbf16>, vector<40x1152xbf16>, vector<8x1152xf32> -> vector<8x1152xf32>
    %66 = arith.addf %62, %65 : vector<8x1152xf32>
    %67 = vector.extract_strided_slice %37 {offsets = [0, 280], sizes = [8, 40], strides = [1, 1]} : vector<8x1000xbf16> to vector<8x40xbf16>
    %c0_43 = arith.constant 0 : index
    %c168 = arith.constant 168 : index
    %68 = vector.load %arg11[%c0_43, %c168] : memref<40x1776xbf16, #tpu.memory_space<vmem>>, vector<40x1152xbf16>
    %cst_44 = arith.constant dense<0.000000e+00> : vector<8x1152xf32>
    %69 = tpu.matmul %67, %68, %cst_44 {dimension_numbers = #tpu.dot_dimension_numbers<[1], [0], [0], [1], [0, 0, 1, 1], [], []>} : vector<8x40xbf16>, vector<40x1152xbf16>, vector<8x1152xf32> -> vector<8x1152xf32>
    %70 = arith.addf %66, %69 : vector<8x1152xf32>
    %71 = vector.extract_strided_slice %37 {offsets = [0, 320], sizes = [8, 40], strides = [1, 1]} : vector<8x1000xbf16> to vector<8x40xbf16>
    %c0_45 = arith.constant 0 : index
    %c180 = arith.constant 180 : index
    %72 = vector.load %arg11[%c0_45, %c180] : memref<40x1776xbf16, #tpu.memory_space<vmem>>, vector<40x1152xbf16>
    %cst_46 = arith.constant dense<0.000000e+00> : vector<8x1152xf32>
    %73 = tpu.matmul %71, %72, %cst_46 {dimension_numbers = #tpu.dot_dimension_numbers<[1], [0], [0], [1], [0, 0, 1, 1], [], []>} : vector<8x40xbf16>, vector<40x1152xbf16>, vector<8x1152xf32> -> vector<8x1152xf32>
    %74 = arith.addf %70, %73 : vector<8x1152xf32>
    %75 = vector.extract_strided_slice %37 {offsets = [0, 360], sizes = [8, 40], strides = [1, 1]} : vector<8x1000xbf16> to vector<8x40xbf16>
    %c0_47 = arith.constant 0 : index
    %c192 = arith.constant 192 : index
    %76 = vector.load %arg11[%c0_47, %c192] : memref<40x1776xbf16, #tpu.memory_space<vmem>>, vector<40x1152xbf16>
    %cst_48 = arith.constant dense<0.000000e+00> : vector<8x1152xf32>
    %77 = tpu.matmul %75, %76, %cst_48 {dimension_numbers = #tpu.dot_dimension_numbers<[1], [0], [0], [1], [0, 0, 1, 1], [], []>} : vector<8x40xbf16>, vector<40x1152xbf16>, vector<8x1152xf32> -> vector<8x1152xf32>
    %78 = arith.addf %74, %77 : vector<8x1152xf32>
    %79 = vector.extract_strided_slice %37 {offsets = [0, 400], sizes = [8, 40], strides = [1, 1]} : vector<8x1000xbf16> to vector<8x40xbf16>
    %c0_49 = arith.constant 0 : index
    %c288 = arith.constant 288 : index
    %80 = vector.load %arg11[%c0_49, %c288] : memref<40x1776xbf16, #tpu.memory_space<vmem>>, vector<40x1152xbf16>
    %cst_50 = arith.constant dense<0.000000e+00> : vector<8x1152xf32>
    %81 = tpu.matmul %79, %80, %cst_50 {dimension_numbers = #tpu.dot_dimension_numbers<[1], [0], [0], [1], [0, 0, 1, 1], [], []>} : vector<8x40xbf16>, vector<40x1152xbf16>, vector<8x1152xf32> -> vector<8x1152xf32>
    %82 = arith.addf %78, %81 : vector<8x1152xf32>
    %83 = vector.extract_strided_slice %37 {offsets = [0, 440], sizes = [8, 40], strides = [1, 1]} : vector<8x1000xbf16> to vector<8x40xbf16>
    %c0_51 = arith.constant 0 : index
    %c300 = arith.constant 300 : index
    %84 = vector.load %arg11[%c0_51, %c300] : memref<40x1776xbf16, #tpu.memory_space<vmem>>, vector<40x1152xbf16>
    %cst_52 = arith.constant dense<0.000000e+00> : vector<8x1152xf32>
    %85 = tpu.matmul %83, %84, %cst_52 {dimension_numbers = #tpu.dot_dimension_numbers<[1], [0], [0], [1], [0, 0, 1, 1], [], []>} : vector<8x40xbf16>, vector<40x1152xbf16>, vector<8x1152xf32> -> vector<8x1152xf32>
    %86 = arith.addf %82, %85 : vector<8x1152xf32>
    %87 = vector.extract_strided_slice %37 {offsets = [0, 480], sizes = [8, 40], strides = [1, 1]} : vector<8x1000xbf16> to vector<8x40xbf16>
    %c0_53 = arith.constant 0 : index
    %c312 = arith.constant 312 : index
    %88 = vector.load %arg11[%c0_53, %c312] : memref<40x1776xbf16, #tpu.memory_space<vmem>>, vector<40x1152xbf16>
    %cst_54 = arith.constant dense<0.000000e+00> : vector<8x1152xf32>
    %89 = tpu.matmul %87, %88, %cst_54 {dimension_numbers = #tpu.dot_dimension_numbers<[1], [0], [0], [1], [0, 0, 1, 1], [], []>} : vector<8x40xbf16>, vector<40x1152xbf16>, vector<8x1152xf32> -> vector<8x1152xf32>
    %90 = arith.addf %86, %89 : vector<8x1152xf32>
    %91 = vector.extract_strided_slice %37 {offsets = [0, 520], sizes = [8, 40], strides = [1, 1]} : vector<8x1000xbf16> to vector<8x40xbf16>
    %c0_55 = arith.constant 0 : index
    %c324 = arith.constant 324 : index
    %92 = vector.load %arg11[%c0_55, %c324] : memref<40x1776xbf16, #tpu.memory_space<vmem>>, vector<40x1152xbf16>
    %cst_56 = arith.constant dense<0.000000e+00> : vector<8x1152xf32>
    %93 = tpu.matmul %91, %92, %cst_56 {dimension_numbers = #tpu.dot_dimension_numbers<[1], [0], [0], [1], [0, 0, 1, 1], [], []>} : vector<8x40xbf16>, vector<40x1152xbf16>, vector<8x1152xf32> -> vector<8x1152xf32>
    %94 = arith.addf %90, %93 : vector<8x1152xf32>
    %95 = vector.extract_strided_slice %37 {offsets = [0, 560], sizes = [8, 40], strides = [1, 1]} : vector<8x1000xbf16> to vector<8x40xbf16>
    %c0_57 = arith.constant 0 : index
    %c336 = arith.constant 336 : index
    %96 = vector.load %arg11[%c0_57, %c336] : memref<40x1776xbf16, #tpu.memory_space<vmem>>, vector<40x1152xbf16>
    %cst_58 = arith.constant dense<0.000000e+00> : vector<8x1152xf32>
    %97 = tpu.matmul %95, %96, %cst_58 {dimension_numbers = #tpu.dot_dimension_numbers<[1], [0], [0], [1], [0, 0, 1, 1], [], []>} : vector<8x40xbf16>, vector<40x1152xbf16>, vector<8x1152xf32> -> vector<8x1152xf32>
    %98 = arith.addf %94, %97 : vector<8x1152xf32>
    %99 = vector.extract_strided_slice %37 {offsets = [0, 600], sizes = [8, 40], strides = [1, 1]} : vector<8x1000xbf16> to vector<8x40xbf16>
    %c0_59 = arith.constant 0 : index
    %c432 = arith.constant 432 : index
    %100 = vector.load %arg11[%c0_59, %c432] : memref<40x1776xbf16, #tpu.memory_space<vmem>>, vector<40x1152xbf16>
    %cst_60 = arith.constant dense<0.000000e+00> : vector<8x1152xf32>
    %101 = tpu.matmul %99, %100, %cst_60 {dimension_numbers = #tpu.dot_dimension_numbers<[1], [0], [0], [1], [0, 0, 1, 1], [], []>} : vector<8x40xbf16>, vector<40x1152xbf16>, vector<8x1152xf32> -> vector<8x1152xf32>
    %102 = arith.addf %98, %101 : vector<8x1152xf32>
    %103 = vector.extract_strided_slice %37 {offsets = [0, 640], sizes = [8, 40], strides = [1, 1]} : vector<8x1000xbf16> to vector<8x40xbf16>
    %c0_61 = arith.constant 0 : index
    %c444 = arith.constant 444 : index
    %104 = vector.load %arg11[%c0_61, %c444] : memref<40x1776xbf16, #tpu.memory_space<vmem>>, vector<40x1152xbf16>
    %cst_62 = arith.constant dense<0.000000e+00> : vector<8x1152xf32>
    %105 = tpu.matmul %103, %104, %cst_62 {dimension_numbers = #tpu.dot_dimension_numbers<[1], [0], [0], [1], [0, 0, 1, 1], [], []>} : vector<8x40xbf16>, vector<40x1152xbf16>, vector<8x1152xf32> -> vector<8x1152xf32>
    %106 = arith.addf %102, %105 : vector<8x1152xf32>
    %107 = vector.extract_strided_slice %37 {offsets = [0, 680], sizes = [8, 40], strides = [1, 1]} : vector<8x1000xbf16> to vector<8x40xbf16>
    %c0_63 = arith.constant 0 : index
    %c456 = arith.constant 456 : index
    %108 = vector.load %arg11[%c0_63, %c456] : memref<40x1776xbf16, #tpu.memory_space<vmem>>, vector<40x1152xbf16>
    %cst_64 = arith.constant dense<0.000000e+00> : vector<8x1152xf32>
    %109 = tpu.matmul %107, %108, %cst_64 {dimension_numbers = #tpu.dot_dimension_numbers<[1], [0], [0], [1], [0, 0, 1, 1], [], []>} : vector<8x40xbf16>, vector<40x1152xbf16>, vector<8x1152xf32> -> vector<8x1152xf32>
    %110 = arith.addf %106, %109 : vector<8x1152xf32>
    %111 = vector.extract_strided_slice %37 {offsets = [0, 720], sizes = [8, 40], strides = [1, 1]} : vector<8x1000xbf16> to vector<8x40xbf16>
    %c0_65 = arith.constant 0 : index
    %c468 = arith.constant 468 : index
    %112 = vector.load %arg11[%c0_65, %c468] : memref<40x1776xbf16, #tpu.memory_space<vmem>>, vector<40x1152xbf16>
    %cst_66 = arith.constant dense<0.000000e+00> : vector<8x1152xf32>
    %113 = tpu.matmul %111, %112, %cst_66 {dimension_numbers = #tpu.dot_dimension_numbers<[1], [0], [0], [1], [0, 0, 1, 1], [], []>} : vector<8x40xbf16>, vector<40x1152xbf16>, vector<8x1152xf32> -> vector<8x1152xf32>
    %114 = arith.addf %110, %113 : vector<8x1152xf32>
    %115 = vector.extract_strided_slice %37 {offsets = [0, 760], sizes = [8, 40], strides = [1, 1]} : vector<8x1000xbf16> to vector<8x40xbf16>
    %c0_67 = arith.constant 0 : index
    %c480 = arith.constant 480 : index
    %116 = vector.load %arg11[%c0_67, %c480] : memref<40x1776xbf16, #tpu.memory_space<vmem>>, vector<40x1152xbf16>
    %cst_68 = arith.constant dense<0.000000e+00> : vector<8x1152xf32>
    %117 = tpu.matmul %115, %116, %cst_68 {dimension_numbers = #tpu.dot_dimension_numbers<[1], [0], [0], [1], [0, 0, 1, 1], [], []>} : vector<8x40xbf16>, vector<40x1152xbf16>, vector<8x1152xf32> -> vector<8x1152xf32>
    %118 = arith.addf %114, %117 : vector<8x1152xf32>
    %119 = vector.extract_strided_slice %37 {offsets = [0, 800], sizes = [8, 40], strides = [1, 1]} : vector<8x1000xbf16> to vector<8x40xbf16>
    %c0_69 = arith.constant 0 : index
    %c576 = arith.constant 576 : index
    %120 = vector.load %arg11[%c0_69, %c576] : memref<40x1776xbf16, #tpu.memory_space<vmem>>, vector<40x1152xbf16>
    %cst_70 = arith.constant dense<0.000000e+00> : vector<8x1152xf32>
    %121 = tpu.matmul %119, %120, %cst_70 {dimension_numbers = #tpu.dot_dimension_numbers<[1], [0], [0], [1], [0, 0, 1, 1], [], []>} : vector<8x40xbf16>, vector<40x1152xbf16>, vector<8x1152xf32> -> vector<8x1152xf32>
    %122 = arith.addf %118, %121 : vector<8x1152xf32>
    %123 = vector.extract_strided_slice %37 {offsets = [0, 840], sizes = [8, 40], strides = [1, 1]} : vector<8x1000xbf16> to vector<8x40xbf16>
    %c0_71 = arith.constant 0 : index
    %c588 = arith.constant 588 : index
    %124 = vector.load %arg11[%c0_71, %c588] : memref<40x1776xbf16, #tpu.memory_space<vmem>>, vector<40x1152xbf16>
    %cst_72 = arith.constant dense<0.000000e+00> : vector<8x1152xf32>
    %125 = tpu.matmul %123, %124, %cst_72 {dimension_numbers = #tpu.dot_dimension_numbers<[1], [0], [0], [1], [0, 0, 1, 1], [], []>} : vector<8x40xbf16>, vector<40x1152xbf16>, vector<8x1152xf32> -> vector<8x1152xf32>
    %126 = arith.addf %122, %125 : vector<8x1152xf32>
    %127 = vector.extract_strided_slice %37 {offsets = [0, 880], sizes = [8, 40], strides = [1, 1]} : vector<8x1000xbf16> to vector<8x40xbf16>
    %c0_73 = arith.constant 0 : index
    %c600 = arith.constant 600 : index
    %128 = vector.load %arg11[%c0_73, %c600] : memref<40x1776xbf16, #tpu.memory_space<vmem>>, vector<40x1152xbf16>
    %cst_74 = arith.constant dense<0.000000e+00> : vector<8x1152xf32>
    %129 = tpu.matmul %127, %128, %cst_74 {dimension_numbers = #tpu.dot_dimension_numbers<[1], [0], [0], [1], [0, 0, 1, 1], [], []>} : vector<8x40xbf16>, vector<40x1152xbf16>, vector<8x1152xf32> -> vector<8x1152xf32>
    %130 = arith.addf %126, %129 : vector<8x1152xf32>
    %131 = vector.extract_strided_slice %37 {offsets = [0, 920], sizes = [8, 40], strides = [1, 1]} : vector<8x1000xbf16> to vector<8x40xbf16>
    %c0_75 = arith.constant 0 : index
    %c612 = arith.constant 612 : index
    %132 = vector.load %arg11[%c0_75, %c612] : memref<40x1776xbf16, #tpu.memory_space<vmem>>, vector<40x1152xbf16>
    %cst_76 = arith.constant dense<0.000000e+00> : vector<8x1152xf32>
    %133 = tpu.matmul %131, %132, %cst_76 {dimension_numbers = #tpu.dot_dimension_numbers<[1], [0], [0], [1], [0, 0, 1, 1], [], []>} : vector<8x40xbf16>, vector<40x1152xbf16>, vector<8x1152xf32> -> vector<8x1152xf32>
    %134 = arith.addf %130, %133 : vector<8x1152xf32>
    %135 = vector.extract_strided_slice %37 {offsets = [0, 960], sizes = [8, 40], strides = [1, 1]} : vector<8x1000xbf16> to vector<8x40xbf16>
    %c0_77 = arith.constant 0 : index
    %c624 = arith.constant 624 : index
    %136 = vector.load %arg11[%c0_77, %c624] : memref<40x1776xbf16, #tpu.memory_space<vmem>>, vector<40x1152xbf16>
    %cst_78 = arith.constant dense<0.000000e+00> : vector<8x1152xf32>
    %137 = tpu.matmul %135, %136, %cst_78 {dimension_numbers = #tpu.dot_dimension_numbers<[1], [0], [0], [1], [0, 0, 1, 1], [], []>} : vector<8x40xbf16>, vector<40x1152xbf16>, vector<8x1152xf32> -> vector<8x1152xf32>
    %138 = arith.addf %134, %137 : vector<8x1152xf32>
    %139 = vector.extract_strided_slice %3 {offsets = [24, 0], sizes = [8, 1], strides = [1, 1]} : vector<56x1xf32> to vector<8x1xf32>
    %140 = vector.broadcast %139 : vector<8x1xf32> to vector<8x1152xf32>
    %141 = arith.addf %138, %140 : vector<8x1152xf32>
    %cst_79 = arith.constant 0.000000e+00 : f32
    %142 = vector.broadcast %cst_79 : f32 to vector<8x1152xf32>
    %143 = arith.maximumf %141, %142 : vector<8x1152xf32>
    %c0_80 = arith.constant 0 : index
    %c0_81 = arith.constant 0 : index
    %c0_82 = arith.constant 0 : index
    %144 = vector.load %arg6[%c0_80, %c0_81, %c0_82] : memref<1x24x1152xf32, #tpu.memory_space<vmem>>, vector<1x8x1152xf32>
    %145 = vector.shape_cast %144 : vector<1x8x1152xf32> to vector<8x1152xf32>
    %146 = vector.shape_cast %143 : vector<8x1152xf32> to vector<1x8x1152xf32>
    tpu.vector_store %arg6[%c0_80, %c0_81, %c0_82], %146 {strides = array<i32>} : memref<1x24x1152xf32, #tpu.memory_space<vmem>>, vector<1x8x1152xf32>,
    %c0_83 = arith.constant 0 : index
    %c0_84 = arith.constant 0 : index
    %147 = vector.load %arg8[%c0_83, %c0_84] : memref<8x1792xf32, #tpu.memory_space<vmem>>, vector<8x1776xf32>
    %c0_85 = arith.constant 0 : index
    %c1_86 = arith.constant 1 : index
    %148 = vector.load %arg8[%c0_85, %c1_86] : memref<8x1792xf32, #tpu.memory_space<vmem>>, vector<8x1776xf32>
    %c0_87 = arith.constant 0 : index
    %c2_88 = arith.constant 2 : index
    %149 = vector.load %arg8[%c0_87, %c2_88] : memref<8x1792xf32, #tpu.memory_space<vmem>>, vector<8x1776xf32>
    %c0_89 = arith.constant 0 : index
    %c3_90 = arith.constant 3 : index
    %150 = vector.load %arg8[%c0_89, %c3_90] : memref<8x1792xf32, #tpu.memory_space<vmem>>, vector<8x1776xf32>
    %c0_91 = arith.constant 0 : index
    %c4_92 = arith.constant 4 : index
    %151 = vector.load %arg8[%c0_91, %c4_92] : memref<8x1792xf32, #tpu.memory_space<vmem>>, vector<8x1776xf32>
    %152 = tpu.concatenate %147, %148, %149, %150, %151 in 0 : vector<8x1776xf32>, vector<8x1776xf32>, vector<8x1776xf32>, vector<8x1776xf32>, vector<8x1776xf32> -> vector<40x1776xf32>
    %153 = arith.truncf %152 : vector<40x1776xf32> to vector<40x1776xbf16>
    %c0_93 = arith.constant 0 : index
    %c0_94 = arith.constant 0 : index
    %154 = vector.load %arg12[%c0_93, %c0_94] : memref<40x1776xbf16, #tpu.memory_space<vmem>>, vector<40x1776xbf16>
    tpu.vector_store %arg12[%c0_93, %c0_94], %153 {strides = array<i32>} : memref<40x1776xbf16, #tpu.memory_space<vmem>>, vector<40x1776xbf16>,
    %c16 = arith.constant 16 : index
    %c0_95 = arith.constant 0 : index
    %155 = vector.load %arg4[%c16, %c0_95] : memref<64x1000xbf16, #tpu.memory_space<vmem>>, vector<8x40xbf16>
    %c0_96 = arith.constant 0 : index
    %c0_97 = arith.constant 0 : index
    %156 = vector.load %arg12[%c0_96, %c0_97] : memref<40x1776xbf16, #tpu.memory_space<vmem>>, vector<40x1776xbf16>
    %cst_98 = arith.constant dense<0.000000e+00> : vector<8x1776xf32>
    %157 = tpu.matmul %155, %156, %cst_98 {dimension_numbers = #tpu.dot_dimension_numbers<[1], [0], [0], [1], [0, 0, 1, 1], [], []>} : vector<8x40xbf16>, vector<40x1776xbf16>, vector<8x1776xf32> -> vector<8x1776xf32>
    %158 = vector.extract_strided_slice %3 {offsets = [32, 0], sizes = [8, 1], strides = [1, 1]} : vector<56x1xf32> to vector<8x1xf32>
    %159 = vector.broadcast %158 : vector<8x1xf32> to vector<8x1776xf32>
    %160 = arith.addf %157, %159 : vector<8x1776xf32>
    %cst_99 = arith.constant 0.000000e+00 : f32
    %161 = vector.broadcast %cst_99 : f32 to vector<8x1776xf32>
    %162 = arith.maximumf %160, %161 : vector<8x1776xf32>
    %c0_100 = arith.constant 0 : index
    %c0_101 = arith.constant 0 : index
    %163 = vector.load %arg9[%c0_100, %c0_101] : memref<8x1776xf32, #tpu.memory_space<vmem>>, vector<8x1776xf32>
    tpu.vector_store %arg9[%c0_100, %c0_101], %162 {strides = array<i32>} : memref<8x1776xf32, #tpu.memory_space<vmem>>, vector<8x1776xf32>,
    %c0_102 = arith.constant 0 : index
    %c0_103 = arith.constant 0 : index
    %164 = vector.load %arg9[%c0_102, %c0_103] : memref<8x1776xf32, #tpu.memory_space<vmem>>, vector<8x1728xf32>
    %c0_104 = arith.constant 0 : index
    %c12_105 = arith.constant 12 : index
    %165 = vector.load %arg9[%c0_104, %c12_105] : memref<8x1776xf32, #tpu.memory_space<vmem>>, vector<8x1728xf32>
    %c0_106 = arith.constant 0 : index
    %c24_107 = arith.constant 24 : index
    %166 = vector.load %arg9[%c0_106, %c24_107] : memref<8x1776xf32, #tpu.memory_space<vmem>>, vector<8x1728xf32>
    %c0_108 = arith.constant 0 : index
    %c36_109 = arith.constant 36 : index
    %167 = vector.load %arg9[%c0_108, %c36_109] : memref<8x1776xf32, #tpu.memory_space<vmem>>, vector<8x1728xf32>
    %c0_110 = arith.constant 0 : index
    %c48_111 = arith.constant 48 : index
    %168 = vector.load %arg9[%c0_110, %c48_111] : memref<8x1776xf32, #tpu.memory_space<vmem>>, vector<8x1728xf32>
    %169 = tpu.concatenate %164, %165, %166, %167, %168 in 0 : vector<8x1728xf32>, vector<8x1728xf32>, vector<8x1728xf32>, vector<8x1728xf32>, vector<8x1728xf32> -> vector<40x1728xf32>
    %170 = arith.truncf %169 : vector<40x1728xf32> to vector<40x1728xbf16>
    %c0_112 = arith.constant 0 : index
    %c0_113 = arith.constant 0 : index
    %171 = vector.load %arg13[%c0_112, %c0_113] : memref<40x1728xbf16, #tpu.memory_space<vmem>>, vector<40x1728xbf16>
    tpu.vector_store %arg13[%c0_112, %c0_113], %170 {strides = array<i32>} : memref<40x1728xbf16, #tpu.memory_space<vmem>>, vector<40x1728xbf16>,
    %c32 = arith.constant 32 : index
    %c0_114 = arith.constant 0 : index
    %172 = vector.load %arg4[%c32, %c0_114] : memref<64x1000xbf16, #tpu.memory_space<vmem>>, vector<8x40xbf16>
    %c0_115 = arith.constant 0 : index
    %c0_116 = arith.constant 0 : index
    %173 = vector.load %arg13[%c0_115, %c0_116] : memref<40x1728xbf16, #tpu.memory_space<vmem>>, vector<40x1728xbf16>
    %cst_117 = arith.constant dense<0.000000e+00> : vector<8x1728xf32>
    %174 = tpu.matmul %172, %173, %cst_117 {dimension_numbers = #tpu.dot_dimension_numbers<[1], [0], [0], [1], [0, 0, 1, 1], [], []>} : vector<8x40xbf16>, vector<40x1728xbf16>, vector<8x1728xf32> -> vector<8x1728xf32>
    %175 = vector.extract_strided_slice %3 {offsets = [40, 0], sizes = [8, 1], strides = [1, 1]} : vector<56x1xf32> to vector<8x1xf32>
    %176 = vector.broadcast %175 : vector<8x1xf32> to vector<8x1728xf32>
    %177 = arith.addf %174, %176 : vector<8x1728xf32>
    %cst_118 = arith.constant 0.000000e+00 : f32
    %178 = vector.broadcast %cst_118 : f32 to vector<8x1728xf32>
    %179 = arith.maximumf %177, %178 : vector<8x1728xf32>
    %c0_119 = arith.constant 0 : index
    %c0_120 = arith.constant 0 : index
    %180 = vector.load %arg10[%c0_119, %c0_120] : memref<8x1728xf32, #tpu.memory_space<vmem>>, vector<8x1728xf32>
    tpu.vector_store %arg10[%c0_119, %c0_120], %179 {strides = array<i32>} : memref<8x1728xf32, #tpu.memory_space<vmem>>, vector<8x1728xf32>,
    %c0_121 = arith.constant 0 : index
    %c0_122 = arith.constant 0 : index
    %181 = vector.load %arg10[%c0_121, %c0_122] : memref<8x1728xf32, #tpu.memory_space<vmem>>, vector<8x1152xf32>
    %c0_123 = arith.constant 0 : index
    %c144_124 = arith.constant 144 : index
    %182 = vector.load %arg10[%c0_123, %c144_124] : memref<8x1728xf32, #tpu.memory_space<vmem>>, vector<8x1152xf32>
    %c0_125 = arith.constant 0 : index
    %c288_126 = arith.constant 288 : index
    %183 = vector.load %arg10[%c0_125, %c288_126] : memref<8x1728xf32, #tpu.memory_space<vmem>>, vector<8x1152xf32>
    %c0_127 = arith.constant 0 : index
    %c432_128 = arith.constant 432 : index
    %184 = vector.load %arg10[%c0_127, %c432_128] : memref<8x1728xf32, #tpu.memory_space<vmem>>, vector<8x1152xf32>
    %c0_129 = arith.constant 0 : index
    %c576_130 = arith.constant 576 : index
    %185 = vector.load %arg10[%c0_129, %c576_130] : memref<8x1728xf32, #tpu.memory_space<vmem>>, vector<8x1152xf32>
    %186 = tpu.concatenate %181, %182, %183, %184, %185 in 0 : vector<8x1152xf32>, vector<8x1152xf32>, vector<8x1152xf32>, vector<8x1152xf32>, vector<8x1152xf32> -> vector<40x1152xf32>
    %187 = arith.truncf %186 : vector<40x1152xf32> to vector<40x1152xbf16>
    %c0_131 = arith.constant 0 : index
    %c0_132 = arith.constant 0 : index
    %188 = vector.load %arg14[%c0_131, %c0_132] : memref<40x1152xbf16, #tpu.memory_space<vmem>>, vector<40x1152xbf16>
    tpu.vector_store %arg14[%c0_131, %c0_132], %187 {strides = array<i32>} : memref<40x1152xbf16, #tpu.memory_space<vmem>>, vector<40x1152xbf16>,
    %c48_133 = arith.constant 48 : index
    %c0_134 = arith.constant 0 : index
    %189 = vector.load %arg4[%c48_133, %c0_134] : memref<64x1000xbf16, #tpu.memory_space<vmem>>, vector<8x40xbf16>
    %c0_135 = arith.constant 0 : index
    %c0_136 = arith.constant 0 : index
    %190 = vector.load %arg14[%c0_135, %c0_136] : memref<40x1152xbf16, #tpu.memory_space<vmem>>, vector<40x1152xbf16>
    %cst_137 = arith.constant dense<0.000000e+00> : vector<8x1152xf32>
    %191 = tpu.matmul %189, %190, %cst_137 {dimension_numbers = #tpu.dot_dimension_numbers<[1], [0], [0], [1], [0, 0, 1, 1], [], []>} : vector<8x40xbf16>, vector<40x1152xbf16>, vector<8x1152xf32> -> vector<8x1152xf32>
    %192 = vector.extract_strided_slice %3 {offsets = [48, 0], sizes = [8, 1], strides = [1, 1]} : vector<56x1xf32> to vector<8x1xf32>
    %193 = vector.broadcast %192 : vector<8x1xf32> to vector<8x1152xf32>
    %194 = arith.addf %191, %193 : vector<8x1152xf32>
    %cst_138 = arith.constant 0.000000e+00 : f32
    %195 = vector.broadcast %cst_138 : f32 to vector<8x1152xf32>
    %196 = arith.maximumf %194, %195 : vector<8x1152xf32>
    %c0_139 = arith.constant 0 : index
    %c16_140 = arith.constant 16 : index
    %c0_141 = arith.constant 0 : index
    %197 = vector.load %arg6[%c0_139, %c16_140, %c0_141] : memref<1x24x1152xf32, #tpu.memory_space<vmem>>, vector<1x8x1152xf32>
    %198 = vector.shape_cast %197 : vector<1x8x1152xf32> to vector<8x1152xf32>
    %199 = vector.shape_cast %196 : vector<8x1152xf32> to vector<1x8x1152xf32>
    tpu.vector_store %arg6[%c0_139, %c16_140, %c0_141], %199 {strides = array<i32>} : memref<1x24x1152xf32, #tpu.memory_space<vmem>>, vector<1x8x1152xf32>,
    return
  }
  func.func @transform_0(%arg0: i32) -> (i32, i32, i32) {
    %c0_i32 = arith.constant 0 : i32
    %c0_i32_0 = arith.constant 0 : i32
    %c0_i32_1 = arith.constant 0 : i32
    return %arg0, %c0_i32, %c0_i32_0 : i32, i32, i32
  }
  func.func @transform_1(%arg0: i32) -> (i32, i32) {
    %c0_i32 = arith.constant 0 : i32
    %c0_i32_0 = arith.constant 0 : i32
    %c0_i32_1 = arith.constant 0 : i32
    return %c0_i32, %c0_i32_0 : i32, i32
  }
  func.func @transform_2(%arg0: i32) -> (i32, i32) {
    %c0_i32 = arith.constant 0 : i32
    %c0_i32_0 = arith.constant 0 : i32
    %c0_i32_1 = arith.constant 0 : i32
    return %c0_i32, %c0_i32_0 : i32, i32
  }
  func.func @transform_3(%arg0: i32) -> (i32, i32) {
    %c0_i32 = arith.constant 0 : i32
    %c0_i32_0 = arith.constant 0 : i32
    %c0_i32_1 = arith.constant 0 : i32
    return %c0_i32, %c0_i32_0 : i32, i32
  }
  func.func @transform_4(%arg0: i32) -> (i32, i32) {
    %c0_i32 = arith.constant 0 : i32
    %c0_i32_0 = arith.constant 0 : i32
    %c0_i32_1 = arith.constant 0 : i32
    return %c0_i32, %c0_i32_0 : i32, i32
  }
  func.func @transform_5(%arg0: i32) -> (i32, i32, i32) {
    %c0_i32 = arith.constant 0 : i32
    %c0_i32_0 = arith.constant 0 : i32
    %c0_i32_1 = arith.constant 0 : i32
    return %arg0, %c0_i32, %c0_i32_0 : i32, i32, i32
  }
}

</mosaic_0001>

<bundles_post_ra>
// kernel: reduction_encoder_forward.1
= control target key start
LH: loop header
LB: loop body
LE: loop exit
PB: predicated region body
PF: predicated region fallthrough
CT: control target
= control target key end

     0   :  { %s16272_s18 = smov 0   ;;  %s22426_s0 = inlined_call_operand.vmem [shape: f32[2,8,1792], index: 0, kind: input, shape index: {}]   ;;  %s22427_s1 = inlined_call_operand.vmem [shape: f32[1,1792], index: 1, kind: input, shape index: {}]   ;;  %s22428_s2 = inlined_call_operand.vmem [shape: f32[24,8], index: 2, kind: input, shape index: {}]   ;;  %s22429_s3 = inlined_call_operand.vmem [shape: bf16[64,1000], index: 3, kind: input, shape index: {}]   ;;  %s22430_s4 = inlined_call_operand.vmem [shape: f32[56,1], index: 4, kind: input, shape index: {}]   ;;  %s22431_s5 = inlined_call_operand.vmem [shape: f32[2,24,1152], index: 5, kind: output, shape index: {}]  }
   0x1 LB: > { %s14037_s19 = sadd.s32 4294967295, %s16207_s18   ;;  %p14041_p0 = scmp.ge.s32.totalorder %s16207_s18, 1  ;;  %s16207_s18 = sphi %s16272_s18, %s15_s18  }
   0x2   : > { %p187_p1 = scmp.lt.s32.totalorder %s16207_s18, 3 }
   0x4   : > { %p188_p2 = pnand %p14041_p0, %p187_p1 }
   0x6   : > { %191 = sbr.rel (%p188_p2) target bundleno = 3033 (0xbd9), region = 40 }
   0xd   : > { %p215_p3 = scmp.lt.s32.totalorder %s14037_s19, 1  ;;  %v22432_v0 = vmov 0.0   ;;  %v242_v1 = vld [vmem:[%s22430_s4] sm:$0xff]  ;;  %v244_v2 = vld [vmem:[%s22430_s4 + $0x10] sm:$0xff]  ;;  %v22434_v3 = vmov 0   ;;  %v243_v4 = vld [vmem:[%s22430_s4 + $0x8] sm:$0xff]  ;;  %v940_v25 = vlaneseq }
   0xe   : > { %341 = vmatprep.mubr.f32.mxu0 %v22432_v0  ;;  %347 = vmatprep.mubr.f32.mxu1 %v22432_v0  ;;  %v16304_v5 = vld [vmem:[%s22428_s2] sm:$0xff]  ;;  %vm267_vm0 = vcmask 64512   ;;  %v16311_v8 = vld [vmem:[%s22428_s2 + $0x8] sm:$0xff]  ;;  %v251_v13 = vld [vmem:[%s22428_s2 + $0x10] sm:$0xff]  ;;  %s16211_s13 = smov 88   ;;  %s16212_s14 = smov 48  }
   0xf   : > { %s22910_s19 = smov (!%p215_p3, %s14037_s19), 1  ;;  %15284 = vset.pattern.permute.xlu0 %v22434_v3  ;;  %15285 = vset.pattern.permute.xlu1 %v22434_v3  ;;  %v1648_v22 = vld [vmem:[%s22429_s3] sm:$0xff]  ;;  %s16213_s15 = smov 8   ;;  %v16400_v29 = vshrl.u32 %v940_v25, 7  ;;  %v16458_v25 = vld [vmem:[%s22427_s1 + $0x8] sm:$0x3f] }
  0x10   : > { %254 = vperm.xlu0 %15284, %v242_v1   ;;  %264 = vperm.xlu1 %15285, %v244_v2   ;;  %s15241_s24 = smul.u32 112, %s22910_s19  ;;  %v14114_v23 = vcombine.low %v1648_v22, %v1648_v22  ;;  %v16389_v24 = vcombine.high %v1648_v22, %v1648_v22  ;;  %s16214_s16 = smov 96   ;;  %v16412_v44 = vld [vmem:[%s22427_s1] sm:$0xff]  ;;  %vm1616_vm1 = vcmask 1043456   ;;  %vm1617_vm2 = vcmask 916484  }
  0x11   : > { %s16215_s17 = smov 56   ;;  %v942_v39 = vsub.s32 0, %v16400_v29  ;;  %v946_v50 = vsub.s32 1, %v16400_v29  ;;  %v958_v51 = vsub.s32 4, %v16400_v29  ;;  %v962_v57 = vsub.s32 5, %v16400_v29  ;;  %s16216_s22 = smov 70   ;;  %vm16605_vm3 = vmor %vm1617_vm2, %vm1616_vm1 }
  0x12   : > { %s16299_s29 = scalar_lea.vmem %s22426_s0, %s15241_s24  ;;  %v950_v62 = vsub.s32 2, %v16400_v29  ;;  %s16217_s25 = smov 126   ;;  %vm1078_vm4 = vcmask 572416   ;;  %vm1246_vm5 = vcmask 1031168   ;;  %vm1190_vm6 = vcmask 1039360  }
  0x13   : > { %v227_v6 = vld [vmem:[%s16299_s29 + $0x8] sm:$0xff]  ;;  %v226_v7 = vld [vmem:[%s16299_s29] sm:$0xff]  ;;  %v229_v9 = vld [vmem:[%s16299_s29 + $0x18] sm:$0xff]  ;;  %v16423_v56 = vrot.slane %v16412_v44, %v942_v39  ;;  %v16448_v22 = vrot.slane %v16412_v44, %v958_v51  ;;  %s16218_s26 = smov 127   ;;  %s16219_s27 = smov 124   ;;  %vm1358_vm7 = vcmask 1014784  }
  0x14   : > { %259 = vperm.xlu0 %15284, %v243_v4   ;;  %277 = vmatprep.subr.mxu0 %v227_v6  ;;  %v231_v10 = vld [vmem:[%s16299_s29 + $0x28] sm:$0xff]  ;;  %v228_v11 = vld [vmem:[%s16299_s29 + $0x10] sm:$0xff]  ;;  %v230_v12 = vld [vmem:[%s16299_s29 + $0x20] sm:$0xff]  ;;  %s16220_s28 = smov 125   ;;  %vm1302_vm8 = vcmask 1022976   ;;  %s16222_s8 = smov 104  }
  0x15   : > { %15239 = vmatprep.subr.mxu1 %v227_v6  ;;  %278 = vmatpush1.msra.mxu0 %v226_v7  ;;  %v235_v14 = vld [vmem:[%s16299_s29 + $0x48] sm:$0xff]  ;;  %v234_v15 = vld [vmem:[%s16299_s29 + $0x40] sm:$0xff]  ;;  %v233_v16 = vld [vmem:[%s16299_s29 + $0x38] sm:$0xff]  ;;  %s16223_s9 = smov 92   ;;  %s16224_s10 = smov 80   ;;  %vm22567_vm9 = vcmask 949248  }
  0x16   : > { %15240 = vmatpush1.msra.mxu1 %v226_v7  ;;  %14044 = vmatmul.mubr.msk.f32.vlgmr.msra.gmra.mrb[0].mxu0 %vm267_vm0, %v16304_v5  ;;  %v239_v17 = vld [vmem:[%s16299_s29 + $0x68] sm:$0xff]  ;;  %v232_v18 = vld [vmem:[%s16299_s29 + $0x30] sm:$0xff]  ;;  %v237_v19 = vld [vmem:[%s16299_s29 + $0x58] sm:$0xff]  ;;  %s16225_s11 = smov 112   ;;  %s16226_s12 = smov 100   ;;  %vm1898_vm10 = vcmask 326656  }
  0x17   : > { %14045 = vmatmul.mubr.msk.f32.vlgmr.msra.gmra.mrb[0].mxu1 %vm267_vm0, %v16311_v8  ;;  %358 = vmatprep.subr.mxu1 %v229_v9  ;;  %v238_v20 = vld [vmem:[%s16299_s29 + $0x60] sm:$0xff]  ;;  %v236_v21 = vld [vmem:[%s16299_s29 + $0x50] sm:$0xff]  ;;  %s15242_s29 = smul.u32 216, %s22910_s19  ;;  %s16221_s19 = smov 116   ;;  %vm16227_vm11 = vmmov 0   ;;  %vm22565_vm12 = vcmask 850944  }
  0x18   : > { %441 = vmatprep.subr.mxu0 %v231_v10  ;;  %359 = vmatpush1.msra.mxu1 %v228_v11  ;;  %vm22560_vm13 = vcmask 752640   ;;  %s16230_s30 = smov 64   ;;  %vm3168_vm14 = vcmask 654336   ;;  %vm3649_vm15 = vcmask 916480   ;;  %s16231_s20 = smov 24   ;;  %vm4007_vm2 = vcmask 818176  }
  0x19   : > { %442 = vmatpush1.msra.mxu0 %v230_v12  ;;  %351 = vmatprep.mubr.f32.mxu1 %v22432_v0  ;;  %s16668_s7 = scalar_lea.vmem %s22431_s5, %s15242_s29  ;;  %s16229_s29 = smov 76  }
  0x1a   : > { %505 = vmatprep.mubr.f32.mxu0 %v22432_v0  ;;  %607 = vmatprep.subr.mxu0 %v235_v14  ;;  %s16232_s21 = smov 84   ;;  %s16233_s23 = smov 72  }
  0x1b   : > { %14046 = vmatmul.mubr.msk.f32.gmra.mrb[2].mxu1 %vm267_vm0, %v251_v13  ;;  %14050 = vmatmul.mubr.msk.f32.vlgmr.msra.gmra.mrb[2].mxu0 %vm267_vm0, %v16304_v5  ;;  %s16234_s6 = smov 32  }
  0x1c   : > { %422 = vmatprep.mubr.f32.mxu1 %v22432_v0  ;;  %608 = vmatpush1.msra.mxu0 %v234_v15  ;;  %v954_v15 = vsub.s32 3, %v16400_v29 }
  0x1d   : > { %511 = vmatprep.mubr.f32.mxu0 %v22432_v0  ;;  %524 = vmatprep.subr.mxu1 %v233_v16 }
  0x1e   : > { %773 = vmatprep.subr.mxu0 %v239_v17  ;;  %1685 = vrot.lane.b32.xlu1 %v14114_v23, %s16211_s13 }
  0x1f   : > { %14047 = vmatmul.mubr.msk.f32.vlgmr.msra.gmra.mrb[4].mxu1 %vm267_vm0, %v16304_v5  ;;  %14051 = vmatmul.mubr.msk.f32.gmra.mrb[4].mxu0 %vm267_vm0, %v16311_v8 }
  0x20   : > { %525 = vmatpush1.msra.mxu1 %v232_v18  ;;  %428 = vmatprep.mubr.f32.mxu1 %v22432_v0  ;;  %v16443_v18 = vrot.slane %v16412_v44, %v946_v50 }
  0x21   : > { %517 = vmatprep.mubr.f32.mxu0 %v22432_v0  ;;  %690 = vmatprep.subr.mxu1 %v237_v19 }
  0x22   : > { %2398 = vrot.lane.b32.xlu0 %v14114_v23, %s16212_s14  ;;  %2751 = vrot.lane.b32.xlu1 %v14114_v23, %s16213_s15  ;;  %v16453_v23 = vrot.slane %v16412_v44, %v962_v57 }
  0x23   : > { %14048 = vmatmul.mubr.msk.f32.gmra.mrb[6].mxu1 %vm267_vm0, %v16311_v8  ;;  %14052 = vmatmul.mubr.msk.f32.gmra.mrb[6].mxu0 %vm267_vm0, %v251_v13 }
  0x24   : > { %434 = vmatprep.mubr.f32.mxu1 %v22432_v0  ;;  %671 = vmatprep.mubr.f32.mxu0 %v22432_v0 }
  0x26   : > { %2753 = vrot.lane.b32.xlu0 %v16389_v24, %s16213_s15  ;;  %3106 = vrot.lane.b32.xlu1 %v16389_v24, %s16214_s16 }
  0x27   : > { %14049 = vmatmul.mubr.msk.f32.gmra.mrb[8].mxu1 %vm267_vm0, %v251_v13  ;;  %14056 = vmatmul.mubr.msk.f32.vlgmr.msra.gmra.mrb[8].mxu0 %vm267_vm0, %v16304_v5 }
  0x28   : > { %588 = vmatprep.mubr.f32.mxu1 %v22432_v0  ;;  %677 = vmatprep.mubr.f32.mxu0 %v22432_v0 }
  0x29   : > { %774 = vmatpush1.msra.mxu0 %v238_v20 }
  0x2a   : > { %3482 = vrot.lane.b32.xlu0 %v16389_v24, %s16215_s17 }
  0x2b   : > { %14053 = vmatmul.mubr.msk.f32.vlgmr.msra.gmra.mrb[10].mxu1 %vm267_vm0, %v16304_v5  ;;  %14057 = vmatmul.mubr.msk.f32.gmra.mrb[10].mxu0 %vm267_vm0, %v16311_v8 }
  0x2c   : > { %594 = vmatprep.mubr.f32.mxu1 %v22432_v0  ;;  %683 = vmatprep.mubr.f32.mxu0 %v22432_v0 }
  0x2d   : > { %691 = vmatpush1.msra.mxu1 %v236_v21 }
  0x2f   : > { %14054 = vmatmul.mubr.msk.f32.gmra.mrb[12].mxu1 %vm267_vm0, %v16311_v8  ;;  %14058 = vmatmul.mubr.msk.f32.gmra.mrb[12].mxu0 %vm267_vm0, %v251_v13 }
  0x30   : > { %600 = vmatprep.mubr.f32.mxu1 %v22432_v0  ;;  %837 = vmatprep.mubr.f32.mxu0 %v22432_v0 }
  0x33   : > { %14055 = vmatmul.mubr.msk.f32.gmra.mrb[14].mxu1 %vm267_vm0, %v251_v13  ;;  %14062 = vmatmul.mubr.msk.f32.vlgmr.msra.gmra.mrb[14].mxu0 %vm267_vm0, %v16304_v5 }
  0x34   : > { %754 = vmatprep.mubr.f32.mxu1 %v22432_v0  ;;  %843 = vmatprep.mubr.f32.mxu0 %v22432_v0 }
  0x37   : > { %14059 = vmatmul.mubr.msk.f32.vlgmr.msra.gmra.mrb[16].mxu1 %vm267_vm0, %v16304_v5  ;;  %14063 = vmatmul.mubr.msk.f32.gmra.mrb[16].mxu0 %vm267_vm0, %v16311_v8 }
  0x38   : > { %760 = vmatprep.mubr.f32.mxu1 %v22432_v0  ;;  %847 = vmatprep.mubr.f32.mxu0 %v22432_v0 }
  0x3b   : > { %14060 = vmatmul.mubr.msk.f32.gmra.mrb[18].mxu1 %vm267_vm0, %v16311_v8  ;;  %14064 = vmatmul.mubr.msk.f32.gmra.mrb[18].mxu0 %vm267_vm0, %v251_v13 }
  0x3c   : > { %766 = vmatprep.mubr.f32.mxu1 %v22432_v0  ;;  %2002 = vmatprep.mubr.bf16.mxu0 %v22434_v3 }
  0x3f   : > { %14061 = vmatmul.mubr.msk.f32.gmra.mrb[20].mxu1 %vm267_vm0, %v251_v13 }
  0x40   : > { %1961 = vmatprep.mubr.bf16.mxu1 %v22434_v3 }
  0x8f   : > { %v16398_v26 = vpop.permute.xlu0 %254  ;;  %v16404_v34 = vpop.permute.xlu1 %264 }
  0x93   : > { %v16416_v47 = vpop.permute.xlu0 %259 }
  0xe9   : > { %v343_v27 = vpop.f32.mrb[0].mxu0 }
  0xea   : > { %v349_v28 = vpop.f32.mrb[0].mxu1  ;;  %v344_v30 = vadd.f32 %v343_v27, %v16398_v26  ;;  %v345_v31 = vpop.f32.mrb[1].mxu0 }
  0xeb   : > { %v350_v32 = vpop.f32.mrb[1].mxu1  ;;  %v346_v33 = vadd.f32 %v345_v31, %v16398_v26 }
  0xec   : > { %v14065_v35 = vmul.f32 -1.442695, %v344_v30 }
  0xed   : > { %v14066_v36 = vmul.f32 -1.442695, %v346_v33 }
  0xee   : > { %v353_v37 = vpop.f32.mrb[2].mxu1  ;;  %v507_v38 = vpop.f32.mrb[2].mxu0  ;;  %15951 = vpow2.f32 %v14065_v35  ;;  %v16463_v35 = vrot.slane %v16412_v44, %v950_v62 }
  0xef   : > { %v508_v40 = vadd.f32 %v507_v38, %v16398_v26  ;;  %v354_v41 = vadd.f32 %v353_v37, %v16404_v34  ;;  %v355_v42 = vpop.f32.mrb[3].mxu1  ;;  %v509_v43 = vpop.f32.mrb[3].mxu0  ;;  %15953 = vpow2.f32 %v14066_v36 }
  0xf0   : > { %v356_v45 = vadd.f32 %v355_v42, %v16404_v34  ;;  %v510_v46 = vadd.f32 %v509_v43, %v16398_v26  ;;  %v16473_v42 = vrot.slane %v16412_v44, %v954_v15 }
  0xf1   : > { %v14069_v48 = vmul.f32 -1.442695, %v508_v40  ;;  %v1106_v49 = vmax.f32 %v354_v41, 0.0 }
  0xf2   : > { %v1107_v52 = vmax.f32 %v356_v45, 0.0  ;;  %v14070_v53 = vmul.f32 -1.442695, %v510_v46  ;;  %v424_v54 = vpop.f32.mrb[4].mxu1  ;;  %v513_v55 = vpop.f32.mrb[4].mxu0 }
  0xf3   : > { %15955 = vpow2.f32 %v14069_v48  ;;  %v425_v58 = vadd.f32 %v424_v54, %v16398_v26  ;;  %v514_v59 = vadd.f32 %v513_v55, %v16416_v47  ;;  %v426_v60 = vpop.f32.mrb[5].mxu1  ;;  %v515_v61 = vpop.f32.mrb[5].mxu0 }
  0xf4   : > { %v14780_v63 = vpack.c.bf16 %v1107_v52, %v1106_v49  ;;  %15957 = vpow2.f32 %v14070_v53  ;;  %v427_v1 = vadd.f32 %v426_v60, %v16398_v26  ;;  %v516_v2 = vadd.f32 %v515_v61, %v16416_v47 }
  0xf5   : > { %v14067_v4 = vmul.f32 -1.442695, %v425_v58  ;;  %v1040_v5 = vmax.f32 %v514_v59, 0.0  ;;  %v16431_v6 = vpack.i.bf16 %v1107_v52, %v1106_v49  ;;  %v16482_v53 = vrot.slane %v16458_v25, %v942_v39 }
  0xf6   : > { %11528 = vst [vmem:[#allocation7] sm:$0xff] %v14780_v63  ;;  %v14068_v7 = vmul.f32 -1.442695, %v427_v1  ;;  %v430_v8 = vpop.f32.mrb[6].mxu1  ;;  %v519_v9 = vpop.f32.mrb[6].mxu0  ;;  %v1041_v10 = vmax.f32 %v516_v2, 0.0 }
  0xf7   : > { %22568 = vst [vmem:[#allocation10_spill] sm:$0xff] %v16431_v6  ;;  %15959 = vpow2.f32 %v14067_v4  ;;  %v431_v11 = vadd.f32 %v430_v8, %v16416_v47  ;;  %v520_v12 = vadd.f32 %v519_v9, %v16404_v34  ;;  %v432_v13 = vpop.f32.mrb[7].mxu1  ;;  %v521_v14 = vpop.f32.mrb[7].mxu0  ;;  %1062 = vrot.lane.b32.xlu1 %v1040_v5, %s16216_s22 }
  0xf8   : > { %15961 = vpow2.f32 %v14068_v7  ;;  %v433_v16 = vadd.f32 %v432_v13, %v16416_v47  ;;  %v522_v17 = vadd.f32 %v521_v14, %v16404_v34  ;;  %1064 = vrot.lane.b32.xlu0 %v1041_v10, %s16216_s22  ;;  %v15952_v19 = vpop.eup %15951  ;;  %v16493_v13 = vrot.slane %v16458_v25, %v946_v50 }
  0xf9   : > { %v1110_v20 = vmax.f32 %v520_v12, 0.0  ;;  %v1038_v21 = vmax.f32 %v431_v11, 0.0  ;;  %v15954_v27 = vpop.eup %15953  ;;  %v896_v28 = vadd.f32 1.0, %v15952_v19 }
  0xfa   : > { %v1111_v30 = vmax.f32 %v522_v17, 0.0  ;;  %v436_v31 = vpop.f32.mrb[8].mxu1  ;;  %v673_v32 = vpop.f32.mrb[8].mxu0  ;;  %v1039_v33 = vmax.f32 %v433_v16, 0.0  ;;  %v897_v36 = vadd.f32 1.0, %v15954_v27 }
  0xfb   : > { %v16466_v37 = vadd.f32 %v436_v31, %v16404_v34  ;;  %v674_v38 = vadd.f32 %v673_v32, %v16398_v26  ;;  %v438_v40 = vpop.f32.mrb[9].mxu1  ;;  %v675_v41 = vpop.f32.mrb[9].mxu0  ;;  %1058 = vrot.lane.b32.xlu1 %v1038_v21, %s16216_s22  ;;  %15963 = vrcp.f32 %v896_v28 }
  0xfc   : > { %v14782_v43 = vpack.c.bf16 %v1111_v30, %v1110_v20  ;;  %v439_v45 = vadd.f32 %v438_v40, %v16404_v34  ;;  %v676_v46 = vadd.f32 %v675_v41, %v16398_v26  ;;  %1060 = vrot.lane.b32.xlu0 %v1039_v33, %s16216_s22  ;;  %15965 = vrcp.f32 %v897_v36 }
  0xfd   : > { %v15956_v48 = vpop.eup %15955  ;;  %v1108_v49 = vmax.f32 %v16466_v37, 0.0  ;;  %v14073_v52 = vmul.f32 -1.442695, %v674_v38  ;;  %v16484_v63 = vpack.i.bf16 %v1111_v30, %v1110_v20  ;;  %v966_v36 = vsub.s32 6, %v16400_v29 }
  0xfe   : > { %v15958_v54 = vpop.eup %15957  ;;  %v900_v55 = vadd.f32 1.0, %v15956_v48  ;;  %11530 = vst [vmem:[#allocation7 + $0x10] sm:$0xff] %v14782_v43  ;;  %v1109_v58 = vmax.f32 %v439_v45, 0.0  ;;  %v14074_v59 = vmul.f32 -1.442695, %v676_v46  ;;  %v590_v60 = vpop.f32.mrb[10].mxu1 }
  0xff   : > { %v679_v61 = vpop.f32.mrb[10].mxu0  ;;  %22569 = vst [vmem:[#allocation11_spill] sm:$0xff] %v16484_v63  ;;  %v901_v1 = vadd.f32 1.0, %v15958_v54  ;;  %15967 = vpow2.f32 %v14073_v52  ;;  %v591_v2 = vadd.f32 %v590_v60, %v16398_v26  ;;  %v592_v5 = vpop.f32.mrb[11].mxu1  ;;  %v970_v40 = vsub.s32 7, %v16400_v29 }
 0x100   : > { %v680_v4 = vadd.f32 %v679_v61, %v16416_v47  ;;  %v681_v7 = vpop.f32.mrb[11].mxu0  ;;  %15969 = vrcp.f32 %v900_v55  ;;  %v14781_v39 = vpack.c.bf16 %v1109_v58, %v1108_v49  ;;  %v593_v8 = vadd.f32 %v592_v5, %v16398_v26  ;;  %v16652_v29 = vpop.permute.xlu1 %1685 }
 0x101   : > { %v682_v9 = vadd.f32 %v681_v7, %v16416_v47  ;;  %v15960_v10 = vpop.eup %15959  ;;  %15971 = vrcp.f32 %v901_v1  ;;  %v14071_v11 = vmul.f32 -1.442695, %v591_v2  ;;  %v16509_v52 = vpack.i.bf16 %v1109_v58, %v1108_v49 }
 0x102   : > { %v1044_v12 = vmax.f32 %v680_v4, 0.0  ;;  %v15962_v14 = vpop.eup %15961  ;;  %v898_v16 = vadd.f32 1.0, %v15960_v10  ;;  %11529 = vst [vmem:[#allocation7 + $0x8] sm:$0xff] %v14781_v39  ;;  %15973 = vpow2.f32 %v14074_v59  ;;  %v14072_v17 = vmul.f32 -1.442695, %v593_v8  ;;  %v596_v19 = vpop.f32.mrb[12].mxu1 }
 0x103   : > { %v685_v20 = vpop.f32.mrb[12].mxu0  ;;  %v1045_v21 = vmax.f32 %v682_v9, 0.0  ;;  %v899_v27 = vadd.f32 1.0, %v15962_v14  ;;  %15975 = vpow2.f32 %v14071_v11  ;;  %v597_v28 = vadd.f32 %v596_v19, %v16416_v47  ;;  %v598_v30 = vpop.f32.mrb[13].mxu1  ;;  %22570 = vst [vmem:[#allocation12_spill] sm:$0xff] %v16509_v52 }
 0x104   : > { %1070 = vrot.lane.b32.xlu1 %v1044_v12, %s16216_s22  ;;  %v16498_v31 = vadd.f32 %v685_v20, %v16404_v34  ;;  %v687_v50 = vpop.f32.mrb[13].mxu0  ;;  %15977 = vrcp.f32 %v898_v16  ;;  %v599_v32 = vadd.f32 %v598_v30, %v16416_v47 }
 0x105   : > { %1072 = vrot.lane.b32.xlu0 %v1045_v21, %s16216_s22  ;;  %v16503_v33 = vadd.f32 %v687_v50, %v16404_v34  ;;  %15979 = vrcp.f32 %v899_v27  ;;  %v1042_v38 = vmax.f32 %v597_v28, 0.0  ;;  %v15964_v41 = vpop.eup %15963 }
 0x106   : > { %v1114_v37 = vmax.f32 %v16498_v31, 0.0  ;;  %15981 = vpow2.f32 %v14072_v17  ;;  %v839_v45 = vpop.f32.mrb[14].mxu0  ;;  %v602_v46 = vpop.f32.mrb[14].mxu1  ;;  %v1043_v48 = vmax.f32 %v599_v32, 0.0  ;;  %v16517_v1 = vmul.f32 %v15964_v41, %v16423_v56 }
 0x107   : > { %v1115_v43 = vmax.f32 %v16503_v33, 0.0  ;;  %v15966_v54 = vpop.eup %15965  ;;  %v840_v55 = vadd.f32 %v839_v45, %v16398_v26  ;;  %v841_v59 = vpop.f32.mrb[15].mxu0  ;;  %v16514_v60 = vadd.f32 %v602_v46, %v16404_v34 }
 0x108   : > { %1066 = vrot.lane.b32.xlu1 %v1042_v38, %s16216_s22  ;;  %v604_v61 = vpop.f32.mrb[15].mxu1  ;;  %v842_v49 = vadd.f32 %v841_v59, %v16398_v26  ;;  %v16529_v4 = vmul.f32 %v15966_v54, %v16443_v18 }
 0x109   : > { %v14784_v2 = vpack.c.bf16 %v1115_v43, %v1114_v37  ;;  %1068 = vrot.lane.b32.xlu0 %v1043_v48, %s16216_s22  ;;  %v16526_v58 = vadd.f32 %v604_v61, %v16404_v34  ;;  %v15968_v5 = vpop.eup %15967  ;;  %v14077_v7 = vmul.f32 -1.442695, %v840_v55  ;;  %v1112_v56 = vmax.f32 %v16514_v60, 0.0 }
 0x10a   : > { %v15970_v39 = vpop.eup %15969  ;;  %v904_v8 = vadd.f32 1.0, %v15968_v5  ;;  %v14078_v9 = vmul.f32 -1.442695, %v842_v49  ;;  %v756_v11 = vpop.f32.mrb[16].mxu1  ;;  %v15291_v12 = vpack.i.bf16 %v16529_v4, %v16517_v1  ;;  %v14745_v19 = vpack.c.bf16 %v16529_v4, %v16517_v1 }
 0x10b   : > { %11532 = vst [vmem:[#allocation7 + $0x20] sm:$0xff] %v14784_v2  ;;  %v1113_v10 = vmax.f32 %v16526_v58, 0.0  ;;  %v845_v14 = vpop.f32.mrb[16].mxu0  ;;  %v15972_v16 = vpop.eup %15971  ;;  %15983 = vpow2.f32 %v14077_v7  ;;  %v757_v18 = vadd.f32 %v756_v11, %v16398_v26  ;;  %v1014_v48 = vmul.f32 %v15970_v39, %v16448_v22 }
 0x10c   : > { %v758_v17 = vpop.f32.mrb[17].mxu1  ;;  %v846_v20 = vpop.f32.mrb[17].mxu0  ;;  %15985 = vrcp.f32 %v904_v8  ;;  %1610 = vst [vmem:[#allocation6] sm:$0xff] %v14745_v19  ;;  %15287 = vrot.lane.b32.xlu1 %v15291_v12, %s16218_s26  ;;  %v967_v61 = vrot.slane %v16412_v44, %v966_v36  ;;  %v16555_v2 = vrot.slane %v16412_v44, %v970_v40 }
 0x10d   : > { %v15974_v21 = vpop.eup %15973  ;;  %v14783_v27 = vpack.c.bf16 %v1113_v10, %v1112_v56  ;;  %v759_v28 = vadd.f32 %v758_v17, %v16398_v26  ;;  %15292 = vrot.lane.b32.xlu0 %v15291_v12, %s16217_s25  ;;  %15987 = vpow2.f32 %v14078_v9  ;;  %v14075_v32 = vmul.f32 -1.442695, %v757_v18 }
 0x10e   : > { %v15976_v30 = vpop.eup %15975  ;;  %v905_v50 = vadd.f32 1.0, %v15974_v21  ;;  %v16545_v46 = vpop.f32.mrb[18].mxu1  ;;  %v1015_v26 = vmul.f32 %v15972_v16, %v16453_v23  ;;  %v16583_v20 = vpack.i.bf16 %v1113_v10, %v1112_v56 }
 0x10f   : > { %v15978_v38 = vpop.eup %15977  ;;  %v902_v41 = vadd.f32 1.0, %v15976_v30  ;;  %11531 = vst [vmem:[#allocation7 + $0x18] sm:$0xff] %v14783_v27  ;;  %v14076_v45 = vmul.f32 -1.442695, %v759_v28  ;;  %v849_v54 = vpop.f32.mrb[18].mxu0 }
 0x110   : > { %v15980_v55 = vpop.eup %15979  ;;  %15989 = vrcp.f32 %v905_v50  ;;  %v16549_v59 = vpop.f32.mrb[19].mxu1  ;;  %v850_v49 = vadd.f32 %v849_v54, %v16404_v34  ;;  %v15311_v22 = vpack.i.bf16 %v1015_v26, %v1014_v48  ;;  %v14747_v23 = vpack.c.bf16 %v1015_v26, %v1014_v48  ;;  %15297 = vrot.lane.b32.xlu1 %v15291_v12, %s16220_s28  ;;  %22573 = vst [vmem:[#allocation15_spill] sm:$0xff] %v16583_v20 }
 0x111   : > { %v851_v5 = vpop.f32.mrb[19].mxu0  ;;  %v15982_v7 = vpop.eup %15981  ;;  %15991 = vrcp.f32 %v902_v41  ;;  %15302 = vrot.lane.b32.xlu0 %v15291_v12, %s16219_s27  ;;  %v16560_v39 = vmul.f32 %v15978_v38, %v16463_v35  ;;  %v16564_v44 = vmul.f32 %v15980_v55, %v16473_v42  ;;  %v765_v48 = vadd.f32 %v16549_v59, %v16416_v47 }
 0x112   : > { %v903_v8 = vadd.f32 1.0, %v15982_v7  ;;  %15993 = vpow2.f32 %v14075_v32  ;;  %1612 = vst [vmem:[#allocation6 + $0x10] sm:$0xff] %v14747_v23  ;;  %v768_v36 = vpop.f32.mrb[20].mxu1  ;;  %v16567_v9 = vmax.f32 %v850_v49, 0.0  ;;  %v852_v18 = vadd.f32 %v851_v5, %v16404_v34 }
 0x113   : > { %15995 = vpow2.f32 %v14076_v45  ;;  %v769_v40 = vadd.f32 %v768_v36, %v16404_v34  ;;  %v770_v35 = vpop.f32.mrb[21].mxu1  ;;  %v15326_v11 = vpack.i.bf16 %v16564_v44, %v16560_v39  ;;  %v14746_v12 = vpack.c.bf16 %v16564_v44, %v16560_v39 }
 0x114   : > { %15997 = vrcp.f32 %v903_v8  ;;  %22571 = vst [vmem:[#allocation13_spill] sm:$0xff] %v16567_v9  ;;  %15307 = vrot.lane.b32.xlu1 %v15311_v22, %s16218_s26  ;;  %v771_v16 = vadd.f32 %v770_v35, %v16404_v34  ;;  %v16588_v30 = vmax.f32 %v852_v18, 0.0  ;;  %v22577_v32 = vmov 0 }
 0x115   : > { %15312 = vrot.lane.b32.xlu0 %v15311_v22, %s16217_s25  ;;  %v15984_v14 = vpop.eup %15983  ;;  %v16575_v42 = vmax.f32 %v769_v40, 0.0  ;;  %1611 = vst [vmem:[#allocation6 + $0x8] sm:$0xff] %v14746_v12  ;;  %v22578_v32 = vsel %vm16605_vm3, 4294967295, %v22577_v32  ;;  %v763_v54 = vadd.f32 %v16545_v46, %v16416_v47  ;;  %v991_v55 = vrot.slane %v16458_v25, %v958_v51 }
 0x116   : > { %v15986_v17 = vpop.eup %15985  ;;  %v908_v19 = vadd.f32 1.0, %v15984_v14  ;;  %v16586_v28 = vmax.f32 %v771_v16, 0.0  ;;  %22575 = vst [vmem:[#allocation17_spill] sm:$0xff] %v16588_v30  ;;  %v14786_v58 = vpack.c.bf16 %v16588_v30, %v16567_v9  ;;  %22579 = vst [vmem:[#allocation19_spill] sm:$0xff] %v22578_v32  ;;  %v995_v59 = vrot.slane %v16458_v25, %v962_v57 }
 0x117   : > { %22572 = vst [vmem:[#allocation14_spill] sm:$0xff] %v16575_v42  ;;  %v15988_v21 = vpop.eup %15987  ;;  %v1018_v27 = vmul.f32 %v15986_v17, %v16482_v53  ;;  %v16600_v53 = vpack.i.bf16 %v1115_v43, %v1114_v37  ;;  %v1046_v7 = vmax.f32 %v763_v54, 0.0  ;;  %v983_v46 = vrot.slane %v16458_v25, %v950_v62 }
 0x118   : > { %22574 = vst [vmem:[#allocation16_spill] sm:$0xff] %v16586_v28  ;;  %15999 = vrcp.f32 %v908_v19  ;;  %v909_v50 = vadd.f32 1.0, %v15988_v21  ;;  %15317 = vrot.lane.b32.xlu1 %v15311_v22, %s16220_s28  ;;  %v14785_v60 = vpack.c.bf16 %v16586_v28, %v16575_v42  ;;  %11534 = vst.msk [vmem:[#allocation7 + $0x30] sm:$0xff] %vm16605_vm3, %v14786_v58  ;;  %v987_v23 = vrot.slane %v16458_v25, %v954_v15  ;;  %v16654_v15 = vpop.permute.xlu0 %2398  ;;  %v16656_v25 = vpop.permute.xlu1 %2751 }
 0x119   : > { %15322 = vrot.lane.b32.xlu0 %v15311_v22, %s16219_s27  ;;  %22576 = vst [vmem:[#allocation18_spill] sm:$0xff] %v16600_v53  ;;  %22580 = vst [vmem:[#allocation20_spill] sm:$0xff] %v16654_v15 }
 0x11a   : > { %v15990_v34 = vpop.eup %15989  ;;  %16001 = vrcp.f32 %v909_v50  ;;  %11533 = vst [vmem:[#allocation7 + $0x28] sm:$0xff] %v14785_v60  ;;  %22581 = vst [vmem:[#allocation21_spill] sm:$0xff] %v16656_v25 }
 0x11b   : > { %v15992_v56 = vpop.eup %15991  ;;  %v1019_v10 = vmul.f32 %v15990_v34, %v16493_v13 }
 0x11c   : > { %v15994_v38 = vpop.eup %15993  ;;  %v1016_v41 = vmul.f32 %v15992_v56, %v967_v61  ;;  %15332 = vrot.lane.b32.xlu1 %v15326_v11, %s16217_s25  ;;  %v16658_v14 = vpop.permute.xlu0 %2753 }
 0x11d   : > { %v15996_v31 = vpop.eup %15995  ;;  %v906_v33 = vadd.f32 1.0, %v15994_v38  ;;  %15327 = vrot.lane.b32.xlu0 %v15326_v11, %s16218_s26  ;;  %v15351_v37 = vpack.i.bf16 %v1019_v10, %v1018_v27  ;;  %v14749_v43 = vpack.c.bf16 %v1019_v10, %v1018_v27  ;;  %22582 = vst [vmem:[#allocation22_spill] sm:$0xff] %v16658_v14  ;;  %v16660_v16 = vpop.permute.xlu1 %3106 }
 0x11e   : > { %v15998_v45 = vpop.eup %15997  ;;  %v907_v13 = vadd.f32 1.0, %v15996_v31  ;;  %22583 = vst [vmem:[#allocation23_spill] sm:$0xff] %v16660_v16 }
 0x11f   : > { %16003 = vrcp.f32 %v906_v33  ;;  %1614 = vst [vmem:[#allocation6 + $0x20] sm:$0xff] %v14749_v43  ;;  %v1017_v26 = vmul.f32 %v15998_v45, %v16555_v2  ;;  %v1047_v2 = vmax.f32 %v765_v48, 0.0 }
 0x120   : > { %16005 = vrcp.f32 %v907_v13  ;;  %15342 = vrot.lane.b32.xlu1 %v15326_v11, %s16219_s27  ;;  %v16662_v18 = vpop.permute.xlu0 %3482 }
 0x121   : > { %15337 = vrot.lane.b32.xlu0 %v15326_v11, %s16220_s28  ;;  %v15366_v61 = vpack.i.bf16 %v1017_v26, %v1016_v41  ;;  %v14748_v49 = vpack.c.bf16 %v1017_v26, %v1016_v41  ;;  %22584 = vst [vmem:[#allocation24_spill] sm:$0xff] %v16662_v18 }
 0x122   : > { %v16000_v5 = vpop.eup %15999 }
 0x123   : > { %1613 = vst [vmem:[#allocation6 + $0x18] sm:$0xff] %v14748_v49  ;;  %v1022_v22 = vmul.f32 %v16000_v5, %v991_v55 }
 0x124   : > { %v16002_v47 = vpop.eup %16001  ;;  %1074 = vrot.lane.b32.xlu1 %v1046_v7, %s16216_s22 }
 0x125   : > { %1076 = vrot.lane.b32.xlu0 %v1047_v2, %s16216_s22  ;;  %v1023_v51 = vmul.f32 %v16002_v47, %v995_v59  ;;  %s16228_s22 = smov 16  }
 0x127   : > { %v15391_v57 = vpack.i.bf16 %v1023_v51, %v1022_v22  ;;  %v14751_v8 = vpack.c.bf16 %v1023_v51, %v1022_v22 }
 0x128   : > { %15347 = vrot.lane.b32.xlu1 %v15351_v37, %s16218_s26 }
 0x129   : > { %v16004_v36 = vpop.eup %16003  ;;  %15352 = vrot.lane.b32.xlu0 %v15351_v37, %s16217_s25  ;;  %1619 = vst.msk [vmem:[#allocation6 + $0x30] sm:$0xff] %vm16605_vm3, %v14751_v8 }
 0x12a   : > { %v16006_v40 = vpop.eup %16005  ;;  %v1020_v35 = vmul.f32 %v16004_v36, %v983_v46 }
 0x12b   : > { %v1021_v11 = vmul.f32 %v16006_v40, %v987_v23 }
 0x12c   : > { %15357 = vrot.lane.b32.xlu1 %v15351_v37, %s16220_s28 }
 0x12d   : > { %15362 = vrot.lane.b32.xlu0 %v15351_v37, %s16219_s27  ;;  %v15406_v62 = vpack.i.bf16 %v1021_v11, %v1020_v35  ;;  %v14750_v12 = vpack.c.bf16 %v1021_v11, %v1020_v35 }
 0x12f   : > { %1615 = vst [vmem:[#allocation6 + $0x28] sm:$0xff] %v14750_v12 }
 0x130   : > { %15372 = vrot.lane.b32.xlu1 %v15366_v61, %s16217_s25 }
 0x131   : > { %15367 = vrot.lane.b32.xlu0 %v15366_v61, %s16218_s26 }
 0x134   : > { %15382 = vrot.lane.b32.xlu1 %v15366_v61, %s16219_s27 }
 0x135   : > { %15377 = vrot.lane.b32.xlu0 %v15366_v61, %s16220_s28 }
 0x138   : > { %15387 = vrot.lane.b32.xlu1 %v15391_v57, %s16218_s26 }
 0x139   : > { %15392 = vrot.lane.b32.xlu0 %v15391_v57, %s16217_s25 }
 0x13c   : > { %15397 = vrot.lane.b32.xlu1 %v15391_v57, %s16220_s28 }
 0x13d   : > { %15402 = vrot.lane.b32.xlu0 %v15391_v57, %s16219_s27 }
 0x140   : > { %15412 = vrot.lane.b32.xlu1 %v15406_v62, %s16217_s25 }
 0x141   : > { %15407 = vrot.lane.b32.xlu0 %v15406_v62, %s16218_s26 }
 0x144   : > { %15422 = vrot.lane.b32.xlu1 %v15406_v62, %s16219_s27 }
 0x145   : > { %15417 = vrot.lane.b32.xlu0 %v15406_v62, %s16220_s28 }
 0x169   : > { %v1063_v17 = vpop.permute.xlu1 %1062 }
 0x16a   : > { %v1065_v19 = vpop.permute.xlu0 %1064 }
 0x16b   : > { %v1081_v21 = vsel %vm1078_vm4, %v1063_v17, %v1065_v19 }
 0x16c   : > { %1099 = vst [vmem:[%s16668_s7 + $0x58] sm:$0xff] %v1081_v21 }
 0x16d   : > { %v1059_v27 = vpop.permute.xlu1 %1058 }
 0x16e   : > { %v1061_v50 = vpop.permute.xlu0 %1060 }
 0x16f   : > { %v1079_v34 = vsel %vm1078_vm4, %v1059_v27, %v1061_v50  ;;  %v1080_v60 = vsel %vm1078_vm4, %v1061_v50, %v1063_v17 }
 0x170   : > { %1097 = vst [vmem:[%s16668_s7 + $0x48] sm:$0xff] %v1079_v34  ;;  %1098 = vst [vmem:[%s16668_s7 + $0x50] sm:$0xff] %v1080_v60 }
 0x176   : > { %v1071_v58 = vpop.permute.xlu1 %1070 }
 0x177   : > { %v16676_v56 = vpop.permute.xlu0 %1072 }
 0x178   : > { %v1085_v10 = vsel %vm1078_vm4, %v1071_v58, %v16676_v56 }
 0x179   : > { %1103 = vst [vmem:[%s16668_s7 + $0x78] sm:$0xff] %v1085_v10 }
 0x17a   : > { %v1067_v38 = vpop.permute.xlu1 %1066 }
 0x17b   : > { %v1082_v41 = vsel %vm1078_vm4, %v1065_v19, %v1067_v38  ;;  %v1069_v31 = vpop.permute.xlu0 %1068 }
 0x17c   : > { %1100 = vst [vmem:[%s16668_s7 + $0x60] sm:$0xff] %v1082_v41  ;;  %v1083_v33 = vsel %vm1078_vm4, %v1067_v38, %v1069_v31  ;;  %v1084_v37 = vsel %vm1078_vm4, %v1069_v31, %v1071_v58 }
 0x17d   : > { %1101 = vst [vmem:[%s16668_s7 + $0x68] sm:$0xff] %v1083_v33  ;;  %1102 = vst [vmem:[%s16668_s7 + $0x70] sm:$0xff] %v1084_v37 }
 0x17e   : > { %v15288_v45 = vpop.permute.xlu1 %15287 }
 0x17f   : > { %v15293_v43 = vpop.permute.xlu0 %15292  ;;  %v15290_v49 = vunpack.i.h.bf16 %v15288_v45  ;;  %v15289_v59 = vunpack.i.l.bf16 %v15288_v45 }
 0x180   : > { %v15295_v55 = vunpack.i.h.bf16 %v15293_v43  ;;  %v15294_v61 = vunpack.i.l.bf16 %v15293_v43 }
 0x181   : > { %v1191_v23 = vsel %vm1190_vm6, %v15289_v59, %v15290_v49 }
 0x182   : > { %v15298_v48 = vpop.permute.xlu1 %15297  ;;  %v1247_v46 = vsel %vm1246_vm5, %v15294_v61, %v15295_v55 }
 0x183   : > { %v15303_v13 = vpop.permute.xlu0 %15302  ;;  %v15300_v22 = vunpack.i.h.bf16 %v15298_v48  ;;  %v15299_v47 = vunpack.i.l.bf16 %v15298_v48 }
 0x184   : > { %v15305_v5 = vunpack.i.h.bf16 %v15303_v13  ;;  %v15304_v2 = vunpack.i.l.bf16 %v15303_v13 }
 0x185   : > { %v1303_v36 = vsel %vm1302_vm8, %v15299_v47, %v15300_v22 }
 0x186   : > { %v16689_v54 = vpop.permute.xlu1 %15307  ;;  %v16698_v57 = vsel %vm1358_vm7, %v15304_v2, %v15305_v5 }
 0x187   : > { %v16687_v26 = vpop.permute.xlu0 %15312  ;;  %v15309_v40 = vunpack.i.l.bf16 %v16689_v54 }
 0x188   : > { %v15314_v12 = vunpack.i.l.bf16 %v16687_v26 }
 0x18a   : > { %v16693_v51 = vpop.permute.xlu1 %15317 }
 0x18b   : > { %v16691_v7 = vpop.permute.xlu0 %15322  ;;  %v15319_v27 = vunpack.i.l.bf16 %v16693_v51 }
 0x18c   : > { %v15324_v17 = vunpack.i.l.bf16 %v16691_v7 }
 0x18e   : > { %v15333_v62 = vpop.permute.xlu1 %15332 }
 0x18f   : > { %v15328_v8 = vpop.permute.xlu0 %15327  ;;  %v15335_v19 = vunpack.i.h.bf16 %v15333_v62  ;;  %v15334_v21 = vunpack.i.l.bf16 %v15333_v62 }
 0x190   : > { %v15330_v35 = vunpack.i.h.bf16 %v15328_v8  ;;  %v15329_v11 = vunpack.i.l.bf16 %v15328_v8  ;;  %v16740_v8 = vpack.c.bf16 %v1191_v23, %v16517_v1 }
 0x191   : > { %v16719_v38 = vsel %vm1246_vm5, %v15335_v19, %v15314_v12  ;;  %v1248_v41 = vsel %vm1246_vm5, %v15295_v55, %v15334_v21  ;;  %v16723_v33 = vsel %vm1246_vm5, %v15334_v21, %v15335_v19 }
 0x192   : > { %v1192_v50 = vsel %vm1190_vm6, %v15290_v49, %v15329_v11  ;;  %v16707_v34 = vsel %vm1190_vm6, %v15329_v11, %v15330_v35  ;;  %v16712_v60 = vsel %vm1190_vm6, %v15330_v35, %v15309_v40  ;;  %v14759_v37 = vpack.c.bf16 %v1248_v41, %v1247_v46  ;;  %v15343_v13 = vpop.permute.xlu1 %15342  ;;  %1792 = vrot.lane.b32.xlu0 %v16740_v8, %s16221_s19 }
 0x193   : > { %v14752_v58 = vpack.c.bf16 %v1192_v50, %v1191_v23  ;;  %v14753_v10 = vpack.c.bf16 %v16712_v60, %v16707_v34  ;;  %v15338_v31 = vpop.permute.xlu0 %15337  ;;  %v14760_v48 = vpack.c.bf16 %v16719_v38, %v16723_v33  ;;  %v15345_v61 = vunpack.i.h.bf16 %v15343_v13 }
 0x194   : > { %v15340_v43 = vunpack.i.h.bf16 %v15338_v31  ;;  %v15339_v45 = vunpack.i.l.bf16 %v15338_v31  ;;  %v15344_v49 = vunpack.i.l.bf16 %v15343_v13  ;;  %v16728_v59 = vpack.c.bf16 %v1192_v50, %v16529_v4  ;;  %1627 = vst [vmem:[#allocation6 + $0x70] sm:$0xff] %v14759_v37 }
 0x195   : > { %1620 = vst [vmem:[#allocation6 + $0x38] sm:$0xff] %v14752_v58  ;;  %1621 = vst [vmem:[#allocation6 + $0x40] sm:$0xff] %v14753_v10  ;;  %v16767_v10 = vpack.c.bf16 %v1303_v36, %v1247_v46  ;;  %v15315_v46 = vunpack.i.h.bf16 %v16687_v26  ;;  %v15325_v13 = vunpack.i.h.bf16 %v16691_v7 }
 0x196   : > { %v1304_v55 = vsel %vm1302_vm8, %v15300_v22, %v15339_v45  ;;  %v16732_v2 = vsel %vm1302_vm8, %v15339_v45, %v15340_v43  ;;  %v16737_v47 = vsel %vm1302_vm8, %v15340_v43, %v15319_v27  ;;  %1628 = vst [vmem:[#allocation6 + $0x78] sm:$0xff] %v14760_v48  ;;  %v16747_v22 = vsel %vm1358_vm7, %v15345_v61, %v15324_v17  ;;  %v1075_v19 = vpop.permute.xlu1 %1074 }
 0x197   : > { %v14766_v35 = vpack.c.bf16 %v1304_v55, %v1303_v36  ;;  %v14767_v4 = vpack.c.bf16 %v16737_v47, %v16732_v2  ;;  %v1360_v11 = vsel %vm1358_vm7, %v15305_v5, %v15344_v49  ;;  %v1077_v62 = vpop.permute.xlu0 %1076  ;;  %1794 = vrot.lane.b32.xlu1 %v16728_v59, %s16221_s19  ;;  %v16753_v1 = vsel %vm1358_vm7, %v15344_v49, %v15345_v61 }
 0x198   : > { %v14773_v23 = vpack.c.bf16 %v1360_v11, %v16698_v57  ;;  %v14774_v5 = vpack.c.bf16 %v16747_v22, %v16753_v1  ;;  %v1086_v21 = vsel %vm1078_vm4, %v16676_v56, %v1075_v19  ;;  %v1087_v50 = vsel %vm1078_vm4, %v1075_v19, %v1077_v62  ;;  %1812 = vrot.lane.b32.xlu0 %v16767_v10, %s16221_s19 }
 0x199   : > { %1634 = vst [vmem:[#allocation6 + $0xa8] sm:$0xff] %v14766_v35  ;;  %1635 = vst [vmem:[#allocation6 + $0xb0] sm:$0xff] %v14767_v4  ;;  %v16763_v58 = vpack.c.bf16 %v1304_v55, %v1248_v41  ;;  %v16777_v56 = vpack.c.bf16 %v1360_v11, %v1360_v11  ;;  %v16781_v41 = vpack.c.bf16 %v16698_v57, %v16698_v57  ;;  %v15310_v36 = vunpack.i.h.bf16 %v16689_v54 }
 0x19a   : > { %1641 = vst [vmem:[#allocation6 + $0xe0] sm:$0xff] %v14773_v23  ;;  %1104 = vst [vmem:[%s16668_s7 + $0x80] sm:$0xff] %v1086_v21  ;;  %v16773_v37 = vpop.permute.xlu1 %15347  ;;  %v16797_v57 = vsel %vm1246_vm5, %v15314_v12, %v15315_v46  ;;  %v15320_v49 = vunpack.i.h.bf16 %v16693_v51  ;;  %v16811_v26 = vsel %vm1358_vm7, %v15324_v17, %v15325_v13  ;;  %vm3945_vm4 = vcmask 130048  }
 0x19b   : > { %1105 = vst [vmem:[%s16668_s7 + $0x88] sm:$0xff] %v1087_v50  ;;  %1642 = vst [vmem:[#allocation6 + $0xe8] sm:$0xff] %v14774_v5  ;;  %v16769_v31 = vpop.permute.xlu0 %15352  ;;  %1814 = vrot.lane.b32.xlu1 %v16763_v58, %s16221_s19  ;;  %v1195_v48 = vsel %vm1190_vm6, %v15309_v40, %v15310_v36  ;;  %v22436_v55 = vunpack.i.l.bf16 %v16773_v37 }
 0x19c   : > { %1832 = vrot.lane.b32.xlu0 %v16781_v41, %s16221_s19  ;;  %v22439_v54 = vunpack.i.l.bf16 %v16769_v31 }
 0x19e   : > { %v16789_v45 = vpop.permute.xlu1 %15357 }
 0x19f   : > { %v16785_v43 = vpop.permute.xlu0 %15362  ;;  %1834 = vrot.lane.b32.xlu1 %v16777_v56, %s16221_s19  ;;  %v22437_v62 = vunpack.i.l.bf16 %v16789_v45 }
 0x1a0   : > { %2402 = vrot.lane.b32.xlu0 %v16728_v59, %s16222_s8 }
 0x1a2   : > { %v15373_v11 = vpop.permute.xlu1 %15372 }
 0x1a3   : > { %v15368_v61 = vpop.permute.xlu0 %15367  ;;  %2400 = vrot.lane.b32.xlu1 %v16740_v8, %s16222_s8  ;;  %v15375_v40 = vunpack.i.h.bf16 %v15373_v11  ;;  %v15374_v12 = vunpack.i.l.bf16 %v15373_v11 }
 0x1a4   : > { %v15370_v35 = vunpack.i.h.bf16 %v15368_v61  ;;  %v15369_v4 = vunpack.i.l.bf16 %v15368_v61  ;;  %2422 = vrot.lane.b32.xlu0 %v16763_v58, %s16222_s8 }
 0x1a5   : > { %v1254_v17 = vsel %vm1246_vm5, %v15375_v40, %v22439_v54  ;;  %v1252_v50 = vsel %vm1246_vm5, %v15315_v46, %v15374_v12 }
 0x1a6   : > { %v1196_v23 = vsel %vm1190_vm6, %v15310_v36, %v15369_v4  ;;  %v1197_v19 = vsel %vm1190_vm6, %v15369_v4, %v15370_v35  ;;  %v1198_v5 = vsel %vm1190_vm6, %v15370_v35, %v22436_v55  ;;  %v1253_v36 = vsel %vm1246_vm5, %v15374_v12, %v15375_v40 }
 0x1a7   : > { %v16820_v21 = vpack.c.bf16 %v1196_v23, %v1195_v48  ;;  %v16822_v7 = vpack.c.bf16 %v1198_v5, %v1197_v19  ;;  %v15378_v61 = vpop.permute.xlu0 %15377  ;;  %2420 = vrot.lane.b32.xlu1 %v16767_v10, %s16222_s8  ;;  %v14761_v4 = vpack.c.bf16 %v1252_v50, %v16797_v57  ;;  %v15383_v48 = vpop.permute.xlu1 %15382  ;;  %v22438_v23 = vunpack.i.l.bf16 %v16785_v43 }
 0x1a8   : > { %v15380_v11 = vunpack.i.h.bf16 %v15378_v61  ;;  %v15379_v35 = vunpack.i.l.bf16 %v15378_v61  ;;  %v14762_v46 = vpack.c.bf16 %v1254_v17, %v1253_v36  ;;  %v15385_v19 = vunpack.i.h.bf16 %v15383_v48  ;;  %2442 = vrot.lane.b32.xlu0 %v16777_v56, %s16222_s8 }
 0x1a9   : > { %1622 = vst [vmem:[#allocation6 + $0x48] sm:$0xff] %v16820_v21  ;;  %1623 = vst [vmem:[#allocation6 + $0x50] sm:$0xff] %v16822_v7  ;;  %v15384_v5 = vunpack.i.l.bf16 %v15383_v48  ;;  %v1307_v40 = vsel %vm1302_vm8, %v15319_v27, %v15320_v49 }
 0x1aa   : > { %1629 = vst [vmem:[#allocation6 + $0x80] sm:$0xff] %v14761_v4  ;;  %v1308_v12 = vsel %vm1302_vm8, %v15320_v49, %v15379_v35  ;;  %v1309_v61 = vsel %vm1302_vm8, %v15379_v35, %v15380_v11  ;;  %v1310_v0 = vsel %vm1302_vm8, %v15380_v11, %v22437_v62  ;;  %1630 = vst [vmem:[#allocation6 + $0x88] sm:$0xff] %v14762_v46 }
 0x1ab   : > { %v14768_v3 = vpack.c.bf16 %v1308_v12, %v1307_v40  ;;  %v14769_v55 = vpack.c.bf16 %v1310_v0, %v1309_v61  ;;  %v16848_v48 = vsel %vm1358_vm7, %v15385_v19, %v22438_v23  ;;  %v16851_v51 = vsel %vm1358_vm7, %v15325_v13, %v15384_v5  ;;  %v15393_v27 = vpop.permute.xlu0 %15392  ;;  %2440 = vrot.lane.b32.xlu1 %v16781_v41, %s16222_s8  ;;  %v15388_v46 = vpop.permute.xlu1 %15387 }
 0x1ac   : > { %v16856_v49 = vsel %vm1358_vm7, %v15384_v5, %v15385_v19  ;;  %v14775_v4 = vpack.c.bf16 %v16851_v51, %v16811_v26  ;;  %v15395_v11 = vunpack.i.h.bf16 %v15393_v27  ;;  %v15394_v35 = vunpack.i.l.bf16 %v15393_v27  ;;  %2759 = vrot.lane.b32.xlu0 %v16728_v59, %s16223_s9 }
 0x1ad   : > { %1636 = vst [vmem:[#allocation6 + $0xb8] sm:$0xff] %v14768_v3  ;;  %1637 = vst [vmem:[#allocation6 + $0xc0] sm:$0xff] %v14769_v55  ;;  %v14776_v13 = vpack.c.bf16 %v16848_v48, %v16856_v49  ;;  %v15390_v62 = vunpack.i.h.bf16 %v15388_v46  ;;  %v15389_v23 = vunpack.i.l.bf16 %v15388_v46  ;;  %v16864_v54 = vpack.c.bf16 %v1308_v12, %v1252_v50 }
 0x1ae   : > { %1643 = vst [vmem:[#allocation6 + $0xf0] sm:$0xff] %v14775_v4  ;;  %v1259_v19 = vsel %vm1246_vm5, %v15394_v35, %v15395_v11  ;;  %v16868_v5 = vpack.c.bf16 %v1307_v40, %v16797_v57  ;;  %v15355_v27 = vunpack.i.h.bf16 %v16769_v31  ;;  %v15350_v50 = vunpack.i.h.bf16 %v16773_v37 }
 0x1af   : > { %1644 = vst [vmem:[#allocation6 + $0xf8] sm:$0xff] %v14776_v13  ;;  %v14765_v30 = vpack.c.bf16 %v15395_v11, %v1259_v19  ;;  %v1203_v3 = vsel %vm1190_vm6, %v15389_v23, %v15390_v62  ;;  %v16872_v55 = vpop.permute.xlu0 %15402  ;;  %2757 = vrot.lane.b32.xlu1 %v16740_v8, %s16223_s9  ;;  %v15398_v40 = vpop.permute.xlu1 %15397  ;;  %v16883_v13 = vpack.c.bf16 %v1310_v0, %v1254_v17 }
 0x1b0   : > { %22585 = vst [vmem:[#allocation25_spill] sm:$0xff] %v16868_v5  ;;  %v14758_v12 = vpack.c.bf16 %v15390_v62, %v1203_v3  ;;  %v15405_v4 = vunpack.i.h.bf16 %v16872_v55  ;;  %v15404_v57 = vunpack.i.l.bf16 %v16872_v55  ;;  %v15400_v11 = vunpack.i.h.bf16 %v15398_v40  ;;  %2779 = vrot.lane.b32.xlu0 %v16763_v58, %s16223_s9 }
 0x1b1   : > { %1633 = vst.msk [vmem:[#allocation6 + $0xa0] sm:$0xff] %vm16605_vm3, %v14765_v30  ;;  %v15399_v46 = vunpack.i.l.bf16 %v15398_v40  ;;  %v16885_v19 = vpack.c.bf16 %v1309_v61, %v1253_v36  ;;  %v22587_v30 = vunpack.i.l.bf16 %v16769_v31 }
 0x1b2   : > { %1626 = vst.msk [vmem:[#allocation6 + $0x68] sm:$0xff] %vm16605_vm3, %v14758_v12  ;;  %v1371_v62 = vsel %vm1358_vm7, %v15404_v57, %v15405_v4  ;;  %v22588_v12 = vunpack.i.l.bf16 %v16773_v37 }
 0x1b3   : > { %22586 = vst [vmem:[#allocation26_spill] sm:$0xff] %v16885_v19  ;;  %v14779_v3 = vpack.c.bf16 %v15405_v4, %v1371_v62  ;;  %v1315_v55 = vsel %vm1302_vm8, %v15399_v46, %v15400_v11  ;;  %v15408_v9 = vpop.permute.xlu0 %15407  ;;  %2777 = vrot.lane.b32.xlu1 %v16767_v10, %s16223_s9  ;;  %v1255_v40 = vsel %vm1246_vm5, %v22587_v30, %v15355_v27  ;;  %v15413_v61 = vpop.permute.xlu1 %15412  ;;  %v15365_v62 = vunpack.i.h.bf16 %v16785_v43 }
 0x1b4   : > { %v14772_v0 = vpack.c.bf16 %v15400_v11, %v1315_v55  ;;  %v15410_v17 = vunpack.i.h.bf16 %v15408_v9  ;;  %v15409_v36 = vunpack.i.l.bf16 %v15408_v9  ;;  %v1199_v4 = vsel %vm1190_vm6, %v22588_v12, %v15350_v50  ;;  %2799 = vrot.lane.b32.xlu0 %v16777_v56, %s16223_s9 }
 0x1b5   : > { %1647 = vst.msk [vmem:[#allocation6 + $0x110] sm:$0xff] %vm16605_vm3, %v14779_v3  ;;  %v15415_v28 = vunpack.i.h.bf16 %v15413_v61  ;;  %v15414_v31 = vunpack.i.l.bf16 %v15413_v61  ;;  %v15360_v30 = vunpack.i.h.bf16 %v16789_v45  ;;  %v3478_v14 = vld [vmem:[#allocation6 + $0xec] sm:$0xff] }
 0x1b6   : > { %1640 = vst.msk [vmem:[#allocation6 + $0xd8] sm:$0xff] %vm16605_vm3, %v14772_v0  ;;  %v1200_v9 = vsel %vm1190_vm6, %v15350_v50, %v15409_v36  ;;  %v1201_v11 = vsel %vm1190_vm6, %v15409_v36, %v15410_v17  ;;  %v1202_v37 = vsel %vm1190_vm6, %v15410_v17, %v15389_v23  ;;  %v22589_v23 = vunpack.i.l.bf16 %v16785_v43 }
 0x1b7   : > { %v16910_v55 = vpack.c.bf16 %v1200_v9, %v1199_v4  ;;  %v14757_v12 = vpack.c.bf16 %v1202_v37, %v1201_v11  ;;  %v1258_v42 = vsel %vm1246_vm5, %v15415_v28, %v15394_v35  ;;  %v1256_v3 = vsel %vm1246_vm5, %v15355_v27, %v15414_v31  ;;  %v15418_v53 = vpop.permute.xlu0 %15417  ;;  %2797 = vrot.lane.b32.xlu1 %v16781_v41, %s16223_s9  ;;  %v15423_v20 = vpop.permute.xlu1 %15422 }
 0x1b8   : > { %v1257_v61 = vsel %vm1246_vm5, %v15414_v31, %v15415_v28  ;;  %v14763_v0 = vpack.c.bf16 %v1256_v3, %v1255_v40  ;;  %v15420_v32 = vunpack.i.h.bf16 %v15418_v53  ;;  %v15419_v50 = vunpack.i.l.bf16 %v15418_v53  ;;  %3108 = vrot.lane.b32.xlu0 %v16740_v8, %s16224_s10 }
 0x1b9   : > { %v16922_v17 = vsel %vm1358_vm7, %v22589_v23, %v15365_v62  ;;  %1624 = vst [vmem:[#allocation6 + $0x58] sm:$0xff] %v16910_v55  ;;  %1625 = vst [vmem:[#allocation6 + $0x60] sm:$0xff] %v14757_v12  ;;  %v14764_v35 = vpack.c.bf16 %v1258_v42, %v1257_v61  ;;  %v15425_v27 = vunpack.i.h.bf16 %v15423_v20  ;;  %v15424_v36 = vunpack.i.l.bf16 %v15423_v20 }
 0x1ba   : > { %v22590_v28 = vunpack.i.l.bf16 %v16789_v45  ;;  %1631 = vst [vmem:[#allocation6 + $0x90] sm:$0xff] %v14763_v0  ;;  %v1312_v53 = vsel %vm1302_vm8, %v15360_v30, %v15419_v50  ;;  %v1313_v31 = vsel %vm1302_vm8, %v15419_v50, %v15420_v32  ;;  %v1314_v43 = vsel %vm1302_vm8, %v15420_v32, %v15399_v46 }
 0x1bb   : > { %1632 = vst [vmem:[#allocation6 + $0x98] sm:$0xff] %v14764_v35  ;;  %v14771_v11 = vpack.c.bf16 %v1314_v43, %v1313_v31  ;;  %v1370_v37 = vsel %vm1358_vm7, %v15425_v27, %v15404_v57  ;;  %v16933_v42 = vsel %vm1358_vm7, %v15365_v62, %v15424_v36  ;;  %3110 = vrot.lane.b32.xlu1 %v16728_v59, %s16224_s10 }
 0x1bc   : > { %v1311_v4 = vsel %vm1302_vm8, %v22590_v28, %v15360_v30  ;;  %v1369_v20 = vsel %vm1358_vm7, %v15424_v36, %v15425_v27  ;;  %v14777_v45 = vpack.c.bf16 %v16933_v42, %v16922_v17  ;;  %v16942_v46 = vpack.c.bf16 %v1312_v53, %v1256_v3  ;;  %3128 = vrot.lane.b32.xlu0 %v16767_v10, %s16224_s10  ;;  %v16007_v3 = vld [vmem:[#allocation6 + $0x10] sm:$0xff] }
 0x1bd   : > { %v14770_v9 = vpack.c.bf16 %v1312_v53, %v1311_v4  ;;  %1639 = vst [vmem:[#allocation6 + $0xd0] sm:$0xff] %v14771_v11  ;;  %v14778_v32 = vpack.c.bf16 %v1370_v37, %v1369_v20  ;;  %v16944_v57 = vpack.c.bf16 %v1311_v4, %v1255_v40  ;;  %v16956_v62 = vpack.c.bf16 %v16712_v60, %v16564_v44  ;;  %v17028_v60 = vld [vmem:[#allocation6 + $0x8] ss:$56 sps:$4 sm:$0xff]  }
 0x1be   : > { %1645 = vst [vmem:[#allocation6 + $0x100] sm:$0xff] %v14777_v45  ;;  %v16960_v40 = vpack.c.bf16 %v16707_v34, %v16560_v39  ;;  %v16968_v30 = vpack.c.bf16 %v16737_v47, %v16719_v38  ;;  %v16972_v12 = vpack.c.bf16 %v16732_v2, %v16723_v33  ;;  %v16980_v39 = vpack.c.bf16 %v16747_v22, %v16747_v22  ;;  %v17026_v34 = vld [vmem:[#allocation6 + $0x4] ss:$56 sps:$4 sm:$0xff]   ;;  %v17034_v38 = vld [vmem:[#allocation6 + $0x74] ss:$56 sps:$4 sm:$0xff]  }
 0x1bf   : > { %1638 = vst [vmem:[#allocation6 + $0xc8] sm:$0xff] %v14770_v9  ;;  %1646 = vst [vmem:[#allocation6 + $0x108] sm:$0xff] %v14778_v32  ;;  %3130 = vrot.lane.b32.xlu1 %v16763_v58, %s16224_s10  ;;  %v16984_v44 = vpack.c.bf16 %v16753_v1, %v16753_v1  ;;  %v17036_v33 = vld [vmem:[#allocation6 + $0x78] ss:$56 sps:$4 sm:$0xff]   ;;  %v3477_v2 = vld [vmem:[#allocation6 + $0xe4] sm:$0xff]  ;;  %v17059_v61 = vcombine.high %v16007_v3, %v16820_v21  ;;  %v17077_v27 = vpack.c.bf16 %v16851_v51, %v16851_v51 }
 0x1c0   : > { %3148 = vrot.lane.b32.xlu0 %v16781_v41, %s16224_s10  ;;  %v17042_v47 = vcombine.high %v3477_v2, %v3477_v2  ;;  %v17044_v22 = vcombine.low %v3477_v2, %v3477_v2  ;;  %v17080_v28 = vcombine.low %v16007_v3, %v16820_v21  ;;  %v17100_v31 = vpack.c.bf16 %v16811_v26, %v16811_v26 }
 0x1c1   : > { %22591 = vst [vmem:[#allocation27_spill] sm:$0xff] %v17077_v27 }
 0x1c2   : > { %22596 = vst [vmem:[#allocation32_spill] sm:$0xff] %v17100_v31 }
 0x1c3   : > { %3150 = vrot.lane.b32.xlu1 %v16777_v56, %s16224_s10 }
 0x1c4   : > { %1796 = vrot.lane.b32.xlu0 %v16960_v40, %s16221_s19 }
 0x1c7   : > { %1798 = vrot.lane.b32.xlu1 %v16956_v62, %s16221_s19 }
 0x1c8   : > { %1816 = vrot.lane.b32.xlu0 %v16972_v12, %s16221_s19 }
 0x1cb   : > { %1818 = vrot.lane.b32.xlu1 %v16968_v30, %s16221_s19 }
 0x1cc   : > { %1836 = vrot.lane.b32.xlu0 %v16984_v44, %s16221_s19 }
 0x1cf   : > { %1838 = vrot.lane.b32.xlu1 %v16980_v39, %s16221_s19 }
 0x1d0   : > { %2406 = vrot.lane.b32.xlu0 %v16956_v62, %s16222_s8 }
 0x1d3   : > { %2404 = vrot.lane.b32.xlu1 %v16960_v40, %s16222_s8 }
 0x1d4   : > { %2426 = vrot.lane.b32.xlu0 %v16968_v30, %s16222_s8 }
 0x1d7   : > { %2424 = vrot.lane.b32.xlu1 %v16972_v12, %s16222_s8 }
 0x1d8   : > { %2446 = vrot.lane.b32.xlu0 %v16980_v39, %s16222_s8 }
 0x1db   : > { %2444 = vrot.lane.b32.xlu1 %v16984_v44, %s16222_s8 }
 0x1dc   : > { %2763 = vrot.lane.b32.xlu0 %v16956_v62, %s16223_s9 }
 0x1df   : > { %2761 = vrot.lane.b32.xlu1 %v16960_v40, %s16223_s9 }
 0x1e0   : > { %2783 = vrot.lane.b32.xlu0 %v16968_v30, %s16223_s9 }
 0x1e3   : > { %2781 = vrot.lane.b32.xlu1 %v16972_v12, %s16223_s9 }
 0x1e4   : > { %2803 = vrot.lane.b32.xlu0 %v16980_v39, %s16223_s9 }
 0x1e7   : > { %2801 = vrot.lane.b32.xlu1 %v16984_v44, %s16223_s9 }
 0x1e8   : > { %3112 = vrot.lane.b32.xlu0 %v16960_v40, %s16224_s10 }
 0x1eb   : > { %3114 = vrot.lane.b32.xlu1 %v16956_v62, %s16224_s10 }
 0x1ec   : > { %3132 = vrot.lane.b32.xlu0 %v16972_v12, %s16224_s10 }
 0x1ef   : > { %3134 = vrot.lane.b32.xlu1 %v16968_v30, %s16224_s10 }
 0x1f0   : > { %3152 = vrot.lane.b32.xlu0 %v16984_v44, %s16224_s10 }
 0x1f3   : > { %3154 = vrot.lane.b32.xlu1 %v16980_v39, %s16224_s10 }
 0x1f4   : > { %3591 = vrot.lane.b32.xlu0 %v17028_v60, %s16225_s11 }
 0x1f7   : > { %3589 = vrot.lane.b32.xlu1 %v17026_v34, %s16225_s11 }
 0x1f8   : > { %3611 = vrot.lane.b32.xlu0 %v17036_v33, %s16225_s11 }
 0x1fb   : > { %3609 = vrot.lane.b32.xlu1 %v17034_v38, %s16225_s11 }
 0x1fc   : > { %3629 = vrot.lane.b32.xlu0 %v17044_v22, %s16225_s11 }
 0x1ff   : > { %3631 = vrot.lane.b32.xlu1 %v17042_v47, %s16225_s11 }
 0x200   : > { %3949 = vrot.lane.b32.xlu0 %v17028_v60, %s16226_s12 }
 0x203   : > { %3947 = vrot.lane.b32.xlu1 %v17026_v34, %s16226_s12 }
 0x204   : > { %3969 = vrot.lane.b32.xlu0 %v17036_v33, %s16226_s12  ;;  %v1793_v0 = vpop.permute.xlu0 %1792 }
 0x207   : > { %3987 = vrot.lane.b32.xlu1 %v17044_v22, %s16226_s12 }
 0x208   : > { %3967 = vrot.lane.b32.xlu0 %v17034_v38, %s16226_s12 }
 0x209   : > { %v1795_v1 = vpop.permute.xlu1 %1794 }
 0x20a   : > { %v17067_v23 = vpop.permute.xlu0 %1812 }
 0x20b   : > { %1802 = vrot.lane.b32.xlu1 %v17059_v61, %s16221_s19 }
 0x20c   : > { %3989 = vrot.lane.b32.xlu0 %v17042_v47, %s16226_s12 }
 0x20d   : > { %v17065_v50 = vpop.permute.xlu1 %1814 }
 0x20e   : > { %v1833_v36 = vpop.permute.xlu0 %1832 }
 0x20f   : > { %1822 = vrot.lane.b32.xlu1 %v16864_v54, %s16221_s19 }
 0x210   : > { %1800 = vrot.lane.b32.xlu0 %v17080_v28, %s16221_s19 }
 0x211   : > { %v17073_v35 = vpop.permute.xlu1 %1834 }
 0x212   : > { %v17088_v53 = vpop.permute.xlu0 %2402 }
 0x213   : > { %1842 = vrot.lane.b32.xlu1 %v17077_v27, %s16221_s19  ;;  %22593 = vst [vmem:[#allocation29_spill] sm:$0xff] %v17088_v53 }
 0x214   : > { %1820 = vrot.lane.b32.xlu0 %v16868_v5, %s16221_s19 }
 0x215   : > { %v17086_v4 = vpop.permute.xlu1 %2400 }
 0x216   : > { %22592 = vst [vmem:[#allocation28_spill] sm:$0xff] %v17086_v4  ;;  %v17096_v21 = vpop.permute.xlu0 %2422 }
 0x217   : > { %2408 = vrot.lane.b32.xlu1 %v17080_v28, %s16222_s8  ;;  %22595 = vst [vmem:[#allocation31_spill] sm:$0xff] %v17096_v21  ;;  %v3479_v21 = vld [vmem:[#allocation6 + $0xf4] sm:$0xff] }
 0x218   : > { %1840 = vrot.lane.b32.xlu0 %v17100_v31, %s16221_s19 }
 0x219   : > { %v17094_v51 = vpop.permute.xlu1 %2420 }
 0x21a   : > { %22594 = vst [vmem:[#allocation30_spill] sm:$0xff] %v17094_v51  ;;  %v17108_v9 = vpop.permute.xlu0 %2442  ;;  %v17369_v51 = vld [vmem:[#allocation6 + $0x88] ss:$56 sps:$4 sm:$0xff]  }
 0x21b   : > { %2428 = vrot.lane.b32.xlu1 %v16868_v5, %s16222_s8  ;;  %22598 = vst [vmem:[#allocation34_spill] sm:$0xff] %v17108_v9 }
 0x21c   : > { %2410 = vrot.lane.b32.xlu0 %v17059_v61, %s16222_s8 }
 0x21d   : > { %v17106_v43 = vpop.permute.xlu1 %2440 }
 0x21e   : > { %22597 = vst [vmem:[#allocation33_spill] sm:$0xff] %v17106_v43  ;;  %v17116_v26 = vpop.permute.xlu0 %2759  ;;  %v17365_v43 = vld [vmem:[#allocation6 + $0x84] ss:$56 sps:$4 sm:$0xff]  }
 0x21f   : > { %2448 = vrot.lane.b32.xlu1 %v17100_v31, %s16222_s8  ;;  %22600 = vst [vmem:[#allocation36_spill] sm:$0xff] %v17116_v26 }
 0x220   : > { %2430 = vrot.lane.b32.xlu0 %v16864_v54, %s16222_s8 }
 0x221   : > { %v17114_v11 = vpop.permute.xlu1 %2757 }
 0x222   : > { %22599 = vst [vmem:[#allocation35_spill] sm:$0xff] %v17114_v11  ;;  %v17124_v20 = vpop.permute.xlu0 %2779 }
 0x223   : > { %2765 = vrot.lane.b32.xlu1 %v17080_v28, %s16223_s9  ;;  %22602 = vst [vmem:[#allocation38_spill] sm:$0xff] %v17124_v20 }
 0x224   : > { %2450 = vrot.lane.b32.xlu0 %v17077_v27, %s16222_s8 }
 0x225   : > { %v17122_v37 = vpop.permute.xlu1 %2777 }
 0x226   : > { %22601 = vst [vmem:[#allocation37_spill] sm:$0xff] %v17122_v37  ;;  %v17132_v32 = vpop.permute.xlu0 %2799  ;;  %v17199_v37 = vld [vmem:[#allocation6 + $0x10] ss:$56 sps:$4 sm:$0xff]  }
 0x227   : > { %2785 = vrot.lane.b32.xlu1 %v16868_v5, %s16223_s9  ;;  %22604 = vst [vmem:[#allocation40_spill] sm:$0xff] %v17132_v32 }
 0x228   : > { %2767 = vrot.lane.b32.xlu0 %v17059_v61, %s16223_s9 }
 0x229   : > { %v17130_v45 = vpop.permute.xlu1 %2797 }
 0x22a   : > { %22603 = vst [vmem:[#allocation39_spill] sm:$0xff] %v17130_v45  ;;  %v17140_v3 = vpop.permute.xlu0 %3108 }
 0x22b   : > { %2805 = vrot.lane.b32.xlu1 %v17100_v31, %s16223_s9  ;;  %22606 = vst [vmem:[#allocation42_spill] sm:$0xff] %v17140_v3 }
 0x22c   : > { %2787 = vrot.lane.b32.xlu0 %v16864_v54, %s16223_s9 }
 0x22d   : > { %v17138_v2 = vpop.permute.xlu1 %3110 }
 0x22e   : > { %22605 = vst [vmem:[#allocation41_spill] sm:$0xff] %v17138_v2  ;;  %v17148_v52 = vpop.permute.xlu0 %3128  ;;  %v17177_v2 = vld [vmem:[#allocation6 + $0x7c] ss:$56 sps:$4 sm:$0xff]  }
 0x22f   : > { %3118 = vrot.lane.b32.xlu1 %v17059_v61, %s16224_s10  ;;  %22608 = vst [vmem:[#allocation44_spill] sm:$0xff] %v17148_v52  ;;  %v17164_v52 = vld [vmem:[#allocation6 + $0xc] ss:$56 sps:$4 sm:$0xff]  }
 0x230   : > { %2807 = vrot.lane.b32.xlu0 %v17077_v27, %s16223_s9 }
 0x231   : > { %v17146_v63 = vpop.permute.xlu1 %3130 }
 0x232   : > { %22607 = vst [vmem:[#allocation43_spill] sm:$0xff] %v17146_v63  ;;  %v17156_v18 = vpop.permute.xlu0 %3148 }
 0x233   : > { %3138 = vrot.lane.b32.xlu1 %v16864_v54, %s16224_s10  ;;  %22610 = vst [vmem:[#allocation46_spill] sm:$0xff] %v17156_v18  ;;  %v1853_v18 = vsel %vm22567_vm9, %v1793_v0, %v1795_v1  ;;  %v17195_v0 = vcombine.high %v3478_v14, %v3478_v14 }
 0x234   : > { %3116 = vrot.lane.b32.xlu0 %v17080_v28, %s16224_s10 }
 0x235   : > { %v17154_v6 = vpop.permute.xlu1 %3150 }
 0x236   : > { %22609 = vst [vmem:[#allocation45_spill] sm:$0xff] %v17154_v6  ;;  %v17166_v63 = vpop.permute.xlu0 %1796 }
 0x237   : > { %3158 = vrot.lane.b32.xlu1 %v17077_v27, %s16224_s10  ;;  %v1854_v6 = vsel %vm22567_vm9, %v1795_v1, %v17166_v63  ;;  %v1862_v1 = vsel %vm22567_vm9, %v17067_v23, %v17065_v50 }
 0x238   : > { %3136 = vrot.lane.b32.xlu0 %v16868_v5, %s16224_s10  ;;  %1929 = vmatprep.subr.bf16.mxu1 %v1854_v6  ;;  %v1871_v6 = vsel %vm22567_vm9, %v1833_v36, %v17073_v35  ;;  %v22674_v5 = vmov 0.0  }
 0x239   : > { %v17162_v16 = vpop.permute.xlu1 %1798  ;;  %1930 = vmatpush1.bf16.msra.mxu1 %v1853_v18  ;;  %v1903_v23 = vsel %vm1616_vm1, %v1871_v6, 0  ;;  %v22614_v6 = vmov 0  }
 0x23a   : > { %v17179_v25 = vpop.permute.xlu0 %1816 }
 0x23b   : > { %3593 = vrot.lane.b32.xlu1 %v17164_v52, %s16225_s11  ;;  %v1863_v45 = vsel %vm22567_vm9, %v17065_v50, %v17179_v25 }
 0x23c   : > { %3156 = vrot.lane.b32.xlu0 %v17100_v31, %s16224_s10  ;;  %1931 = vmatprep.subr.bf16.mxu1 %v1863_v45 }
 0x23d   : > { %v17175_v3 = vpop.permute.xlu1 %1818  ;;  %1932 = vmatpush1.bf16.msra.mxu1 %v1862_v1  ;;  %v17214_v1 = vld [vmem:[#allocation6 + $0x80] ss:$56 sps:$4 sm:$0xff]  }
 0x23e   : > { %v17197_v32 = vpop.permute.xlu0 %1836 }
 0x23f   : > { %3613 = vrot.lane.b32.xlu1 %v17177_v2, %s16225_s11  ;;  %v1872_v50 = vsel %vm22567_vm9, %v17073_v35, %v17197_v32 }
 0x240   : > { %3595 = vrot.lane.b32.xlu0 %v17199_v37, %s16225_s11  ;;  %14145 = vmatprep.subr.msk.bf16.mxu1 %vm1616_vm1, %v1872_v50 }
 0x241   : > { %v17193_v18 = vpop.permute.xlu1 %1838  ;;  %1934 = vmatpush1.bf16.msra.mxu1 %v1903_v23  ;;  %v17227_v23 = vcombine.low %v3478_v14, %v3478_v14  ;;  %v16008_v14 = vld [vmem:[#allocation6 + $0x18] sm:$0xff] }
 0x242   : > { %v17212_v45 = vpop.permute.xlu0 %2406 }
 0x243   : > { %3635 = vrot.lane.b32.xlu1 %v17195_v0, %s16225_s11  ;;  %22612 = vst [vmem:[#allocation48_spill] sm:$0xff] %v17212_v45  ;;  %v17249_v45 = vcombine.low %v16008_v14, %v16822_v7 }
 0x244   : > { %3615 = vrot.lane.b32.xlu0 %v17214_v1, %s16225_s11  ;;  %14146 = vmatmul.mubr.msk.bf16.vlgmr.msra.gmra.mrb[24].mxu1 %vm1898_vm10, %v16652_v29 }
 0x245   : > { %v17210_v36 = vpop.permute.xlu1 %2404  ;;  %2043 = vmatprep.mubr.bf16.mxu1 %v22614_v6 }
 0x246   : > { %22611 = vst [vmem:[#allocation47_spill] sm:$0xff] %v17210_v36  ;;  %v17225_v50 = vpop.permute.xlu0 %2426  ;;  %v17385_v36 = vcombine.low %v3479_v21, %v3479_v21 }
 0x247   : > { %3951 = vrot.lane.b32.xlu1 %v17164_v52, %s16226_s12  ;;  %22615 = vst [vmem:[#allocation50_spill] sm:$0xff] %v17225_v50  ;;  %v17244_v50 = vcombine.high %v16008_v14, %v16822_v7  ;;  %v17267_v7 = vpack.c.bf16 %v16848_v48, %v16848_v48 }
 0x248   : > { %3633 = vrot.lane.b32.xlu0 %v17227_v23, %s16225_s11 }
 0x249   : > { %v17222_v35 = vpop.permute.xlu1 %2424  ;;  %22623 = vst [vmem:[#allocation58_spill] sm:$0xff] %v17267_v7 }
 0x24a   : > { %22613 = vst [vmem:[#allocation49_spill] sm:$0xff] %v17222_v35  ;;  %v17235_v11 = vpop.permute.xlu0 %2446  ;;  %v1855_v35 = vsel %vm22567_vm9, %v17166_v63, %v17162_v16  ;;  %v1864_v63 = vsel %vm22567_vm9, %v17179_v25, %v17175_v3 }
 0x24b   : > { %3971 = vrot.lane.b32.xlu1 %v17177_v2, %s16226_s12  ;;  %22617 = vst [vmem:[#allocation52_spill] sm:$0xff] %v17235_v11 }
 0x24c   : > { %3953 = vrot.lane.b32.xlu0 %v17199_v37, %s16226_s12 }
 0x24d   : > { %v17233_v20 = vpop.permute.xlu1 %2444 }
 0x24e   : > { %22616 = vst [vmem:[#allocation51_spill] sm:$0xff] %v17233_v20  ;;  %v17246_v15 = vpop.permute.xlu0 %2763 }
 0x24f   : > { %3991 = vrot.lane.b32.xlu1 %v17227_v23, %s16226_s12  ;;  %22619 = vst [vmem:[#allocation54_spill] sm:$0xff] %v17246_v15 }
 0x250   : > { %1804 = vrot.lane.b32.xlu0 %v17249_v45, %s16221_s19 }
 0x251   : > { %v17241_v26 = vpop.permute.xlu1 %2761 }
 0x252   : > { %22618 = vst [vmem:[#allocation53_spill] sm:$0xff] %v17241_v26  ;;  %v17257_v20 = vpop.permute.xlu0 %2783  ;;  %v17273_v26 = vpack.c.bf16 %v16856_v49, %v16856_v49 }
 0x253   : > { %1806 = vrot.lane.b32.xlu1 %v17244_v50, %s16221_s19  ;;  %22621 = vst [vmem:[#allocation56_spill] sm:$0xff] %v17257_v20 }
 0x254   : > { %1824 = vrot.lane.b32.xlu0 %v16885_v19, %s16221_s19  ;;  %22625 = vst [vmem:[#allocation60_spill] sm:$0xff] %v17273_v26 }
 0x255   : > { %v17255_v11 = vpop.permute.xlu1 %2781 }
 0x256   : > { %22620 = vst [vmem:[#allocation55_spill] sm:$0xff] %v17255_v11  ;;  %v17269_v14 = vpop.permute.xlu0 %2803 }
 0x257   : > { %1826 = vrot.lane.b32.xlu1 %v16883_v13, %s16221_s19  ;;  %22624 = vst [vmem:[#allocation59_spill] sm:$0xff] %v17269_v14 }
 0x258   : > { %1844 = vrot.lane.b32.xlu0 %v17273_v26, %s16221_s19 }
 0x259   : > { %v17263_v15 = vpop.permute.xlu1 %2801 }
 0x25a   : > { %22622 = vst [vmem:[#allocation57_spill] sm:$0xff] %v17263_v15  ;;  %v17281_v11 = vpop.permute.xlu0 %3112  ;;  %v17357_v15 = vld [vmem:[#allocation6 + $0x18] ss:$56 sps:$4 sm:$0xff]  }
 0x25b   : > { %1846 = vrot.lane.b32.xlu1 %v17267_v7, %s16221_s19  ;;  %22627 = vst [vmem:[#allocation62_spill] sm:$0xff] %v17281_v11 }
 0x25c   : > { %2414 = vrot.lane.b32.xlu0 %v17244_v50, %s16222_s8 }
 0x25d   : > { %v17279_v20 = vpop.permute.xlu1 %3114 }
 0x25e   : > { %22626 = vst [vmem:[#allocation61_spill] sm:$0xff] %v17279_v20  ;;  %v17289_v49 = vpop.permute.xlu0 %3132 }
 0x25f   : > { %2412 = vrot.lane.b32.xlu1 %v17249_v45, %s16222_s8  ;;  %22629 = vst [vmem:[#allocation64_spill] sm:$0xff] %v17289_v49 }
 0x260   : > { %2434 = vrot.lane.b32.xlu0 %v16883_v13, %s16222_s8 }
 0x261   : > { %v17287_v48 = vpop.permute.xlu1 %3134 }
 0x262   : > { %22628 = vst [vmem:[#allocation63_spill] sm:$0xff] %v17287_v48  ;;  %v17297_v20 = vpop.permute.xlu0 %3152 }
 0x263   : > { %2432 = vrot.lane.b32.xlu1 %v16885_v19, %s16222_s8  ;;  %22631 = vst [vmem:[#allocation66_spill] sm:$0xff] %v17297_v20 }
 0x264   : > { %2454 = vrot.lane.b32.xlu0 %v17267_v7, %s16222_s8 }
 0x265   : > { %v17295_v14 = vpop.permute.xlu1 %3154 }
 0x266   : > { %22630 = vst [vmem:[#allocation65_spill] sm:$0xff] %v17295_v14  ;;  %v17305_v48 = vpop.permute.xlu0 %3591 }
 0x267   : > { %2452 = vrot.lane.b32.xlu1 %v17273_v26, %s16222_s8  ;;  %22633 = vst [vmem:[#allocation68_spill] sm:$0xff] %v17305_v48 }
 0x268   : > { %2771 = vrot.lane.b32.xlu0 %v17244_v50, %s16223_s9 }
 0x269   : > { %v17303_v11 = vpop.permute.xlu1 %3589 }
 0x26a   : > { %22632 = vst [vmem:[#allocation67_spill] sm:$0xff] %v17303_v11  ;;  %v17313_v14 = vpop.permute.xlu0 %3611 }
 0x26b   : > { %2769 = vrot.lane.b32.xlu1 %v17249_v45, %s16223_s9  ;;  %22635 = vst [vmem:[#allocation70_spill] sm:$0xff] %v17313_v14 }
 0x26c   : > { %2791 = vrot.lane.b32.xlu0 %v16883_v13, %s16223_s9 }
 0x26d   : > { %v17311_v49 = vpop.permute.xlu1 %3609 }
 0x26e   : > { %22634 = vst [vmem:[#allocation69_spill] sm:$0xff] %v17311_v49  ;;  %v17321_v11 = vpop.permute.xlu0 %3629 }
 0x26f   : > { %2789 = vrot.lane.b32.xlu1 %v16885_v19, %s16223_s9  ;;  %22637 = vst [vmem:[#allocation72_spill] sm:$0xff] %v17321_v11 }
 0x270   : > { %2811 = vrot.lane.b32.xlu0 %v17267_v7, %s16223_s9 }
 0x271   : > { %v17319_v20 = vpop.permute.xlu1 %3631 }
 0x272   : > { %22636 = vst [vmem:[#allocation71_spill] sm:$0xff] %v17319_v20  ;;  %v17329_v49 = vpop.permute.xlu0 %3949 }
 0x273   : > { %2809 = vrot.lane.b32.xlu1 %v17273_v26, %s16223_s9  ;;  %22639 = vst [vmem:[#allocation74_spill] sm:$0xff] %v17329_v49 }
 0x274   : > { %3120 = vrot.lane.b32.xlu0 %v17249_v45, %s16224_s10 }
 0x275   : > { %v17327_v48 = vpop.permute.xlu1 %3947 }
 0x276   : > { %22638 = vst [vmem:[#allocation73_spill] sm:$0xff] %v17327_v48  ;;  %v17337_v20 = vpop.permute.xlu0 %3969 }
 0x277   : > { %3122 = vrot.lane.b32.xlu1 %v17244_v50, %s16224_s10  ;;  %22641 = vst [vmem:[#allocation76_spill] sm:$0xff] %v17337_v20 }
 0x278   : > { %3140 = vrot.lane.b32.xlu0 %v16885_v19, %s16224_s10 }
 0x279   : > { %v17335_v14 = vpop.permute.xlu1 %3987 }
 0x27a   : > { %22640 = vst [vmem:[#allocation75_spill] sm:$0xff] %v17335_v14  ;;  %v17345_v48 = vpop.permute.xlu0 %3967  ;;  %v17353_v14 = vld [vmem:[#allocation6 + $0x14] ss:$56 sps:$4 sm:$0xff]  }
 0x27b   : > { %3142 = vrot.lane.b32.xlu1 %v16883_v13, %s16224_s10  ;;  %22642 = vst [vmem:[#allocation77_spill] sm:$0xff] %v17345_v48 }
 0x27c   : > { %3160 = vrot.lane.b32.xlu0 %v17273_v26, %s16224_s10 }
 0x27d   : > { %v17343_v11 = vpop.permute.xlu1 %1802 }
 0x27e   : > { %v17355_v20 = vpop.permute.xlu0 %3989 }
 0x27f   : > { %3162 = vrot.lane.b32.xlu1 %v17267_v7, %s16224_s10  ;;  %22643 = vst [vmem:[#allocation78_spill] sm:$0xff] %v17355_v20  ;;  %v17405_v7 = vcombine.high %v3479_v21, %v3479_v21 }
 0x280   : > { %3599 = vrot.lane.b32.xlu0 %v17357_v15, %s16225_s11 }
 0x281   : > { %v17351_v49 = vpop.permute.xlu1 %1822 }
 0x282   : > { %v17367_v9 = vpop.permute.xlu0 %1800 }
 0x283   : > { %3597 = vrot.lane.b32.xlu1 %v17353_v14, %s16225_s11  ;;  %v1856_v20 = vsel %vm22567_vm9, %v17162_v16, %v17367_v9  ;;  %v1677_v16 = vld [vmem:[#allocation6 + $0x20] sm:$0xff] }
 0x284   : > { %3619 = vrot.lane.b32.xlu0 %v17369_v51, %s16225_s11  ;;  %1970 = vmatprep.subr.bf16.mxu0 %v1856_v20  ;;  %v1873_v20 = vsel %vm22567_vm9, %v17197_v32, %v17193_v18  ;;  %v14123_v21 = vcombine.low %v1677_v16, %v16910_v55 }
 0x285   : > { %v17363_v48 = vpop.permute.xlu1 %1842  ;;  %1971 = vmatpush1.bf16.msra.mxu0 %v1855_v35 }
 0x286   : > { %v17383_v53 = vpop.permute.xlu0 %1820 }
 0x287   : > { %3617 = vrot.lane.b32.xlu1 %v17365_v43, %s16225_s11  ;;  %v1865_v26 = vsel %vm22567_vm9, %v17175_v3, %v17383_v53 }
 0x288   : > { %3637 = vrot.lane.b32.xlu0 %v17385_v36, %s16225_s11  ;;  %1972 = vmatprep.subr.bf16.mxu0 %v1865_v26  ;;  %v1909_v26 = vsel %vm1616_vm1, %v1873_v20, 0 }
 0x289   : > { %v17381_v4 = vpop.permute.xlu1 %2408  ;;  %1973 = vmatpush1.bf16.msra.mxu0 %v1864_v63  ;;  %v16115_v63 = vpack.c.bf16 %v16933_v42, %v16933_v42 }
 0x28a   : > { %22644 = vst [vmem:[#allocation79_spill] sm:$0xff] %v17381_v4  ;;  %v14124_v4 = vcombine.high %v1677_v16, %v16910_v55  ;;  %v17403_v31 = vpop.permute.xlu0 %1840 }
 0x28b   : > { %3955 = vrot.lane.b32.xlu1 %v17353_v14, %s16226_s12  ;;  %v1874_v25 = vsel %vm22567_vm9, %v17193_v18, %v17403_v31 }
 0x28c   : > { %3639 = vrot.lane.b32.xlu0 %v17405_v7, %s16225_s11  ;;  %14147 = vmatprep.subr.msk.bf16.mxu0 %vm1616_vm1, %v1874_v25  ;;  %v16116_v25 = vpack.c.bf16 %v16922_v17, %v16922_v17 }
 0x28d   : > { %v17400_v35 = vpop.permute.xlu1 %2428  ;;  %1975 = vmatpush1.bf16.msra.mxu0 %v1909_v26 }
 0x28e   : > { %22645 = vst [vmem:[#allocation80_spill] sm:$0xff] %v17400_v35  ;;  %v17417_v3 = vpop.permute.xlu0 %2410  ;;  %v3481_v35 = vld [vmem:[#allocation6 + $0x104] sm:$0xff] }
 0x28f   : > { %1810 = vrot.lane.b32.xlu1 %v14124_v4, %s16221_s19  ;;  %22647 = vst [vmem:[#allocation82_spill] sm:$0xff] %v17417_v3  ;;  %v17563_v19 = vcombine.low %v3481_v35, %v3481_v35 }
 0x290   : > { %1808 = vrot.lane.b32.xlu0 %v14123_v21, %s16221_s19  ;;  %14148 = vmatmul.mubr.msk.bf16.vlgmr.msra.gmra.mrb[20].mxu0 %vm1898_vm10, %v16652_v29 }
 0x291   : > { %v17415_v32 = vpop.permute.xlu1 %2448  ;;  %2084 = vmatprep.mubr.bf16.mxu0 %v22614_v6 }
 0x292   : > { %22646 = vst [vmem:[#allocation81_spill] sm:$0xff] %v17415_v32  ;;  %v17430_v20 = vpop.permute.xlu0 %2430 }
 0x293   : > { %1830 = vrot.lane.b32.xlu1 %v16942_v46, %s16221_s19  ;;  %22649 = vst [vmem:[#allocation84_spill] sm:$0xff] %v17430_v20  ;;  %v17542_v20 = vld [vmem:[#allocation6 + $0x94] ss:$56 sps:$4 sm:$0xff]  }
 0x294   : > { %1828 = vrot.lane.b32.xlu0 %v16944_v57, %s16221_s19 }
 0x295   : > { %v17425_v18 = vpop.permute.xlu1 %2765 }
 0x296   : > { %22648 = vst [vmem:[#allocation83_spill] sm:$0xff] %v17425_v18  ;;  %v17437_v16 = vpop.permute.xlu0 %2450 }
 0x297   : > { %1850 = vrot.lane.b32.xlu1 %v16115_v63, %s16221_s19  ;;  %22651 = vst [vmem:[#allocation86_spill] sm:$0xff] %v17437_v16 }
 0x298   : > { %1848 = vrot.lane.b32.xlu0 %v16116_v25, %s16221_s19 }
 0x299   : > { %v17435_v55 = vpop.permute.xlu1 %2785 }
 0x29a   : > { %22650 = vst [vmem:[#allocation85_spill] sm:$0xff] %v17435_v55  ;;  %v17445_v26 = vpop.permute.xlu0 %2767 }
 0x29b   : > { %2416 = vrot.lane.b32.xlu1 %v14123_v21, %s16222_s8  ;;  %22653 = vst [vmem:[#allocation88_spill] sm:$0xff] %v17445_v26 }
 0x29c   : > { %2418 = vrot.lane.b32.xlu0 %v14124_v4, %s16222_s8 }
 0x29d   : > { %v17443_v42 = vpop.permute.xlu1 %2805 }
 0x29e   : > { %22652 = vst [vmem:[#allocation87_spill] sm:$0xff] %v17443_v42  ;;  %v17452_v55 = vpop.permute.xlu0 %2787 }
 0x29f   : > { %2436 = vrot.lane.b32.xlu1 %v16944_v57, %s16222_s8  ;;  %22655 = vst [vmem:[#allocation90_spill] sm:$0xff] %v17452_v55 }
 0x2a0   : > { %2438 = vrot.lane.b32.xlu0 %v16942_v46, %s16222_s8 }
 0x2a1   : > { %v17450_v18 = vpop.permute.xlu1 %3118 }
 0x2a2   : > { %22654 = vst [vmem:[#allocation89_spill] sm:$0xff] %v17450_v18  ;;  %v17459_v16 = vpop.permute.xlu0 %2807 }
 0x2a3   : > { %2456 = vrot.lane.b32.xlu1 %v16116_v25, %s16222_s8  ;;  %22657 = vst [vmem:[#allocation92_spill] sm:$0xff] %v17459_v16 }
 0x2a4   : > { %2458 = vrot.lane.b32.xlu0 %v16115_v63, %s16222_s8 }
 0x2a5   : > { %v17457_v17 = vpop.permute.xlu1 %3138 }
 0x2a6   : > { %22656 = vst [vmem:[#allocation91_spill] sm:$0xff] %v17457_v17  ;;  %v17465_v42 = vpop.permute.xlu0 %3116 }
 0x2a7   : > { %2773 = vrot.lane.b32.xlu1 %v14123_v21, %s16223_s9  ;;  %22659 = vst [vmem:[#allocation94_spill] sm:$0xff] %v17465_v42 }
 0x2a8   : > { %2775 = vrot.lane.b32.xlu0 %v14124_v4, %s16223_s9 }
 0x2a9   : > { %v17463_v26 = vpop.permute.xlu1 %3158 }
 0x2aa   : > { %22658 = vst [vmem:[#allocation93_spill] sm:$0xff] %v17463_v26  ;;  %v17472_v55 = vpop.permute.xlu0 %3136 }
 0x2ab   : > { %2793 = vrot.lane.b32.xlu1 %v16944_v57, %s16223_s9  ;;  %22661 = vst [vmem:[#allocation96_spill] sm:$0xff] %v17472_v55 }
 0x2ac   : > { %2795 = vrot.lane.b32.xlu0 %v16942_v46, %s16223_s9 }
 0x2ad   : > { %v17470_v18 = vpop.permute.xlu1 %3593 }
 0x2ae   : > { %22660 = vst [vmem:[#allocation95_spill] sm:$0xff] %v17470_v18  ;;  %v17479_v16 = vpop.permute.xlu0 %3156 }
 0x2af   : > { %2813 = vrot.lane.b32.xlu1 %v16116_v25, %s16223_s9  ;;  %22663 = vst [vmem:[#allocation98_spill] sm:$0xff] %v17479_v16 }
 0x2b0   : > { %2815 = vrot.lane.b32.xlu0 %v16115_v63, %s16223_s9 }
 0x2b1   : > { %v17477_v17 = vpop.permute.xlu1 %3613 }
 0x2b2   : > { %22662 = vst [vmem:[#allocation97_spill] sm:$0xff] %v17477_v17  ;;  %v17485_v42 = vpop.permute.xlu0 %3595  ;;  %v17499_v17 = vld [vmem:[#allocation6 + $0x1c] ss:$56 sps:$4 sm:$0xff]  }
 0x2b3   : > { %3126 = vrot.lane.b32.xlu1 %v14124_v4, %s16224_s10  ;;  %22665 = vst [vmem:[#allocation100_spill] sm:$0xff] %v17485_v42 }
 0x2b4   : > { %3124 = vrot.lane.b32.xlu0 %v14123_v21, %s16224_s10  ;;  %v17508_v21 = vld [vmem:[#allocation6 + $0x8c] ss:$56 sps:$4 sm:$0xff]  }
 0x2b5   : > { %v17483_v26 = vpop.permute.xlu1 %3635 }
 0x2b6   : > { %22664 = vst [vmem:[#allocation99_spill] sm:$0xff] %v17483_v26  ;;  %v17492_v55 = vpop.permute.xlu0 %3615 }
 0x2b7   : > { %3146 = vrot.lane.b32.xlu1 %v16942_v46, %s16224_s10  ;;  %22667 = vst [vmem:[#allocation102_spill] sm:$0xff] %v17492_v55  ;;  %v1857_v55 = vsel %vm22567_vm9, %v17367_v9, %v17343_v11  ;;  %v1866_v9 = vsel %vm22567_vm9, %v17383_v53, %v17351_v49 }
 0x2b8   : > { %3144 = vrot.lane.b32.xlu0 %v16944_v57, %s16224_s10 }
 0x2b9   : > { %v17490_v18 = vpop.permute.xlu1 %3951 }
 0x2ba   : > { %22666 = vst [vmem:[#allocation101_spill] sm:$0xff] %v17490_v18  ;;  %v17501_v26 = vpop.permute.xlu0 %3633 }
 0x2bb   : > { %3166 = vrot.lane.b32.xlu1 %v16115_v63, %s16224_s10  ;;  %22669 = vst [vmem:[#allocation104_spill] sm:$0xff] %v17501_v26  ;;  %v17512_v63 = vld [vmem:[#allocation6 + $0x20] ss:$56 sps:$4 sm:$0xff]  }
 0x2bc   : > { %3164 = vrot.lane.b32.xlu0 %v16116_v25, %s16224_s10  ;;  %v17524_v25 = vld [vmem:[#allocation6 + $0x28] ss:$56 sps:$4 sm:$0xff]  }
 0x2bd   : > { %v17497_v4 = vpop.permute.xlu1 %3971 }
 0x2be   : > { %22668 = vst [vmem:[#allocation103_spill] sm:$0xff] %v17497_v4  ;;  %v17510_v18 = vpop.permute.xlu0 %3953  ;;  %v17520_v4 = vld [vmem:[#allocation6 + $0x90] ss:$56 sps:$4 sm:$0xff]  }
 0x2bf   : > { %3601 = vrot.lane.b32.xlu1 %v17499_v17, %s16225_s11  ;;  %22671 = vst [vmem:[#allocation106_spill] sm:$0xff] %v17510_v18 }
 0x2c0   : > { %3603 = vrot.lane.b32.xlu0 %v17512_v63, %s16225_s11 }
 0x2c1   : > { %v17506_v46 = vpop.permute.xlu1 %3991 }
 0x2c2   : > { %22670 = vst [vmem:[#allocation105_spill] sm:$0xff] %v17506_v46  ;;  %v17522_v26 = vpop.permute.xlu0 %1804  ;;  %v3480_v46 = vld [vmem:[#allocation6 + $0xfc] sm:$0xff] }
 0x2c3   : > { %3621 = vrot.lane.b32.xlu1 %v17508_v21, %s16225_s11  ;;  %v1858_v18 = vsel %vm22567_vm9, %v17343_v11, %v17522_v26  ;;  %v17538_v16 = vcombine.low %v3480_v46, %v3480_v46  ;;  %v1875_v11 = vsel %vm22567_vm9, %v17403_v31, %v17363_v48  ;;  %v17559_v3 = vcombine.high %v3480_v46, %v3480_v46  ;;  %v17576_v46 = vld [vmem:[#allocation6 + $0x24] ss:$56 sps:$4 sm:$0xff]  }
 0x2c4   : > { %3607 = vrot.lane.b32.xlu0 %v17524_v25, %s16225_s11  ;;  %2011 = vmatprep.subr.bf16.mxu1 %v1858_v18  ;;  %v1915_v31 = vsel %vm1616_vm1, %v1875_v11, 0  ;;  %v17591_v11 = vld [vmem:[#allocation6 + $0x98] ss:$56 sps:$4 sm:$0xff]  }
 0x2c5   : > { %v17518_v57 = vpop.permute.xlu1 %1806  ;;  %2012 = vmatpush1.bf16.msra.mxu1 %v1857_v55 }
 0x2c6   : > { %v17540_v32 = vpop.permute.xlu0 %1824 }
 0x2c7   : > { %3623 = vrot.lane.b32.xlu1 %v17520_v4, %s16225_s11  ;;  %v1867_v18 = vsel %vm22567_vm9, %v17351_v49, %v17540_v32 }
 0x2c8   : > { %3625 = vrot.lane.b32.xlu0 %v17542_v20, %s16225_s11  ;;  %2013 = vmatprep.subr.bf16.mxu1 %v1867_v18 }
 0x2c9   : > { %v17536_v42 = vpop.permute.xlu1 %1826  ;;  %2014 = vmatpush1.bf16.msra.mxu1 %v1866_v9  ;;  %v17580_v9 = vcombine.high %v3481_v35, %v3481_v35 }
 0x2ca   : > { %v17561_v27 = vpop.permute.xlu0 %1844 }
 0x2cb   : > { %3641 = vrot.lane.b32.xlu1 %v17538_v16, %s16225_s11  ;;  %v1876_v53 = vsel %vm22567_vm9, %v17363_v48, %v17561_v27 }
 0x2cc   : > { %3645 = vrot.lane.b32.xlu0 %v17563_v19, %s16225_s11  ;;  %14149 = vmatprep.subr.msk.bf16.mxu1 %vm1616_vm1, %v1876_v53 }
 0x2cd   : > { %v17557_v55 = vpop.permute.xlu1 %1846  ;;  %2016 = vmatpush1.bf16.msra.mxu1 %v1915_v31 }
 0x2ce   : > { %v17578_v18 = vpop.permute.xlu0 %2414  ;;  %14979 = vmatprep.subr.bf16.mxu1 %v22674_v5 }
 0x2cf   : > { %3643 = vrot.lane.b32.xlu1 %v17559_v3, %s16225_s11  ;;  %22673 = vst [vmem:[#allocation108_spill] sm:$0xff] %v17578_v18 }
 0x2d0   : > { %3647 = vrot.lane.b32.xlu0 %v17580_v9, %s16225_s11  ;;  %14150 = vmatmul.mubr.msk.bf16.vlgmr.msra.gmra.mrb[28].mxu1 %vm1898_vm10, %v16652_v29 }
 0x2d1   : > { %v17574_v49 = vpop.permute.xlu1 %2412  ;;  %14985 = vmatprep.mubr.msk.bf16.mxu1 %vm16227_vm11, %v22674_v5 }
 0x2d2   : > { %22672 = vst [vmem:[#allocation107_spill] sm:$0xff] %v17574_v49  ;;  %v17595_v35 = vpop.permute.xlu0 %2434 }
 0x2d3   : > { %3605 = vrot.lane.b32.xlu1 %v17576_v46, %s16225_s11  ;;  %22676 = vst [vmem:[#allocation110_spill] sm:$0xff] %v17595_v35  ;;  %v1649_v35 = vld [vmem:[%s22429_s3 + $0x8] sm:$0xff] }
 0x2d4   : > { %3973 = vrot.lane.b32.xlu0 %v17214_v1, %s16226_s12 }
 0x2d5   : > { %v17589_v48 = vpop.permute.xlu1 %2432 }
 0x2d6   : > { %22675 = vst [vmem:[#allocation109_spill] sm:$0xff] %v17589_v48  ;;  %v17603_v31 = vpop.permute.xlu0 %2454 }
 0x2d7   : > { %3627 = vrot.lane.b32.xlu1 %v17591_v11, %s16225_s11  ;;  %22678 = vst [vmem:[#allocation112_spill] sm:$0xff] %v17603_v31 }
 0x2d8   : > { %3957 = vrot.lane.b32.xlu0 %v17357_v15, %s16226_s12 }
 0x2d9   : > { %v17601_v53 = vpop.permute.xlu1 %2452 }
 0x2da   : > { %22677 = vst [vmem:[#allocation111_spill] sm:$0xff] %v17601_v53  ;;  %v17614_v48 = vpop.permute.xlu0 %2771  ;;  %v17618_v53 = vcombine.low %v1649_v35, %v1649_v35 }
 0x2db   : > { %3975 = vrot.lane.b32.xlu1 %v17365_v43, %s16226_s12  ;;  %22680 = vst [vmem:[#allocation114_spill] sm:$0xff] %v17614_v48 }
 0x2dc   : > { %3941 = vrot.lane.b32.xlu0 %v16389_v24, %s16228_s22 }
 0x2dd   : > { %v17612_v18 = vpop.permute.xlu1 %2769 }
 0x2de   : > { %22679 = vst [vmem:[#allocation113_spill] sm:$0xff] %v17612_v18  ;;  %v17624_v49 = vpop.permute.xlu0 %2791 }
 0x2df   : > { %3959 = vrot.lane.b32.xlu1 %v17499_v17, %s16226_s12  ;;  %22682 = vst [vmem:[#allocation116_spill] sm:$0xff] %v17624_v49 }
 0x2e0   : > { %3993 = vrot.lane.b32.xlu0 %v17195_v0, %s16226_s12 }
 0x2e1   : > { %v17622_v31 = vpop.permute.xlu1 %2789 }
 0x2e2   : > { %22681 = vst [vmem:[#allocation115_spill] sm:$0xff] %v17622_v31  ;;  %v17632_v18 = vpop.permute.xlu0 %2811 }
 0x2e3   : > { %3943 = vrot.lane.b32.xlu1 %v17618_v53, %s16228_s22  ;;  %22684 = vst [vmem:[#allocation118_spill] sm:$0xff] %v17632_v18 }
 0x2e4   : > { %3977 = vrot.lane.b32.xlu0 %v17369_v51, %s16226_s12 }
 0x2e5   : > { %v17630_v48 = vpop.permute.xlu1 %2809 }
 0x2e6   : > { %22683 = vst [vmem:[#allocation117_spill] sm:$0xff] %v17630_v48  ;;  %v17640_v35 = vpop.permute.xlu0 %3120 }
 0x2e7   : > { %3995 = vrot.lane.b32.xlu1 %v17385_v36, %s16226_s12  ;;  %22686 = vst [vmem:[#allocation120_spill] sm:$0xff] %v17640_v35 }
 0x2e8   : > { %3961 = vrot.lane.b32.xlu0 %v17512_v63, %s16226_s12 }
 0x2e9   : > { %v17638_v24 = vpop.permute.xlu1 %3122 }
 0x2ea   : > { %22685 = vst [vmem:[#allocation119_spill] sm:$0xff] %v17638_v24  ;;  %v17648_v48 = vpop.permute.xlu0 %3140 }
 0x2eb   : > { %3979 = vrot.lane.b32.xlu1 %v17508_v21, %s16226_s12  ;;  %22688 = vst [vmem:[#allocation122_spill] sm:$0xff] %v17648_v48 }
 0x2ec   : > { %3997 = vrot.lane.b32.xlu0 %v17405_v7, %s16226_s12 }
 0x2ed   : > { %v17646_v49 = vpop.permute.xlu1 %3142 }
 0x2ee   : > { %22687 = vst [vmem:[#allocation121_spill] sm:$0xff] %v17646_v49  ;;  %v17656_v24 = vpop.permute.xlu0 %3160 }
 0x2ef   : > { %3963 = vrot.lane.b32.xlu1 %v17576_v46, %s16226_s12  ;;  %22690 = vst [vmem:[#allocation124_spill] sm:$0xff] %v17656_v24 }
 0x2f0   : > { %3981 = vrot.lane.b32.xlu0 %v17520_v4, %s16226_s12 }
 0x2f1   : > { %v17654_v18 = vpop.permute.xlu1 %3162 }
 0x2f2   : > { %22689 = vst [vmem:[#allocation123_spill] sm:$0xff] %v17654_v18  ;;  %v17664_v49 = vpop.permute.xlu0 %3599 }
 0x2f3   : > { %3999 = vrot.lane.b32.xlu1 %v17538_v16, %s16226_s12  ;;  %22692 = vst [vmem:[#allocation126_spill] sm:$0xff] %v17664_v49 }
 0x2f4   : > { %3965 = vrot.lane.b32.xlu0 %v17524_v25, %s16226_s12 }
 0x2f5   : > { %v17662_v35 = vpop.permute.xlu1 %3597 }
 0x2f6   : > { %22691 = vst [vmem:[#allocation125_spill] sm:$0xff] %v17662_v35  ;;  %v17672_v18 = vpop.permute.xlu0 %3619 }
 0x2f7   : > { %3983 = vrot.lane.b32.xlu1 %v17542_v20, %s16226_s12  ;;  %22694 = vst [vmem:[#allocation128_spill] sm:$0xff] %v17672_v18 }
 0x2f8   : > { %4003 = vrot.lane.b32.xlu0 %v17563_v19, %s16226_s12 }
 0x2f9   : > { %v17670_v48 = vpop.permute.xlu1 %3617 }
 0x2fa   : > { %22693 = vst [vmem:[#allocation127_spill] sm:$0xff] %v17670_v48  ;;  %v17680_v35 = vpop.permute.xlu0 %3637 }
 0x2fb   : > { %4001 = vrot.lane.b32.xlu1 %v17559_v3, %s16226_s12  ;;  %22696 = vst [vmem:[#allocation130_spill] sm:$0xff] %v17680_v35 }
 0x2fc   : > { %4300 = vrot.lane.b32.xlu0 %v17028_v60, %s16211_s13  ;;  %v1859_v60 = vsel %vm22567_vm9, %v17522_v26, %v17518_v57  ;;  %v1877_v26 = vsel %vm22567_vm9, %v17561_v27, %v17557_v55 }
 0x2fd   : > { %v17678_v24 = vpop.permute.xlu1 %3955  ;;  %v1921_v27 = vsel %vm1616_vm1, %v1877_v26, 0  ;;  %v22707_v26 = vld [vmem:[#allocation29_spill] sm:$0xff] }
 0x2fe   : > { %22695 = vst [vmem:[#allocation129_spill] sm:$0xff] %v17678_v24  ;;  %v17686_v48 = vpop.permute.xlu0 %3639 }
 0x2ff   : > { %3985 = vrot.lane.b32.xlu1 %v17591_v11, %s16226_s12  ;;  %22697 = vst [vmem:[#allocation131_spill] sm:$0xff] %v17686_v48 }
 0x300   : > { %4298 = vrot.lane.b32.xlu0 %v17026_v34, %s16211_s13 }
 0x301   : > { %v1811_v49 = vpop.permute.xlu1 %1810 }
 0x302   : > { %v1809_v31 = vpop.permute.xlu0 %1808 }
 0x303   : > { %4302 = vrot.lane.b32.xlu1 %v17164_v52, %s16211_s13  ;;  %v1860_v24 = vsel %vm22567_vm9, %v17518_v57, %v1809_v31  ;;  %v1861_v35 = vsel %vm22567_vm9, %v1809_v31, %v1811_v49 }
 0x304   : > { %4320 = vrot.lane.b32.xlu0 %v17036_v33, %s16211_s13  ;;  %2052 = vmatprep.subr.bf16.mxu0 %v1860_v24  ;;  %v1868_v33 = vsel %vm22567_vm9, %v17540_v32, %v17536_v42 }
 0x305   : > { %v1831_v18 = vpop.permute.xlu1 %1830  ;;  %14980 = vmatpush3.bf16.msra.mxu1 %v1861_v35  ;;  %2053 = vmatpush1.bf16.msra.mxu0 %v1859_v60  ;;  %v22704_v35 = vld [vmem:[#allocation32_spill] sm:$0xff] }
 0x306   : > { %v1829_v48 = vpop.permute.xlu0 %1828  ;;  %14981 = vmatprep.subr.bf16.mxu1 %v22674_v5  ;;  %v2180_v60 = vsel %vm1616_vm1, %v22704_v35, 0 }
 0x307   : > { %4005 = vrot.lane.b32.xlu1 %v17580_v9, %s16226_s12  ;;  %v1869_v49 = vsel %vm22567_vm9, %v17536_v42, %v1829_v48  ;;  %v1870_v31 = vsel %vm22567_vm9, %v1829_v48, %v1831_v18  ;;  %s16235_s12 = smov 60  }
 0x308   : > { %4318 = vrot.lane.b32.xlu0 %v17034_v38, %s16211_s13  ;;  %2054 = vmatprep.subr.bf16.mxu0 %v1869_v49 }
 0x309   : > { %v1851_v34 = vpop.permute.xlu1 %1850  ;;  %14982 = vmatpush3.bf16.msra.mxu1 %v1870_v31  ;;  %2055 = vmatpush1.bf16.msra.mxu0 %v1868_v33  ;;  %v22706_v33 = vld [vmem:[#allocation47_spill] sm:$0xff] }
 0x30a   : > { %v1849_v24 = vpop.permute.xlu0 %1848  ;;  %14983 = vmatprep.subr.bf16.mxu1 %v22674_v5 }
 0x30b   : > { %4322 = vrot.lane.b32.xlu1 %v17177_v2, %s16211_s13  ;;  %v1879_v18 = vsel %vm22567_vm9, %v1849_v24, %v1851_v34  ;;  %v1878_v38 = vsel %vm22567_vm9, %v17557_v55, %v1849_v24  ;;  %v22705_v34 = vld [vmem:[#allocation60_spill] sm:$0xff]  ;;  %v2462_v24 = vsel %vm22565_vm12, %v22707_v26, %v22706_v33  ;;  %vm6607_vm9 = vcmask 490496  }
 0x30c   : > { %4306 = vrot.lane.b32.xlu0 %v17353_v14, %s16211_s13  ;;  %14151 = vmatprep.subr.msk.bf16.mxu0 %vm1616_vm1, %v1878_v38  ;;  %v1927_v32 = vsel %vm1616_vm1, %v1879_v18, 0  ;;  %v2186_v49 = vsel %vm1616_vm1, %v22705_v34, 0  ;;  %v15804_v38 = vld [vmem:[#allocation6 + $0x20] ss:$56 sps:$4 sm:$0xff]  }
 0x30d   : > { %v17716_v57 = vpop.permute.xlu1 %2416  ;;  %2057 = vmatpush1.bf16.msra.mxu0 %v1921_v27  ;;  %14984 = vmatpush3.bf16.msra.mxu1 %v1927_v32  ;;  %v22708_v27 = vld [vmem:[#allocation28_spill] sm:$0xff]  ;;  %v22712_v34 = vld [vmem:[#allocation34_spill] sm:$0xff] }
 0x30e   : > { %2194 = vmatprep.subr.bf16.mxu0 %v16728_v59  ;;  %2235 = vmatprep.subr.bf16.mxu1 %v16956_v62  ;;  %v17733_v48 = vpop.permute.xlu0 %2418  ;;  %v2168_v62 = vsel %vm1616_vm1, %v16781_v41, 0  ;;  %v17792_v41 = vld [vmem:[%s22429_s3] sm:$0xff]  ;;  %v2461_v32 = vsel %vm22565_vm12, %v22708_v27, %v22707_v26 }
 0x30f   : > { %4304 = vrot.lane.b32.xlu1 %v17199_v37, %s16211_s13 }
 0x310   : > { %4340 = vrot.lane.b32.xlu0 %v17042_v47, %s16211_s13  ;;  %14152 = vmatmul.mubr.msk.bf16.vlgmr.msra.gmra.mrb[24].mxu0 %vm1898_vm10, %v16652_v29 }
 0x311   : > { %v17729_v42 = vpop.permute.xlu1 %2436  ;;  %14986 = vmatmul.mubr.msk.bf16.vlgmr.msra.gmra.mrb[32].mxu1 %vm1898_vm10, %v16652_v29  ;;  %2195 = vmatpush1.bf16.msra.mxu0 %v16740_v8 }
 0x312   : > { %2236 = vmatpush1.bf16.msra.mxu1 %v16960_v40  ;;  %2196 = vmatprep.subr.bf16.mxu0 %v16763_v58  ;;  %v17748_v59 = vpop.permute.xlu0 %2438 }
 0x313   : > { %4338 = vrot.lane.b32.xlu1 %v17044_v22, %s16211_s13  ;;  %2237 = vmatprep.subr.bf16.mxu1 %v16968_v30 }
 0x314   : > { %4324 = vrot.lane.b32.xlu0 %v17214_v1, %s16211_s13  ;;  %2226 = vmatprep.mubr.bf16.mxu0 %v22614_v6  ;;  %v22700_v1 = vld [vmem:[#allocation25_spill] sm:$0xff] }
 0x315   : > { %v17744_v55 = vpop.permute.xlu1 %2456  ;;  %2197 = vmatpush1.bf16.msra.mxu0 %v16767_v10  ;;  %2267 = vmatprep.mubr.bf16.mxu1 %v22614_v6 }
 0x316   : > { %2238 = vmatpush1.bf16.msra.mxu1 %v16972_v12  ;;  %14157 = vmatprep.subr.msk.bf16.mxu0 %vm1616_vm1, %v16777_v56  ;;  %v17763_v8 = vpop.permute.xlu0 %2458  ;;  %v2174_v56 = vsel %vm1616_vm1, %v16984_v44, 0 }
 0x317   : > { %4342 = vrot.lane.b32.xlu1 %v17227_v23, %s16211_s13  ;;  %14159 = vmatprep.subr.msk.bf16.mxu1 %vm1616_vm1, %v16980_v39  ;;  %v17767_v58 = vpop.f32.mrb[24].mxu1 }
 0x318   : > { %22698 = vst [vmem:[#allocation132_spill] sm:$0xff] %v17767_v58  ;;  %v17771_v10 = vpop.f32.mrb[25].mxu1  ;;  %4308 = vrot.lane.b32.xlu0 %v17357_v15, %s16211_s13 }
 0x319   : > { %v17757_v29 = vpop.permute.xlu1 %2773  ;;  %22699 = vst [vmem:[#allocation133_spill] sm:$0xff] %v17771_v10  ;;  %v1967_v40 = vpop.f32.mrb[26].mxu1  ;;  %2199 = vmatpush1.bf16.msra.mxu0 %v2168_v62 }
 0x31a   : > { %2240 = vmatpush1.bf16.msra.mxu1 %v2174_v56  ;;  %v1968_v12 = vpop.f32.mrb[27].mxu1  ;;  %2276 = vmatprep.subr.bf16.mxu0 %v17059_v61  ;;  %v17782_v39 = vpop.permute.xlu0 %2775  ;;  %v22709_v40 = vld [vmem:[#allocation49_spill] sm:$0xff]  ;;  %v22710_v56 = vld [vmem:[#allocation31_spill] sm:$0xff] }
 0x31b   : > { %4326 = vrot.lane.b32.xlu1 %v17365_v43, %s16211_s13  ;;  %2317 = vmatprep.subr.bf16.mxu1 %v17244_v50  ;;  %v22703_v50 = vld [vmem:[#allocation58_spill] sm:$0xff]  ;;  %v2471_v12 = vsel %vm22565_vm12, %v22710_v56, %v22709_v40 }
 0x31c   : > { %4296 = vrot.lane.b32.xlu0 %v17618_v53, %s16222_s8  ;;  %14158 = vmatmul.mubr.msk.bf16.vlgmr.msra.gmra.mrb[28].mxu0 %vm1898_vm10, %v17792_v41 }
 0x31d   : > { %v17779_v30 = vpop.permute.xlu1 %2793  ;;  %14160 = vmatmul.mubr.msk.bf16.vlgmr.msra.gmra.mrb[36].mxu1 %vm1898_vm10, %v17792_v41  ;;  %2277 = vmatpush1.bf16.msra.mxu0 %v17080_v28 }
 0x31e   : > { %2318 = vmatpush1.bf16.msra.mxu1 %v17249_v45  ;;  %2278 = vmatprep.subr.bf16.mxu0 %v16864_v54  ;;  %v17803_v61 = vpop.permute.xlu0 %2795  ;;  %v22701_v45 = vld [vmem:[#allocation26_spill] sm:$0xff]  ;;  %v22702_v54 = vld [vmem:[#allocation27_spill] sm:$0xff] }
 0x31f   : > { %4310 = vrot.lane.b32.xlu1 %v17499_v17, %s16211_s13  ;;  %2319 = vmatprep.subr.bf16.mxu1 %v16883_v13 }
 0x320   : > { %4346 = vrot.lane.b32.xlu0 %v17385_v36, %s16211_s13  ;;  %2308 = vmatprep.mubr.bf16.mxu0 %v22614_v6 }
 0x321   : > { %v17799_v44 = vpop.permute.xlu1 %2813  ;;  %2279 = vmatpush1.bf16.msra.mxu0 %v22700_v1  ;;  %2349 = vmatprep.mubr.bf16.mxu1 %v22614_v6 }
 0x322   : > { %2320 = vmatpush1.bf16.msra.mxu1 %v22701_v45  ;;  %14161 = vmatprep.subr.msk.bf16.mxu0 %vm1616_vm1, %v22702_v54  ;;  %v17818_v13 = vpop.permute.xlu0 %2815  ;;  %v15805_v45 = vld [vmem:[#allocation6 + $0x90] ss:$56 sps:$4 sm:$0xff]   ;;  %v15806_v54 = vld [vmem:[#allocation6 + $0x100] ss:$0 sps:$4 sm:$0xff]  }
 0x323   : > { %4344 = vrot.lane.b32.xlu1 %v17195_v0, %s16211_s13  ;;  %14163 = vmatprep.subr.msk.bf16.mxu1 %vm1616_vm1, %v22703_v50  ;;  %v22711_v50 = vld [vmem:[#allocation30_spill] sm:$0xff] }
 0x324   : > { %4330 = vrot.lane.b32.xlu0 %v17508_v21, %s16211_s13  ;;  %v2470_v35 = vsel %vm22565_vm12, %v22711_v50, %v22710_v56  ;;  %v22717_v50 = vld [vmem:[#allocation48_spill] sm:$0xff] }
 0x325   : > { %v17812_v28 = vpop.permute.xlu1 %3126  ;;  %2281 = vmatpush1.bf16.msra.mxu0 %v2180_v60 }
 0x326   : > { %2322 = vmatpush1.bf16.msra.mxu1 %v2186_v49  ;;  %v17835_v18 = vpop.permute.xlu0 %3124  ;;  %14989 = vmatprep.subr.bf16.mxu0 %v22674_v5  ;;  %v22713_v49 = vld [vmem:[#allocation33_spill] sm:$0xff] }
 0x327   : > { %4328 = vrot.lane.b32.xlu1 %v17369_v51, %s16211_s13  ;;  %2536 = vmatprep.subr.bf16.mxu1 %v2462_v24  ;;  %v2479_v26 = vsel %vm22565_vm12, %v22713_v49, %v22712_v34  ;;  %v22714_v24 = vld [vmem:[#allocation51_spill] sm:$0xff]  ;;  %v22719_v49 = vld [vmem:[#allocation82_spill] sm:$0xff] }
 0x328   : > { %4314 = vrot.lane.b32.xlu0 %v17576_v46, %s16211_s13  ;;  %14162 = vmatmul.mubr.msk.bf16.vlgmr.msra.gmra.mrb[32].mxu0 %vm1898_vm10, %v17792_v41  ;;  %v2510_v56 = vsel %vm1616_vm1, %v2479_v26, 0  ;;  %v22720_v26 = vld [vmem:[#allocation20_spill] sm:$0xff] }
 0x329   : > { %v17830_v31 = vpop.permute.xlu1 %3146  ;;  %14164 = vmatmul.mubr.msk.bf16.vlgmr.msra.gmra.mrb[40].mxu1 %vm1898_vm10, %v17792_v41  ;;  %14990 = vmatpush3.bf16.msra.mxu0 %v15804_v38  ;;  %v2480_v38 = vsel %vm22565_vm12, %v22712_v34, %v22714_v24  ;;  %v22718_v34 = vld [vmem:[#allocation107_spill] sm:$0xff] }
 0x32a   : > { %2537 = vmatpush1.bf16.msra.mxu1 %v2461_v32  ;;  %v17854_v1 = vpop.permute.xlu0 %3144  ;;  %14991 = vmatprep.subr.bf16.mxu0 %v22674_v5  ;;  %v2192_v32 = vsel %vm1616_vm1, %v15806_v54, 0  ;;  %v2463_v54 = vsel %vm22565_vm12, %v22706_v33, %v22717_v50 }
 0x32b   : > { %4312 = vrot.lane.b32.xlu1 %v17512_v63, %s16211_s13  ;;  %2538 = vmatprep.subr.bf16.mxu1 %v2471_v12 }
 0x32c   : > { %4350 = vrot.lane.b32.xlu0 %v17538_v16, %s16211_s13  ;;  %14995 = vmatprep.mubr.msk.bf16.mxu0 %vm16227_vm11, %v22674_v5 }
 0x32d   : > { %v17849_v62 = vpop.permute.xlu1 %3166  ;;  %14992 = vmatpush3.bf16.msra.mxu0 %v15805_v45  ;;  %2568 = vmatprep.mubr.bf16.mxu1 %v22614_v6  ;;  %v22716_v45 = vld [vmem:[#allocation79_spill] sm:$0xff] }
 0x32e   : > { %2539 = vmatpush1.bf16.msra.mxu1 %v2470_v35  ;;  %v17875_v27 = vpop.permute.xlu0 %3164  ;;  %14993 = vmatprep.subr.bf16.mxu0 %v22674_v5  ;;  %v2464_v35 = vsel %vm22565_vm12, %v22717_v50, %v22716_v45 }
 0x32f   : > { %4348 = vrot.lane.b32.xlu1 %v17405_v7, %s16211_s13  ;;  %14166 = vmatprep.subr.msk.bf16.mxu1 %vm1616_vm1, %v2480_v38  ;;  %v2466_v38 = vsel %vm22565_vm12, %v22719_v49, %v22718_v34 }
 0x330   : > { %4334 = vrot.lane.b32.xlu0 %v17542_v20, %s16211_s13 }
 0x331   : > { %v17866_v60 = vpop.permute.xlu1 %3601  ;;  %14994 = vmatpush3.bf16.msra.mxu0 %v2192_v32  ;;  %v2465_v32 = vsel %vm22565_vm12, %v22716_v45, %v22719_v49 }
 0x332   : > { %2541 = vmatpush1.bf16.msra.mxu1 %v2510_v56  ;;  %2577 = vmatprep.subr.bf16.mxu0 %v2464_v35  ;;  %v17893_v10 = vpop.permute.xlu0 %3603  ;;  %v22721_v35 = vld [vmem:[#allocation80_spill] sm:$0xff] }
 0x333   : > { %4332 = vrot.lane.b32.xlu1 %v17520_v4, %s16211_s13  ;;  %2618 = vmatprep.subr.bf16.mxu1 %v2466_v38  ;;  %v22722_v38 = vld [vmem:[#allocation50_spill] sm:$0xff] }
 0x334   : > { %4352 = vrot.lane.b32.xlu0 %v17559_v3, %s16211_s13  ;;  %14996 = vmatmul.mubr.msk.bf16.vlgmr.msra.gmra.mrb[36].mxu0 %vm1898_vm10, %v17792_v41  ;;  %v2473_v58 = vsel %vm22565_vm12, %v22722_v38, %v22721_v35  ;;  %v22723_v41 = vld [vmem:[#allocation109_spill] sm:$0xff]  ;;  %v2472_v45 = vsel %vm22565_vm12, %v22709_v40, %v22722_v38  ;;  %v22728_v40 = vld [vmem:[#allocation86_spill] sm:$0xff] }
 0x335   : > { %v17885_v12 = vpop.permute.xlu1 %3621  ;;  %14167 = vmatmul.mubr.msk.bf16.vlgmr.msra.gmra.mrb[44].mxu1 %vm1898_vm10, %v22720_v26  ;;  %2578 = vmatpush1.bf16.msra.mxu0 %v2463_v54 }
 0x336   : > { %22715 = vst [vmem:[#allocation25_spill] sm:$0xff] %v17885_v12  ;;  %2619 = vmatpush1.bf16.msra.mxu1 %v2465_v32  ;;  %2579 = vmatprep.subr.bf16.mxu0 %v2473_v58  ;;  %v22724_v12 = vld [vmem:[#allocation84_spill] sm:$0xff]  ;;  %v17917_v50 = vpop.permute.xlu0 %3607 }
 0x337   : > { %4316 = vrot.lane.b32.xlu1 %v17524_v25, %s16211_s13  ;;  %v2475_v33 = vsel %vm22565_vm12, %v22724_v12, %v22723_v41  ;;  %22725 = vst [vmem:[#allocation26_spill] sm:$0xff] %v17917_v50  ;;  %2609 = vmatprep.mubr.bf16.mxu0 %v22614_v6  ;;  %v22726_v58 = vld [vmem:[#allocation52_spill] sm:$0xff]  ;;  %v2474_v54 = vsel %vm22565_vm12, %v22721_v35, %v22724_v12  ;;  %v17949_v35 = vld [vmem:[#allocation6 + $0x8] ss:$56 sps:$4 sm:$0xff]  }
 0x338   : > { %2620 = vmatprep.subr.bf16.mxu1 %v2475_v33  ;;  %4336 = vrot.lane.b32.xlu0 %v17591_v11, %s16211_s13  ;;  %v2481_v49 = vsel %vm22565_vm12, %v22714_v24, %v22726_v58  ;;  %v22727_v33 = vld [vmem:[#allocation81_spill] sm:$0xff]  ;;  %v22729_v24 = vld [vmem:[#allocation111_spill] sm:$0xff] }
 0x339   : > { %v17909_v56 = vpop.permute.xlu1 %3623  ;;  %2580 = vmatpush1.bf16.msra.mxu0 %v2472_v45  ;;  %v2482_v50 = vsel %vm22565_vm12, %v22726_v58, %v22727_v33  ;;  %2650 = vmatprep.mubr.bf16.mxu1 %v22614_v6  ;;  %v2483_v38 = vsel %vm22565_vm12, %v22727_v33, %v22728_v40  ;;  %v2484_v45 = vsel %vm22565_vm12, %v22728_v40, %v22729_v24  ;;  %v2516_v58 = vsel %vm1616_vm1, %v2481_v49, 0  ;;  %v22731_v33 = vld [vmem:[#allocation108_spill] sm:$0xff] }
 0x33a   : > { %2621 = vmatpush1.bf16.msra.mxu1 %v2474_v54  ;;  %14168 = vmatprep.subr.msk.bf16.mxu0 %vm1616_vm1, %v2482_v50  ;;  %v17946_v12 = vpop.permute.xlu0 %3625  ;;  %v2522_v50 = vsel %vm1616_vm1, %v2483_v38, 0  ;;  %v2468_v40 = vsel %vm22565_vm12, %v22731_v33, %v17716_v57  ;;  %v2467_v49 = vsel %vm22565_vm12, %v22718_v34, %v22731_v33  ;;  %v2469_v38 = vsel %vm22565_vm12, %v17716_v57, %v17733_v48  ;;  %v22734_v48 = vld [vmem:[#allocation112_spill] sm:$0xff] }
 0x33b   : > { %4354 = vrot.lane.b32.xlu1 %v17563_v19, %s16211_s13  ;;  %14170 = vmatprep.subr.msk.bf16.mxu1 %vm1616_vm1, %v2484_v45  ;;  %v2485_v34 = vsel %vm22565_vm12, %v22729_v24, %v22734_v48  ;;  %v2478_v33 = vsel %vm22565_vm12, %v17729_v42, %v17748_v59 }
 0x33c   : > { %4653 = vrot.lane.b32.xlu0 %v17164_v52, %s16229_s29  ;;  %v17967_v52 = vld [vmem:[#allocation6 + $0x4] ss:$56 sps:$4 sm:$0xff]  }
 0x33d   : > { %v17933_v32 = vpop.permute.xlu1 %3641  ;;  %2582 = vmatpush1.bf16.msra.mxu0 %v2516_v58 }
 0x33e   : > { %2623 = vmatpush1.bf16.msra.mxu1 %v2522_v50  ;;  %2659 = vmatprep.subr.bf16.mxu0 %v2468_v40  ;;  %v17962_v45 = vpop.permute.xlu0 %3645  ;;  %v22733_v50 = vld [vmem:[#allocation110_spill] sm:$0xff] }
 0x33f   : > { %4651 = vrot.lane.b32.xlu1 %v17949_v35, %s16229_s29  ;;  %22732 = vst [vmem:[#allocation58_spill] sm:$0xff] %v17962_v45  ;;  %14999 = vmatprep.subr.bf16.mxu1 %v22674_v5  ;;  %v2477_v40 = vsel %vm22565_vm12, %v22733_v50, %v17729_v42  ;;  %v2476_v57 = vsel %vm22565_vm12, %v22723_v41, %v22733_v50  ;;  %v2528_v42 = vsel %vm1616_vm1, %v2485_v34, 0  ;;  %v22742_v34 = vld [vmem:[#allocation35_spill] sm:$0xff] }
 0x340   : > { %4649 = vrot.lane.b32.xlu0 %v17967_v52, %s16229_s29  ;;  %14169 = vmatmul.mubr.msk.bf16.vlgmr.msra.gmra.mrb[40].mxu0 %vm1898_vm10, %v22720_v26  ;;  %v2487_v41 = vsel %vm22565_vm12, %v17744_v55, %v17763_v8  ;;  %v22737_v8 = vld [vmem:[#allocation53_spill] sm:$0xff] }
 0x341   : > { %v17957_v54 = vpop.permute.xlu1 %3643  ;;  %14171 = vmatmul.mubr.msk.bf16.vlgmr.msra.gmra.mrb[48].mxu1 %vm1898_vm10, %v22720_v26  ;;  %2660 = vmatpush1.bf16.msra.mxu0 %v2467_v49  ;;  %v2534_v59 = vsel %vm1616_vm1, %v2487_v41, 0 }
 0x342   : > { %22730 = vst [vmem:[#allocation27_spill] sm:$0xff] %v17957_v54  ;;  %15000 = vmatpush3.bf16.msra.mxu1 %v2469_v38  ;;  %2661 = vmatprep.subr.bf16.mxu0 %v2477_v40  ;;  %v17986_v45 = vpop.permute.xlu0 %3647  ;;  %v17988_v54 = vld [vmem:[#allocation6 + $0x78] ss:$56 sps:$4 sm:$0xff]   ;;  %v22740_v40 = vld [vmem:[#allocation54_spill] sm:$0xff] }
 0x343   : > { %4356 = vrot.lane.b32.xlu1 %v17580_v9, %s16211_s13  ;;  %15001 = vmatprep.subr.bf16.mxu1 %v22674_v5  ;;  %v22738_v38 = vld [vmem:[#allocation36_spill] sm:$0xff] }
 0x344   : > { %4673 = vrot.lane.b32.xlu0 %v17177_v2, %s16229_s29  ;;  %2691 = vmatprep.mubr.bf16.mxu0 %v22614_v6  ;;  %v2486_v2 = vsel %vm22565_vm12, %v22734_v48, %v17744_v55  ;;  %v2819_v50 = vsel %vm22560_vm13, %v22738_v38, %v22737_v8  ;;  %vm5898_vm12 = vcmask 687104  }
 0x345   : > { %v17981_v58 = vpop.permute.xlu1 %3605  ;;  %2662 = vmatpush1.bf16.msra.mxu0 %v2476_v57  ;;  %15005 = vmatprep.mubr.msk.bf16.mxu1 %vm16227_vm11, %v22674_v5 }
 0x346   : > { %15002 = vmatpush3.bf16.msra.mxu1 %v2478_v33  ;;  %14172 = vmatprep.subr.msk.bf16.mxu0 %vm1616_vm1, %v2486_v2  ;;  %v18016_v24 = vpop.permute.xlu0 %3973  ;;  %v2818_v33 = vsel %vm22560_vm13, %v22742_v34, %v22738_v38  ;;  %v2820_v2 = vsel %vm22560_vm13, %v22737_v8, %v22740_v40 }
 0x347   : > { %4671 = vrot.lane.b32.xlu1 %v17988_v54, %s16229_s29  ;;  %22735 = vst [vmem:[#allocation32_spill] sm:$0xff] %v18016_v24  ;;  %15003 = vmatprep.subr.bf16.mxu1 %v22674_v5  ;;  %v22747_v24 = vld [vmem:[#allocation56_spill] sm:$0xff] }
 0x348   : > { %4657 = vrot.lane.b32.xlu0 %v17353_v14, %s16229_s29  ;;  %v18035_v14 = vld [vmem:[#allocation6 + $0x74] ss:$56 sps:$4 sm:$0xff]  }
 0x349   : > { %v18005_v49 = vpop.permute.xlu1 %3627  ;;  %2664 = vmatpush1.bf16.msra.mxu0 %v2528_v42  ;;  %v22744_v42 = vld [vmem:[#allocation55_spill] sm:$0xff] }
 0x34a   : > { %15004 = vmatpush3.bf16.msra.mxu1 %v2534_v59  ;;  %2893 = vmatprep.subr.bf16.mxu0 %v2819_v50  ;;  %v18033_v48 = vpop.permute.xlu0 %3957  ;;  %v22745_v59 = vld [vmem:[#allocation38_spill] sm:$0xff] }
 0x34b   : > { %4655 = vrot.lane.b32.xlu1 %v17199_v37, %s16229_s29  ;;  %v22739_v37 = vld [vmem:[#allocation83_spill] sm:$0xff]  ;;  %22741 = vst [vmem:[#allocation47_spill] sm:$0xff] %v18033_v48  ;;  %v2828_v50 = vsel %vm22560_vm13, %v22745_v59, %v22744_v42 }
 0x34c   : > { %v2821_v57 = vsel %vm22560_vm13, %v22740_v40, %v22739_v37  ;;  %4689 = vrot.lane.b32.xlu0 %v17044_v22, %s16229_s29  ;;  %14173 = vmatmul.mubr.msk.bf16.vlgmr.msra.gmra.mrb[44].mxu0 %vm1898_vm10, %v22720_v26  ;;  %v22750_v40 = vld [vmem:[#allocation40_spill] sm:$0xff] }
 0x34d   : > { %v18025_v55 = vpop.permute.xlu1 %3975  ;;  %2934 = vmatprep.subr.bf16.mxu1 %v2821_v57  ;;  %15006 = vmatmul.mubr.msk.bf16.vlgmr.msra.gmra.mrb[52].mxu1 %vm1898_vm10, %v22720_v26  ;;  %v22746_v57 = vld [vmem:[#allocation85_spill] sm:$0xff] }
 0x34e   : > { %22736 = vst [vmem:[#allocation60_spill] sm:$0xff] %v18025_v55  ;;  %2894 = vmatpush1.bf16.msra.mxu0 %v2818_v33  ;;  %2935 = vmatpush1.bf16.msra.mxu1 %v2820_v2  ;;  %v2830_v38 = vsel %vm22560_vm13, %v22747_v24, %v22746_v57  ;;  %v18059_v34 = vpop.permute.xlu0 %3941  ;;  %v22749_v26 = vld [vmem:[#allocation37_spill] sm:$0xff]  ;;  %v22751_v33 = vld [vmem:[#allocation39_spill] sm:$0xff] }
 0x34f   : > { %4669 = vrot.lane.b32.xlu1 %v18035_v14, %s16229_s29  ;;  %2895 = vmatprep.subr.bf16.mxu0 %v2828_v50  ;;  %22748 = vst [vmem:[#allocation28_spill] sm:$0xff] %v18059_v34  ;;  %v2827_v8 = vsel %vm22560_vm13, %v22749_v26, %v22745_v59  ;;  %v2836_v2 = vsel %vm22560_vm13, %v22751_v33, %v22750_v40  ;;  %v22753_v55 = vld [vmem:[#allocation57_spill] sm:$0xff]  ;;  %v22754_v59 = vld [vmem:[#allocation59_spill] sm:$0xff] }
 0x350   : > { %2936 = vmatprep.subr.bf16.mxu1 %v2830_v38  ;;  %4693 = vrot.lane.b32.xlu0 %v17227_v23, %s16229_s29  ;;  %v2829_v50 = vsel %vm22560_vm13, %v22744_v42, %v22747_v24  ;;  %v2837_v34 = vsel %vm22560_vm13, %v22750_v40, %v22753_v55  ;;  %v2838_v26 = vsel %vm22560_vm13, %v22753_v55, %v22754_v59  ;;  %v18091_v42 = vld [vmem:[#allocation6 + $0x80] ss:$56 sps:$4 sm:$0xff]   ;;  %v2867_v55 = vsel %vm1616_vm1, %v2836_v2, 0 }
 0x351   : > { %v18051_v41 = vpop.permute.xlu1 %3959  ;;  %2925 = vmatprep.mubr.bf16.mxu0 %v22614_v6  ;;  %2966 = vmatprep.mubr.bf16.mxu1 %v22614_v6 }
 0x352   : > { %22743 = vst [vmem:[#allocation29_spill] sm:$0xff] %v18051_v41  ;;  %2896 = vmatpush1.bf16.msra.mxu0 %v2827_v8  ;;  %2937 = vmatpush1.bf16.msra.mxu1 %v2829_v50  ;;  %v22755_v8 = vld [vmem:[#allocation87_spill] sm:$0xff]  ;;  %v18088_v24 = vpop.permute.xlu0 %3993  ;;  %v22757_v50 = vld [vmem:[#allocation113_spill] sm:$0xff] }
 0x353   : > { %4691 = vrot.lane.b32.xlu1 %v17042_v47, %s16229_s29  ;;  %14176 = vmatprep.subr.msk.bf16.mxu0 %vm1616_vm1, %v2837_v34  ;;  %v2839_v33 = vsel %vm22560_vm13, %v22754_v59, %v22755_v8  ;;  %22756 = vst [vmem:[#allocation31_spill] sm:$0xff] %v18088_v24  ;;  %v2873_v34 = vsel %vm1616_vm1, %v2838_v26, 0  ;;  %v22758_v59 = vld [vmem:[#allocation88_spill] sm:$0xff]  ;;  %v22761_v41 = vld [vmem:[#allocation21_spill] sm:$0xff] }
 0x354   : > { %14178 = vmatprep.subr.msk.bf16.mxu1 %vm1616_vm1, %v2839_v33  ;;  %4677 = vrot.lane.b32.xlu0 %v17365_v43, %s16229_s29  ;;  %v2823_v24 = vsel %vm22560_vm13, %v22758_v59, %v22757_v50  ;;  %v22759_v33 = vld [vmem:[#allocation114_spill] sm:$0xff]  ;;  %v2822_v26 = vsel %vm22560_vm13, %v22739_v37, %v22758_v59  ;;  %v22765_v59 = vld [vmem:[#allocation92_spill] sm:$0xff] }
 0x355   : > { %v18075_v38 = vpop.permute.xlu1 %3943  ;;  %v22760_v43 = vld [vmem:[#allocation22_spill] sm:$0xff] }
 0x356   : > { %22752 = vst [vmem:[#allocation49_spill] sm:$0xff] %v18075_v38  ;;  %2898 = vmatpush1.bf16.msra.mxu0 %v2867_v55  ;;  %2939 = vmatpush1.bf16.msra.mxu1 %v2873_v34  ;;  %v2825_v38 = vsel %vm22560_vm13, %v22759_v33, %v17757_v29  ;;  %v18107_v48 = vpop.permute.xlu0 %3977  ;;  %v18112_v2 = vsel %vm267_vm0, %v22761_v41, %v22760_v43  ;;  %v22764_v55 = vld [vmem:[#allocation116_spill] sm:$0xff] }
 0x357   : > { %4675 = vrot.lane.b32.xlu1 %v18091_v42, %s16229_s29  ;;  %2975 = vmatprep.subr.bf16.mxu0 %v2823_v24  ;;  %v2824_v41 = vsel %vm22560_vm13, %v22757_v50, %v22759_v33  ;;  %v22763_v24 = vld [vmem:[#allocation90_spill] sm:$0xff]  ;;  %v2834_v37 = vsel %vm22560_vm13, %v22764_v55, %v17779_v30  ;;  %v2840_v33 = vsel %vm22560_vm13, %v22755_v8, %v22765_v59 }
 0x358   : > { %3016 = vmatprep.subr.bf16.mxu1 %v2825_v38  ;;  %4661 = vrot.lane.b32.xlu0 %v17499_v17, %s16229_s29  ;;  %v2831_v50 = vsel %vm22560_vm13, %v22746_v57, %v22763_v24  ;;  %v22767_v57 = vld [vmem:[#allocation118_spill] sm:$0xff] }
 0x359   : > { %v18099_v40 = vpop.permute.xlu1 %3995  ;;  %14177 = vmatmul.mubr.msk.bf16.vlgmr.msra.gmra.mrb[48].mxu0 %vm1898_vm10, %v18112_v2  ;;  %14179 = vmatmul.mubr.msk.bf16.vlgmr.msra.gmra.mrb[56].mxu1 %vm1898_vm10, %v18112_v2  ;;  %v2843_v8 = vsel %vm22560_vm13, %v22767_v57, %v17799_v44 }
 0x35a   : > { %2976 = vmatpush1.bf16.msra.mxu0 %v2822_v26  ;;  %3017 = vmatpush1.bf16.msra.mxu1 %v2824_v41  ;;  %v18136_v34 = vpop.permute.xlu0 %3961  ;;  %v22766_v41 = vld [vmem:[#allocation117_spill] sm:$0xff] }
 0x35b   : > { %4659 = vrot.lane.b32.xlu1 %v17357_v15, %s16229_s29  ;;  %v22762_v15 = vld [vmem:[#allocation115_spill] sm:$0xff]  ;;  %3018 = vmatprep.subr.bf16.mxu1 %v2834_v37 }
 0x35c   : > { %v2832_v17 = vsel %vm22560_vm13, %v22763_v24, %v22762_v15  ;;  %4697 = vrot.lane.b32.xlu0 %v17385_v36, %s16229_s29  ;;  %3007 = vmatprep.mubr.bf16.mxu0 %v22614_v6  ;;  %v2833_v43 = vsel %vm22560_vm13, %v22762_v15, %v22764_v55  ;;  %v2842_v24 = vsel %vm22560_vm13, %v22766_v41, %v22767_v57  ;;  %v2879_v55 = vsel %vm1616_vm1, %v2840_v33, 0 }
 0x35d   : > { %v18128_v38 = vpop.permute.xlu1 %3979  ;;  %2977 = vmatprep.subr.bf16.mxu0 %v2832_v17  ;;  %v2841_v17 = vsel %vm22560_vm13, %v22765_v59, %v22766_v41  ;;  %3048 = vmatprep.mubr.bf16.mxu1 %v22614_v6  ;;  %v2885_v37 = vsel %vm1616_vm1, %v2842_v24, 0  ;;  %v22768_v59 = vld [vmem:[#allocation62_spill] sm:$0xff] }
 0x35e   : > { %2978 = vmatpush1.bf16.msra.mxu0 %v2831_v50  ;;  %3019 = vmatpush1.bf16.msra.mxu1 %v2833_v43  ;;  %v18165_v15 = vpop.permute.xlu0 %3997  ;;  %v22769_v43 = vld [vmem:[#allocation41_spill] sm:$0xff]  ;;  %v22772_v24 = vld [vmem:[#allocation42_spill] sm:$0xff] }
 0x35f   : > { %4695 = vrot.lane.b32.xlu1 %v17195_v0, %s16229_s29  ;;  %14180 = vmatprep.subr.msk.bf16.mxu0 %vm1616_vm1, %v2841_v17  ;;  %v3170_v41 = vsel %vm3168_vm14, %v22769_v43, %v22768_v59 }
 0x360   : > { %14182 = vmatprep.subr.msk.bf16.mxu1 %vm1616_vm1, %v2843_v8  ;;  %4679 = vrot.lane.b32.xlu0 %v17369_v51, %s16229_s29  ;;  %v2826_v51 = vsel %vm22560_vm13, %v17757_v29, %v17782_v39  ;;  %v3169_v8 = vsel %vm3168_vm14, %v22772_v24, %v22769_v43  ;;  %v22773_v39 = vld [vmem:[#allocation64_spill] sm:$0xff]  ;;  %v2844_v24 = vsel %vm22560_vm13, %v17799_v44, %v17818_v13 }
 0x361   : > { %v18152_v26 = vpop.permute.xlu1 %3963  ;;  %v22775_v43 = vld [vmem:[#allocation44_spill] sm:$0xff]  ;;  %v2891_v44 = vsel %vm1616_vm1, %v2844_v24, 0  ;;  %v22783_v24 = vld [vmem:[#allocation23_spill] sm:$0xff] }
 0x362   : > { %2980 = vmatpush1.bf16.msra.mxu0 %v2879_v55  ;;  %3021 = vmatpush1.bf16.msra.mxu1 %v2885_v37  ;;  %v18179_v17 = vpop.permute.xlu0 %3981  ;;  %v22774_v37 = vld [vmem:[#allocation43_spill] sm:$0xff] }
 0x363   : > { %4647 = vrot.lane.b32.xlu1 %v17618_v53, %s16230_s30  ;;  %15009 = vmatprep.subr.bf16.mxu0 %v22674_v5  ;;  %v18182_v57 = vpop.f32.mrb[20].mxu0 }
 0x364   : > { %3244 = vmatprep.subr.bf16.mxu1 %v3170_v41  ;;  %22770 = vst [vmem:[#allocation30_spill] sm:$0xff] %v18182_v57  ;;  %v18189_v33 = vpop.f32.mrb[21].mxu0  ;;  %4663 = vrot.lane.b32.xlu0 %v17512_v63, %s16229_s29  ;;  %v3179_v41 = vsel %vm3168_vm14, %v22774_v37, %v22773_v39  ;;  %v2835_v63 = vsel %vm22560_vm13, %v17779_v30, %v17803_v61  ;;  %v22776_v30 = vld [vmem:[#allocation45_spill] sm:$0xff]  ;;  %v22777_v61 = vld [vmem:[#allocation46_spill] sm:$0xff]  ;;  %vm4358_vm13 = vcmask 719872  }
 0x365   : > { %v18174_v50 = vpop.permute.xlu1 %3999  ;;  %22771 = vst [vmem:[#allocation34_spill] sm:$0xff] %v18189_v33  ;;  %14181 = vmatmul.mubr.msk.bf16.vlgmr.msra.gmra.mrb[52].mxu0 %vm1898_vm10, %v18112_v2  ;;  %14183 = vmatmul.mubr.msk.bf16.vlgmr.msra.gmra.mrb[60].mxu1 %vm1898_vm10, %v18112_v2 }
 0x366   : > { %15010 = vmatpush3.bf16.msra.mxu0 %v2826_v51  ;;  %3245 = vmatpush1.bf16.msra.mxu1 %v3169_v8  ;;  %v18205_v33 = vpop.permute.xlu0 %3965  ;;  %v3178_v51 = vsel %vm3168_vm14, %v22775_v43, %v22774_v37  ;;  %v3187_v8 = vsel %vm3168_vm14, %v22777_v61, %v22776_v30  ;;  %v22780_v43 = vld [vmem:[#allocation61_spill] sm:$0xff] }
 0x367   : > { %4681 = vrot.lane.b32.xlu1 %v17508_v21, %s16229_s29  ;;  %v2008_v21 = vpop.f32.mrb[22].mxu0  ;;  %15011 = vmatprep.subr.bf16.mxu0 %v22674_v5  ;;  %v3218_v13 = vsel %vm1616_vm1, %v3187_v8, 0  ;;  %v22782_v61 = vld [vmem:[#allocation89_spill] sm:$0xff] }
 0x368   : > { %v2009_v29 = vpop.f32.mrb[23].mxu0  ;;  %3246 = vmatprep.subr.bf16.mxu1 %v3179_v41  ;;  %4699 = vrot.lane.b32.xlu0 %v17405_v7, %s16229_s29  ;;  %v22778_v21 = vld [vmem:[#allocation66_spill] sm:$0xff] }
 0x369   : > { %v18200_v55 = vpop.permute.xlu1 %3983  ;;  %15015 = vmatprep.mubr.msk.bf16.mxu0 %vm16227_vm11, %v22674_v5  ;;  %3276 = vmatprep.mubr.bf16.mxu1 %v22614_v6  ;;  %v3188_v29 = vsel %vm3168_vm14, %v22776_v30, %v22778_v21  ;;  %v22781_v30 = vld [vmem:[#allocation120_spill] sm:$0xff] }
 0x36a   : > { %15012 = vmatpush3.bf16.msra.mxu0 %v2835_v63  ;;  %3247 = vmatpush1.bf16.msra.mxu1 %v3178_v51  ;;  %v18232_v41 = vpop.permute.xlu0 %4003  ;;  %v22779_v63 = vld [vmem:[#allocation94_spill] sm:$0xff] }
 0x36b   : > { %4665 = vrot.lane.b32.xlu1 %v17576_v46, %s16229_s29  ;;  %15013 = vmatprep.subr.bf16.mxu0 %v22674_v5  ;;  %v3172_v51 = vsel %vm3168_vm14, %v22780_v43, %v22779_v63  ;;  %v3173_v8 = vsel %vm3168_vm14, %v22779_v63, %v22782_v61 }
 0x36c   : > { %14185 = vmatprep.subr.msk.bf16.mxu1 %vm1616_vm1, %v3188_v29  ;;  %4683 = vrot.lane.b32.xlu0 %v17520_v4, %s16229_s29  ;;  %v3174_v29 = vsel %vm3168_vm14, %v22782_v61, %v22781_v30  ;;  %v3171_v4 = vsel %vm3168_vm14, %v22768_v59, %v22780_v43  ;;  %v22788_v61 = vld [vmem:[#allocation65_spill] sm:$0xff] }
 0x36d   : > { %v18223_v46 = vpop.permute.xlu1 %4001 }
 0x36e   : > { %15014 = vmatpush3.bf16.msra.mxu0 %v2891_v44  ;;  %3249 = vmatpush1.bf16.msra.mxu1 %v3218_v13  ;;  %v18250_v57 = vpop.permute.xlu0 %4300  ;;  %v22785_v13 = vld [vmem:[#allocation63_spill] sm:$0xff] }
 0x36f   : > { %4701 = vrot.lane.b32.xlu1 %v17538_v16, %s16229_s29  ;;  %3285 = vmatprep.subr.bf16.mxu0 %v3172_v51  ;;  %v22787_v51 = vld [vmem:[#allocation91_spill] sm:$0xff]  ;;  %v3180_v63 = vsel %vm3168_vm14, %v22773_v39, %v22785_v13  ;;  %v22790_v39 = vld [vmem:[#allocation93_spill] sm:$0xff] }
 0x370   : > { %3326 = vmatprep.subr.bf16.mxu1 %v3174_v29  ;;  %4667 = vrot.lane.b32.xlu0 %v17524_v25, %s16229_s29  ;;  %v3189_v29 = vsel %vm3168_vm14, %v22778_v21, %v22788_v61  ;;  %v22791_v21 = vld [vmem:[#allocation124_spill] sm:$0xff] }
 0x371   : > { %v18242_v37 = vpop.permute.xlu1 %3985  ;;  %15016 = vmatmul.mubr.msk.bf16.vlgmr.msra.gmra.mrb[56].mxu0 %vm1898_vm10, %v18112_v2  ;;  %14186 = vmatmul.mubr.msk.bf16.vlgmr.msra.gmra.mrb[64].mxu1 %vm1898_vm10, %v22783_v24  ;;  %v22786_v2 = vld [vmem:[#allocation122_spill] sm:$0xff] }
 0x372   : > { %3286 = vmatpush1.bf16.msra.mxu0 %v3171_v4  ;;  %3327 = vmatpush1.bf16.msra.mxu1 %v3173_v8  ;;  %v3183_v59 = vsel %vm3168_vm14, %v22787_v51, %v22786_v2  ;;  %v18274_v43 = vpop.permute.xlu0 %4298 }
 0x373   : > { %4685 = vrot.lane.b32.xlu1 %v17542_v20, %s16229_s29  ;;  %v22784_v20 = vld [vmem:[#allocation96_spill] sm:$0xff]  ;;  %3328 = vmatprep.subr.bf16.mxu1 %v3183_v59 }
 0x374   : > { %v3181_v25 = vsel %vm3168_vm14, %v22785_v13, %v22784_v20  ;;  %4705 = vrot.lane.b32.xlu0 %v17563_v19, %s16229_s29  ;;  %3317 = vmatprep.mubr.bf16.mxu0 %v22614_v6  ;;  %v3182_v4 = vsel %vm3168_vm14, %v22784_v20, %v22787_v51  ;;  %v3224_v51 = vsel %vm1616_vm1, %v3189_v29, 0 }
 0x375   : > { %v18266_v44 = vpop.permute.xlu1 %4302  ;;  %3287 = vmatprep.subr.bf16.mxu0 %v3181_v25  ;;  %v22789_v25 = vld [vmem:[#allocation98_spill] sm:$0xff]  ;;  %3358 = vmatprep.mubr.bf16.mxu1 %v22614_v6 }
 0x376   : > { %3288 = vmatpush1.bf16.msra.mxu0 %v3180_v63  ;;  %v3190_v59 = vsel %vm3168_vm14, %v22788_v61, %v22789_v25  ;;  %v3191_v13 = vsel %vm3168_vm14, %v22789_v25, %v22790_v39  ;;  %3329 = vmatpush1.bf16.msra.mxu1 %v3182_v4  ;;  %v3192_v63 = vsel %vm3168_vm14, %v22790_v39, %v22791_v21  ;;  %v18303_v20 = vpop.permute.xlu0 %4320  ;;  %v22792_v25 = vld [vmem:[#allocation119_spill] sm:$0xff] }
 0x377   : > { %4703 = vrot.lane.b32.xlu1 %v17559_v3, %s16229_s29  ;;  %14187 = vmatprep.subr.msk.bf16.mxu0 %vm1616_vm1, %v3190_v59  ;;  %v3230_v61 = vsel %vm1616_vm1, %v3191_v13, 0  ;;  %v3176_v59 = vsel %vm3168_vm14, %v22792_v25, %v17835_v18  ;;  %v22793_v13 = vld [vmem:[#allocation121_spill] sm:$0xff] }
 0x378   : > { %14189 = vmatprep.subr.msk.bf16.mxu1 %vm1616_vm1, %v3192_v63  ;;  %5008 = vrot.lane.b32.xlu0 %v17949_v35, %s16230_s30  ;;  %v16015_v63 = vld [vmem:[#allocation6 + $0xc] ss:$56 sps:$4 sm:$0xff]   ;;  %v3177_v35 = vsel %vm3168_vm14, %v17835_v18, %v17812_v28  ;;  %v3184_v28 = vsel %vm3168_vm14, %v22786_v2, %v22793_v13  ;;  %v3195_v2 = vsel %vm3168_vm14, %v17875_v27, %v17849_v62 }
 0x379   : > { %v18290_v8 = vpop.permute.xlu1 %4005  ;;  %v22794_v18 = vld [vmem:[#allocation123_spill] sm:$0xff] }
 0x37a   : > { %3290 = vmatpush1.bf16.msra.mxu0 %v3224_v51  ;;  %3331 = vmatpush1.bf16.msra.mxu1 %v3230_v61  ;;  %v18317_v39 = vpop.permute.xlu0 %4318  ;;  %v3185_v51 = vsel %vm3168_vm14, %v22793_v13, %v17854_v1  ;;  %v3186_v61 = vsel %vm3168_vm14, %v17854_v1, %v17830_v31  ;;  %v3242_v1 = vsel %vm1616_vm1, %v3195_v2, 0  ;;  %v22798_v13 = vld [vmem:[#allocation100_spill] sm:$0xff] }
 0x37b   : > { %4687 = vrot.lane.b32.xlu1 %v17591_v11, %s16229_s29  ;;  %3367 = vmatprep.subr.bf16.mxu0 %v3176_v59  ;;  %v3175_v11 = vsel %vm3168_vm14, %v22781_v30, %v22792_v25  ;;  %v3193_v30 = vsel %vm3168_vm14, %v22791_v21, %v22794_v18  ;;  %v16016_v59 = vld [vmem:[#allocation6 + $0x7c] ss:$56 sps:$4 sm:$0xff]  }
 0x37c   : > { %15019 = vmatprep.subr.bf16.mxu1 %v22674_v5  ;;  %5006 = vrot.lane.b32.xlu0 %v17967_v52, %s16230_s30  ;;  %v3236_v31 = vsel %vm1616_vm1, %v3193_v30, 0  ;;  %v22799_v30 = vld [vmem:[#allocation67_spill] sm:$0xff] }
 0x37d   : > { %v18312_v4 = vpop.permute.xlu1 %4322  ;;  %14188 = vmatmul.mubr.msk.bf16.vlgmr.msra.gmra.mrb[60].mxu0 %vm1898_vm10, %v22783_v24  ;;  %14190 = vmatmul.mubr.msk.bf16.vlgmr.msra.gmra.mrb[68].mxu1 %vm1898_vm10, %v22783_v24 }
 0x37e   : > { %3368 = vmatpush1.bf16.msra.mxu0 %v3175_v11  ;;  %15020 = vmatpush3.bf16.msra.mxu1 %v3177_v35  ;;  %v18338_v52 = vpop.permute.xlu0 %4306  ;;  %v22797_v35 = vld [vmem:[#allocation125_spill] sm:$0xff] }
 0x37f   : > { %5010 = vrot.lane.b32.xlu1 %v16015_v63, %s16230_s30  ;;  %3369 = vmatprep.subr.bf16.mxu0 %v3185_v51  ;;  %v22796_v63 = vld [vmem:[#allocation68_spill] sm:$0xff]  ;;  %v3653_v51 = vsel %vm3649_vm15, %v22798_v13, %v22797_v35 }
 0x380   : > { %15021 = vmatprep.subr.bf16.mxu1 %v22674_v5  ;;  %5028 = vrot.lane.b32.xlu0 %v17988_v54, %s16230_s30  ;;  %v3194_v54 = vsel %vm3168_vm14, %v22794_v18, %v17875_v27  ;;  %v22795_v27 = vld [vmem:[#allocation95_spill] sm:$0xff]  ;;  %v16018_v18 = vld [vmem:[#allocation6 + $0x14] ss:$56 sps:$4 sm:$0xff]  }
 0x381   : > { %v18333_v29 = vpop.permute.xlu1 %4304  ;;  %3399 = vmatprep.mubr.bf16.mxu0 %v22614_v6  ;;  %15025 = vmatprep.mubr.msk.bf16.mxu1 %vm16227_vm11, %v22674_v5  ;;  %v3651_v11 = vsel %vm3649_vm15, %v22796_v63, %v22795_v27 }
 0x382   : > { %3370 = vmatpush1.bf16.msra.mxu0 %v3184_v28  ;;  %15022 = vmatpush3.bf16.msra.mxu1 %v3186_v61  ;;  %v18366_v21 = vpop.permute.xlu0 %4340  ;;  %v3650_v61 = vsel %vm3649_vm15, %v22799_v30, %v22796_v63 }
 0x383   : > { %4707 = vrot.lane.b32.xlu1 %v17580_v9, %s16229_s29  ;;  %14191 = vmatprep.subr.msk.bf16.mxu0 %vm1616_vm1, %v3194_v54  ;;  %v3652_v54 = vsel %vm3649_vm15, %v22795_v27, %v22798_v13  ;;  %v22805_v13 = vld [vmem:[#allocation71_spill] sm:$0xff] }
 0x384   : > { %15023 = vmatprep.subr.bf16.mxu1 %v22674_v5  ;;  %5026 = vrot.lane.b32.xlu0 %v18035_v14, %s16230_s30  ;;  %v16017_v14 = vld [vmem:[#allocation6 + $0x10] ss:$56 sps:$4 sm:$0xff]  }
 0x385   : > { %v18355_v25 = vpop.permute.xlu1 %4338 }
 0x386   : > { %3372 = vmatpush1.bf16.msra.mxu0 %v3236_v31  ;;  %15024 = vmatpush3.bf16.msra.mxu1 %v3242_v1  ;;  %v18382_v28 = vpop.permute.xlu0 %4324  ;;  %v22801_v31 = vld [vmem:[#allocation70_spill] sm:$0xff] }
 0x387   : > { %5030 = vrot.lane.b32.xlu1 %v16016_v59, %s16230_s30  ;;  %3725 = vmatprep.subr.bf16.mxu0 %v3651_v11  ;;  %v22800_v59 = vld [vmem:[#allocation97_spill] sm:$0xff]  ;;  %v22802_v11 = vld [vmem:[#allocation127_spill] sm:$0xff] }
 0x388   : > { %3766 = vmatprep.subr.bf16.mxu1 %v3653_v51  ;;  %5014 = vrot.lane.b32.xlu0 %v16018_v18, %s16230_s30  ;;  %v3660_v1 = vsel %vm3649_vm15, %v22801_v31, %v22800_v59  ;;  %v22803_v51 = vld [vmem:[#allocation102_spill] sm:$0xff]  ;;  %v22806_v18 = vld [vmem:[#allocation72_spill] sm:$0xff] }
 0x389   : > { %v18374_v62 = vpop.permute.xlu1 %4342  ;;  %14192 = vmatmul.mubr.msk.bf16.vlgmr.msra.gmra.mrb[64].mxu0 %vm1898_vm10, %v22783_v24  ;;  %15026 = vmatmul.mubr.msk.bf16.vlgmr.msra.gmra.mrb[72].mxu1 %vm1898_vm10, %v22783_v24  ;;  %v3662_v63 = vsel %vm3649_vm15, %v22803_v51, %v22802_v11  ;;  %v22804_v24 = vld [vmem:[#allocation69_spill] sm:$0xff]  ;;  %v3668_v30 = vsel %vm3649_vm15, %v22806_v18, %v22805_v13  ;;  %v22810_v18 = vld [vmem:[#allocation126_spill] sm:$0xff] }
 0x38a   : > { %3726 = vmatpush1.bf16.msra.mxu0 %v3650_v61  ;;  %3767 = vmatpush1.bf16.msra.mxu1 %v3652_v54  ;;  %v3659_v27 = vsel %vm3649_vm15, %v22804_v24, %v22801_v31  ;;  %v3661_v61 = vsel %vm3649_vm15, %v22800_v59, %v22803_v51  ;;  %v22808_v31 = vld [vmem:[#allocation99_spill] sm:$0xff]  ;;  %v3699_v51 = vsel %vm1616_vm1, %v3668_v30, 0 }
 0x38b   : > { %5012 = vrot.lane.b32.xlu1 %v16017_v14, %s16230_s30  ;;  %3727 = vmatprep.subr.bf16.mxu0 %v3660_v1  ;;  %v18404_v14 = vpop.permute.xlu0 %4308  ;;  %v16019_v30 = vld [vmem:[#allocation6 + $0x84] ss:$56 sps:$4 sm:$0xff]  }
 0x38c   : > { %3768 = vmatprep.subr.bf16.mxu1 %v3662_v63  ;;  %5048 = vrot.lane.b32.xlu0 %v17042_v47, %s16230_s30  ;;  %v22809_v63 = vld [vmem:[#allocation130_spill] sm:$0xff] }
 0x38d   : > { %v18396_v2 = vpop.permute.xlu1 %4326  ;;  %3757 = vmatprep.mubr.bf16.mxu0 %v22614_v6  ;;  %3798 = vmatprep.mubr.bf16.mxu1 %v22614_v6  ;;  %v3671_v24 = vsel %vm3649_vm15, %v22808_v31, %v22809_v63 }
 0x38e   : > { %3728 = vmatpush1.bf16.msra.mxu0 %v3659_v27  ;;  %3769 = vmatpush1.bf16.msra.mxu1 %v3661_v61  ;;  %v3655_v61 = vsel %vm3649_vm15, %v22810_v18, %v17866_v60 }
 0x38f   : > { %5046 = vrot.lane.b32.xlu1 %v17044_v22, %s16230_s30  ;;  %v22807_v22 = vld [vmem:[#allocation104_spill] sm:$0xff]  ;;  %v18433_v59 = vpop.permute.xlu0 %4296  ;;  %14226 = vmatprep.subr.msk.bf16.mxu1 %vm1616_vm1, %v3671_v24 }
 0x390   : > { %v3669_v47 = vsel %vm3649_vm15, %v22805_v13, %v22807_v22  ;;  %v3670_v1 = vsel %vm3649_vm15, %v22807_v22, %v22808_v31  ;;  %5032 = vrot.lane.b32.xlu0 %v18091_v42, %s16230_s30  ;;  %v22811_v42 = vld [vmem:[#allocation24_spill] sm:$0xff]  ;;  %v3654_v31 = vsel %vm3649_vm15, %v22797_v35, %v22810_v18  ;;  %v3666_v35 = vsel %vm3649_vm15, %v17909_v56, %v17946_v12 }
 0x391   : > { %v18420_v54 = vpop.permute.xlu1 %4310  ;;  %14224 = vmatprep.subr.msk.bf16.mxu0 %vm1616_vm1, %v3669_v47  ;;  %v3705_v27 = vsel %vm1616_vm1, %v3670_v1, 0  ;;  %v16020_v47 = vld [vmem:[#allocation6 + $0x18] ss:$56 sps:$4 sm:$0xff]   ;;  %v3656_v1 = vsel %vm3649_vm15, %v17866_v60, %v17893_v10 }
 0x392   : > { %3730 = vmatpush1.bf16.msra.mxu0 %v3699_v51  ;;  %3771 = vmatpush1.bf16.msra.mxu1 %v3705_v27  ;;  %v22812_v51 = vld [vmem:[#allocation25_spill] sm:$0xff]  ;;  %v22813_v27 = vld [vmem:[#allocation128_spill] sm:$0xff] }
 0x393   : > { %5050 = vrot.lane.b32.xlu1 %v17227_v23, %s16230_s30  ;;  %3807 = vmatprep.subr.bf16.mxu0 %v3655_v61  ;;  %v3657_v23 = vsel %vm3649_vm15, %v17893_v10, %v17981_v58  ;;  %v18450_v22 = vpop.permute.xlu0 %4346  ;;  %v3664_v61 = vsel %vm3649_vm15, %v22813_v27, %v22812_v51  ;;  %v16022_v10 = vld [vmem:[%s22429_s3 + $0x8] sm:$0xff] }
 0x394   : > { %3848 = vmatprep.subr.bf16.mxu1 %v3657_v23  ;;  %5016 = vrot.lane.b32.xlu0 %v16020_v47, %s16230_s30  ;;  %v16021_v23 = vld [vmem:[#allocation6 + $0x1c] ss:$56 sps:$4 sm:$0xff]   ;;  %v18478_v60 = vcombine.high %v16022_v10, %v16022_v10  ;;  %v22815_v47 = vld [vmem:[#allocation131_spill] sm:$0xff] }
 0x395   : > { %v18442_v13 = vpop.permute.xlu1 %4344  ;;  %14225 = vmatmul.mubr.msk.bf16.vlgmr.msra.gmra.mrb[68].mxu0 %vm1898_vm10, %v22811_v42  ;;  %14227 = vmatmul.mubr.msk.bf16.vlgmr.msra.gmra.mrb[76].mxu1 %vm1898_vm10, %v22811_v42  ;;  %v22818_v10 = vld [vmem:[#allocation101_spill] sm:$0xff] }
 0x396   : > { %3808 = vmatpush1.bf16.msra.mxu0 %v3654_v31  ;;  %3849 = vmatpush1.bf16.msra.mxu1 %v3656_v1  ;;  %22814 = vst [vmem:[#allocation33_spill] sm:$0xff] %v18478_v60  ;;  %v3672_v31 = vsel %vm3649_vm15, %v22809_v63, %v22815_v47  ;;  %v3665_v1 = vsel %vm3649_vm15, %v22812_v51, %v17909_v56  ;;  %v22817_v63 = vld [vmem:[#allocation58_spill] sm:$0xff] }
 0x397   : > { %5034 = vrot.lane.b32.xlu1 %v16019_v30, %s16230_s30  ;;  %3809 = vmatprep.subr.bf16.mxu0 %v3664_v61  ;;  %v18472_v18 = vpop.permute.xlu0 %4330  ;;  %v3663_v30 = vsel %vm3649_vm15, %v22802_v11, %v22813_v27  ;;  %v22816_v11 = vld [vmem:[#allocation27_spill] sm:$0xff]  ;;  %v3711_v51 = vsel %vm1616_vm1, %v3672_v31, 0  ;;  %v22820_v31 = vld [vmem:[#allocation26_spill] sm:$0xff] }
 0x398   : > { %3850 = vmatprep.subr.bf16.mxu1 %v3666_v35  ;;  %5000 = vrot.lane.b32.xlu0 %v17618_v53, %s16231_s20  ;;  %v3673_v53 = vsel %vm3649_vm15, %v22815_v47, %v17933_v32  ;;  %v3674_v27 = vsel %vm3649_vm15, %v17933_v32, %v22816_v11  ;;  %v3675_v35 = vsel %vm3649_vm15, %v22816_v11, %v22817_v63  ;;  %v22821_v11 = vld [vmem:[#allocation73_spill] sm:$0xff] }
 0x399   : > { %v18464_v24 = vpop.permute.xlu1 %4328  ;;  %3839 = vmatprep.mubr.bf16.mxu0 %v22614_v6  ;;  %3880 = vmatprep.mubr.bf16.mxu1 %v22614_v6  ;;  %v3717_v32 = vsel %vm1616_vm1, %v3674_v27, 0 }
 0x39a   : > { %3810 = vmatpush1.bf16.msra.mxu0 %v3663_v30  ;;  %3851 = vmatpush1.bf16.msra.mxu1 %v3665_v1  ;;  %v22819_v30 = vld [vmem:[#allocation74_spill] sm:$0xff] }
 0x39b   : > { %5018 = vrot.lane.b32.xlu1 %v16021_v23, %s16230_s30  ;;  %14228 = vmatprep.subr.msk.bf16.mxu0 %vm1616_vm1, %v3673_v53  ;;  %v18504_v56 = vpop.permute.xlu0 %4314  ;;  %v4009_v47 = vsel %vm4007_vm2, %v22819_v30, %v22818_v10  ;;  %v3658_v53 = vsel %vm3649_vm15, %v17981_v58, %v22820_v31  ;;  %v4008_v27 = vsel %vm4007_vm2, %v22821_v11, %v22819_v30  ;;  %v22826_v11 = vld [vmem:[#allocation77_spill] sm:$0xff] }
 0x39c   : > { %14230 = vmatprep.subr.msk.bf16.mxu1 %vm1616_vm1, %v3675_v35  ;;  %5052 = vrot.lane.b32.xlu0 %v17195_v0, %s16230_s30  ;;  %v16023_v0 = vld [vmem:[#allocation6 + $0x88] ss:$56 sps:$4 sm:$0xff]   ;;  %v3667_v30 = vsel %vm3649_vm15, %v17946_v12, %v18005_v49 }
 0x39d   : > { %v18491_v61 = vpop.permute.xlu1 %4312  ;;  %v22827_v12 = vld [vmem:[#allocation78_spill] sm:$0xff]  ;;  %v22828_v49 = vld [vmem:[#allocation75_spill] sm:$0xff] }
 0x39e   : > { %3812 = vmatpush1.bf16.msra.mxu0 %v3711_v51  ;;  %3853 = vmatpush1.bf16.msra.mxu1 %v3717_v32  ;;  %v22823_v51 = vld [vmem:[#allocation76_spill] sm:$0xff] }
 0x39f   : > { %5002 = vrot.lane.b32.xlu1 %v18478_v60, %s16231_s20  ;;  %v18517_v1 = vpop.permute.xlu0 %4350  ;;  %15029 = vmatprep.subr.bf16.mxu0 %v22674_v5  ;;  %v22829_v60 = vld [vmem:[#allocation105_spill] sm:$0xff]  ;;  %s16236_s20 = smov 120  }
 0x3a0   : > { %4083 = vmatprep.subr.bf16.mxu1 %v4009_v47  ;;  %5036 = vrot.lane.b32.xlu0 %v16023_v0, %s16230_s30  ;;  %v16024_v0 = vld [vmem:[#allocation6 + $0x8c] ss:$56 sps:$4 sm:$0xff]  }
 0x3a1   : > { %v18512_v23 = vpop.permute.xlu1 %4348  ;;  %14229 = vmatmul.mubr.msk.bf16.vlgmr.msra.gmra.mrb[72].mxu0 %vm1898_vm10, %v22811_v42  ;;  %14231 = vmatmul.mubr.msk.bf16.vlgmr.msra.gmra.mrb[80].mxu1 %vm1898_vm10, %v22811_v42 }
 0x3a2   : > { %15030 = vmatpush3.bf16.msra.mxu0 %v3658_v53  ;;  %4084 = vmatpush1.bf16.msra.mxu1 %v4008_v27  ;;  %v16025_v53 = vld [vmem:[#allocation6 + $0x20] ss:$56 sps:$4 sm:$0xff]   ;;  %v4017_v27 = vsel %vm4007_vm2, %v22826_v11, %v22823_v51 }
 0x3a3   : > { %5054 = vrot.lane.b32.xlu1 %v17385_v36, %s16230_s30  ;;  %v22822_v36 = vld [vmem:[#allocation103_spill] sm:$0xff]  ;;  %v18538_v47 = vpop.permute.xlu0 %4334  ;;  %15031 = vmatprep.subr.bf16.mxu0 %v22674_v5  ;;  %v18541_v58 = vpop.f32.mrb[28].mxu1 }
 0x3a4   : > { %v4018_v32 = vsel %vm4007_vm2, %v22823_v51, %v22822_v36  ;;  %22824 = vst [vmem:[#allocation51_spill] sm:$0xff] %v18541_v58  ;;  %v18547_v31 = vpop.f32.mrb[29].mxu1  ;;  %5020 = vrot.lane.b32.xlu0 %v16025_v53, %s16230_s30  ;;  %15035 = vmatprep.mubr.msk.bf16.mxu0 %vm16227_vm11, %v22674_v5  ;;  %v4026_v53 = vsel %vm4007_vm2, %v22828_v49, %v22827_v12  ;;  %v22832_v49 = vld [vmem:[#allocation29_spill] sm:$0xff] }
 0x3a5   : > { %v18533_v35 = vpop.permute.xlu1 %4332  ;;  %4085 = vmatprep.subr.bf16.mxu1 %v4018_v32  ;;  %22825 = vst [vmem:[#allocation79_spill] sm:$0xff] %v18547_v31  ;;  %v3676_v32 = vsel %vm3649_vm15, %v22817_v63, %v17986_v45  ;;  %4115 = vmatprep.mubr.bf16.mxu1 %v22614_v6  ;;  %v4027_v51 = vsel %vm4007_vm2, %v22827_v12, %v22829_v60  ;;  %v16026_v45 = vld [vmem:[#allocation6 + $0x24] ss:$56 sps:$4 sm:$0xff]  }
 0x3a6   : > { %15032 = vmatpush3.bf16.msra.mxu0 %v3667_v30  ;;  %4086 = vmatpush1.bf16.msra.mxu1 %v4017_v27  ;;  %v3723_v63 = vsel %vm1616_vm1, %v3676_v32, 0  ;;  %v4057_v30 = vsel %vm1616_vm1, %v4026_v53, 0  ;;  %v22830_v27 = vld [vmem:[#allocation129_spill] sm:$0xff]  ;;  %v22835_v53 = vld [vmem:[#allocation28_spill] sm:$0xff] }
 0x3a7   : > { %5038 = vrot.lane.b32.xlu1 %v16024_v0, %s16230_s30  ;;  %v2049_v0 = vpop.f32.mrb[30].mxu1  ;;  %v18567_v11 = vpop.permute.xlu0 %4352  ;;  %15033 = vmatprep.subr.bf16.mxu0 %v22674_v5 }
 0x3a8   : > { %v2050_v31 = vpop.f32.mrb[31].mxu1  ;;  %14234 = vmatprep.subr.msk.bf16.mxu1 %vm1616_vm1, %v4027_v51  ;;  %5056 = vrot.lane.b32.xlu0 %v17405_v7, %s16230_s30  ;;  %v22831_v0 = vld [vmem:[#allocation106_spill] sm:$0xff]  ;;  %v22833_v51 = vld [vmem:[#allocation47_spill] sm:$0xff]  ;;  %v22834_v7 = vld [vmem:[#allocation49_spill] sm:$0xff] }
 0x3a9   : > { %v18558_v58 = vpop.permute.xlu1 %4316  ;;  %v4011_v12 = vsel %vm4007_vm2, %v22831_v0, %v22830_v27 }
 0x3aa   : > { %15034 = vmatpush3.bf16.msra.mxu0 %v3723_v63  ;;  %4088 = vmatpush1.bf16.msra.mxu1 %v4057_v30  ;;  %v18591_v63 = vsel %vm3945_vm4, %v22835_v53, %v22834_v7  ;;  %v16027_v30 = vld [vmem:[#allocation6 + $0x90] ss:$56 sps:$4 sm:$0xff]  }
 0x3ab   : > { %5022 = vrot.lane.b32.xlu1 %v16026_v45, %s16230_s30  ;;  %4124 = vmatprep.subr.bf16.mxu0 %v4011_v12  ;;  %v4013_v45 = vsel %vm4007_vm2, %v22833_v51, %v22832_v49  ;;  %v18584_v32 = vpop.permute.xlu0 %4336  ;;  %v4010_v12 = vsel %vm4007_vm2, %v22818_v10, %v22831_v0  ;;  %v22836_v7 = vld [vmem:[#allocation60_spill] sm:$0xff]  ;;  %v4022_v10 = vsel %vm4007_vm2, %v18107_v48, %v18128_v38 }
 0x3ac   : > { %4165 = vmatprep.subr.bf16.mxu1 %v4013_v45  ;;  %5040 = vrot.lane.b32.xlu0 %v16027_v30, %s16230_s30  ;;  %v22837_v53 = vld [vmem:[#allocation32_spill] sm:$0xff] }
 0x3ad   : > { %v18576_v31 = vpop.permute.xlu1 %4354  ;;  %15036 = vmatmul.mubr.msk.bf16.vlgmr.msra.gmra.mrb[76].mxu0 %vm1898_vm10, %v22811_v42  ;;  %14235 = vmatmul.mubr.msk.bf16.vlgmr.msra.gmra.mrb[84].mxu1 %vm1898_vm10, %v18591_v63  ;;  %v4020_v42 = vsel %vm4007_vm2, %v22837_v53, %v22836_v7  ;;  %v16028_v30 = vld [vmem:[#allocation6 + $0x94] ss:$56 sps:$4 sm:$0xff]  }
 0x3ae   : > { %4125 = vmatpush1.bf16.msra.mxu0 %v4010_v12  ;;  %v16029_v12 = vld [vmem:[#allocation6 + $0x28] ss:$56 sps:$4 sm:$0xff]   ;;  %4156 = vmatprep.mubr.bf16.mxu0 %v22614_v6 }
 0x3af   : > { %5058 = vrot.lane.b32.xlu1 %v17538_v16, %s16230_s30  ;;  %v4012_v16 = vsel %vm4007_vm2, %v22830_v27, %v22833_v51  ;;  %4126 = vmatprep.subr.bf16.mxu0 %v4020_v42  ;;  %v18612_v0 = vpop.permute.xlu0 %4653  ;;  %v4019_v27 = vsel %vm4007_vm2, %v22822_v36, %v22837_v53  ;;  %v22838_v51 = vld [vmem:[#allocation31_spill] sm:$0xff]  ;;  %v4021_v42 = vsel %vm4007_vm2, %v22836_v7, %v18107_v48 }
 0x3b0   : > { %4166 = vmatpush1.bf16.msra.mxu1 %v4012_v16  ;;  %5024 = vrot.lane.b32.xlu0 %v16029_v12, %s16230_s30  ;;  %v4028_v16 = vsel %vm4007_vm2, %v22829_v60, %v22838_v51  ;;  %v4030_v36 = vsel %vm4007_vm2, %v18099_v40, %v18165_v15  ;;  %v4031_v60 = vsel %vm4007_vm2, %v18165_v15, %v18174_v50 }
 0x3b1   : > { %v18604_v45 = vpop.permute.xlu1 %4651  ;;  %4167 = vmatprep.subr.bf16.mxu1 %v4022_v10  ;;  %4197 = vmatprep.mubr.bf16.mxu1 %v22614_v6  ;;  %v4063_v7 = vsel %vm1616_vm1, %v4028_v16, 0  ;;  %v4015_v15 = vsel %vm4007_vm2, %v18136_v34, %v18152_v26 }
 0x3b2   : > { %4127 = vmatpush1.bf16.msra.mxu0 %v4019_v27  ;;  %v18655_v27 = vld [vmem:[#allocation6 + $0xc] ss:$56 sps:$4 sm:$0xff]  }
 0x3b3   : > { %5042 = vrot.lane.b32.xlu1 %v16028_v30, %s16230_s30  ;;  %v4029_v30 = vsel %vm4007_vm2, %v22838_v51, %v18099_v40  ;;  %v18639_v48 = vpop.permute.xlu0 %4649  ;;  %v4069_v40 = vsel %vm1616_vm1, %v4030_v36, 0  ;;  %v4016_v51 = vsel %vm4007_vm2, %v18152_v26, %v18205_v33  ;;  %v4032_v26 = vsel %vm4007_vm2, %v18174_v50, %v18223_v46 }
 0x3b4   : > { %4168 = vmatpush1.bf16.msra.mxu1 %v4021_v42  ;;  %14236 = vmatprep.subr.msk.bf16.mxu0 %vm1616_vm1, %v4029_v30  ;;  %v4024_v42 = vsel %vm4007_vm2, %v18179_v17, %v18200_v55  ;;  %v18676_v30 = vld [vmem:[#allocation6 + $0x10] ss:$56 sps:$4 sm:$0xff]   ;;  %v4025_v33 = vsel %vm4007_vm2, %v18200_v55, %v18242_v37  ;;  %v4075_v55 = vsel %vm1616_vm1, %v4032_v26, 0  ;;  %v4360_v37 = vsel %vm4358_vm13, %v18250_v57, %v18266_v44 }
 0x3b5   : > { %v18626_v10 = vpop.permute.xlu1 %4356  ;;  %14238 = vmatprep.subr.msk.bf16.mxu1 %vm1616_vm1, %v4031_v60  ;;  %5062 = vrot.lane.b32.xlu0 %v17563_v19, %s16230_s30  ;;  %v4014_v19 = vsel %vm4007_vm2, %v22832_v49, %v18136_v34  ;;  %v4023_v34 = vsel %vm4007_vm2, %v18128_v38, %v18179_v17  ;;  %v18700_v60 = vld [vmem:[#allocation6 + $0x8] ss:$56 sps:$4 sm:$0xff]   ;;  %v4034_v38 = vsel %vm4007_vm2, %v18232_v41, %v18290_v8  ;;  %v18710_v17 = vld [vmem:[#allocation6 + $0x7c] ss:$56 sps:$4 sm:$0xff]   ;;  %v18759_v26 = vld [vmem:[#allocation6 + $0x78] ss:$56 sps:$4 sm:$0xff]  }
 0x3b6   : > { %4129 = vmatpush1.bf16.msra.mxu0 %v4063_v7  ;;  %v18724_v8 = vld [vmem:[#allocation6 + $0x80] ss:$56 sps:$4 sm:$0xff]   ;;  %v4362_v7 = vsel %vm4358_vm13, %v18333_v29, %v18338_v52 }
 0x3b7   : > { %5060 = vrot.lane.b32.xlu1 %v17559_v3, %s16230_s30  ;;  %4206 = vmatprep.subr.bf16.mxu0 %v4015_v15  ;;  %v18653_v12 = vpop.permute.xlu0 %4673  ;;  %v16030_v3 = vld [vmem:[#allocation6 + $0x98] ss:$56 sps:$4 sm:$0xff]   ;;  %v18731_v15 = vld [vmem:[#allocation6 + $0x14] ss:$56 sps:$4 sm:$0xff]  }
 0x3b8   : > { %4170 = vmatpush1.bf16.msra.mxu1 %v4069_v40 }
 0x3b9   : > { %v18648_v53 = vpop.permute.xlu1 %4671  ;;  %15039 = vmatprep.subr.bf16.mxu1 %v22674_v5  ;;  %14237 = vmatmul.mubr.msk.bf16.vlgmr.msra.gmra.mrb[80].mxu0 %vm1898_vm10, %v18591_v63 }
 0x3ba   : > { %5489 = vrot.lane.b32.xlu0 %v18655_v27, %s16214_s16  ;;  %4207 = vmatpush1.bf16.msra.mxu0 %v4014_v19  ;;  %v4361_v19 = vsel %vm4358_vm13, %v18266_v44, %v18333_v29  ;;  %v4368_v44 = vsel %vm4358_vm13, %v18317_v39, %v18303_v20  ;;  %v4379_v39 = vsel %vm4358_vm13, %v18374_v62, %v18442_v13 }
 0x3bb   : > { %5044 = vrot.lane.b32.xlu1 %v16030_v3, %s16230_s30  ;;  %14239 = vmatmul.mubr.msk.bf16.vlgmr.msra.gmra.mrb[88].mxu1 %vm1898_vm10, %v18591_v63  ;;  %v18678_v36 = vpop.permute.xlu0 %4657  ;;  %v4359_v3 = vsel %vm4358_vm13, %v18274_v43, %v18250_v57  ;;  %v4369_v57 = vsel %vm4358_vm13, %v18303_v20, %v18312_v4  ;;  %v18752_v43 = vld [vmem:[#allocation6 + $0x18] ss:$56 sps:$4 sm:$0xff]   ;;  %v4378_v20 = vsel %vm4358_vm13, %v18366_v21, %v18374_v62  ;;  %v4414_v62 = vsel %vm1616_vm1, %v4379_v39, 0 }
 0x3bc   : > { %15040 = vmatpush3.bf16.msra.mxu1 %v4016_v51  ;;  %4208 = vmatprep.subr.bf16.mxu0 %v4024_v42  ;;  %v5375_v42 = vld [vmem:[#allocation6 + $0xe8] sm:$0xff] }
 0x3bd   : > { %v18671_v16 = vpop.permute.xlu1 %4655  ;;  %15041 = vmatprep.subr.bf16.mxu1 %v22674_v5  ;;  %4238 = vmatprep.mubr.bf16.mxu0 %v22614_v6  ;;  %v18768_v29 = vcombine.low %v5375_v42, %v5375_v42 }
 0x3be   : > { %5064 = vrot.lane.b32.xlu0 %v17580_v9, %s16230_s30  ;;  %4209 = vmatpush1.bf16.msra.mxu0 %v4023_v34  ;;  %v4033_v9 = vsel %vm4007_vm2, %v18223_v46, %v18232_v41  ;;  %v4081_v46 = vsel %vm1616_vm1, %v4034_v38, 0  ;;  %vm4709_vm2 = vcmask 621568  }
 0x3bf   : > { %5491 = vrot.lane.b32.xlu1 %v18676_v30, %s16214_s16  ;;  %15045 = vmatprep.mubr.msk.bf16.mxu1 %vm16227_vm11, %v22674_v5  ;;  %v18708_v50 = vpop.permute.xlu0 %4689 }
 0x3c0   : > { %15042 = vmatpush3.bf16.msra.mxu1 %v4025_v33  ;;  %14240 = vmatprep.subr.msk.bf16.mxu0 %vm1616_vm1, %v4033_v9  ;;  %v4377_v33 = vsel %vm4358_vm13, %v18355_v25, %v18366_v21  ;;  %v4370_v9 = vsel %vm4358_vm13, %v18312_v4, %v18382_v28  ;;  %v4380_v25 = vsel %vm4358_vm13, %v18442_v13, %v18450_v22 }
 0x3c1   : > { %v18695_v49 = vpop.permute.xlu1 %4669  ;;  %15043 = vmatprep.subr.bf16.mxu1 %v22674_v5  ;;  %v4408_v21 = vsel %vm1616_vm1, %v4377_v33, 0  ;;  %v4364_v13 = vsel %vm4358_vm13, %v18404_v14, %v18420_v54  ;;  %v18834_v33 = vld [vmem:[#allocation6 + $0x88] ss:$56 sps:$4 sm:$0xff]  }
 0x3c2   : > { %5509 = vrot.lane.b32.xlu0 %v18710_v17, %s16214_s16  ;;  %4211 = vmatpush1.bf16.msra.mxu0 %v4075_v55  ;;  %v5376_v55 = vld [vmem:[#allocation6 + $0xf0] sm:$0xff] }
 0x3c3   : > { %5487 = vrot.lane.b32.xlu1 %v18700_v60, %s16214_s16  ;;  %4434 = vmatprep.subr.bf16.mxu0 %v4360_v37  ;;  %v18729_v40 = vpop.permute.xlu0 %4693  ;;  %v18806_v37 = vcombine.low %v5376_v55, %v5376_v55 }
 0x3c4   : > { %15044 = vmatpush3.bf16.msra.mxu1 %v4081_v46 }
 0x3c5   : > { %v18719_v41 = vpop.permute.xlu1 %4691  ;;  %4475 = vmatprep.subr.bf16.mxu1 %v4362_v7  ;;  %14241 = vmatmul.mubr.msk.bf16.vlgmr.msra.gmra.mrb[84].mxu0 %vm1898_vm10, %v18591_v63  ;;  %v4366_v7 = vsel %vm4358_vm13, %v18491_v61, %v18504_v56 }
 0x3c6   : > { %5493 = vrot.lane.b32.xlu0 %v18731_v15, %s16214_s16  ;;  %4435 = vmatpush1.bf16.msra.mxu0 %v4359_v3 }
 0x3c7   : > { %5511 = vrot.lane.b32.xlu1 %v18724_v8, %s16214_s16  ;;  %15046 = vmatmul.mubr.msk.bf16.vlgmr.msra.gmra.mrb[92].mxu1 %vm1898_vm10, %v18591_v63  ;;  %v4371_v63 = vsel %vm4358_vm13, %v18382_v28, %v18396_v2  ;;  %v18757_v34 = vpop.permute.xlu0 %4677  ;;  %v18792_v28 = vcombine.high %v5375_v42, %v5375_v42  ;;  %v4365_v42 = vsel %vm4358_vm13, %v18420_v54, %v18491_v61 }
 0x3c8   : > { %4476 = vmatpush1.bf16.msra.mxu1 %v4361_v19  ;;  %4436 = vmatprep.subr.bf16.mxu0 %v4369_v57  ;;  %v18813_v19 = vld [vmem:[#allocation6 + $0x84] ss:$56 sps:$4 sm:$0xff]   ;;  %v4363_v57 = vsel %vm4358_vm13, %v18338_v52, %v18404_v14  ;;  %v4375_v52 = vsel %vm4358_vm13, %v18533_v35, %v18538_v47  ;;  %v4372_v54 = vsel %vm4358_vm13, %v18396_v2, %v18464_v24 }
 0x3c9   : > { %v18747_v51 = vpop.permute.xlu1 %4675  ;;  %4477 = vmatprep.subr.bf16.mxu1 %v4371_v63  ;;  %4466 = vmatprep.mubr.bf16.mxu0 %v22614_v6  ;;  %v4381_v61 = vsel %vm4358_vm13, %v18450_v22, %v18512_v23  ;;  %v4383_v2 = vsel %vm4358_vm13, %v18517_v1, %v18567_v11  ;;  %v4384_v22 = vsel %vm4358_vm13, %v18567_v11, %v18576_v31 }
 0x3ca   : > { %5507 = vrot.lane.b32.xlu0 %v18759_v26, %s16214_s16  ;;  %4437 = vmatpush1.bf16.msra.mxu0 %v4368_v44  ;;  %v4373_v44 = vsel %vm4358_vm13, %v18464_v24, %v18472_v18 }
 0x3cb   : > { %5495 = vrot.lane.b32.xlu1 %v18752_v43, %s16214_s16  ;;  %4507 = vmatprep.mubr.bf16.mxu1 %v22614_v6  ;;  %v18790_v4 = vpop.permute.xlu0 %4661 }
 0x3cc   : > { %4478 = vmatpush1.bf16.msra.mxu1 %v4370_v9  ;;  %14243 = vmatprep.subr.msk.bf16.mxu0 %vm1616_vm1, %v4378_v20  ;;  %v18841_v9 = vld [vmem:[#allocation6 + $0x1c] ss:$56 sps:$4 sm:$0xff]   ;;  %v4374_v20 = vsel %vm4358_vm13, %v18472_v18, %v18533_v35  ;;  %v18874_v18 = vcombine.high %v5376_v55, %v5376_v55  ;;  %v4426_v35 = vsel %vm1616_vm1, %v4383_v2, 0  ;;  %v4711_v55 = vsel %vm4709_vm2, %v18604_v45, %v18612_v0 }
 0x3cd   : > { %v18777_v38 = vpop.permute.xlu1 %4659  ;;  %14245 = vmatprep.subr.msk.bf16.mxu1 %vm1616_vm1, %v4380_v25  ;;  %v4382_v25 = vsel %vm4358_vm13, %v18512_v23, %v18517_v1  ;;  %v5377_v23 = vld [vmem:[#allocation6 + $0xf8] sm:$0xff]  ;;  %v4420_v1 = vsel %vm1616_vm1, %v4381_v61, 0  ;;  %v4719_v61 = vsel %vm4709_vm2, %v18695_v49, %v18648_v53  ;;  %v5378_v49 = vld [vmem:[#allocation6 + $0x100] sm:$0xff] }
 0x3ce   : > { %5529 = vrot.lane.b32.xlu0 %v18792_v28, %s16214_s16  ;;  %4439 = vmatpush1.bf16.msra.mxu0 %v4408_v21  ;;  %v18862_v21 = vld [vmem:[#allocation6 + $0x20] ss:$56 sps:$4 sm:$0xff]  }
 0x3cf   : > { %5527 = vrot.lane.b32.xlu1 %v18768_v29, %s16214_s16  ;;  %4516 = vmatprep.subr.bf16.mxu0 %v4364_v13  ;;  %v18811_v3 = vpop.permute.xlu0 %4697 }
 0x3d0   : > { %4480 = vmatpush1.bf16.msra.mxu1 %v4414_v62  ;;  %v18885_v62 = vcombine.low %v5377_v23, %v5377_v23 }
 0x3d1   : > { %v18801_v46 = vpop.permute.xlu1 %4695  ;;  %4557 = vmatprep.subr.bf16.mxu1 %v4366_v7  ;;  %14244 = vmatmul.mubr.msk.bf16.vlgmr.msra.gmra.mrb[88].mxu0 %vm1898_vm10, %v18433_v59  ;;  %v4367_v7 = vsel %vm4358_vm13, %v18504_v56, %v18558_v58  ;;  %v4720_v56 = vsel %vm4709_vm2, %v18648_v53, %v18653_v12 }
 0x3d2   : > { %5513 = vrot.lane.b32.xlu0 %v18813_v19, %s16214_s16  ;;  %4517 = vmatpush1.bf16.msra.mxu0 %v4363_v57  ;;  %v22839_v57 = vld [vmem:[#allocation33_spill] sm:$0xff] }
 0x3d3   : > { %5531 = vrot.lane.b32.xlu1 %v18806_v37, %s16214_s16  ;;  %14246 = vmatmul.mubr.msk.bf16.vlgmr.msra.gmra.mrb[96].mxu1 %vm1898_vm10, %v18433_v59  ;;  %v18839_v14 = vpop.permute.xlu0 %4679 }
 0x3d4   : > { %4558 = vmatpush1.bf16.msra.mxu1 %v4365_v42  ;;  %4518 = vmatprep.subr.bf16.mxu0 %v4373_v44  ;;  %v4710_v42 = vsel %vm4709_vm2, %v18639_v48, %v18604_v45  ;;  %v4376_v45 = vsel %vm4358_vm13, %v18538_v47, %v18584_v32  ;;  %v4385_v48 = vsel %vm4358_vm13, %v18576_v31, %v18626_v10  ;;  %v18947_v10 = vld [vmem:[#allocation6 + $0x28] ss:$56 sps:$4 sm:$0xff]   ;;  %vm5066_vm13 = vcmask 523264  }
 0x3d5   : > { %v18829_v63 = vpop.permute.xlu1 %4647  ;;  %4559 = vmatprep.subr.bf16.mxu1 %v4375_v52  ;;  %4548 = vmatprep.mubr.bf16.mxu0 %v22614_v6  ;;  %v18909_v52 = vld [vmem:[#allocation6 + $0x8c] ss:$56 sps:$4 sm:$0xff]   ;;  %v4728_v47 = vsel %vm4709_vm2, %v18708_v50, %v18719_v41  ;;  %v4729_v31 = vsel %vm4709_vm2, %v18719_v41, %v18729_v40  ;;  %v4432_v50 = vsel %vm1616_vm1, %v4385_v48, 0  ;;  %v18973_v48 = vcombine.low %v5378_v49, %v5378_v49 }
 0x3d6   : > { %5497 = vrot.lane.b32.xlu0 %v18841_v9, %s16214_s16  ;;  %4519 = vmatpush1.bf16.msra.mxu0 %v4372_v54  ;;  %v18916_v54 = vld [vmem:[#allocation6 + $0x90] ss:$56 sps:$4 sm:$0xff]  }
 0x3d7   : > { %5515 = vrot.lane.b32.xlu1 %v18834_v33, %s16214_s16  ;;  %4589 = vmatprep.mubr.bf16.mxu1 %v22614_v6  ;;  %v18872_v24 = vpop.permute.xlu0 %4663 }
 0x3d8   : > { %4560 = vmatpush1.bf16.msra.mxu1 %v4374_v20  ;;  %14247 = vmatprep.subr.msk.bf16.mxu0 %vm1616_vm1, %v4382_v25  ;;  %v18936_v25 = vld [vmem:[#allocation6 + $0x24] ss:$56 sps:$4 sm:$0xff]  }
 0x3d9   : > { %v18857_v39 = vpop.permute.xlu1 %4681  ;;  %14249 = vmatprep.subr.msk.bf16.mxu1 %vm1616_vm1, %v4384_v22 }
 0x3da   : > { %5533 = vrot.lane.b32.xlu0 %v18874_v18, %s16214_s16  ;;  %4521 = vmatpush1.bf16.msra.mxu0 %v4420_v1 }
 0x3db   : > { %5499 = vrot.lane.b32.xlu1 %v18862_v21, %s16214_s16  ;;  %v18890_v13 = vpop.permute.xlu0 %4699  ;;  %15049 = vmatprep.subr.bf16.mxu0 %v22674_v5 }
 0x3dc   : > { %4562 = vmatpush1.bf16.msra.mxu1 %v4426_v35  ;;  %v4759_v35 = vsel %vm1616_vm1, %v4728_v47, 0 }
 0x3dd   : > { %v18883_v11 = vpop.permute.xlu1 %4665  ;;  %4785 = vmatprep.subr.bf16.mxu1 %v4711_v55  ;;  %14248 = vmatmul.mubr.msk.bf16.vlgmr.msra.gmra.mrb[92].mxu0 %vm1898_vm10, %v18433_v59  ;;  %v4713_v55 = vsel %vm4709_vm2, %v18671_v16, %v18678_v36 }
 0x3de   : > { %5380 = vrot.lane.b32.xlu0 %v22839_v57, %s16225_s11  ;;  %15050 = vmatpush3.bf16.msra.mxu0 %v4367_v7  ;;  %v18966_v7 = vcombine.high %v5377_v23, %v5377_v23  ;;  %v4712_v23 = vsel %vm4709_vm2, %v18612_v0, %v18671_v16  ;;  %v4724_v0 = vsel %vm4709_vm2, %v18839_v14, %v18857_v39  ;;  %v19001_v16 = vld [vmem:[#allocation6 + $0x98] ss:$56 sps:$4 sm:$0xff]  }
 0x3df   : > { %5535 = vrot.lane.b32.xlu1 %v18885_v62, %s16214_s16  ;;  %14250 = vmatmul.mubr.msk.bf16.vlgmr.msra.gmra.mrb[100].mxu1 %vm1898_vm10, %v18433_v59  ;;  %v18914_v58 = vpop.permute.xlu0 %4683 }
 0x3e0   : > { %4786 = vmatpush1.bf16.msra.mxu1 %v4710_v42  ;;  %15051 = vmatprep.subr.bf16.mxu0 %v22674_v5 }
 0x3e1   : > { %v18907_v44 = vpop.permute.xlu1 %4701  ;;  %4787 = vmatprep.subr.bf16.mxu1 %v4720_v56  ;;  %15055 = vmatprep.mubr.msk.bf16.mxu0 %vm16227_vm11, %v22674_v5 }
 0x3e2   : > { %5519 = vrot.lane.b32.xlu0 %v18916_v54, %s16214_s16  ;;  %15052 = vmatpush3.bf16.msra.mxu0 %v4376_v45  ;;  %v4715_v45 = vsel %vm4709_vm2, %v18777_v38, %v18790_v4 }
 0x3e3   : > { %5517 = vrot.lane.b32.xlu1 %v18909_v52, %s16214_s16  ;;  %4817 = vmatprep.mubr.bf16.mxu1 %v22614_v6  ;;  %v18945_v32 = vpop.permute.xlu0 %4667  ;;  %v18951_v53 = vpop.f32.mrb[24].mxu0 }
 0x3e4   : > { %4788 = vmatpush1.bf16.msra.mxu1 %v4719_v61  ;;  %15053 = vmatprep.subr.bf16.mxu0 %v22674_v5  ;;  %v18956_v2 = vpop.f32.mrb[32].mxu1  ;;  %v18958_v22 = vpop.f32.mrb[25].mxu0 }
 0x3e5   : > { %v18934_v20 = vpop.permute.xlu1 %4685  ;;  %14252 = vmatprep.subr.msk.bf16.mxu1 %vm1616_vm1, %v4729_v31  ;;  %v14987_v41 = vpop.f32.mrb[33].mxu1 }
 0x3e6   : > { %5503 = vrot.lane.b32.xlu0 %v18947_v10, %s16214_s16  ;;  %v2090_v1 = vpop.f32.mrb[26].mxu0  ;;  %15054 = vmatpush3.bf16.msra.mxu0 %v4432_v50  ;;  %v2130_v42 = vpop.f32.mrb[34].mxu1  ;;  %v4714_v50 = vsel %vm4709_vm2, %v18678_v36, %v18777_v38  ;;  %v4722_v41 = vsel %vm4709_vm2, %v18747_v51, %v18757_v34  ;;  %v4721_v38 = vsel %vm4709_vm2, %v18653_v12, %v18747_v51 }
 0x3e7   : > { %5501 = vrot.lane.b32.xlu1 %v18936_v25, %s16214_s16  ;;  %4826 = vmatprep.subr.bf16.mxu0 %v4713_v55  ;;  %v2091_v61 = vpop.f32.mrb[27].mxu0  ;;  %v14988_v31 = vpop.f32.mrb[35].mxu1  ;;  %v18994_v1 = vld [vmem:[#allocation6 + $0x94] ss:$56 sps:$4 sm:$0xff]   ;;  %v4723_v55 = vsel %vm4709_vm2, %v18757_v34, %v18839_v14  ;;  %v4731_v42 = vsel %vm4709_vm2, %v18801_v46, %v18811_v3  ;;  %v4732_v12 = vsel %vm4709_vm2, %v18811_v3, %v18890_v13 }
 0x3e8   : > { %4790 = vmatpush1.bf16.msra.mxu1 %v4759_v35  ;;  %v18977_v47 = vpop.permute.xlu0 %4705  ;;  %v4730_v35 = vsel %vm4709_vm2, %v18729_v40, %v18801_v46  ;;  %v4733_v40 = vsel %vm4709_vm2, %v18890_v13, %v18907_v44  ;;  %v19034_v34 = vcombine.high %v5378_v49, %v5378_v49  ;;  %v5379_v46 = vld [vmem:[#allocation6 + $0x108] sm:$0xff]  ;;  %v22843_v49 = vld [vmem:[#allocation30_spill] sm:$0xff] }
 0x3e9   : > { %v18968_v56 = vpop.permute.xlu1 %4703  ;;  %4867 = vmatprep.subr.bf16.mxu1 %v4715_v45  ;;  %15056 = vmatmul.mubr.msk.bf16.vlgmr.msra.gmra.mrb[96].mxu0 %vm1898_vm10, %v18433_v59  ;;  %v19022_v45 = vld [vmem:[#allocation6 + $0x2c] ss:$56 sps:$4 sm:$0xff]   ;;  %v4765_v13 = vsel %vm1616_vm1, %v4730_v35, 0 }
 0x3ea   : > { %5539 = vrot.lane.b32.xlu0 %v18973_v48, %s16214_s16  ;;  %4827 = vmatpush1.bf16.msra.mxu0 %v4712_v23  ;;  %22840 = vst [vmem:[#allocation48_spill] sm:$0xff] %v19022_v45  ;;  %22841 = vst [vmem:[#allocation107_spill] sm:$0xff] %v19034_v34  ;;  %v22842_v3 = vld [vmem:[#allocation132_spill] sm:$0xff] }
 0x3eb   : > { %5537 = vrot.lane.b32.xlu1 %v18966_v7, %s16214_s16  ;;  %14253 = vmatmul.mubr.msk.bf16.vlgmr.msra.gmra.mrb[104].mxu1 %vm1898_vm10, %v18829_v63 }
 0x3ec   : > { %4868 = vmatpush1.bf16.msra.mxu1 %v4714_v50  ;;  %4828 = vmatprep.subr.bf16.mxu0 %v4722_v41  ;;  %v19005_v36 = vpop.permute.xlu0 %5008 }
 0x3ed   : > { %v18996_v59 = vpop.permute.xlu1 %4687  ;;  %4869 = vmatprep.subr.bf16.mxu1 %v4724_v0  ;;  %4858 = vmatprep.mubr.bf16.mxu0 %v22614_v6 }
 0x3ee   : > { %5523 = vrot.lane.b32.xlu0 %v19001_v16, %s16214_s16  ;;  %4829 = vmatpush1.bf16.msra.mxu0 %v4721_v38  ;;  %v4771_v38 = vsel %vm1616_vm1, %v4732_v12, 0 }
 0x3ef   : > { %5521 = vrot.lane.b32.xlu1 %v18994_v1, %s16214_s16  ;;  %4899 = vmatprep.mubr.bf16.mxu1 %v22614_v6  ;;  %v2228_v14 = vpop.f32.mrb[28].mxu0 }
 0x3f0   : > { %4870 = vmatpush1.bf16.msra.mxu1 %v4723_v55  ;;  %14254 = vmatprep.subr.msk.bf16.mxu0 %vm1616_vm1, %v4731_v42  ;;  %v19039_v61 = vpop.permute.xlu0 %5006  ;;  %v19042_v31 = vadd.f32 %v2228_v14, %v22842_v3  ;;  %v2269_v23 = vpop.f32.mrb[36].mxu1  ;;  %v4717_v55 = vsel %vm4709_vm2, %v18872_v24, %v18883_v11  ;;  %v19054_v42 = vcombine.low %v5379_v46, %v5379_v46  ;;  %v22845_v3 = vld [vmem:[#allocation34_spill] sm:$0xff] }
 0x3f1   : > { %v19028_v51 = vpop.permute.xlu1 %5010  ;;  %14256 = vmatprep.subr.msk.bf16.mxu1 %vm1616_vm1, %v4733_v40  ;;  %v19048_v50 = vadd.f32 %v2269_v23, %v22843_v49  ;;  %v2230_v41 = vpop.f32.mrb[29].mxu0  ;;  %v22844_v40 = vld [vmem:[#allocation133_spill] sm:$0xff] }
 0x3f2   : > { %5541 = vrot.lane.b32.xlu0 %v19034_v34, %s16214_s16  ;;  %v2271_v0 = vpop.f32.mrb[37].mxu1  ;;  %4831 = vmatpush1.bf16.msra.mxu0 %v4765_v13  ;;  %v19057_v14 = vadd.f32 %v2230_v41, %v22844_v40  ;;  %v19062_v23 = vld [vmem:[#allocation6 + $0x9c] ss:$56 sps:$4 sm:$0xff]   ;;  %v2232_v13 = vpop.f32.mrb[30].mxu0  ;;  %v4716_v41 = vsel %vm4709_vm2, %v18790_v4, %v18872_v24  ;;  %v4725_v24 = vsel %vm4709_vm2, %v18857_v39, %v18914_v58 }
 0x3f3   : > { %5505 = vrot.lane.b32.xlu1 %v19022_v45, %s16214_s16  ;;  %v19060_v34 = vadd.f32 %v2271_v0, %v22845_v3  ;;  %4908 = vmatprep.subr.bf16.mxu0 %v4717_v55  ;;  %v2273_v12 = vpop.f32.mrb[38].mxu1  ;;  %v2233_v49 = vpop.f32.mrb[31].mxu0  ;;  %v4726_v55 = vsel %vm4709_vm2, %v18914_v58, %v18934_v20  ;;  %v4735_v3 = vsel %vm4709_vm2, %v18968_v56, %v18977_v47 }
 0x3f4   : > { %4872 = vmatpush1.bf16.msra.mxu1 %v4771_v38  ;;  %v19067_v45 = vpop.permute.xlu0 %5028  ;;  %v2274_v0 = vpop.f32.mrb[39].mxu1  ;;  %v4718_v38 = vsel %vm4709_vm2, %v18883_v11, %v18945_v32  ;;  %v4734_v11 = vsel %vm4709_vm2, %v18907_v44, %v18968_v56  ;;  %v4727_v32 = vsel %vm4709_vm2, %v18934_v20, %v18996_v59  ;;  %v19109_v44 = vcombine.high %v5379_v46, %v5379_v46  ;;  %v22846_v56 = vld [vmem:[#allocation51_spill] sm:$0xff] }
 0x3f5   : > { %v4708_v35 = vpop.permute.xlu1 %4707  ;;  %15059 = vmatprep.subr.bf16.mxu1 %v22674_v5  ;;  %14255 = vmatmul.mubr.msk.bf16.vlgmr.msra.gmra.mrb[100].mxu0 %vm1898_vm10, %v18829_v63  ;;  %v5068_v0 = vsel %vm5066_vm13, %v19005_v36, %v19028_v51 }
 0x3f6   : > { %5525 = vrot.lane.b32.xlu0 %v19062_v23, %s16214_s16  ;;  %4909 = vmatpush1.bf16.msra.mxu0 %v4716_v41  ;;  %v4736_v39 = vsel %vm4709_vm2, %v18977_v47, %v4708_v35  ;;  %v4777_v47 = vsel %vm1616_vm1, %v4734_v11, 0  ;;  %vm5004_vm2 = vcmask 195584  }
 0x3f7   : > { %5543 = vrot.lane.b32.xlu1 %v19054_v42, %s16214_s16  ;;  %14257 = vmatmul.mubr.msk.bf16.vlgmr.msra.gmra.mrb[108].mxu1 %vm1898_vm10, %v18829_v63  ;;  %v4783_v46 = vsel %vm1616_vm1, %v4736_v39, 0 }
 0x3f8   : > { %15060 = vmatpush3.bf16.msra.mxu1 %v4718_v38  ;;  %4910 = vmatprep.subr.bf16.mxu0 %v4726_v55  ;;  %v5027_v4 = vpop.permute.xlu0 %5026  ;;  %v22847_v38 = vld [vmem:[#allocation79_spill] sm:$0xff] }
 0x3f9   : > { %v19084_v40 = vpop.permute.xlu1 %5030  ;;  %15061 = vmatprep.subr.bf16.mxu1 %v22674_v5  ;;  %4940 = vmatprep.mubr.bf16.mxu0 %v22614_v6 }
 0x3fa   : > { %5842 = vrot.lane.b32.xlu0 %v18676_v30, %s16232_s21  ;;  %4911 = vmatpush1.bf16.msra.mxu0 %v4725_v24 }
 0x3fb   : > { %5840 = vrot.lane.b32.xlu1 %v18655_v27, %s16232_s21  ;;  %15065 = vmatprep.mubr.msk.bf16.mxu1 %vm16227_vm11, %v22674_v5  ;;  %v2310_v13 = vpop.f32.mrb[32].mxu0 }
 0x3fc   : > { %15062 = vmatpush3.bf16.msra.mxu1 %v4727_v32  ;;  %14258 = vmatprep.subr.msk.bf16.mxu0 %vm1616_vm1, %v4735_v3  ;;  %v19114_v20 = vpop.permute.xlu0 %5014  ;;  %v19117_v59 = vadd.f32 %v2310_v13, %v22846_v56  ;;  %v2351_v12 = vpop.f32.mrb[40].mxu1  ;;  %v5067_v13 = vsel %vm5066_vm13, %v19039_v61, %v19005_v36  ;;  %v5076_v61 = vsel %vm5066_vm13, %v5027_v4, %v19067_v45 }
 0x3fd   : > { %v5013_v58 = vpop.permute.xlu1 %5012  ;;  %15063 = vmatprep.subr.bf16.mxu1 %v22674_v5  ;;  %v19124_v35 = vadd.f32 %v2351_v12, %v18951_v53  ;;  %v2312_v49 = vpop.f32.mrb[33].mxu0 }
 0x3fe   : > { %5545 = vrot.lane.b32.xlu0 %v19109_v44, %s16214_s16  ;;  %v2353_v41 = vpop.f32.mrb[41].mxu1  ;;  %4913 = vmatpush1.bf16.msra.mxu0 %v4777_v47  ;;  %v19130_v55 = vadd.f32 %v2312_v49, %v22847_v38  ;;  %v5070_v53 = vsel %vm5066_vm13, %v5013_v58, %v19114_v20  ;;  %v2314_v32 = vpop.f32.mrb[34].mxu0  ;;  %v5069_v12 = vsel %vm5066_vm13, %v19028_v51, %v5013_v58 }
 0x3ff   : > { %5838 = vrot.lane.b32.xlu1 %v18700_v60, %s16232_s21  ;;  %v19133_v24 = vadd.f32 %v2353_v41, %v18958_v22  ;;  %5142 = vmatprep.subr.bf16.mxu0 %v5068_v0  ;;  %v2355_v3 = vpop.f32.mrb[42].mxu1  ;;  %v2315_v39 = vpop.f32.mrb[35].mxu0  ;;  %v5077_v47 = vsel %vm5066_vm13, %v19067_v45, %v19084_v40 }
 0x400   : > { %15064 = vmatpush3.bf16.msra.mxu1 %v4783_v46  ;;  %v5049_v56 = vpop.permute.xlu0 %5048  ;;  %v2356_v22 = vpop.f32.mrb[43].mxu1 }
 0x401   : > { %v5047_v11 = vpop.permute.xlu1 %5046  ;;  %5183 = vmatprep.subr.bf16.mxu1 %v5070_v53  ;;  %14259 = vmatmul.mubr.msk.bf16.vlgmr.msra.gmra.mrb[104].mxu0 %vm1898_vm10, %v18829_v63 }
 0x402   : > { %5862 = vrot.lane.b32.xlu0 %v18724_v8, %s16232_s21  ;;  %5143 = vmatpush1.bf16.msra.mxu0 %v5067_v13  ;;  %v5085_v51 = vsel %vm5066_vm13, %v5047_v11, %v5049_v56 }
 0x403   : > { %5860 = vrot.lane.b32.xlu1 %v18710_v17, %s16232_s21  ;;  %15066 = vmatmul.mubr.msk.bf16.vlgmr.msra.gmra.mrb[112].mxu1 %vm1898_vm10, %v18829_v63  ;;  %v5116_v38 = vsel %vm1616_vm1, %v5085_v51, 0 }
 0x404   : > { %5184 = vmatpush1.bf16.msra.mxu1 %v5069_v12  ;;  %5144 = vmatprep.subr.bf16.mxu0 %v5077_v47  ;;  %v5033_v63 = vpop.permute.xlu0 %5032 }
 0x405   : > { %v5051_v36 = vpop.permute.xlu1 %5050  ;;  %5174 = vmatprep.mubr.bf16.mxu0 %v22614_v6  ;;  %5215 = vmatprep.mubr.bf16.mxu1 %v22614_v6  ;;  %v5078_v11 = vsel %vm5066_vm13, %v19084_v40, %v5033_v63 }
 0x406   : > { %5844 = vrot.lane.b32.xlu0 %v18731_v15, %s16232_s21  ;;  %5145 = vmatpush1.bf16.msra.mxu0 %v5076_v61  ;;  %v5086_v58 = vsel %vm5066_vm13, %v5049_v56, %v5051_v36 }
 0x407   : > { %5858 = vrot.lane.b32.xlu1 %v18759_v26, %s16232_s21  ;;  %14262 = vmatprep.subr.msk.bf16.mxu0 %vm1616_vm1, %v5086_v58  ;;  %v2392_v49 = vpop.f32.mrb[36].mxu0 }
 0x408   : > { %v5017_v4 = vpop.permute.xlu0 %5016  ;;  %v19171_v41 = vadd.f32 %v2392_v49, %v18956_v2  ;;  %v2570_v0 = vpop.f32.mrb[44].mxu1 }
 0x409   : > { %v19163_v46 = vpop.permute.xlu1 %5034  ;;  %v19179_v53 = vadd.f32 %v2570_v0, %v19042_v31  ;;  %v2572_v32 = vpop.f32.mrb[45].mxu1 }
 0x40a   : > { %v5079_v45 = vsel %vm5066_vm13, %v5033_v63, %v19163_v46  ;;  %5878 = vrot.lane.b32.xlu0 %v18768_v29, %s16232_s21  ;;  %5147 = vmatpush1.bf16.msra.mxu0 %v5116_v38  ;;  %v14997_v3 = vpop.f32.mrb[37].mxu0  ;;  %v19182_v2 = vadd.f32 %v2572_v32, %v19057_v14  ;;  %v2574_v39 = vpop.f32.mrb[46].mxu1  ;;  %v5071_v63 = vsel %vm5066_vm13, %v19114_v20, %v5017_v4 }
 0x40b   : > { %5846 = vrot.lane.b32.xlu1 %v18752_v43, %s16232_s21  ;;  %5185 = vmatprep.subr.bf16.mxu1 %v5079_v45  ;;  %v2575_v56 = vpop.f32.mrb[47].mxu1  ;;  %v2395_v12 = vpop.f32.mrb[38].mxu0 }
 0x40c   : > { %5186 = vmatpush1.bf16.msra.mxu1 %v5078_v11  ;;  %v5001_v40 = vpop.permute.xlu0 %5000  ;;  %v14998_v31 = vpop.f32.mrb[39].mxu0 }
 0x40d   : > { %v5019_v13 = vpop.permute.xlu1 %5018 }
 0x40e   : > { %v5072_v22 = vsel %vm5066_vm13, %v5017_v4, %v5019_v13  ;;  %5882 = vrot.lane.b32.xlu0 %v18806_v37, %s16232_s21 }
 0x40f   : > { %5880 = vrot.lane.b32.xlu1 %v18792_v28, %s16232_s21  ;;  %5224 = vmatprep.subr.bf16.mxu0 %v5072_v22 }
 0x410   : > { %v5053_v14 = vpop.permute.xlu0 %5052 }
 0x411   : > { %v5003_v47 = vpop.permute.xlu1 %5002  ;;  %v5087_v51 = vsel %vm5066_vm13, %v5051_v36, %v5053_v14 }
 0x412   : > { %v19189_v61 = vsel %vm5004_vm2, %v5001_v40, %v5003_v47  ;;  %5866 = vrot.lane.b32.xlu0 %v18834_v33, %s16232_s21  ;;  %v5122_v20 = vsel %vm1616_vm1, %v5087_v51, 0  ;;  %vm22566_vm2 = vcmask 785408  }
 0x413   : > { %5864 = vrot.lane.b32.xlu1 %v18813_v19, %s16232_s21  ;;  %14263 = vmatmul.mubr.msk.bf16.vlgmr.msra.gmra.mrb[108].mxu0 %vm1898_vm10, %v19189_v61  ;;  %v2611_v49 = vpop.f32.mrb[40].mxu0 }
 0x414   : > { %5225 = vmatpush1.bf16.msra.mxu0 %v5071_v63  ;;  %5256 = vmatprep.mubr.bf16.mxu0 %v22614_v6  ;;  %v5037_v0 = vpop.permute.xlu0 %5036  ;;  %v2652_v38 = vpop.f32.mrb[48].mxu1  ;;  %v19209_v36 = vadd.f32 %v2611_v49, %v19048_v50 }
 0x415   : > { %v5055_v58 = vpop.permute.xlu1 %5054  ;;  %v2613_v4 = vpop.f32.mrb[41].mxu0  ;;  %v19212_v32 = vadd.f32 %v2652_v38, %v19117_v59  ;;  %v5080_v59 = vsel %vm5066_vm13, %v19163_v46, %v5037_v0 }
 0x416   : > { %v5088_v45 = vsel %vm5066_vm13, %v5053_v14, %v5055_v58  ;;  %5850 = vrot.lane.b32.xlu0 %v18862_v21, %s16232_s21  ;;  %v2654_v11 = vpop.f32.mrb[49].mxu1  ;;  %v2615_v3 = vpop.f32.mrb[42].mxu0  ;;  %v19215_v56 = vadd.f32 %v2613_v4, %v19060_v34 }
 0x417   : > { %5848 = vrot.lane.b32.xlu1 %v18841_v9, %s16232_s21  ;;  %14264 = vmatprep.subr.msk.bf16.mxu1 %vm1616_vm1, %v5088_v45  ;;  %v2656_v39 = vpop.f32.mrb[50].mxu1  ;;  %v19218_v22 = vadd.f32 %v2654_v11, %v19130_v55  ;;  %v2616_v40 = vpop.f32.mrb[43].mxu0 }
 0x418   : > { %5188 = vmatpush1.bf16.msra.mxu1 %v5122_v20  ;;  %v2657_v50 = vpop.f32.mrb[51].mxu1  ;;  %v5021_v31 = vpop.permute.xlu0 %5020 }
 0x419   : > { %v5039_v12 = vpop.permute.xlu1 %5038  ;;  %v5073_v63 = vsel %vm5066_vm13, %v5019_v13, %v5021_v31 }
 0x41a   : > { %5884 = vrot.lane.b32.xlu0 %v18874_v18, %s16232_s21  ;;  %v5081_v34 = vsel %vm5066_vm13, %v5037_v0, %v5039_v12 }
 0x41b   : > { %5836 = vrot.lane.b32.xlu1 %v22839_v57, %s16233_s23  ;;  %14265 = vmatmul.mubr.msk.bf16.vlgmr.msra.gmra.mrb[116].mxu1 %vm1898_vm10, %v19189_v61 }
 0x41c   : > { %5226 = vmatprep.subr.bf16.mxu0 %v5081_v34  ;;  %5297 = vmatprep.mubr.bf16.mxu1 %v22614_v6  ;;  %v5057_v47 = vpop.permute.xlu0 %5056 }
 0x41d   : > { %5227 = vmatpush1.bf16.msra.mxu0 %v5080_v59  ;;  %v5023_v55 = vpop.permute.xlu1 %5022  ;;  %v5089_v51 = vsel %vm5066_vm13, %v5055_v58, %v5057_v47 }
 0x41e   : > { %5868 = vrot.lane.b32.xlu0 %v18909_v52, %s16232_s21  ;;  %v5074_v14 = vsel %vm5066_vm13, %v5021_v31, %v5023_v55  ;;  %v5128_v58 = vsel %vm1616_vm1, %v5089_v51, 0 }
 0x41f   : > { %5886 = vrot.lane.b32.xlu1 %v18885_v62, %s16232_s21  ;;  %5265 = vmatprep.subr.bf16.mxu1 %v5074_v14  ;;  %v2693_v49 = vpop.f32.mrb[44].mxu0 }
 0x420   : > { %5266 = vmatpush1.bf16.msra.mxu1 %v5073_v63  ;;  %v5041_v45 = vpop.permute.xlu0 %5040  ;;  %v2734_v0 = vpop.f32.mrb[52].mxu1  ;;  %v19243_v20 = vadd.f32 %v2693_v49, %v19124_v35 }
 0x421   : > { %v5059_v46 = vpop.permute.xlu1 %5058  ;;  %v2695_v4 = vpop.f32.mrb[45].mxu0  ;;  %v19248_v11 = vadd.f32 %v2734_v0, %v19171_v41 }
 0x422   : > { %5852 = vrot.lane.b32.xlu0 %v18936_v25, %s16232_s21  ;;  %v5090_v38 = vsel %vm5066_vm13, %v5057_v47, %v5059_v46  ;;  %v15007_v13 = vpop.f32.mrb[53].mxu1  ;;  %v2697_v3 = vpop.f32.mrb[46].mxu0  ;;  %v19251_v40 = vadd.f32 %v2695_v4, %v19133_v24  ;;  %v5082_v24 = vsel %vm5066_vm13, %v5039_v12, %v5041_v45 }
 0x423   : > { %5870 = vrot.lane.b32.xlu1 %v18916_v54, %s16232_s21  ;;  %14266 = vmatprep.subr.msk.bf16.mxu0 %vm1616_vm1, %v5090_v38  ;;  %v2737_v39 = vpop.f32.mrb[54].mxu1  ;;  %v2698_v31 = vpop.f32.mrb[47].mxu0  ;;  %v22848_v38 = vld [vmem:[#allocation48_spill] sm:$0xff] }
 0x424   : > { %5229 = vmatpush1.bf16.msra.mxu0 %v5128_v58  ;;  %v15008_v35 = vpop.f32.mrb[55].mxu1  ;;  %v5025_v34 = vpop.permute.xlu0 %5024 }
 0x425   : > { %v5043_v50 = vpop.permute.xlu1 %5042  ;;  %15069 = vmatprep.subr.bf16.mxu0 %v22674_v5  ;;  %v5075_v59 = vsel %vm5066_vm13, %v5023_v55, %v5025_v34  ;;  %v22849_v34 = vld [vmem:[#allocation107_spill] sm:$0xff] }
 0x426   : > { %5888 = vrot.lane.b32.xlu0 %v18966_v7, %s16232_s21  ;;  %v5083_v41 = vsel %vm5066_vm13, %v5041_v45, %v5043_v50 }
 0x427   : > { %5854 = vrot.lane.b32.xlu1 %v18947_v10, %s16232_s21  ;;  %14267 = vmatmul.mubr.msk.bf16.vlgmr.msra.gmra.mrb[112].mxu0 %vm1898_vm10, %v19189_v61 }
 0x428   : > { %5267 = vmatprep.subr.bf16.mxu1 %v5083_v41  ;;  %15070 = vmatpush3.bf16.msra.mxu0 %v5075_v59  ;;  %v5063_v63 = vpop.permute.xlu0 %5062 }
 0x429   : > { %5268 = vmatpush1.bf16.msra.mxu1 %v5082_v24  ;;  %v5061_v47 = vpop.permute.xlu1 %5060  ;;  %15071 = vmatprep.subr.bf16.mxu0 %v22674_v5 }
 0x42a   : > { %v5091_v14 = vsel %vm5066_vm13, %v5059_v46, %v5061_v47  ;;  %5872 = vrot.lane.b32.xlu0 %v18994_v1, %s16232_s21  ;;  %15075 = vmatprep.mubr.msk.bf16.mxu0 %vm16227_vm11, %v22674_v5  ;;  %v5092_v55 = vsel %vm5066_vm13, %v5061_v47, %v5063_v63 }
 0x42b   : > { %5890 = vrot.lane.b32.xlu1 %v18973_v48, %s16232_s21  ;;  %v5134_v12 = vsel %vm1616_vm1, %v5091_v14, 0  ;;  %14268 = vmatprep.subr.msk.bf16.mxu1 %vm1616_vm1, %v5092_v55 }
 0x42c   : > { %v2927_v49 = vpop.f32.mrb[48].mxu0  ;;  %v5490_v45 = vpop.permute.xlu0 %5489 }
 0x42d   : > { %5270 = vmatpush1.bf16.msra.mxu1 %v5134_v12  ;;  %v5045_v51 = vpop.permute.xlu1 %5044  ;;  %v2968_v0 = vpop.f32.mrb[56].mxu1  ;;  %v19280_v4 = vadd.f32 %v2927_v49, %v19179_v53 }
 0x42e   : > { %v5084_v46 = vsel %vm5066_vm13, %v5043_v50, %v5045_v51  ;;  %5856 = vrot.lane.b32.xlu0 %v22848_v38, %s16232_s21  ;;  %v19283_v13 = vadd.f32 %v2968_v0, %v19209_v36  ;;  %v2929_v58 = vpop.f32.mrb[49].mxu0  ;;  %v2970_v3 = vpop.f32.mrb[57].mxu1 }
 0x42f   : > { %5874 = vrot.lane.b32.xlu1 %v19001_v16, %s16232_s21  ;;  %15072 = vmatpush3.bf16.msra.mxu0 %v5084_v46  ;;  %v19286_v39 = vadd.f32 %v2970_v3, %v19215_v56  ;;  %v2931_v50 = vpop.f32.mrb[50].mxu0  ;;  %v2972_v31 = vpop.f32.mrb[58].mxu1  ;;  %v19292_v53 = vadd.f32 %v2929_v58, %v19182_v2 }
 0x430   : > { %14269 = vmatmul.mubr.msk.bf16.vlgmr.msra.gmra.mrb[120].mxu1 %vm1898_vm10, %v19189_v61  ;;  %15073 = vmatprep.subr.bf16.mxu0 %v22674_v5  ;;  %v2932_v36 = vpop.f32.mrb[51].mxu0  ;;  %v2973_v41 = vpop.f32.mrb[59].mxu1 }
 0x431   : > { %v5492_v35 = vpop.permute.xlu1 %5491  ;;  %5655 = vmatprep.mubr.bf16.mxu1 %v22614_v6  ;;  %v5065_v56 = vpop.permute.xlu0 %5064 }
 0x432   : > { %5894 = vrot.lane.b32.xlu0 %v19054_v42, %s16232_s21  ;;  %v5549_v59 = vsel %vm22566_vm2, %v5490_v45, %v5492_v35  ;;  %v5093_v24 = vsel %vm5066_vm13, %v5063_v63, %v5065_v56 }
 0x433   : > { %5892 = vrot.lane.b32.xlu1 %v22849_v34, %s16232_s21  ;;  %5623 = vmatprep.subr.bf16.mxu1 %v5549_v59  ;;  %v5140_v2 = vsel %vm1616_vm1, %v5093_v24, 0 }
 0x434   : > { %15074 = vmatpush3.bf16.msra.mxu0 %v5140_v2 }
 0x435   : > { %v5488_v47 = vpop.permute.xlu1 %5487  ;;  %v5510_v55 = vpop.permute.xlu0 %5509 }
 0x436   : > { %v5548_v14 = vsel %vm22566_vm2, %v5488_v47, %v5490_v45  ;;  %6198 = vrot.lane.b32.xlu0 %v18655_v27, %s16233_s23 }
 0x437   : > { %5876 = vrot.lane.b32.xlu1 %v19062_v23, %s16232_s21  ;;  %5624 = vmatpush1.bf16.msra.mxu1 %v5548_v14 }
 0x438   : > { %15076 = vmatmul.mubr.msk.bf16.vlgmr.msra.gmra.mrb[116].mxu0 %vm1898_vm10, %v19189_v61  ;;  %v3009_v63 = vpop.f32.mrb[52].mxu0  ;;  %v3050_v46 = vpop.f32.mrb[60].mxu1 }
 0x439   : > { %v5512_v12 = vpop.permute.xlu1 %5511  ;;  %5696 = vmatprep.mubr.bf16.mxu0 %v22614_v6  ;;  %v5494_v51 = vpop.permute.xlu0 %5493  ;;  %v19313_v49 = vadd.f32 %v3009_v63, %v19212_v32  ;;  %v19319_v45 = vadd.f32 %v3050_v46, %v19243_v20 }
 0x43a   : > { %5896 = vrot.lane.b32.xlu0 %v19109_v44, %s16232_s21  ;;  %v5558_v27 = vsel %vm22566_vm2, %v5510_v55, %v5512_v12  ;;  %v3011_v61 = vpop.f32.mrb[53].mxu0  ;;  %v3052_v0 = vpop.f32.mrb[61].mxu1  ;;  %s16237_s21 = smov 40  }
 0x43b   : > { %6200 = vrot.lane.b32.xlu1 %v18676_v30, %s16233_s23  ;;  %5625 = vmatprep.subr.bf16.mxu1 %v5558_v27  ;;  %v19322_v30 = vadd.f32 %v3011_v61, %v19218_v22  ;;  %v19325_v58 = vadd.f32 %v3052_v0, %v19251_v40  ;;  %v3013_v32 = vpop.f32.mrb[54].mxu0  ;;  %v3054_v3 = vpop.f32.mrb[62].mxu1  ;;  %v5550_v40 = vsel %vm22566_vm2, %v5492_v35, %v5494_v51 }
 0x43c   : > { %v3014_v31 = vpop.f32.mrb[55].mxu0  ;;  %v3055_v36 = vpop.f32.mrb[63].mxu1 }
 0x43d   : > { %v19327_v50 = vpop.permute.xlu1 %5495  ;;  %v5508_v20 = vpop.permute.xlu0 %5507 }
 0x43e   : > { %6218 = vrot.lane.b32.xlu0 %v18710_v17, %s16233_s23  ;;  %v5551_v22 = vsel %vm22566_vm2, %v5494_v51, %v19327_v50  ;;  %v5557_v41 = vsel %vm22566_vm2, %v5508_v20, %v5510_v55 }
 0x43f   : > { %6196 = vrot.lane.b32.xlu1 %v18700_v60, %s16233_s23  ;;  %5664 = vmatprep.subr.bf16.mxu0 %v5551_v22 }
 0x440   : > { %5626 = vmatpush1.bf16.msra.mxu1 %v5557_v41  ;;  %5665 = vmatpush1.bf16.msra.mxu0 %v5550_v40  ;;  %v1650_v40 = vld [vmem:[%s22429_s3 + $0x10] sm:$0xff] }
 0x441   : > { %v5528_v56 = vpop.permute.xlu1 %5527  ;;  %v5530_v60 = vpop.permute.xlu0 %5529 }
 0x442   : > { %6202 = vrot.lane.b32.xlu0 %v18731_v15, %s16233_s23  ;;  %v5566_v17 = vsel %vm22566_vm2, %v5528_v56, %v5530_v60 }
 0x443   : > { %6220 = vrot.lane.b32.xlu1 %v18724_v8, %s16233_s23  ;;  %v5597_v63 = vsel %vm1616_vm1, %v5566_v17, 0 }
 0x444   : > { %v3091_v24 = vpop.f32.mrb[56].mxu0  ;;  %v3278_v47 = vpop.f32.mrb[64].mxu1 }
 0x445   : > { %v5532_v59 = vpop.permute.xlu1 %5531  ;;  %v5514_v2 = vpop.permute.xlu0 %5513  ;;  %v19345_v35 = vadd.f32 %v3091_v24, %v19248_v11  ;;  %v19351_v14 = vadd.f32 %v3278_v47, %v19280_v4 }
 0x446   : > { %6216 = vrot.lane.b32.xlu0 %v18759_v26, %s16233_s23  ;;  %v5567_v8 = vsel %vm22566_vm2, %v5530_v60, %v5532_v59  ;;  %v15017_v15 = vpop.f32.mrb[57].mxu0  ;;  %v3280_v55 = vpop.f32.mrb[65].mxu1  ;;  %v5559_v0 = vsel %vm22566_vm2, %v5512_v12, %v5514_v2 }
 0x447   : > { %6204 = vrot.lane.b32.xlu1 %v18752_v43, %s16233_s23  ;;  %14301 = vmatprep.subr.msk.bf16.mxu1 %vm1616_vm1, %v5567_v8  ;;  %v19356_v43 = vadd.f32 %v3280_v55, %v19292_v53  ;;  %v3094_v11 = vpop.f32.mrb[58].mxu0  ;;  %v3282_v51 = vpop.f32.mrb[66].mxu1 }
 0x448   : > { %5628 = vmatpush1.bf16.msra.mxu1 %v5597_v63  ;;  %v15018_v27 = vpop.f32.mrb[59].mxu0  ;;  %v3283_v26 = vpop.f32.mrb[67].mxu1 }
 0x449   : > { %v5516_v46 = vpop.permute.xlu1 %5515  ;;  %v5498_v4 = vpop.permute.xlu0 %5497 }
 0x44a   : > { %6238 = vrot.lane.b32.xlu0 %v18792_v28, %s16233_s23  ;;  %v5560_v61 = vsel %vm22566_vm2, %v5514_v2, %v5516_v46 }
 0x44b   : > { %6236 = vrot.lane.b32.xlu1 %v18768_v29, %s16233_s23  ;;  %5666 = vmatprep.subr.bf16.mxu0 %v5560_v61 }
 0x44c   : > { %5667 = vmatpush1.bf16.msra.mxu0 %v5559_v0 }
 0x44d   : > { %v5500_v53 = vpop.permute.xlu1 %5499  ;;  %v5534_v32 = vpop.permute.xlu0 %5533 }
 0x44e   : > { %6222 = vrot.lane.b32.xlu0 %v18813_v19, %s16233_s23  ;;  %v5553_v3 = vsel %vm22566_vm2, %v5498_v4, %v5500_v53  ;;  %v5568_v31 = vsel %vm22566_vm2, %v5532_v59, %v5534_v32 }
 0x44f   : > { %6240 = vrot.lane.b32.xlu1 %v18806_v37, %s16233_s23  ;;  %5705 = vmatprep.subr.bf16.mxu1 %v5553_v3 }
 0x450   : > { %v3319_v20 = vpop.f32.mrb[60].mxu0  ;;  %v3360_v41 = vpop.f32.mrb[68].mxu1 }
 0x451   : > { %v5536_v36 = vpop.permute.xlu1 %5535  ;;  %v19372_v12 = vpop.permute.xlu0 %5380  ;;  %v19375_v22 = vadd.f32 %v3319_v20, %v19283_v13  ;;  %v19384_v56 = vadd.f32 %v3360_v41, %v19313_v49 }
 0x452   : > { %6206 = vrot.lane.b32.xlu0 %v18841_v9, %s16233_s23  ;;  %v5569_v19 = vsel %vm22566_vm2, %v5534_v32, %v5536_v36  ;;  %14302 = vmatmul.mubr.msk.bf16.vlgmr.msra.gmra.mrb[124].mxu1 %vm1898_vm10, %v19372_v12  ;;  %v3321_v13 = vpop.f32.mrb[61].mxu0  ;;  %v3362_v60 = vpop.f32.mrb[69].mxu1  ;;  %v5603_v9 = vsel %vm1616_vm1, %v5568_v31, 0 }
 0x453   : > { %6224 = vrot.lane.b32.xlu1 %v18834_v33, %s16233_s23  ;;  %v5552_v33 = vsel %vm22566_vm2, %v19327_v50, %v5498_v4  ;;  %14303 = vmatprep.subr.msk.bf16.mxu0 %vm1616_vm1, %v5569_v19  ;;  %v19393_v17 = vadd.f32 %v3321_v13, %v19286_v39  ;;  %v19396_v59 = vadd.f32 %v3362_v60, %v19322_v30  ;;  %v3323_v49 = vpop.f32.mrb[62].mxu0  ;;  %v3364_v24 = vpop.f32.mrb[70].mxu1 }
 0x454   : > { %5706 = vmatpush1.bf16.msra.mxu1 %v5552_v33  ;;  %5669 = vmatpush1.bf16.msra.mxu0 %v5603_v9  ;;  %v3324_v47 = vpop.f32.mrb[63].mxu0  ;;  %v19400_v50 = vcombine.low %v1650_v40, %v1650_v40  ;;  %v3365_v8 = vpop.f32.mrb[71].mxu1 }
 0x455   : > { %v5518_v2 = vpop.permute.xlu1 %5517  ;;  %5737 = vmatprep.mubr.bf16.mxu1 %v22614_v6  ;;  %v5520_v15 = vpop.permute.xlu0 %5519 }
 0x456   : > { %6190 = vrot.lane.b32.xlu0 %v22839_v57, %s16234_s6  ;;  %v5561_v39 = vsel %vm22566_vm2, %v5516_v46, %v5518_v2  ;;  %v5562_v30 = vsel %vm22566_vm2, %v5518_v2, %v5520_v15 }
 0x457   : > { %6208 = vrot.lane.b32.xlu1 %v18862_v21, %s16233_s23  ;;  %14304 = vmatmul.mubr.msk.bf16.vlgmr.msra.gmra.mrb[120].mxu0 %vm1898_vm10, %v19372_v12 }
 0x458   : > { %5707 = vmatprep.subr.bf16.mxu1 %v5562_v30  ;;  %5778 = vmatprep.mubr.bf16.mxu0 %v22614_v6 }
 0x459   : > { %5708 = vmatpush1.bf16.msra.mxu1 %v5561_v39  ;;  %v5502_v21 = vpop.permute.xlu1 %5501  ;;  %v5504_v55 = vpop.permute.xlu0 %5503 }
 0x45a   : > { %6242 = vrot.lane.b32.xlu0 %v18874_v18, %s16233_s23  ;;  %v5554_v57 = vsel %vm22566_vm2, %v5500_v53, %v5502_v21  ;;  %v5555_v63 = vsel %vm22566_vm2, %v5502_v21, %v5504_v55 }
 0x45b   : > { %6192 = vrot.lane.b32.xlu1 %v19400_v50, %s16234_s6  ;;  %5746 = vmatprep.subr.bf16.mxu0 %v5555_v63 }
 0x45c   : > { %5747 = vmatpush1.bf16.msra.mxu0 %v5554_v57  ;;  %v3401_v51 = vpop.f32.mrb[64].mxu0  ;;  %v3442_v4 = vpop.f32.mrb[72].mxu1 }
 0x45d   : > { %v5538_v11 = vpop.permute.xlu1 %5537  ;;  %v5540_v27 = vpop.permute.xlu0 %5539  ;;  %v19420_v26 = vadd.f32 %v3401_v51, %v19319_v45  ;;  %v19425_v61 = vadd.f32 %v3442_v4, %v19345_v35 }
 0x45e   : > { %v5570_v46 = vsel %vm22566_vm2, %v5536_v36, %v5538_v11  ;;  %6226 = vrot.lane.b32.xlu0 %v18909_v52, %s16233_s23  ;;  %v3403_v0 = vpop.f32.mrb[65].mxu0  ;;  %v15027_v53 = vpop.f32.mrb[73].mxu1  ;;  %v5571_v32 = vsel %vm22566_vm2, %v5538_v11, %v5540_v27 }
 0x45f   : > { %6244 = vrot.lane.b32.xlu1 %v18885_v62, %s16233_s23  ;;  %v5609_v3 = vsel %vm1616_vm1, %v5570_v46, 0  ;;  %v19430_v31 = vadd.f32 %v3403_v0, %v19325_v58  ;;  %14305 = vmatprep.subr.msk.bf16.mxu1 %vm1616_vm1, %v5571_v32  ;;  %v3405_v45 = vpop.f32.mrb[66].mxu0  ;;  %v3445_v36 = vpop.f32.mrb[74].mxu1  ;;  %v19494_v32 = vld [vmem:[#allocation6 + $0xc] ss:$56 sps:$4 sm:$0xff]  }
 0x460   : > { %5710 = vmatpush1.bf16.msra.mxu1 %v5609_v3  ;;  %v3406_v41 = vpop.f32.mrb[67].mxu0  ;;  %v15028_v52 = vpop.f32.mrb[75].mxu1 }
 0x461   : > { %v5522_v20 = vpop.permute.xlu1 %5521  ;;  %v5524_v35 = vpop.permute.xlu0 %5523  ;;  %15079 = vmatprep.subr.bf16.mxu1 %v22674_v5 }
 0x462   : > { %6210 = vrot.lane.b32.xlu0 %v18936_v25, %s16233_s23  ;;  %v5563_v19 = vsel %vm22566_vm2, %v5520_v15, %v5522_v20  ;;  %v5564_v58 = vsel %vm22566_vm2, %v5522_v20, %v5524_v35 }
 0x463   : > { %6228 = vrot.lane.b32.xlu1 %v18916_v54, %s16233_s23  ;;  %14306 = vmatmul.mubr.msk.bf16.vlgmr.msra.gmra.mrb[128].mxu1 %vm1898_vm10, %v19372_v12 }
 0x464   : > { %5748 = vmatprep.subr.bf16.mxu0 %v5564_v58  ;;  %15085 = vmatprep.mubr.msk.bf16.mxu1 %vm16227_vm11, %v22674_v5 }
 0x465   : > { %5749 = vmatpush1.bf16.msra.mxu0 %v5563_v19  ;;  %v5506_v40 = vpop.permute.xlu1 %5505  ;;  %v5542_v33 = vpop.permute.xlu0 %5541  ;;  %v19511_v19 = vld [vmem:[#allocation6 + $0x10] ss:$56 sps:$4 sm:$0xff]  }
 0x466   : > { %v5556_v54 = vsel %vm22566_vm2, %v5504_v55, %v5506_v40  ;;  %6246 = vrot.lane.b32.xlu0 %v18966_v7, %s16233_s23  ;;  %v5572_v25 = vsel %vm22566_vm2, %v5540_v27, %v5542_v33  ;;  %v19517_v40 = vld [vmem:[#allocation6 + $0x8] ss:$56 sps:$4 sm:$0xff]  }
 0x467   : > { %6212 = vrot.lane.b32.xlu1 %v18947_v10, %s16233_s23  ;;  %15080 = vmatpush3.bf16.msra.mxu1 %v5556_v54  ;;  %v5615_v39 = vsel %vm1616_vm1, %v5572_v25, 0 }
 0x468   : > { %15081 = vmatprep.subr.bf16.mxu1 %v22674_v5  ;;  %v3759_v60 = vpop.f32.mrb[68].mxu0  ;;  %v3800_v49 = vpop.f32.mrb[76].mxu1 }
 0x469   : > { %v5544_v13 = vpop.permute.xlu1 %5543  ;;  %v5526_v10 = vpop.permute.xlu0 %5525  ;;  %v19454_v9 = vadd.f32 %v3759_v60, %v19351_v14  ;;  %v19461_v47 = vadd.f32 %v3800_v49, %v19375_v22  ;;  %v19529_v49 = vld [vmem:[#allocation6 + $0x80] ss:$56 sps:$4 sm:$0xff]  }
 0x46a   : > { %6230 = vrot.lane.b32.xlu0 %v18994_v1, %s16233_s23  ;;  %v5573_v24 = vsel %vm22566_vm2, %v5542_v33, %v5544_v13  ;;  %v5565_v2 = vsel %vm22566_vm2, %v5524_v35, %v5526_v10  ;;  %v3761_v8 = vpop.f32.mrb[69].mxu0  ;;  %v3802_v15 = vpop.f32.mrb[77].mxu1  ;;  %v19523_v33 = vld [vmem:[#allocation6 + $0x7c] ss:$56 sps:$4 sm:$0xff]  }
 0x46b   : > { %6248 = vrot.lane.b32.xlu1 %v18973_v48, %s16233_s23  ;;  %14307 = vmatprep.subr.msk.bf16.mxu0 %vm1616_vm1, %v5573_v24  ;;  %v19466_v14 = vadd.f32 %v3761_v8, %v19356_v43  ;;  %v19469_v30 = vadd.f32 %v3802_v15, %v19393_v17  ;;  %v3763_v1 = vpop.f32.mrb[70].mxu0  ;;  %v3804_v21 = vpop.f32.mrb[78].mxu1 }
 0x46c   : > { %15082 = vmatpush3.bf16.msra.mxu1 %v5565_v2  ;;  %5751 = vmatpush1.bf16.msra.mxu0 %v5615_v39  ;;  %v3764_v22 = vpop.f32.mrb[71].mxu0  ;;  %v3805_v57 = vpop.f32.mrb[79].mxu1  ;;  %v19537_v39 = vld [vmem:[#allocation6 + $0x78] ss:$56 sps:$4 sm:$0xff]  }
 0x46d   : > { %v5841_v55 = vpop.permute.xlu1 %5840  ;;  %15083 = vmatprep.subr.bf16.mxu1 %v22674_v5  ;;  %v5843_v63 = vpop.permute.xlu0 %5842 }
 0x46e   : > { %6214 = vrot.lane.b32.xlu0 %v22848_v38, %s16233_s23  ;;  %v5900_v43 = vsel %vm5898_vm12, %v5841_v55, %v5843_v63 }
 0x46f   : > { %6232 = vrot.lane.b32.xlu1 %v19001_v16, %s16233_s23  ;;  %14308 = vmatmul.mubr.msk.bf16.vlgmr.msra.gmra.mrb[124].mxu0 %vm1898_vm10, %v19372_v12 }
 0x470   : > { %5974 = vmatprep.subr.bf16.mxu0 %v5900_v43  ;;  %6006 = vmatprep.mubr.bf16.mxu0 %v22614_v6 }
 0x471   : > { %v5839_v17 = vpop.permute.xlu1 %5838  ;;  %v5546_v11 = vpop.permute.xlu0 %5545 }
 0x472   : > { %v5899_v16 = vsel %vm5898_vm12, %v5839_v17, %v5841_v55  ;;  %6252 = vrot.lane.b32.xlu0 %v19054_v42, %s16233_s23  ;;  %v5574_v38 = vsel %vm22566_vm2, %v5544_v13, %v5546_v11  ;;  %v19550_v11 = vld [vmem:[#allocation6 + $0x14] ss:$56 sps:$4 sm:$0xff]   ;;  %vm6256_vm2 = vcmask 588800  }
 0x473   : > { %6250 = vrot.lane.b32.xlu1 %v22849_v34, %s16233_s23  ;;  %5975 = vmatpush1.bf16.msra.mxu0 %v5899_v16  ;;  %v5621_v51 = vsel %vm1616_vm1, %v5574_v38, 0 }
 0x474   : > { %15084 = vmatpush3.bf16.msra.mxu1 %v5621_v51  ;;  %v3841_v27 = vpop.f32.mrb[72].mxu0  ;;  %v3882_v53 = vpop.f32.mrb[80].mxu1  ;;  %v19554_v51 = vld [vmem:[#allocation6 + $0x18] ss:$56 sps:$4 sm:$0xff]  }
 0x475   : > { %v5861_v46 = vpop.permute.xlu1 %5860  ;;  %v19489_v4 = vpop.permute.xlu0 %5862  ;;  %v19492_v0 = vadd.f32 %v3841_v27, %v19384_v56  ;;  %v19499_v3 = vadd.f32 %v3882_v53, %v19420_v26 }
 0x476   : > { %6549 = vrot.lane.b32.xlu0 %v19494_v32, %s16235_s12  ;;  %v3843_v45 = vpop.f32.mrb[73].mxu0  ;;  %v3884_v36 = vpop.f32.mrb[81].mxu1 }
 0x477   : > { %6234 = vrot.lane.b32.xlu1 %v19062_v23, %s16233_s23  ;;  %v5909_v23 = vsel %vm5898_vm12, %v5861_v46, %v19489_v4  ;;  %v19504_v20 = vadd.f32 %v3843_v45, %v19396_v59  ;;  %v19507_v56 = vadd.f32 %v3884_v36, %v19430_v31  ;;  %15086 = vmatmul.mubr.msk.bf16.vlgmr.msra.gmra.mrb[132].mxu1 %vm1898_vm10, %v19372_v12  ;;  %v3845_v41 = vpop.f32.mrb[74].mxu0  ;;  %v3886_v52 = vpop.f32.mrb[82].mxu1 }
 0x478   : > { %5976 = vmatprep.subr.bf16.mxu0 %v5909_v23  ;;  %v3846_v26 = vpop.f32.mrb[75].mxu0  ;;  %6047 = vmatprep.mubr.bf16.mxu1 %v22614_v6  ;;  %v3887_v58 = vpop.f32.mrb[83].mxu1 }
 0x479   : > { %v5859_v35 = vpop.permute.xlu1 %5858  ;;  %v5845_v31 = vpop.permute.xlu0 %5844  ;;  %v19576_v26 = vld [vmem:[#allocation6 + $0x84] ss:$56 sps:$4 sm:$0xff]  }
 0x47a   : > { %v5908_v59 = vsel %vm5898_vm12, %v5859_v35, %v5861_v46  ;;  %6547 = vrot.lane.b32.xlu0 %v19517_v40, %s16235_s12  ;;  %v5901_v13 = vsel %vm5898_vm12, %v5843_v63, %v5845_v31 }
 0x47b   : > { %6551 = vrot.lane.b32.xlu1 %v19511_v19, %s16235_s12  ;;  %5977 = vmatpush1.bf16.msra.mxu0 %v5908_v59 }
 0x47d   : > { %v5847_v12 = vpop.permute.xlu1 %5846  ;;  %v5879_v54 = vpop.permute.xlu0 %5878 }
 0x47e   : > { %6569 = vrot.lane.b32.xlu0 %v19523_v33, %s16235_s12  ;;  %v5902_v25 = vsel %vm5898_vm12, %v5845_v31, %v5847_v12 }
 0x47f   : > { %6254 = vrot.lane.b32.xlu1 %v19109_v44, %s16233_s23  ;;  %6015 = vmatprep.subr.bf16.mxu1 %v5902_v25  ;;  %s16238_s23 = smov 68  }
 0x480   : > { %6016 = vmatpush1.bf16.msra.mxu1 %v5901_v13  ;;  %v3923_v10 = vpop.f32.mrb[76].mxu0  ;;  %v4117_v15 = vpop.f32.mrb[84].mxu1 }
 0x481   : > { %v5881_v60 = vpop.permute.xlu1 %5880  ;;  %v5883_v2 = vpop.permute.xlu0 %5882  ;;  %v19535_v8 = vadd.f32 %v3923_v10, %v19425_v61  ;;  %v19542_v1 = vadd.f32 %v4117_v15, %v19454_v9 }
 0x482   : > { %v5917_v24 = vsel %vm5898_vm12, %v5879_v54, %v5881_v60  ;;  %6567 = vrot.lane.b32.xlu0 %v19537_v39, %s16235_s12  ;;  %v15037_v21 = vpop.f32.mrb[77].mxu0  ;;  %v4119_v55 = vpop.f32.mrb[85].mxu1  ;;  %v5918_v22 = vsel %vm5898_vm12, %v5881_v60, %v5883_v2 }
 0x483   : > { %6571 = vrot.lane.b32.xlu1 %v19529_v49, %s16235_s12  ;;  %v5948_v57 = vsel %vm1616_vm1, %v5917_v24, 0  ;;  %v19547_v63 = vadd.f32 %v4119_v55, %v19466_v14  ;;  %14310 = vmatprep.subr.msk.bf16.mxu0 %vm1616_vm1, %v5918_v22  ;;  %v3926_v61 = vpop.f32.mrb[78].mxu0  ;;  %v4121_v43 = vpop.f32.mrb[86].mxu1  ;;  %v19591_v24 = vld [vmem:[#allocation6 + $0x88] ss:$56 sps:$4 sm:$0xff]  }
 0x484   : > { %5979 = vmatpush1.bf16.msra.mxu0 %v5948_v57  ;;  %v15038_v16 = vpop.f32.mrb[79].mxu0  ;;  %v4122_v9 = vpop.f32.mrb[87].mxu1  ;;  %v19595_v21 = vld [vmem:[#allocation6 + $0x1c] ss:$56 sps:$4 sm:$0xff]   ;;  %v19602_v55 = vld [vmem:[#allocation6 + $0x20] ss:$56 sps:$4 sm:$0xff]  }
 0x485   : > { %v5865_v17 = vpop.permute.xlu1 %5864  ;;  %v5867_v38 = vpop.permute.xlu0 %5866 }
 0x486   : > { %6555 = vrot.lane.b32.xlu0 %v19554_v51, %s16235_s12  ;;  %v5910_v14 = vsel %vm5898_vm12, %v19489_v4, %v5865_v17  ;;  %v5911_v46 = vsel %vm5898_vm12, %v5865_v17, %v5867_v38 }
 0x487   : > { %6553 = vrot.lane.b32.xlu1 %v19550_v11, %s16235_s12  ;;  %6017 = vmatprep.subr.bf16.mxu1 %v5911_v46 }
 0x488   : > { %6018 = vmatpush1.bf16.msra.mxu1 %v5910_v14 }
 0x489   : > { %v5849_v27 = vpop.permute.xlu1 %5848  ;;  %v5851_v53 = vpop.permute.xlu0 %5850 }
 0x48a   : > { %6589 = vrot.lane.b32.xlu0 %v18792_v28, %s16235_s12  ;;  %v5904_v45 = vsel %vm5898_vm12, %v5849_v27, %v5851_v53  ;;  %v5903_v35 = vsel %vm5898_vm12, %v5847_v12, %v5849_v27 }
 0x48b   : > { %6587 = vrot.lane.b32.xlu1 %v18768_v29, %s16235_s12  ;;  %6056 = vmatprep.subr.bf16.mxu0 %v5904_v45 }
 0x48c   : > { %v4158_v23 = vpop.f32.mrb[80].mxu0 }
 0x48d   : > { %v19566_v36 = vpop.permute.xlu1 %5836  ;;  %v5885_v4 = vpop.permute.xlu0 %5884  ;;  %v19571_v41 = vadd.f32 %v4158_v23, %v19461_v47 }
 0x48e   : > { %v4199_v52 = vpop.f32.mrb[88].mxu1  ;;  %14311 = vmatmul.mubr.msk.bf16.vlgmr.msra.gmra.mrb[128].mxu0 %vm1898_vm10, %v19566_v36  ;;  %6573 = vrot.lane.b32.xlu0 %v19576_v26, %s16235_s12  ;;  %v4160_v58 = vpop.f32.mrb[81].mxu0  ;;  %v5919_v47 = vsel %vm5898_vm12, %v5883_v2, %v5885_v4 }
 0x48f   : > { %6591 = vrot.lane.b32.xlu1 %v18806_v37, %s16235_s12  ;;  %v19581_v59 = vadd.f32 %v4199_v52, %v19492_v0  ;;  %6057 = vmatpush1.bf16.msra.mxu0 %v5903_v35  ;;  %v4201_v31 = vpop.f32.mrb[89].mxu1  ;;  %v19586_v54 = vadd.f32 %v4160_v58, %v19469_v30  ;;  %v4162_v25 = vpop.f32.mrb[82].mxu0 }
 0x490   : > { %6088 = vmatprep.mubr.bf16.mxu0 %v22614_v6  ;;  %v19589_v12 = vadd.f32 %v4201_v31, %v19504_v20  ;;  %v4203_v13 = vpop.f32.mrb[90].mxu1  ;;  %v4163_v10 = vpop.f32.mrb[83].mxu0  ;;  %v5954_v20 = vsel %vm1616_vm1, %v5919_v47, 0  ;;  %v19628_v47 = vld [vmem:[#allocation6 + $0x8c] ss:$56 sps:$4 sm:$0xff]  }
 0x491   : > { %v5887_v60 = vpop.permute.xlu1 %5886  ;;  %v4204_v0 = vpop.f32.mrb[91].mxu1  ;;  %v19632_v13 = vld [vmem:[#allocation6 + $0x90] ss:$56 sps:$4 sm:$0xff]   ;;  %v19639_v10 = vld [vmem:[#allocation6 + $0x24] ss:$56 sps:$4 sm:$0xff]  }
 0x492   : > { %v5869_v15 = vpop.permute.xlu0 %5868  ;;  %6557 = vrot.lane.b32.xlu0 %v19595_v21, %s16235_s12  ;;  %v5920_v30 = vsel %vm5898_vm12, %v5885_v4, %v5887_v60 }
 0x493   : > { %6575 = vrot.lane.b32.xlu1 %v19591_v24, %s16235_s12  ;;  %14312 = vmatprep.subr.msk.bf16.mxu1 %vm1616_vm1, %v5920_v30  ;;  %v5912_v61 = vsel %vm5898_vm12, %v5867_v38, %v5869_v15 }
 0x494   : > { %6020 = vmatpush1.bf16.msra.mxu1 %v5954_v20 }
 0x495   : > { %v5871_v2 = vpop.permute.xlu1 %5870 }
 0x496   : > { %v5853_v22 = vpop.permute.xlu0 %5852  ;;  %6545 = vrot.lane.b32.xlu0 %v19400_v50, %s16236_s20  ;;  %v5913_v57 = vsel %vm5898_vm12, %v5869_v15, %v5871_v2  ;;  %v19644_v15 = vld [vmem:[#allocation6 + $0x28] ss:$56 sps:$4 sm:$0xff]   ;;  %s16241_s20 = smov 28  }
 0x497   : > { %6559 = vrot.lane.b32.xlu1 %v19602_v55, %s16235_s12  ;;  %14313 = vmatmul.mubr.msk.bf16.vlgmr.msra.gmra.mrb[136].mxu1 %vm1898_vm10, %v19566_v36  ;;  %v5905_v23 = vsel %vm5898_vm12, %v5851_v53, %v5853_v22 }
 0x498   : > { %6058 = vmatprep.subr.bf16.mxu0 %v5913_v57  ;;  %6129 = vmatprep.mubr.bf16.mxu1 %v22614_v6  ;;  %v4240_v17 = vpop.f32.mrb[84].mxu0 }
 0x499   : > { %6059 = vmatpush1.bf16.msra.mxu0 %v5912_v61  ;;  %v5855_v43 = vpop.permute.xlu1 %5854  ;;  %v19615_v9 = vadd.f32 %v4240_v17, %v19499_v3  ;;  %v4242_v27 = vpop.f32.mrb[85].mxu0 }
 0x49a   : > { %v5889_v16 = vpop.permute.xlu0 %5888  ;;  %v4281_v14 = vpop.f32.mrb[92].mxu1  ;;  %6595 = vrot.lane.b32.xlu0 %v18885_v62, %s16235_s12  ;;  %v5906_v46 = vsel %vm5898_vm12, %v5853_v22, %v5855_v43  ;;  %v19626_v52 = vadd.f32 %v4242_v27, %v19507_v56 }
 0x49b   : > { %6593 = vrot.lane.b32.xlu1 %v18874_v18, %s16235_s12  ;;  %v19621_v38 = vadd.f32 %v4281_v14, %v19535_v8  ;;  %v15047_v45 = vpop.f32.mrb[93].mxu1  ;;  %6097 = vmatprep.subr.bf16.mxu1 %v5906_v46  ;;  %v5921_v4 = vsel %vm5898_vm12, %v5887_v60, %v5889_v16  ;;  %v4244_v3 = vpop.f32.mrb[86].mxu0 }
 0x49c   : > { %v4284_v35 = vpop.f32.mrb[94].mxu1  ;;  %6098 = vmatpush1.bf16.msra.mxu1 %v5905_v23  ;;  %v4245_v31 = vpop.f32.mrb[87].mxu0  ;;  %v5960_v53 = vsel %vm1616_vm1, %v5921_v4, 0 }
 0x49d   : > { %v5891_v58 = vpop.permute.xlu1 %5890  ;;  %v15048_v8 = vpop.f32.mrb[95].mxu1  ;;  %v19676_v31 = vld [vmem:[#allocation6 + $0x94] ss:$56 sps:$4 sm:$0xff]  }
 0x49e   : > { %v5873_v25 = vpop.permute.xlu0 %5872  ;;  %6579 = vrot.lane.b32.xlu0 %v19632_v13, %s16235_s12  ;;  %v5922_v56 = vsel %vm5898_vm12, %v5889_v16, %v5891_v58 }
 0x49f   : > { %6577 = vrot.lane.b32.xlu1 %v19628_v47, %s16235_s12  ;;  %14314 = vmatprep.subr.msk.bf16.mxu0 %vm1616_vm1, %v5922_v56  ;;  %v5914_v22 = vsel %vm5898_vm12, %v5871_v2, %v5873_v25  ;;  %v19681_v56 = vld [vmem:[#allocation6 + $0x98] ss:$56 sps:$4 sm:$0xff]  }
 0x4a0   : > { %6061 = vmatpush1.bf16.msra.mxu0 %v5960_v53  ;;  %v19688_v53 = vld [vmem:[#allocation6 + $0x2c] ss:$56 sps:$4 sm:$0xff]  }
 0x4a1   : > { %v5875_v60 = vpop.permute.xlu1 %5874  ;;  %15089 = vmatprep.subr.bf16.mxu0 %v22674_v5 }
 0x4a2   : > { %v5857_v0 = vpop.permute.xlu0 %5856  ;;  %6563 = vrot.lane.b32.xlu0 %v19644_v15, %s16235_s12  ;;  %v5915_v30 = vsel %vm5898_vm12, %v5873_v25, %v5875_v60 }
 0x4a3   : > { %6561 = vrot.lane.b32.xlu1 %v19639_v10, %s16235_s12  ;;  %v5907_v20 = vsel %vm5898_vm12, %v5855_v43, %v5857_v0  ;;  %14315 = vmatmul.mubr.msk.bf16.vlgmr.msra.gmra.mrb[132].mxu0 %vm1898_vm10, %v19566_v36 }
 0x4a4   : > { %6099 = vmatprep.subr.bf16.mxu1 %v5915_v30  ;;  %15090 = vmatpush3.bf16.msra.mxu0 %v5907_v20  ;;  %v4468_v61 = vpop.f32.mrb[88].mxu0 }
 0x4a5   : > { %6100 = vmatpush1.bf16.msra.mxu1 %v5914_v22  ;;  %v5893_v57 = vpop.permute.xlu1 %5892  ;;  %15091 = vmatprep.subr.bf16.mxu0 %v22674_v5  ;;  %v19658_v43 = vadd.f32 %v4468_v61, %v19542_v1  ;;  %v4470_v46 = vpop.f32.mrb[89].mxu0 }
 0x4a6   : > { %v5923_v17 = vsel %vm5898_vm12, %v5891_v58, %v5893_v57  ;;  %v5895_v16 = vpop.permute.xlu0 %5894  ;;  %v4509_v14 = vpop.f32.mrb[96].mxu1  ;;  %6599 = vrot.lane.b32.xlu0 %v18973_v48, %s16235_s12  ;;  %15095 = vmatprep.mubr.msk.bf16.mxu0 %vm16227_vm11, %v22674_v5  ;;  %v19670_v4 = vadd.f32 %v4470_v46, %v19547_v63 }
 0x4a7   : > { %6597 = vrot.lane.b32.xlu1 %v18966_v7, %s16235_s12  ;;  %v19665_v2 = vadd.f32 %v4509_v14, %v19571_v41  ;;  %v4511_v27 = vpop.f32.mrb[97].mxu1  ;;  %v5924_v45 = vsel %vm5898_vm12, %v5893_v57, %v5895_v16  ;;  %v5966_v23 = vsel %vm1616_vm1, %v5923_v17, 0  ;;  %v4472_v3 = vpop.f32.mrb[90].mxu0 }
 0x4a8   : > { %v19673_v1 = vadd.f32 %v4511_v27, %v19586_v54  ;;  %14316 = vmatprep.subr.msk.bf16.mxu1 %vm1616_vm1, %v5924_v45  ;;  %v4513_v35 = vpop.f32.mrb[98].mxu1  ;;  %v4473_v41 = vpop.f32.mrb[91].mxu0  ;;  %v19704_v27 = vld [vmem:[#allocation6 + $0x9c] ss:$56 sps:$4 sm:$0xff]  }
 0x4a9   : > { %6102 = vmatpush1.bf16.msra.mxu1 %v5966_v23  ;;  %v5877_v58 = vpop.permute.xlu1 %5876  ;;  %v4514_v25 = vpop.f32.mrb[99].mxu1 }
 0x4aa   : > { %v5916_v8 = vsel %vm5898_vm12, %v5875_v60, %v5877_v58  ;;  %v6199_v63 = vpop.permute.xlu0 %6198  ;;  %6583 = vrot.lane.b32.xlu0 %v19681_v56, %s16235_s12 }
 0x4ab   : > { %6581 = vrot.lane.b32.xlu1 %v19676_v31, %s16235_s12  ;;  %15092 = vmatpush3.bf16.msra.mxu0 %v5916_v8 }
 0x4ac   : > { %14317 = vmatmul.mubr.msk.bf16.vlgmr.msra.gmra.mrb[140].mxu1 %vm1898_vm10, %v19566_v36  ;;  %15093 = vmatprep.subr.bf16.mxu0 %v22674_v5 }
 0x4ad   : > { %v6201_v54 = vpop.permute.xlu1 %6200  ;;  %6364 = vmatprep.mubr.bf16.mxu1 %v22614_v6 }
 0x4ae   : > { %v5897_v60 = vpop.permute.xlu0 %5896  ;;  %6601 = vrot.lane.b32.xlu0 %v22849_v34, %s16235_s12  ;;  %v6258_v0 = vsel %vm6256_vm2, %v6199_v63, %v6201_v54 }
 0x4af   : > { %6565 = vrot.lane.b32.xlu1 %v19688_v53, %s16235_s12  ;;  %v5925_v30 = vsel %vm5898_vm12, %v5895_v16, %v5897_v60  ;;  %6332 = vmatprep.subr.bf16.mxu1 %v6258_v0  ;;  %vm6194_vm12 = vcmask 261120  }
 0x4b0   : > { %v5972_v20 = vsel %vm1616_vm1, %v5925_v30, 0  ;;  %v4550_v57 = vpop.f32.mrb[92].mxu0 }
 0x4b1   : > { %15094 = vmatpush3.bf16.msra.mxu0 %v5972_v20  ;;  %v6197_v22 = vpop.permute.xlu1 %6196  ;;  %v19702_v14 = vadd.f32 %v4550_v57, %v19581_v59  ;;  %v4552_v45 = vpop.f32.mrb[93].mxu0 }
 0x4b2   : > { %v6257_v61 = vsel %vm6256_vm2, %v6197_v22, %v6199_v63  ;;  %v6219_v17 = vpop.permute.xlu0 %6218  ;;  %v4591_v46 = vpop.f32.mrb[100].mxu1  ;;  %6585 = vrot.lane.b32.xlu0 %v19704_v27, %s16235_s12  ;;  %v19712_v3 = vadd.f32 %v4552_v45, %v19589_v12 }
 0x4b3   : > { %6603 = vrot.lane.b32.xlu1 %v19054_v42, %s16235_s12  ;;  %v19709_v16 = vadd.f32 %v4591_v46, %v19615_v9  ;;  %v4593_v23 = vpop.f32.mrb[101].mxu1  ;;  %6333 = vmatpush1.bf16.msra.mxu1 %v6257_v61  ;;  %v4554_v59 = vpop.f32.mrb[94].mxu0 }
 0x4b4   : > { %v19715_v35 = vadd.f32 %v4593_v23, %v19626_v52  ;;  %15096 = vmatmul.mubr.msk.bf16.vlgmr.msra.gmra.mrb[136].mxu0 %vm1898_vm10, %v19566_v36  ;;  %v4595_v58 = vpop.f32.mrb[102].mxu1  ;;  %v4555_v8 = vpop.f32.mrb[95].mxu0 }
 0x4b5   : > { %v6221_v41 = vpop.permute.xlu1 %6220  ;;  %6405 = vmatprep.mubr.bf16.mxu0 %v22614_v6  ;;  %v4596_v9 = vpop.f32.mrb[103].mxu1 }
 0x4b6   : > { %v6203_v25 = vpop.permute.xlu0 %6202  ;;  %6902 = vrot.lane.b32.xlu0 %v19511_v19, %s16212_s14  ;;  %v6267_v12 = vsel %vm6256_vm2, %v6219_v17, %v6221_v41 }
 0x4b7   : > { %6900 = vrot.lane.b32.xlu1 %v19494_v32, %s16212_s14  ;;  %6334 = vmatprep.subr.bf16.mxu1 %v6267_v12  ;;  %v6259_v19 = vsel %vm6256_vm2, %v6201_v54, %v6203_v25 }
 0x4b9   : > { %v19725_v52 = vpop.permute.xlu1 %6204 }
 0x4ba   : > { %v6217_v36 = vpop.permute.xlu0 %6216  ;;  %6898 = vrot.lane.b32.xlu0 %v19517_v40, %s16212_s14  ;;  %v6260_v32 = vsel %vm6256_vm2, %v6203_v25, %v19725_v52 }
 0x4bb   : > { %6605 = vrot.lane.b32.xlu1 %v19109_v44, %s16235_s12  ;;  %v6266_v63 = vsel %vm6256_vm2, %v6217_v36, %v6219_v17  ;;  %6373 = vmatprep.subr.bf16.mxu0 %v6260_v32 }
 0x4bc   : > { %6335 = vmatpush1.bf16.msra.mxu1 %v6266_v63  ;;  %6374 = vmatpush1.bf16.msra.mxu0 %v6259_v19  ;;  %v4632_v0 = vpop.f32.mrb[96].mxu0 }
 0x4bd   : > { %v6237_v60 = vpop.permute.xlu1 %6236  ;;  %v19738_v20 = vadd.f32 %v4632_v0, %v19621_v38  ;;  %v15057_v57 = vpop.f32.mrb[97].mxu0 }
 0x4be   : > { %v6239_v30 = vpop.permute.xlu0 %6238  ;;  %v4819_v40 = vpop.f32.mrb[104].mxu1  ;;  %6922 = vrot.lane.b32.xlu0 %v19529_v49, %s16212_s14 }
 0x4bf   : > { %6920 = vrot.lane.b32.xlu1 %v19523_v33, %s16212_s14  ;;  %v19743_v22 = vadd.f32 %v4819_v40, %v19658_v43  ;;  %v4821_v54 = vpop.f32.mrb[105].mxu1  ;;  %v6275_v61 = vsel %vm6256_vm2, %v6237_v60, %v6239_v30  ;;  %v4635_v46 = vpop.f32.mrb[98].mxu0 }
 0x4c0   : > { %v19747_v17 = vadd.f32 %v4821_v54, %v19670_v4  ;;  %v4823_v33 = vpop.f32.mrb[106].mxu1  ;;  %v15058_v23 = vpop.f32.mrb[99].mxu0  ;;  %v6306_v43 = vsel %vm1616_vm1, %v6275_v61, 0 }
 0x4c1   : > { %v6241_v45 = vpop.permute.xlu1 %6240  ;;  %v4824_v38 = vpop.f32.mrb[107].mxu1 }
 0x4c2   : > { %v6223_v59 = vpop.permute.xlu0 %6222  ;;  %6906 = vrot.lane.b32.xlu0 %v19554_v51, %s16212_s14  ;;  %v6276_v49 = vsel %vm6256_vm2, %v6239_v30, %v6241_v45 }
 0x4c3   : > { %6904 = vrot.lane.b32.xlu1 %v19550_v11, %s16212_s14  ;;  %14320 = vmatprep.subr.msk.bf16.mxu1 %vm1616_vm1, %v6276_v49  ;;  %v6268_v51 = vsel %vm6256_vm2, %v6221_v41, %v6223_v59 }
 0x4c4   : > { %6337 = vmatpush1.bf16.msra.mxu1 %v6306_v43 }
 0x4c5   : > { %v6225_v4 = vpop.permute.xlu1 %6224 }
 0x4c6   : > { %v6207_v58 = vpop.permute.xlu0 %6206  ;;  %6938 = vrot.lane.b32.xlu0 %v18768_v29, %s16212_s14  ;;  %v6269_v11 = vsel %vm6256_vm2, %v6223_v59, %v6225_v4 }
 0x4c7   : > { %6918 = vrot.lane.b32.xlu1 %v19537_v39, %s16212_s14  ;;  %6375 = vmatprep.subr.bf16.mxu0 %v6269_v11 }
 0x4c8   : > { %6376 = vmatpush1.bf16.msra.mxu0 %v6268_v51  ;;  %v4860_v9 = vpop.f32.mrb[100].mxu0 }
 0x4c9   : > { %v19762_v8 = vpop.permute.xlu1 %6208  ;;  %v19767_v12 = vadd.f32 %v4860_v9, %v19665_v2  ;;  %v4862_v36 = vpop.f32.mrb[101].mxu0 }
 0x4ca   : > { %v6191_v25 = vpop.permute.xlu0 %6190  ;;  %v4901_v39 = vpop.f32.mrb[108].mxu1  ;;  %6942 = vrot.lane.b32.xlu0 %v18806_v37, %s16212_s14  ;;  %v6262_v29 = vsel %vm6256_vm2, %v6207_v58, %v19762_v8 }
 0x4cb   : > { %6940 = vrot.lane.b32.xlu1 %v18792_v28, %s16212_s14  ;;  %v19774_v41 = vadd.f32 %v4901_v39, %v19702_v14  ;;  %v4903_v32 = vpop.f32.mrb[109].mxu1  ;;  %6414 = vmatprep.subr.bf16.mxu1 %v6262_v29  ;;  %v19777_v28 = vadd.f32 %v4862_v36, %v19673_v1  ;;  %v4864_v63 = vpop.f32.mrb[102].mxu0  ;;  %v6261_v1 = vsel %vm6256_vm2, %v19725_v52, %v6207_v58 }
 0x4cc   : > { %v19780_v2 = vadd.f32 %v4903_v32, %v19712_v3  ;;  %v4905_v19 = vpop.f32.mrb[110].mxu1  ;;  %v4865_v37 = vpop.f32.mrb[103].mxu0 }
 0x4cd   : > { %v6193_v60 = vpop.permute.xlu1 %6192  ;;  %v4906_v0 = vpop.f32.mrb[111].mxu1 }
 0x4ce   : > { %v19785_v14 = vsel %vm6194_vm12, %v6191_v25, %v6193_v60  ;;  %v6243_v30 = vpop.permute.xlu0 %6242  ;;  %6926 = vrot.lane.b32.xlu0 %v19591_v24, %s16212_s14 }
 0x4cf   : > { %6924 = vrot.lane.b32.xlu1 %v19576_v26, %s16212_s14  ;;  %14321 = vmatmul.mubr.msk.bf16.vlgmr.msra.gmra.mrb[144].mxu1 %vm1898_vm10, %v19785_v14  ;;  %v6277_v3 = vsel %vm6256_vm2, %v6241_v45, %v6243_v30 }
 0x4d0   : > { %6415 = vmatpush1.bf16.msra.mxu1 %v6261_v1  ;;  %6446 = vmatprep.mubr.bf16.mxu1 %v22614_v6  ;;  %v6312_v57 = vsel %vm1616_vm1, %v6277_v3, 0 }
 0x4d1   : > { %v6245_v26 = vpop.permute.xlu1 %6244 }
 0x4d2   : > { %v6227_v40 = vpop.permute.xlu0 %6226  ;;  %6910 = vrot.lane.b32.xlu0 %v19602_v55, %s16212_s14  ;;  %v6278_v24 = vsel %vm6256_vm2, %v6243_v30, %v6245_v26 }
 0x4d3   : > { %6908 = vrot.lane.b32.xlu1 %v19595_v21, %s16212_s14  ;;  %14322 = vmatprep.subr.msk.bf16.mxu0 %vm1616_vm1, %v6278_v24 }
 0x4d4   : > { %6378 = vmatpush1.bf16.msra.mxu0 %v6312_v57  ;;  %v4942_v54 = vpop.f32.mrb[104].mxu0 }
 0x4d5   : > { %v6229_v52 = vpop.permute.xlu1 %6228  ;;  %v19805_v46 = vadd.f32 %v4942_v54, %v19709_v16  ;;  %v4944_v45 = vpop.f32.mrb[105].mxu0 }
 0x4d6   : > { %v6211_v61 = vpop.permute.xlu0 %6210  ;;  %v4983_v21 = vpop.f32.mrb[112].mxu1  ;;  %6946 = vrot.lane.b32.xlu0 %v18885_v62, %s16212_s14  ;;  %v6271_v55 = vsel %vm6256_vm2, %v6227_v40, %v6229_v52  ;;  %v19817_v16 = vadd.f32 %v4944_v45, %v19715_v35 }
 0x4d7   : > { %6944 = vrot.lane.b32.xlu1 %v18874_v18, %s16212_s14  ;;  %v19811_v33 = vadd.f32 %v4983_v21, %v19738_v20  ;;  %v15067_v23 = vpop.f32.mrb[113].mxu1  ;;  %14323 = vmatmul.mubr.msk.bf16.vlgmr.msra.gmra.mrb[140].mxu0 %vm1898_vm10, %v19785_v14  ;;  %v6270_v18 = vsel %vm6256_vm2, %v6225_v4, %v6227_v40  ;;  %v4946_v38 = vpop.f32.mrb[106].mxu0  ;;  %v6263_v35 = vsel %vm6256_vm2, %v19762_v8, %v6211_v61  ;;  %v19893_v21 = vld [vmem:[#allocation6 + $0xc] ss:$56 sps:$4 sm:$0xff]  }
 0x4d8   : > { %6416 = vmatprep.subr.bf16.mxu1 %v6271_v55  ;;  %v4986_v59 = vpop.f32.mrb[114].mxu1  ;;  %6487 = vmatprep.mubr.bf16.mxu0 %v22614_v6  ;;  %v4947_v49 = vpop.f32.mrb[107].mxu0 }
 0x4d9   : > { %6417 = vmatpush1.bf16.msra.mxu1 %v6270_v18  ;;  %v6213_v62 = vpop.permute.xlu1 %6212  ;;  %v15068_v20 = vpop.f32.mrb[115].mxu1  ;;  %v19903_v18 = vld [vmem:[#allocation6 + $0x80] ss:$56 sps:$4 sm:$0xff]  }
 0x4da   : > { %v6247_v43 = vpop.permute.xlu0 %6246  ;;  %6928 = vrot.lane.b32.xlu0 %v19628_v47, %s16212_s14  ;;  %v6264_v4 = vsel %vm6256_vm2, %v6211_v61, %v6213_v62 }
 0x4db   : > { %6896 = vrot.lane.b32.xlu1 %v19400_v50, %s16224_s10  ;;  %6455 = vmatprep.subr.bf16.mxu0 %v6264_v4  ;;  %v6279_v58 = vsel %vm6256_vm2, %v6245_v26, %v6247_v43  ;;  %v19915_v4 = vld [vmem:[#allocation6 + $0x84] ss:$56 sps:$4 sm:$0xff]  }
 0x4dc   : > { %6456 = vmatpush1.bf16.msra.mxu0 %v6263_v35  ;;  %v6318_v47 = vsel %vm1616_vm1, %v6279_v58, 0  ;;  %v19920_v58 = vld [vmem:[#allocation6 + $0x7c] ss:$56 sps:$4 sm:$0xff]  }
 0x4dd   : > { %v6249_v11 = vpop.permute.xlu1 %6248 }
 0x4de   : > { %v6231_v51 = vpop.permute.xlu0 %6230  ;;  %6912 = vrot.lane.b32.xlu0 %v19639_v10, %s16212_s14  ;;  %v6280_v9 = vsel %vm6256_vm2, %v6247_v43, %v6249_v11 }
 0x4df   : > { %6930 = vrot.lane.b32.xlu1 %v19632_v13, %s16212_s14  ;;  %14324 = vmatprep.subr.msk.bf16.mxu1 %vm1616_vm1, %v6280_v9  ;;  %v6272_v39 = vsel %vm6256_vm2, %v6229_v52, %v6231_v51  ;;  %v19883_v52 = vld [vmem:[#allocation6 + $0x10] ss:$56 sps:$4 sm:$0xff]  }
 0x4e0   : > { %6419 = vmatpush1.bf16.msra.mxu1 %v6318_v47  ;;  %v19926_v9 = vld [vmem:[#allocation6 + $0x18] ss:$56 sps:$4 sm:$0xff]  }
 0x4e1   : > { %v6233_v25 = vpop.permute.xlu1 %6232  ;;  %15099 = vmatprep.subr.bf16.mxu1 %v22674_v5 }
 0x4e2   : > { %v6215_v8 = vpop.permute.xlu0 %6214  ;;  %6948 = vrot.lane.b32.xlu0 %v18966_v7, %s16212_s14  ;;  %v6273_v13 = vsel %vm6256_vm2, %v6231_v51, %v6233_v25 }
 0x4e3   : > { %6914 = vrot.lane.b32.xlu1 %v19644_v15, %s16212_s14  ;;  %v6265_v10 = vsel %vm6256_vm2, %v6213_v62, %v6215_v8  ;;  %14325 = vmatmul.mubr.msk.bf16.vlgmr.msra.gmra.mrb[148].mxu1 %vm1898_vm10, %v19785_v14 }
 0x4e4   : > { %6457 = vmatprep.subr.bf16.mxu0 %v6273_v13  ;;  %15100 = vmatpush3.bf16.msra.mxu1 %v6265_v10 }
 0x4e5   : > { %6458 = vmatpush1.bf16.msra.mxu0 %v6272_v39  ;;  %v6251_v29 = vpop.permute.xlu1 %6250  ;;  %15101 = vmatprep.subr.bf16.mxu1 %v22674_v5 }
 0x4e6   : > { %v5176_v15 = vpop.f32.mrb[108].mxu0  ;;  %v6281_v7 = vsel %vm6256_vm2, %v6249_v11, %v6251_v29  ;;  %v6253_v36 = vpop.permute.xlu0 %6252  ;;  %6932 = vrot.lane.b32.xlu0 %v19676_v31, %s16212_s14  ;;  %15105 = vmatprep.mubr.msk.bf16.mxu1 %vm16227_vm11, %v22674_v5 }
 0x4e7   : > { %6950 = vrot.lane.b32.xlu1 %v18973_v48, %s16212_s14  ;;  %v19850_v32 = vadd.f32 %v5176_v15, %v19743_v22  ;;  %v5178_v63 = vpop.f32.mrb[109].mxu0  ;;  %v6282_v48 = vsel %vm6256_vm2, %v6251_v29, %v6253_v36  ;;  %v6324_v37 = vsel %vm1616_vm1, %v6281_v7, 0 }
 0x4e8   : > { %v19857_v19 = vadd.f32 %v5178_v63, %v19747_v17  ;;  %v5180_v60 = vpop.f32.mrb[110].mxu0  ;;  %14326 = vmatprep.subr.msk.bf16.mxu0 %vm1616_vm1, %v6282_v48  ;;  %v7268_v48 = vld [vmem:[#allocation6 + $0xf4] sm:$0xff] }
 0x4e9   : > { %v5181_v0 = vpop.f32.mrb[111].mxu0  ;;  %6460 = vmatpush1.bf16.msra.mxu0 %v6324_v37  ;;  %v6235_v22 = vpop.permute.xlu1 %6234 }
 0x4ea   : > { %v6274_v31 = vsel %vm6256_vm2, %v6233_v25, %v6235_v22  ;;  %v6550_v30 = vpop.permute.xlu0 %6549  ;;  %6916 = vrot.lane.b32.xlu0 %v19688_v53, %s16212_s14  ;;  %v7267_v25 = vld [vmem:[#allocation6 + $0xec] sm:$0xff] }
 0x4eb   : > { %6934 = vrot.lane.b32.xlu1 %v19681_v56, %s16212_s14  ;;  %15102 = vmatpush3.bf16.msra.mxu1 %v6274_v31  ;;  %v19938_v15 = vcombine.low %v7267_v25, %v7267_v25  ;;  %v19943_v63 = vcombine.high %v7267_v25, %v7267_v25  ;;  %v20005_v25 = vld [vmem:[#allocation6 + $0x90] ss:$56 sps:$4 sm:$0xff]  }
 0x4ec   : > { %14327 = vmatmul.mubr.msk.bf16.vlgmr.msra.gmra.mrb[144].mxu0 %vm1898_vm10, %v19785_v14  ;;  %15103 = vmatprep.subr.bf16.mxu1 %v22674_v5 }
 0x4ed   : > { %v6552_v17 = vpop.permute.xlu1 %6551  ;;  %6715 = vmatprep.mubr.bf16.mxu0 %v22614_v6 }
 0x4ee   : > { %v5217_v1 = vpop.f32.mrb[116].mxu1  ;;  %v6548_v56 = vpop.permute.xlu0 %6547  ;;  %6954 = vrot.lane.b32.xlu0 %v19054_v42, %s16212_s14  ;;  %v6609_v53 = vsel %vm6607_vm9, %v6550_v30, %v6552_v17 }
 0x4ef   : > { %6952 = vrot.lane.b32.xlu1 %v22849_v34, %s16212_s14  ;;  %v19874_v3 = vadd.f32 %v5217_v1, %v19767_v12  ;;  %v5219_v26 = vpop.f32.mrb[117].mxu1  ;;  %v6608_v40 = vsel %vm6607_vm9, %v6548_v56, %v6550_v30  ;;  %6683 = vmatprep.subr.bf16.mxu0 %v6609_v53 }
 0x4f0   : > { %v19881_v24 = vadd.f32 %v5219_v26, %v19777_v28  ;;  %v5221_v57 = vpop.f32.mrb[118].mxu1  ;;  %6684 = vmatpush1.bf16.msra.mxu0 %v6608_v40  ;;  %v19891_v28 = vld [vmem:[#allocation6 + $0x14] ss:$56 sps:$4 sm:$0xff]  }
 0x4f1   : > { %v5222_v34 = vpop.f32.mrb[119].mxu1  ;;  %v6255_v54 = vpop.permute.xlu1 %6254  ;;  %v19968_v57 = vld [vmem:[#allocation6 + $0x8c] ss:$56 sps:$4 sm:$0xff]  }
 0x4f2   : > { %v6283_v12 = vsel %vm6256_vm2, %v6253_v36, %v6255_v54  ;;  %v6570_v42 = vpop.permute.xlu0 %6569  ;;  %7381 = vrot.lane.b32.xlu0 %v19883_v52, %s16224_s10  ;;  %vm6958_vm2 = vcmask 392192  }
 0x4f3   : > { %6936 = vrot.lane.b32.xlu1 %v19704_v27, %s16212_s14  ;;  %v6330_v61 = vsel %vm1616_vm1, %v6283_v12, 0  ;;  %v19973_v12 = vld [vmem:[#allocation6 + $0x20] ss:$56 sps:$4 sm:$0xff]  }
 0x4f4   : > { %15104 = vmatpush3.bf16.msra.mxu1 %v6330_v61 }
 0x4f5   : > { %v6572_v55 = vpop.permute.xlu1 %6571 }
 0x4f6   : > { %v6568_v45 = vpop.permute.xlu0 %6567  ;;  %7379 = vrot.lane.b32.xlu0 %v19893_v21, %s16224_s10  ;;  %v6618_v27 = vsel %vm6607_vm9, %v6570_v42, %v6572_v55 }
 0x4f7   : > { %7383 = vrot.lane.b32.xlu1 %v19891_v28, %s16224_s10  ;;  %v6617_v23 = vsel %vm6607_vm9, %v6568_v45, %v6570_v42  ;;  %15106 = vmatmul.mubr.msk.bf16.vlgmr.msra.gmra.mrb[152].mxu1 %vm1898_vm10, %v19785_v14 }
 0x4f8   : > { %6685 = vmatprep.subr.bf16.mxu0 %v6618_v27  ;;  %6756 = vmatprep.mubr.bf16.mxu1 %v22614_v6 }
 0x4f9   : > { %6686 = vmatpush1.bf16.msra.mxu0 %v6617_v23  ;;  %v6554_v38 = vpop.permute.xlu1 %6553 }
 0x4fa   : > { %v6556_v59 = vpop.permute.xlu0 %6555  ;;  %v5258_v62 = vpop.f32.mrb[112].mxu0  ;;  %7401 = vrot.lane.b32.xlu0 %v19903_v18, %s16224_s10  ;;  %v6610_v49 = vsel %vm6607_vm9, %v6552_v17, %v6554_v38  ;;  %v19954_v17 = vcombine.low %v7268_v48, %v7268_v48 }
 0x4fb   : > { %6956 = vrot.lane.b32.xlu1 %v19109_v44, %s16212_s14  ;;  %v19912_v20 = vadd.f32 %v5258_v62, %v19774_v41  ;;  %v5260_v14 = vpop.f32.mrb[113].mxu0  ;;  %v6611_v43 = vsel %vm6607_vm9, %v6554_v38, %v6556_v59  ;;  %v19983_v38 = vld [vmem:[#allocation6 + $0x24] ss:$56 sps:$4 sm:$0xff]  }
 0x4fc   : > { %v19918_v35 = vadd.f32 %v5260_v14, %v19780_v2  ;;  %6724 = vmatprep.subr.bf16.mxu1 %v6611_v43  ;;  %v5262_v44 = vpop.f32.mrb[114].mxu0  ;;  %v19929_v2 = vld [vmem:[#allocation6 + $0x1c] ss:$56 sps:$4 sm:$0xff]  }
 0x4fd   : > { %6725 = vmatpush1.bf16.msra.mxu1 %v6610_v49  ;;  %v6588_v11 = vpop.permute.xlu1 %6587  ;;  %v5263_v51 = vpop.f32.mrb[115].mxu0  ;;  %v7269_v62 = vld [vmem:[#allocation6 + $0xfc] sm:$0xff]  ;;  %v19992_v44 = vcombine.high %v7268_v48, %v7268_v48 }
 0x4fe   : > { %v6590_v41 = vpop.permute.xlu0 %6589  ;;  %7399 = vrot.lane.b32.xlu0 %v19920_v58, %s16224_s10  ;;  %v20016_v48 = vld [vmem:[#allocation6 + $0x28] ss:$56 sps:$4 sm:$0xff]  }
 0x4ff   : > { %7403 = vrot.lane.b32.xlu1 %v19915_v4, %s16224_s10  ;;  %v6626_v47 = vsel %vm6607_vm9, %v6588_v11, %v6590_v41  ;;  %v19996_v11 = vcombine.low %v7269_v62, %v7269_v62 }
 0x500   : > { %v6657_v29 = vsel %vm1616_vm1, %v6626_v47, 0 }
 0x501   : > { %v6592_v8 = vpop.permute.xlu1 %6591 }
 0x502   : > { %v6574_v13 = vpop.permute.xlu0 %6573  ;;  %7387 = vrot.lane.b32.xlu0 %v19929_v2, %s16224_s10  ;;  %v6627_v10 = vsel %vm6607_vm9, %v6590_v41, %v6592_v8 }
 0x503   : > { %7385 = vrot.lane.b32.xlu1 %v19926_v9, %s16224_s10  ;;  %v5299_v39 = vpop.f32.mrb[120].mxu1  ;;  %14329 = vmatprep.subr.msk.bf16.mxu0 %vm1616_vm1, %v6627_v10  ;;  %v6619_v30 = vsel %vm6607_vm9, %v6572_v55, %v6574_v13 }
 0x504   : > { %v19941_v7 = vadd.f32 %v5299_v39, %v19805_v46  ;;  %v5301_v36 = vpop.f32.mrb[121].mxu1  ;;  %6688 = vmatpush1.bf16.msra.mxu0 %v6657_v29 }
 0x505   : > { %v19946_v60 = vadd.f32 %v5301_v36, %v19817_v16  ;;  %v5303_v37 = vpop.f32.mrb[122].mxu1  ;;  %v6576_v0 = vpop.permute.xlu1 %6575  ;;  %v19956_v16 = vld [vmem:[#allocation6 + $0x88] ss:$56 sps:$4 sm:$0xff]  }
 0x506   : > { %v5304_v22 = vpop.f32.mrb[123].mxu1  ;;  %v6558_v31 = vpop.permute.xlu0 %6557  ;;  %7421 = vrot.lane.b32.xlu0 %v19943_v63, %s16224_s10  ;;  %v6620_v46 = vsel %vm6607_vm9, %v6574_v13, %v6576_v0  ;;  %v20019_v37 = vld [vmem:[#allocation6 + $0x2c] ss:$56 sps:$4 sm:$0xff]  }
 0x507   : > { %7419 = vrot.lane.b32.xlu1 %v19938_v15, %s16224_s10  ;;  %6726 = vmatprep.subr.bf16.mxu1 %v6620_v46  ;;  %v6612_v40 = vsel %vm6607_vm9, %v6556_v59, %v6558_v31  ;;  %v7270_v22 = vld [vmem:[#allocation6 + $0x104] sm:$0xff] }
 0x508   : > { %6727 = vmatpush1.bf16.msra.mxu1 %v6619_v30 }
 0x509   : > { %v6560_v1 = vpop.permute.xlu1 %6559 }
 0x50a   : > { %v19960_v56 = vpop.permute.xlu0 %6545  ;;  %7405 = vrot.lane.b32.xlu0 %v19956_v16, %s16224_s10  ;;  %v6613_v26 = vsel %vm6607_vm9, %v6558_v31, %v6560_v1 }
 0x50b   : > { %7423 = vrot.lane.b32.xlu1 %v19954_v17, %s16224_s10  ;;  %v5340_v53 = vpop.f32.mrb[116].mxu0  ;;  %14330 = vmatmul.mubr.msk.bf16.vlgmr.msra.gmra.mrb[148].mxu0 %vm1898_vm10, %v19960_v56 }
 0x50c   : > { %6765 = vmatprep.subr.bf16.mxu0 %v6613_v26  ;;  %v19971_v34 = vadd.f32 %v5340_v53, %v19811_v33  ;;  %v15077_v54 = vpop.f32.mrb[117].mxu0  ;;  %6797 = vmatprep.mubr.bf16.mxu0 %v22614_v6  ;;  %v20032_v26 = vcombine.low %v7270_v22, %v7270_v22 }
 0x50d   : > { %6766 = vmatpush1.bf16.msra.mxu0 %v6612_v40  ;;  %v5343_v42 = vpop.f32.mrb[118].mxu0  ;;  %v6594_v61 = vpop.permute.xlu1 %6593 }
 0x50e   : > { %v6628_v55 = vsel %vm6607_vm9, %v6592_v8, %v6594_v61  ;;  %v15078_v45 = vpop.f32.mrb[119].mxu0  ;;  %v6596_v27 = vpop.permute.xlu0 %6595  ;;  %7389 = vrot.lane.b32.xlu0 %v19973_v12, %s16224_s10  ;;  %v20007_v8 = vld [vmem:[#allocation6 + $0x94] ss:$56 sps:$4 sm:$0xff]   ;;  %v20041_v42 = vld [vmem:[#allocation6 + $0x98] ss:$56 sps:$4 sm:$0xff]  }
 0x50f   : > { %7407 = vrot.lane.b32.xlu1 %v19968_v57, %s16224_s10  ;;  %v6629_v33 = vsel %vm6607_vm9, %v6594_v61, %v6596_v27  ;;  %v6663_v23 = vsel %vm1616_vm1, %v6628_v55, 0  ;;  %v20045_v55 = vld [vmem:[#allocation6 + $0x9c] ss:$56 sps:$4 sm:$0xff]  }
 0x510   : > { %14331 = vmatprep.subr.msk.bf16.mxu1 %vm1616_vm1, %v6629_v33 }
 0x511   : > { %6729 = vmatpush1.bf16.msra.mxu1 %v6663_v23  ;;  %v6578_v59 = vpop.permute.xlu1 %6577 }
 0x512   : > { %v6580_v49 = vpop.permute.xlu0 %6579  ;;  %7272 = vrot.lane.b32.xlu0 %v19400_v50, %s16237_s21  ;;  %v6621_v14 = vsel %vm6607_vm9, %v6576_v0, %v6578_v59 }
 0x513   : > { %7391 = vrot.lane.b32.xlu1 %v19983_v38, %s16224_s10  ;;  %v6622_v43 = vsel %vm6607_vm9, %v6578_v59, %v6580_v49 }
 0x514   : > { %14332 = vmatmul.mubr.msk.bf16.vlgmr.msra.gmra.mrb[156].mxu1 %vm1898_vm10, %v19960_v56  ;;  %6767 = vmatprep.subr.bf16.mxu0 %v6622_v43  ;;  %v20058_v43 = vld [vmem:[#allocation6 + $0x30] ss:$56 sps:$4 sm:$0xff]  }
 0x515   : > { %6768 = vmatpush1.bf16.msra.mxu0 %v6621_v14  ;;  %v6562_v51 = vpop.permute.xlu1 %6561  ;;  %6838 = vmatprep.mubr.bf16.mxu1 %v22614_v6 }
 0x516   : > { %v6564_v41 = vpop.permute.xlu0 %6563  ;;  %7427 = vrot.lane.b32.xlu0 %v19996_v11, %s16224_s10  ;;  %v6614_v50 = vsel %vm6607_vm9, %v6560_v1, %v6562_v51  ;;  %v20028_v1 = vcombine.high %v7269_v62, %v7269_v62 }
 0x517   : > { %7425 = vrot.lane.b32.xlu1 %v19992_v44, %s16224_s10  ;;  %v6615_v47 = vsel %vm6607_vm9, %v6562_v51, %v6564_v41 }
 0x518   : > { %6806 = vmatprep.subr.bf16.mxu1 %v6615_v47 }
 0x519   : > { %6807 = vmatpush1.bf16.msra.mxu1 %v6614_v50  ;;  %v6598_v13 = vpop.permute.xlu1 %6597  ;;  %v20063_v50 = vcombine.high %v7270_v22, %v7270_v22 }
 0x51a   : > { %v6630_v10 = vsel %vm6607_vm9, %v6596_v27, %v6598_v13  ;;  %v6600_v39 = vpop.permute.xlu0 %6599  ;;  %7411 = vrot.lane.b32.xlu0 %v20007_v8, %s16224_s10 }
 0x51b   : > { %7409 = vrot.lane.b32.xlu1 %v20005_v25, %s16224_s10  ;;  %v6631_v29 = vsel %vm6607_vm9, %v6598_v13, %v6600_v39  ;;  %v6669_v36 = vsel %vm1616_vm1, %v6630_v10, 0 }
 0x51c   : > { %14333 = vmatprep.subr.msk.bf16.mxu0 %vm1616_vm1, %v6631_v29 }
 0x51d   : > { %6770 = vmatpush1.bf16.msra.mxu0 %v6669_v36  ;;  %v6582_v0 = vpop.permute.xlu1 %6581 }
 0x51e   : > { %v6584_v31 = vpop.permute.xlu0 %6583  ;;  %7395 = vrot.lane.b32.xlu0 %v20019_v37, %s16224_s10  ;;  %v6623_v46 = vsel %vm6607_vm9, %v6580_v49, %v6582_v0  ;;  %15109 = vmatprep.subr.bf16.mxu0 %v22674_v5 }
 0x51f   : > { %7393 = vrot.lane.b32.xlu1 %v20016_v48, %s16224_s10  ;;  %v6624_v30 = vsel %vm6607_vm9, %v6582_v0, %v6584_v31 }
 0x520   : > { %14334 = vmatmul.mubr.msk.bf16.vlgmr.msra.gmra.mrb[152].mxu0 %vm1898_vm10, %v19960_v56  ;;  %6808 = vmatprep.subr.bf16.mxu1 %v6624_v30 }
 0x521   : > { %6809 = vmatpush1.bf16.msra.mxu1 %v6623_v46  ;;  %v6566_v53 = vpop.permute.xlu1 %6565  ;;  %15115 = vmatprep.mubr.msk.bf16.mxu0 %vm16227_vm11, %v22674_v5  ;;  %v20081_v46 = vld [vmem:[#allocation6 + $0xa0] ss:$56 sps:$4 sm:$0xff]  }
 0x522   : > { %v6616_v40 = vsel %vm6607_vm9, %v6564_v41, %v6566_v53  ;;  %v6602_v54 = vpop.permute.xlu0 %6601  ;;  %7431 = vrot.lane.b32.xlu0 %v20032_v26, %s16224_s10 }
 0x523   : > { %7429 = vrot.lane.b32.xlu1 %v20028_v1, %s16224_s10  ;;  %15110 = vmatpush3.bf16.msra.mxu0 %v6616_v40  ;;  %v6632_v61 = vsel %vm6607_vm9, %v6600_v39, %v6602_v54 }
 0x524   : > { %15111 = vmatprep.subr.bf16.mxu0 %v22674_v5  ;;  %v6675_v14 = vsel %vm1616_vm1, %v6632_v61, 0 }
 0x525   : > { %v6604_v45 = vpop.permute.xlu1 %6603  ;;  %v5657_v27 = vpop.f32.mrb[124].mxu1 }
 0x526   : > { %v6586_v33 = vpop.permute.xlu0 %6585  ;;  %7415 = vrot.lane.b32.xlu0 %v20045_v55, %s16224_s10  ;;  %v6633_v23 = vsel %vm6607_vm9, %v6602_v54, %v6604_v45  ;;  %v20053_v59 = vadd.f32 %v5657_v27, %v19850_v32  ;;  %v5659_v49 = vpop.f32.mrb[125].mxu1  ;;  %v7271_v32 = vld [vmem:[#allocation6 + $0x10c] sm:$0xff] }
 0x527   : > { %7413 = vrot.lane.b32.xlu1 %v20041_v42, %s16224_s10  ;;  %v6625_v62 = vsel %vm6607_vm9, %v6584_v31, %v6586_v33  ;;  %14335 = vmatprep.subr.msk.bf16.mxu1 %vm1616_vm1, %v6633_v23  ;;  %v20061_v51 = vadd.f32 %v5659_v49, %v19857_v19  ;;  %v5661_v41 = vpop.f32.mrb[126].mxu1  ;;  %v20076_v0 = vcombine.low %v7271_v32, %v7271_v32 }
 0x528   : > { %15112 = vmatpush3.bf16.msra.mxu0 %v6625_v62  ;;  %6811 = vmatpush1.bf16.msra.mxu1 %v6675_v14  ;;  %v5662_v47 = vpop.f32.mrb[127].mxu1  ;;  %v20098_v33 = vcombine.high %v7271_v32, %v7271_v32 }
 0x529   : > { %v6901_v13 = vpop.permute.xlu1 %6900  ;;  %15113 = vmatprep.subr.bf16.mxu0 %v22674_v5 }
 0x52a   : > { %v6903_v10 = vpop.permute.xlu0 %6902  ;;  %v5698_v39 = vpop.f32.mrb[120].mxu0  ;;  %7433 = vrot.lane.b32.xlu0 %v20063_v50, %s16224_s10 }
 0x52b   : > { %7397 = vrot.lane.b32.xlu1 %v20058_v43, %s16224_s10  ;;  %v20071_v19 = vadd.f32 %v5698_v39, %v19874_v3  ;;  %v5700_v29 = vpop.f32.mrb[121].mxu0  ;;  %14336 = vmatmul.mubr.msk.bf16.vlgmr.msra.gmra.mrb[160].mxu1 %vm1898_vm10, %v19960_v56  ;;  %v6960_v36 = vsel %vm6958_vm2, %v6901_v13, %v6903_v10 }
 0x52c   : > { %v20079_v22 = vadd.f32 %v5700_v29, %v19881_v24  ;;  %7034 = vmatprep.subr.bf16.mxu1 %v6960_v36  ;;  %v5702_v31 = vpop.f32.mrb[122].mxu0  ;;  %7066 = vmatprep.mubr.bf16.mxu1 %v22614_v6 }
 0x52d   : > { %v6606_v30 = vpop.permute.xlu1 %6605  ;;  %v5703_v3 = vpop.f32.mrb[123].mxu0 }
 0x52e   : > { %v6634_v53 = vsel %vm6607_vm9, %v6604_v45, %v6606_v30  ;;  %v6899_v40 = vpop.permute.xlu0 %6898  ;;  %7417 = vrot.lane.b32.xlu0 %v20081_v46, %s16224_s10  ;;  %vm7789_vm9 = vcmask 556032  }
 0x52f   : > { %7435 = vrot.lane.b32.xlu1 %v20076_v0, %s16224_s10  ;;  %v6681_v24 = vsel %vm1616_vm1, %v6634_v53, 0  ;;  %v6959_v54 = vsel %vm6958_vm2, %v6899_v40, %v6901_v13 }
 0x530   : > { %7035 = vmatpush1.bf16.msra.mxu1 %v6959_v54  ;;  %15114 = vmatpush3.bf16.msra.mxu0 %v6681_v24 }
 0x531   : > { %v6921_v61 = vpop.permute.xlu1 %6920 }
 0x532   : > { %v6923_v27 = vpop.permute.xlu0 %6922  ;;  %7733 = vrot.lane.b32.xlu0 %v19891_v28, %s16238_s23 }
 0x533   : > { %7731 = vrot.lane.b32.xlu1 %v19883_v52, %s16238_s23  ;;  %15116 = vmatmul.mubr.msk.bf16.vlgmr.msra.gmra.mrb[156].mxu0 %vm1898_vm10, %v19960_v56  ;;  %v6969_v45 = vsel %vm6958_vm2, %v6921_v61, %v6923_v27 }
 0x534   : > { %7036 = vmatprep.subr.bf16.mxu1 %v6969_v45  ;;  %7107 = vmatprep.mubr.bf16.mxu0 %v22614_v6 }
 0x535   : > { %v6905_v23 = vpop.permute.xlu1 %6904 }
 0x536   : > { %v20103_v62 = vpop.permute.xlu0 %6906  ;;  %7729 = vrot.lane.b32.xlu0 %v19893_v21, %s16238_s23  ;;  %v6961_v49 = vsel %vm6958_vm2, %v6903_v10, %v6905_v23  ;;  %v5739_v14 = vpop.f32.mrb[128].mxu1 }
 0x537   : > { %7437 = vrot.lane.b32.xlu1 %v20098_v33, %s16224_s10  ;;  %v6962_v56 = vsel %vm6958_vm2, %v6905_v23, %v20103_v62  ;;  %v20111_v41 = vadd.f32 %v5739_v14, %v19912_v20  ;;  %v5741_v32 = vpop.f32.mrb[129].mxu1 }
 0x538   : > { %7075 = vmatprep.subr.bf16.mxu0 %v6962_v56  ;;  %v20114_v47 = vadd.f32 %v5741_v32, %v19918_v35  ;;  %v5743_v13 = vpop.f32.mrb[130].mxu1 }
 0x539   : > { %7076 = vmatpush1.bf16.msra.mxu0 %v6961_v49  ;;  %v6919_v39 = vpop.permute.xlu1 %6918  ;;  %v5744_v29 = vpop.f32.mrb[131].mxu1 }
 0x53a   : > { %v6968_v10 = vsel %vm6958_vm2, %v6919_v39, %v6921_v61  ;;  %v6939_v36 = vpop.permute.xlu0 %6938  ;;  %7753 = vrot.lane.b32.xlu0 %v19915_v4, %s16238_s23 }
 0x53b   : > { %7751 = vrot.lane.b32.xlu1 %v19903_v18, %s16238_s23  ;;  %7037 = vmatpush1.bf16.msra.mxu1 %v6968_v10 }
 0x53d   : > { %v6941_v20 = vpop.permute.xlu1 %6940 }
 0x53e   : > { %v6977_v35 = vsel %vm6958_vm2, %v6939_v36, %v6941_v20  ;;  %v6943_v31 = vpop.permute.xlu0 %6942  ;;  %7737 = vrot.lane.b32.xlu0 %v19929_v2, %s16238_s23 }
 0x53f   : > { %7735 = vrot.lane.b32.xlu1 %v19926_v9, %s16238_s23  ;;  %v6978_v30 = vsel %vm6958_vm2, %v6941_v20, %v6943_v31  ;;  %v7008_v3 = vsel %vm1616_vm1, %v6977_v35, 0 }
 0x540   : > { %14338 = vmatprep.subr.msk.bf16.mxu1 %vm1616_vm1, %v6978_v30 }
 0x541   : > { %7039 = vmatpush1.bf16.msra.mxu1 %v7008_v3  ;;  %v6925_v53 = vpop.permute.xlu1 %6924 }
 0x542   : > { %v6927_v40 = vpop.permute.xlu0 %6926  ;;  %v5780_v24 = vpop.f32.mrb[124].mxu0  ;;  %7769 = vrot.lane.b32.xlu0 %v19938_v15, %s16238_s23  ;;  %v6970_v54 = vsel %vm6958_vm2, %v6923_v27, %v6925_v53 }
 0x543   : > { %7749 = vrot.lane.b32.xlu1 %v19920_v58, %s16238_s23  ;;  %v20135_v61 = vadd.f32 %v5780_v24, %v19941_v7  ;;  %v5782_v45 = vpop.f32.mrb[125].mxu0  ;;  %v6971_v23 = vsel %vm6958_vm2, %v6925_v53, %v6927_v40 }
 0x544   : > { %v20139_v49 = vadd.f32 %v5782_v45, %v19946_v60  ;;  %7077 = vmatprep.subr.bf16.mxu0 %v6971_v23  ;;  %v5784_v14 = vpop.f32.mrb[126].mxu0 }
 0x545   : > { %7078 = vmatpush1.bf16.msra.mxu0 %v6970_v54  ;;  %v6909_v56 = vpop.permute.xlu1 %6908  ;;  %v5785_v32 = vpop.f32.mrb[127].mxu0 }
 0x546   : > { %v6911_v13 = vpop.permute.xlu0 %6910  ;;  %7773 = vrot.lane.b32.xlu0 %v19954_v17, %s16238_s23  ;;  %v6963_v24 = vsel %vm6958_vm2, %v20103_v62, %v6909_v56 }
 0x547   : > { %7771 = vrot.lane.b32.xlu1 %v19943_v63, %s16238_s23  ;;  %v6964_v7 = vsel %vm6958_vm2, %v6909_v56, %v6911_v13 }
 0x548   : > { %7116 = vmatprep.subr.bf16.mxu1 %v6964_v7 }
 0x549   : > { %v6945_v27 = vpop.permute.xlu1 %6944 }
 0x54a   : > { %v6979_v60 = vsel %vm6958_vm2, %v6943_v31, %v6945_v27  ;;  %v6947_v39 = vpop.permute.xlu0 %6946  ;;  %7757 = vrot.lane.b32.xlu0 %v19968_v57, %s16238_s23  ;;  %v5821_v10 = vpop.f32.mrb[132].mxu1 }
 0x54b   : > { %7755 = vrot.lane.b32.xlu1 %v19956_v16, %s16238_s23  ;;  %v6980_v29 = vsel %vm6958_vm2, %v6945_v27, %v6947_v39  ;;  %v7014_v36 = vsel %vm1616_vm1, %v6979_v60, 0  ;;  %v20154_v20 = vadd.f32 %v5821_v10, %v19971_v34  ;;  %v15087_v35 = vpop.f32.mrb[133].mxu1 }
 0x54c   : > { %14340 = vmatprep.subr.msk.bf16.mxu0 %vm1616_vm1, %v6980_v29  ;;  %v5824_v30 = vpop.f32.mrb[134].mxu1 }
 0x54d   : > { %7080 = vmatpush1.bf16.msra.mxu0 %v7014_v36  ;;  %v20157_v3 = vpop.permute.xlu1 %6896  ;;  %v15088_v31 = vpop.f32.mrb[135].mxu1 }
 0x54e   : > { %v6929_v53 = vpop.permute.xlu0 %6928  ;;  %14339 = vmatmul.mubr.msk.bf16.vlgmr.msra.gmra.mrb[164].mxu1 %vm1898_vm10, %v20157_v3  ;;  %7741 = vrot.lane.b32.xlu0 %v19983_v38, %s16238_s23 }
 0x54f   : > { %7739 = vrot.lane.b32.xlu1 %v19973_v12, %s16238_s23  ;;  %7117 = vmatpush1.bf16.msra.mxu1 %v6963_v24  ;;  %v6972_v45 = vsel %vm6958_vm2, %v6927_v40, %v6929_v53 }
 0x550   : > { %7148 = vmatprep.mubr.bf16.mxu1 %v22614_v6  ;;  %14341 = vmatmul.mubr.msk.bf16.vlgmr.msra.gmra.mrb[160].mxu0 %vm1898_vm10, %v20157_v3 }
 0x551   : > { %v6931_v34 = vpop.permute.xlu1 %6930  ;;  %7189 = vmatprep.mubr.bf16.mxu0 %v22614_v6 }
 0x552   : > { %v6913_v54 = vpop.permute.xlu0 %6912  ;;  %7777 = vrot.lane.b32.xlu0 %v19996_v11, %s16238_s23  ;;  %v6973_v62 = vsel %vm6958_vm2, %v6929_v53, %v6931_v34 }
 0x553   : > { %7775 = vrot.lane.b32.xlu1 %v19992_v44, %s16238_s23  ;;  %7118 = vmatprep.subr.bf16.mxu1 %v6973_v62  ;;  %v6965_v32 = vsel %vm6958_vm2, %v6911_v13, %v6913_v54 }
 0x554   : > { %7119 = vmatpush1.bf16.msra.mxu1 %v6972_v45 }
 0x555   : > { %v6915_v23 = vpop.permute.xlu1 %6914 }
 0x556   : > { %v6949_v14 = vpop.permute.xlu0 %6948  ;;  %7761 = vrot.lane.b32.xlu0 %v20007_v8, %s16238_s23  ;;  %v6966_v56 = vsel %vm6958_vm2, %v6913_v54, %v6915_v23 }
 0x557   : > { %7759 = vrot.lane.b32.xlu1 %v20005_v25, %s16238_s23  ;;  %7157 = vmatprep.subr.bf16.mxu0 %v6966_v56  ;;  %v6981_v7 = vsel %vm6958_vm2, %v6947_v39, %v6949_v14 }
 0x558   : > { %7158 = vmatpush1.bf16.msra.mxu0 %v6965_v32  ;;  %v7020_v10 = vsel %vm1616_vm1, %v6981_v7, 0 }
 0x559   : > { %v6951_v27 = vpop.permute.xlu1 %6950 }
 0x55a   : > { %v6933_v40 = vpop.permute.xlu0 %6932  ;;  %7745 = vrot.lane.b32.xlu0 %v20019_v37, %s16238_s23  ;;  %v6982_v60 = vsel %vm6958_vm2, %v6949_v14, %v6951_v27 }
 0x55b   : > { %7743 = vrot.lane.b32.xlu1 %v20016_v48, %s16238_s23  ;;  %14342 = vmatprep.subr.msk.bf16.mxu1 %vm1616_vm1, %v6982_v60  ;;  %v6974_v35 = vsel %vm6958_vm2, %v6931_v34, %v6933_v40 }
 0x55c   : > { %7121 = vmatpush1.bf16.msra.mxu1 %v7020_v10 }
 0x55d   : > { %v6935_v29 = vpop.permute.xlu1 %6934  ;;  %15119 = vmatprep.subr.bf16.mxu1 %v22674_v5 }
 0x55e   : > { %v6917_v13 = vpop.permute.xlu0 %6916  ;;  %7781 = vrot.lane.b32.xlu0 %v20032_v26, %s16238_s23  ;;  %v6975_v39 = vsel %vm6958_vm2, %v6933_v40, %v6935_v29 }
 0x55f   : > { %7779 = vrot.lane.b32.xlu1 %v20028_v1, %s16238_s23  ;;  %v6967_v36 = vsel %vm6958_vm2, %v6915_v23, %v6917_v13  ;;  %14343 = vmatmul.mubr.msk.bf16.vlgmr.msra.gmra.mrb[168].mxu1 %vm1898_vm10, %v20157_v3 }
 0x560   : > { %7159 = vmatprep.subr.bf16.mxu0 %v6975_v39  ;;  %15120 = vmatpush3.bf16.msra.mxu1 %v6967_v36 }
 0x561   : > { %7160 = vmatpush1.bf16.msra.mxu0 %v6974_v35  ;;  %v6953_v30 = vpop.permute.xlu1 %6952  ;;  %v6008_v31 = vpop.f32.mrb[128].mxu0  ;;  %15121 = vmatprep.subr.bf16.mxu1 %v22674_v5 }
 0x562   : > { %v6983_v53 = vsel %vm6958_vm2, %v6951_v27, %v6953_v30  ;;  %v20206_v24 = vadd.f32 %v6008_v31, %v20053_v59  ;;  %v6955_v54 = vpop.permute.xlu0 %6954  ;;  %v6010_v62 = vpop.f32.mrb[129].mxu0  ;;  %7765 = vrot.lane.b32.xlu0 %v20045_v55, %s16238_s23  ;;  %15125 = vmatprep.mubr.msk.bf16.mxu1 %vm16227_vm11, %v22674_v5 }
 0x563   : > { %7763 = vrot.lane.b32.xlu1 %v20041_v42, %s16238_s23  ;;  %v20213_v34 = vadd.f32 %v6010_v62, %v20061_v51  ;;  %v6012_v45 = vpop.f32.mrb[130].mxu0  ;;  %v6984_v23 = vsel %vm6958_vm2, %v6953_v30, %v6955_v54  ;;  %v7026_v14 = vsel %vm1616_vm1, %v6983_v53, 0 }
 0x564   : > { %14344 = vmatprep.subr.msk.bf16.mxu0 %vm1616_vm1, %v6984_v23  ;;  %v6013_v59 = vpop.f32.mrb[131].mxu0 }
 0x565   : > { %7162 = vmatpush1.bf16.msra.mxu0 %v7026_v14  ;;  %v6937_v56 = vpop.permute.xlu1 %6936 }
 0x566   : > { %v6976_v32 = vsel %vm6958_vm2, %v6935_v29, %v6937_v56  ;;  %v7382_v7 = vpop.permute.xlu0 %7381  ;;  %7783 = vrot.lane.b32.xlu0 %v20063_v50, %s16238_s23 }
 0x567   : > { %7747 = vrot.lane.b32.xlu1 %v20058_v43, %s16238_s23  ;;  %15122 = vmatpush3.bf16.msra.mxu1 %v6976_v32 }
 0x568   : > { %14345 = vmatmul.mubr.msk.bf16.vlgmr.msra.gmra.mrb[164].mxu0 %vm1898_vm10, %v20157_v3  ;;  %15123 = vmatprep.subr.bf16.mxu1 %v22674_v5 }
 0x569   : > { %v7384_v51 = vpop.permute.xlu1 %7383  ;;  %7546 = vmatprep.mubr.bf16.mxu0 %v22614_v6 }
 0x56a   : > { %v7380_v27 = vpop.permute.xlu0 %7379  ;;  %v6049_v40 = vpop.f32.mrb[136].mxu1  ;;  %7767 = vrot.lane.b32.xlu0 %v20081_v46, %s16238_s23  ;;  %v7440_v60 = vsel %vm3168_vm14, %v7382_v7, %v7384_v51 }
 0x56b   : > { %7785 = vrot.lane.b32.xlu1 %v20076_v0, %s16238_s23  ;;  %v7439_v10 = vsel %vm3168_vm14, %v7380_v27, %v7382_v7  ;;  %v20234_v29 = vadd.f32 %v6049_v40, %v20071_v19  ;;  %v6051_v13 = vpop.f32.mrb[137].mxu1  ;;  %7514 = vmatprep.subr.bf16.mxu0 %v7440_v60 }
 0x56c   : > { %v20237_v39 = vadd.f32 %v6051_v13, %v20079_v22  ;;  %v6053_v36 = vpop.f32.mrb[138].mxu1  ;;  %7515 = vmatpush1.bf16.msra.mxu0 %v7439_v10 }
 0x56d   : > { %v6957_v35 = vpop.permute.xlu1 %6956  ;;  %v6054_v30 = vpop.f32.mrb[139].mxu1 }
 0x56e   : > { %v6985_v31 = vsel %vm6958_vm2, %v6955_v54, %v6957_v35  ;;  %v7402_v53 = vpop.permute.xlu0 %7401  ;;  %8084 = vrot.lane.b32.xlu0 %v19891_v28, %s16215_s17  ;;  %vm8140_vm2 = vcmask 457728  }
 0x56f   : > { %8082 = vrot.lane.b32.xlu1 %v19883_v52, %s16215_s17  ;;  %v7032_v19 = vsel %vm1616_vm1, %v6985_v31, 0 }
 0x570   : > { %15124 = vmatpush3.bf16.msra.mxu1 %v7032_v19 }
 0x571   : > { %v7404_v62 = vpop.permute.xlu1 %7403 }
 0x572   : > { %v7400_v22 = vpop.permute.xlu0 %7399  ;;  %7787 = vrot.lane.b32.xlu0 %v20098_v33, %s16238_s23  ;;  %v7449_v45 = vsel %vm3168_vm14, %v7402_v53, %v7404_v62 }
 0x573   : > { %8080 = vrot.lane.b32.xlu1 %v19893_v21, %s16215_s17  ;;  %v7448_v52 = vsel %vm3168_vm14, %v7400_v22, %v7402_v53  ;;  %15126 = vmatmul.mubr.msk.bf16.vlgmr.msra.gmra.mrb[172].mxu1 %vm1898_vm10, %v20157_v3 }
 0x574   : > { %7516 = vmatprep.subr.bf16.mxu0 %v7449_v45  ;;  %7587 = vmatprep.mubr.bf16.mxu1 %v22614_v6 }
 0x575   : > { %7517 = vmatpush1.bf16.msra.mxu0 %v7448_v52  ;;  %v7386_v28 = vpop.permute.xlu1 %7385 }
 0x576   : > { %v7388_v21 = vpop.permute.xlu0 %7387  ;;  %v6090_v54 = vpop.f32.mrb[132].mxu0  ;;  %8104 = vrot.lane.b32.xlu0 %v19915_v4, %s16215_s17  ;;  %v7441_v23 = vsel %vm3168_vm14, %v7384_v51, %v7386_v28 }
 0x577   : > { %8102 = vrot.lane.b32.xlu1 %v19903_v18, %s16215_s17  ;;  %v20260_v14 = vadd.f32 %v6090_v54, %v20111_v41  ;;  %v6092_v59 = vpop.f32.mrb[133].mxu0  ;;  %v7442_v3 = vsel %vm3168_vm14, %v7386_v28, %v7388_v21 }
 0x578   : > { %v20264_v56 = vadd.f32 %v6092_v59, %v20114_v47  ;;  %7555 = vmatprep.subr.bf16.mxu1 %v7442_v3  ;;  %v6094_v32 = vpop.f32.mrb[134].mxu0 }
 0x579   : > { %7556 = vmatpush1.bf16.msra.mxu1 %v7441_v23  ;;  %v7420_v18 = vpop.permute.xlu1 %7419  ;;  %v6095_v7 = vpop.f32.mrb[135].mxu0 }
 0x57a   : > { %v7422_v4 = vpop.permute.xlu0 %7421  ;;  %8086 = vrot.lane.b32.xlu0 %v19926_v9, %s16215_s17 }
 0x57b   : > { %8100 = vrot.lane.b32.xlu1 %v19920_v58, %s16215_s17  ;;  %v7457_v41 = vsel %vm3168_vm14, %v7420_v18, %v7422_v4 }
 0x57c   : > { %v7488_v58 = vsel %vm1616_vm1, %v7457_v41, 0 }
 0x57d   : > { %v7424_v51 = vpop.permute.xlu1 %7423 }
 0x57e   : > { %v7406_v47 = vpop.permute.xlu0 %7405  ;;  %8120 = vrot.lane.b32.xlu0 %v19938_v15, %s16215_s17  ;;  %v7458_v27 = vsel %vm3168_vm14, %v7422_v4, %v7424_v51 }
 0x57f   : > { %8088 = vrot.lane.b32.xlu1 %v19929_v2, %s16215_s17  ;;  %v6131_v40 = vpop.f32.mrb[140].mxu1  ;;  %14377 = vmatprep.subr.msk.bf16.mxu0 %vm1616_vm1, %v7458_v27 }
 0x580   : > { %v20279_v60 = vadd.f32 %v6131_v40, %v20135_v61  ;;  %v6133_v9 = vpop.f32.mrb[141].mxu1  ;;  %7519 = vmatpush1.bf16.msra.mxu0 %v7488_v58  ;;  %v7450_v61 = vsel %vm3168_vm14, %v7404_v62, %v7406_v47 }
 0x581   : > { %v20282_v10 = vadd.f32 %v6133_v9, %v20139_v49  ;;  %v6135_v2 = vpop.f32.mrb[142].mxu1  ;;  %v7408_v13 = vpop.permute.xlu1 %7407 }
 0x582   : > { %v6136_v36 = vpop.f32.mrb[143].mxu1  ;;  %v7390_v35 = vpop.permute.xlu0 %7389  ;;  %8124 = vrot.lane.b32.xlu0 %v19954_v17, %s16215_s17  ;;  %v7451_v30 = vsel %vm3168_vm14, %v7406_v47, %v7408_v13 }
 0x583   : > { %8122 = vrot.lane.b32.xlu1 %v19943_v63, %s16215_s17  ;;  %7557 = vmatprep.subr.bf16.mxu1 %v7451_v30  ;;  %v7443_v22 = vsel %vm3168_vm14, %v7388_v21, %v7390_v35 }
 0x584   : > { %7558 = vmatpush1.bf16.msra.mxu1 %v7450_v61 }
 0x585   : > { %v7392_v31 = vpop.permute.xlu1 %7391 }
 0x586   : > { %v20292_v49 = vpop.permute.xlu0 %7272  ;;  %8108 = vrot.lane.b32.xlu0 %v19968_v57, %s16215_s17  ;;  %v7444_v53 = vsel %vm3168_vm14, %v7390_v35, %v7392_v31 }
 0x587   : > { %8106 = vrot.lane.b32.xlu1 %v19956_v16, %s16215_s17  ;;  %v6172_v19 = vpop.f32.mrb[136].mxu0  ;;  %14378 = vmatmul.mubr.msk.bf16.vlgmr.msra.gmra.mrb[168].mxu0 %vm1898_vm10, %v20292_v49  ;;  %v16051_v16 = vld [vmem:[%s22429_s3 + $0x10] sm:$0xff] }
 0x588   : > { %7596 = vmatprep.subr.bf16.mxu0 %v7444_v53  ;;  %v20301_v62 = vadd.f32 %v6172_v19, %v20154_v20  ;;  %v15097_v45 = vpop.f32.mrb[137].mxu0  ;;  %7628 = vmatprep.mubr.bf16.mxu0 %v22614_v6  ;;  %v20307_v57 = vcombine.high %v16051_v16, %v16051_v16 }
 0x589   : > { %7597 = vmatpush1.bf16.msra.mxu0 %v7443_v22  ;;  %v6175_v52 = vpop.f32.mrb[138].mxu0  ;;  %v7426_v28 = vpop.permute.xlu1 %7425 }
 0x58a   : > { %v7459_v21 = vsel %vm3168_vm14, %v7424_v51, %v7426_v28  ;;  %v15098_v54 = vpop.f32.mrb[139].mxu0  ;;  %v7428_v20 = vpop.permute.xlu0 %7427  ;;  %8092 = vrot.lane.b32.xlu0 %v19983_v38, %s16215_s17 }
 0x58b   : > { %8090 = vrot.lane.b32.xlu1 %v19973_v12, %s16215_s17  ;;  %v7460_v23 = vsel %vm3168_vm14, %v7426_v28, %v7428_v20  ;;  %v7494_v59 = vsel %vm1616_vm1, %v7459_v21, 0 }
 0x58c   : > { %14379 = vmatprep.subr.msk.bf16.mxu1 %vm1616_vm1, %v7460_v23 }
 0x58d   : > { %7560 = vmatpush1.bf16.msra.mxu1 %v7494_v59  ;;  %v7410_v3 = vpop.permute.xlu1 %7409 }
 0x58e   : > { %v7412_v32 = vpop.permute.xlu0 %7411  ;;  %8126 = vrot.lane.b32.xlu0 %v19992_v44, %s16215_s17  ;;  %v7452_v12 = vsel %vm3168_vm14, %v7408_v13, %v7410_v3 }
 0x58f   : > { %8078 = vrot.lane.b32.xlu1 %v20307_v57, %s16211_s13  ;;  %v7453_v18 = vsel %vm3168_vm14, %v7410_v3, %v7412_v32  ;;  %s16239_s13 = smov 44  }
 0x590   : > { %14380 = vmatmul.mubr.msk.bf16.vlgmr.msra.gmra.mrb[176].mxu1 %vm1898_vm10, %v20292_v49  ;;  %7598 = vmatprep.subr.bf16.mxu0 %v7453_v18 }
 0x591   : > { %7599 = vmatpush1.bf16.msra.mxu0 %v7452_v12  ;;  %v7394_v7 = vpop.permute.xlu1 %7393  ;;  %7669 = vmatprep.mubr.bf16.mxu1 %v22614_v6 }
 0x592   : > { %v7396_v4 = vpop.permute.xlu0 %7395  ;;  %8110 = vrot.lane.b32.xlu0 %v20005_v25, %s16215_s17  ;;  %v7445_v41 = vsel %vm3168_vm14, %v7392_v31, %v7394_v7 }
 0x593   : > { %8128 = vrot.lane.b32.xlu1 %v19996_v11, %s16215_s17  ;;  %v7446_v51 = vsel %vm3168_vm14, %v7394_v7, %v7396_v4 }
 0x594   : > { %7637 = vmatprep.subr.bf16.mxu1 %v7446_v51 }
 0x595   : > { %7638 = vmatpush1.bf16.msra.mxu1 %v7445_v41  ;;  %v7430_v47 = vpop.permute.xlu1 %7429 }
 0x596   : > { %v7461_v27 = vsel %vm3168_vm14, %v7428_v20, %v7430_v47  ;;  %v7432_v40 = vpop.permute.xlu0 %7431  ;;  %8094 = vrot.lane.b32.xlu0 %v20016_v48, %s16215_s17 }
 0x597   : > { %8112 = vrot.lane.b32.xlu1 %v20007_v8, %s16215_s17  ;;  %v7462_v58 = vsel %vm3168_vm14, %v7430_v47, %v7432_v40  ;;  %v7500_v9 = vsel %vm1616_vm1, %v7461_v27, 0 }
 0x598   : > { %14381 = vmatprep.subr.msk.bf16.mxu0 %vm1616_vm1, %v7462_v58 }
 0x599   : > { %7601 = vmatpush1.bf16.msra.mxu0 %v7500_v9  ;;  %v7414_v2 = vpop.permute.xlu1 %7413 }
 0x59a   : > { %v7416_v13 = vpop.permute.xlu0 %7415  ;;  %8130 = vrot.lane.b32.xlu0 %v20028_v1, %s16215_s17  ;;  %v7454_v36 = vsel %vm3168_vm14, %v7412_v32, %v7414_v2  ;;  %15129 = vmatprep.subr.bf16.mxu0 %v22674_v5 }
 0x59b   : > { %8096 = vrot.lane.b32.xlu1 %v20019_v37, %s16215_s17  ;;  %v7455_v35 = vsel %vm3168_vm14, %v7414_v2, %v7416_v13 }
 0x59c   : > { %14382 = vmatmul.mubr.msk.bf16.vlgmr.msra.gmra.mrb[172].mxu0 %vm1898_vm10, %v20292_v49  ;;  %7639 = vmatprep.subr.bf16.mxu1 %v7455_v35  ;;  %v20406_v35 = vld [vmem:[#allocation6 + $0xc] ss:$56 sps:$4 sm:$0xff]  }
 0x59d   : > { %7640 = vmatpush1.bf16.msra.mxu1 %v7454_v36  ;;  %v7398_v30 = vpop.permute.xlu1 %7397  ;;  %15135 = vmatprep.mubr.msk.bf16.mxu0 %vm16227_vm11, %v22674_v5 }
 0x59e   : > { %v7447_v61 = vsel %vm3168_vm14, %v7396_v4, %v7398_v30  ;;  %v7434_v31 = vpop.permute.xlu0 %7433  ;;  %8114 = vrot.lane.b32.xlu0 %v20041_v42, %s16215_s17  ;;  %v20384_v4 = vld [vmem:[#allocation6 + $0x10] ss:$56 sps:$4 sm:$0xff]  }
 0x59f   : > { %8132 = vrot.lane.b32.xlu1 %v20032_v26, %s16215_s17  ;;  %15130 = vmatpush3.bf16.msra.mxu0 %v7447_v61  ;;  %v7463_v53 = vsel %vm3168_vm14, %v7432_v40, %v7434_v31  ;;  %v20410_v61 = vld [vmem:[#allocation6 + $0x80] ss:$56 sps:$4 sm:$0xff]  }
 0x5a0   : > { %15131 = vmatprep.subr.bf16.mxu0 %v22674_v5  ;;  %v7506_v54 = vsel %vm1616_vm1, %v7463_v53, 0 }
 0x5a1   : > { %v7436_v19 = vpop.permute.xlu1 %7435 }
 0x5a2   : > { %v7418_v22 = vpop.permute.xlu0 %7417  ;;  %v6366_v45 = vpop.f32.mrb[144].mxu1  ;;  %8098 = vrot.lane.b32.xlu0 %v20058_v43, %s16215_s17  ;;  %v7464_v16 = vsel %vm3168_vm14, %v7434_v31, %v7436_v19 }
 0x5a3   : > { %8116 = vrot.lane.b32.xlu1 %v20045_v55, %s16215_s17  ;;  %v7456_v52 = vsel %vm3168_vm14, %v7416_v13, %v7418_v22  ;;  %v20365_v28 = vadd.f32 %v6366_v45, %v20206_v24  ;;  %v6368_v21 = vpop.f32.mrb[145].mxu1  ;;  %14383 = vmatprep.subr.msk.bf16.mxu1 %vm1616_vm1, %v7464_v16  ;;  %v20396_v13 = vld [vmem:[#allocation6 + $0x14] ss:$56 sps:$4 sm:$0xff]  }
 0x5a4   : > { %v20370_v20 = vadd.f32 %v6368_v21, %v20213_v34  ;;  %15132 = vmatpush3.bf16.msra.mxu0 %v7456_v52  ;;  %v6370_v23 = vpop.f32.mrb[146].mxu1  ;;  %7642 = vmatpush1.bf16.msra.mxu1 %v7506_v54  ;;  %v20421_v52 = vld [vmem:[#allocation6 + $0x18] ss:$56 sps:$4 sm:$0xff]  }
 0x5a5   : > { %v7732_v59 = vpop.permute.xlu1 %7731  ;;  %v6371_v3 = vpop.f32.mrb[147].mxu1  ;;  %15133 = vmatprep.subr.bf16.mxu0 %v22674_v5 }
 0x5a6   : > { %v7734_v24 = vpop.permute.xlu0 %7733  ;;  %8136 = vrot.lane.b32.xlu0 %v20076_v0, %s16215_s17 }
 0x5a7   : > { %8134 = vrot.lane.b32.xlu1 %v20063_v50, %s16215_s17  ;;  %14384 = vmatmul.mubr.msk.bf16.vlgmr.msra.gmra.mrb[180].mxu1 %vm1898_vm10, %v20292_v49  ;;  %v7791_v34 = vsel %vm7789_vm9, %v7732_v59, %v7734_v24 }
 0x5a8   : > { %7865 = vmatprep.subr.bf16.mxu1 %v7791_v34  ;;  %7897 = vmatprep.mubr.bf16.mxu1 %v22614_v6  ;;  %v20431_v34 = vld [vmem:[#allocation6 + $0x1c] ss:$56 sps:$4 sm:$0xff]  }
 0x5a9   : > { %v7438_v32 = vpop.permute.xlu1 %7437 }
 0x5aa   : > { %v7465_v12 = vsel %vm3168_vm14, %v7436_v19, %v7438_v32  ;;  %v7730_v18 = vpop.permute.xlu0 %7729  ;;  %v6407_v7 = vpop.f32.mrb[140].mxu0  ;;  %8433 = vrot.lane.b32.xlu0 %v20384_v4, %s16239_s13  ;;  %v20416_v19 = vld [vmem:[#allocation6 + $0x84] ss:$56 sps:$4 sm:$0xff]  }
 0x5ab   : > { %8118 = vrot.lane.b32.xlu1 %v20081_v46, %s16215_s17  ;;  %v7512_v41 = vsel %vm1616_vm1, %v7465_v12, 0  ;;  %v7790_v51 = vsel %vm7789_vm9, %v7730_v18, %v7732_v59  ;;  %v20391_v47 = vadd.f32 %v6407_v7, %v20234_v29  ;;  %v6409_v27 = vpop.f32.mrb[141].mxu0  ;;  %v20436_v18 = vld [vmem:[#allocation6 + $0x7c] ss:$56 sps:$4 sm:$0xff]  }
 0x5ac   : > { %v20394_v40 = vadd.f32 %v6409_v27, %v20237_v39  ;;  %7866 = vmatpush1.bf16.msra.mxu1 %v7790_v51  ;;  %v6411_v58 = vpop.f32.mrb[142].mxu0  ;;  %15134 = vmatpush3.bf16.msra.mxu0 %v7512_v41 }
 0x5ad   : > { %v7752_v9 = vpop.permute.xlu1 %7751  ;;  %v6412_v2 = vpop.f32.mrb[143].mxu0 }
 0x5ae   : > { %v7754_v36 = vpop.permute.xlu0 %7753  ;;  %8138 = vrot.lane.b32.xlu0 %v20098_v33, %s16215_s17 }
 0x5af   : > { %8435 = vrot.lane.b32.xlu1 %v20396_v13, %s16239_s13  ;;  %15136 = vmatmul.mubr.msk.bf16.vlgmr.msra.gmra.mrb[176].mxu0 %vm1898_vm10, %v20292_v49  ;;  %v7800_v29 = vsel %vm7789_vm9, %v7752_v9, %v7754_v36 }
 0x5b0   : > { %7867 = vmatprep.subr.bf16.mxu1 %v7800_v29  ;;  %7938 = vmatprep.mubr.bf16.mxu0 %v22614_v6 }
 0x5b1   : > { %v7736_v39 = vpop.permute.xlu1 %7735 }
 0x5b2   : > { %v7738_v30 = vpop.permute.xlu0 %7737  ;;  %8453 = vrot.lane.b32.xlu0 %v20410_v61, %s16239_s13  ;;  %v7792_v31 = vsel %vm7789_vm9, %v7734_v24, %v7736_v39 }
 0x5b3   : > { %8431 = vrot.lane.b32.xlu1 %v20406_v35, %s16239_s13  ;;  %v7793_v49 = vsel %vm7789_vm9, %v7736_v39, %v7738_v30 }
 0x5b4   : > { %7906 = vmatprep.subr.bf16.mxu0 %v7793_v49 }
 0x5b5   : > { %7907 = vmatpush1.bf16.msra.mxu0 %v7792_v31  ;;  %v7750_v53 = vpop.permute.xlu1 %7749 }
 0x5b6   : > { %v7799_v22 = vsel %vm7789_vm9, %v7750_v53, %v7752_v9  ;;  %v7770_v45 = vpop.permute.xlu0 %7769  ;;  %v6448_v16 = vpop.f32.mrb[148].mxu1  ;;  %8437 = vrot.lane.b32.xlu0 %v20421_v52, %s16239_s13  ;;  %v20459_v53 = vld [vmem:[#allocation6 + $0x88] ss:$56 sps:$4 sm:$0xff]  }
 0x5b7   : > { %8455 = vrot.lane.b32.xlu1 %v20416_v19, %s16239_s13  ;;  %v20426_v21 = vadd.f32 %v6448_v16, %v20260_v14  ;;  %v6450_v54 = vpop.f32.mrb[149].mxu1  ;;  %7868 = vmatpush1.bf16.msra.mxu1 %v7799_v22 }
 0x5b8   : > { %v20429_v23 = vadd.f32 %v6450_v54, %v20264_v56  ;;  %v6452_v59 = vpop.f32.mrb[150].mxu1 }
 0x5b9   : > { %v7772_v3 = vpop.permute.xlu1 %7771  ;;  %v6453_v24 = vpop.f32.mrb[151].mxu1  ;;  %v20471_v59 = vld [vmem:[#allocation6 + $0x20] ss:$56 sps:$4 sm:$0xff]  }
 0x5ba   : > { %v7808_v32 = vsel %vm7789_vm9, %v7770_v45, %v7772_v3  ;;  %v7774_v12 = vpop.permute.xlu0 %7773  ;;  %8451 = vrot.lane.b32.xlu0 %v20436_v18, %s16239_s13  ;;  %v20466_v45 = vld [vmem:[#allocation6 + $0x8c] ss:$56 sps:$4 sm:$0xff]  }
 0x5bb   : > { %8439 = vrot.lane.b32.xlu1 %v20431_v34, %s16239_s13  ;;  %v7809_v14 = vsel %vm7789_vm9, %v7772_v3, %v7774_v12  ;;  %v7839_v56 = vsel %vm1616_vm1, %v7808_v32, 0 }
 0x5bc   : > { %14387 = vmatprep.subr.msk.bf16.mxu1 %vm1616_vm1, %v7809_v14 }
 0x5bd   : > { %7870 = vmatpush1.bf16.msra.mxu1 %v7839_v56  ;;  %v7756_v7 = vpop.permute.xlu1 %7755 }
 0x5be   : > { %v7758_v41 = vpop.permute.xlu0 %7757  ;;  %8473 = vrot.lane.b32.xlu0 %v19943_v63, %s16239_s13  ;;  %v7801_v51 = vsel %vm7789_vm9, %v7754_v36, %v7756_v7 }
 0x5bf   : > { %8471 = vrot.lane.b32.xlu1 %v19938_v15, %s16239_s13  ;;  %v6489_v27 = vpop.f32.mrb[144].mxu0  ;;  %v7802_v58 = vsel %vm7789_vm9, %v7756_v7, %v7758_v41 }
 0x5c0   : > { %v20450_v9 = vadd.f32 %v6489_v27, %v20279_v60  ;;  %v6491_v2 = vpop.f32.mrb[145].mxu0  ;;  %14388 = vmatmul.mubr.msk.bf16.vlgmr.msra.gmra.mrb[184].mxu1 %vm1898_vm10, %v20307_v57  ;;  %7908 = vmatprep.subr.bf16.mxu0 %v7802_v58 }
 0x5c1   : > { %v20455_v29 = vadd.f32 %v6491_v2, %v20282_v10  ;;  %v6493_v39 = vpop.f32.mrb[146].mxu0  ;;  %7909 = vmatpush1.bf16.msra.mxu0 %v7801_v51  ;;  %v7740_v31 = vpop.permute.xlu1 %7739  ;;  %7979 = vmatprep.mubr.bf16.mxu1 %v22614_v6 }
 0x5c2   : > { %v6494_v36 = vpop.f32.mrb[147].mxu0  ;;  %v7742_v49 = vpop.permute.xlu0 %7741  ;;  %8457 = vrot.lane.b32.xlu0 %v20459_v53, %s16239_s13  ;;  %v7794_v60 = vsel %vm7789_vm9, %v7738_v30, %v7740_v31 }
 0x5c3   : > { %8475 = vrot.lane.b32.xlu1 %v19954_v17, %s16239_s13  ;;  %v7795_v10 = vsel %vm7789_vm9, %v7740_v31, %v7742_v49 }
 0x5c4   : > { %7947 = vmatprep.subr.bf16.mxu1 %v7795_v10 }
 0x5c5   : > { %7948 = vmatpush1.bf16.msra.mxu1 %v7794_v60  ;;  %v7776_v22 = vpop.permute.xlu1 %7775 }
 0x5c6   : > { %v7810_v16 = vsel %vm7789_vm9, %v7774_v12, %v7776_v22  ;;  %v7778_v54 = vpop.permute.xlu0 %7777  ;;  %8441 = vrot.lane.b32.xlu0 %v20471_v59, %s16239_s13 }
 0x5c7   : > { %8459 = vrot.lane.b32.xlu1 %v20466_v45, %s16239_s13  ;;  %v7811_v30 = vsel %vm7789_vm9, %v7776_v22, %v7778_v54  ;;  %v7845_v3 = vsel %vm1616_vm1, %v7810_v16, 0 }
 0x5c8   : > { %14389 = vmatprep.subr.msk.bf16.mxu0 %vm1616_vm1, %v7811_v30 }
 0x5c9   : > { %7911 = vmatpush1.bf16.msra.mxu0 %v7845_v3  ;;  %v7760_v24 = vpop.permute.xlu1 %7759 }
 0x5ca   : > { %v7762_v32 = vpop.permute.xlu0 %7761  ;;  %v6530_v14 = vpop.f32.mrb[152].mxu1  ;;  %8477 = vrot.lane.b32.xlu0 %v19992_v44, %s16239_s13  ;;  %v7803_v12 = vsel %vm7789_vm9, %v7758_v41, %v7760_v24 }
 0x5cb   : > { %8443 = vrot.lane.b32.xlu1 %v19983_v38, %s16239_s13  ;;  %v20484_v56 = vadd.f32 %v6530_v14, %v20301_v62  ;;  %v15107_v7 = vpop.f32.mrb[153].mxu1  ;;  %v7804_v51 = vsel %vm7789_vm9, %v7760_v24, %v7762_v32 }
 0x5cc   : > { %14390 = vmatmul.mubr.msk.bf16.vlgmr.msra.gmra.mrb[180].mxu0 %vm1898_vm10, %v20307_v57  ;;  %7949 = vmatprep.subr.bf16.mxu1 %v7804_v51  ;;  %v6533_v27 = vpop.f32.mrb[154].mxu1 }
 0x5cd   : > { %7950 = vmatpush1.bf16.msra.mxu1 %v7803_v12  ;;  %v7744_v38 = vpop.permute.xlu1 %7743  ;;  %v15108_v58 = vpop.f32.mrb[155].mxu1  ;;  %8020 = vmatprep.mubr.bf16.mxu0 %v22614_v6 }
 0x5ce   : > { %v7746_v2 = vpop.permute.xlu0 %7745  ;;  %8429 = vrot.lane.b32.xlu0 %v20307_v57, %s16212_s14  ;;  %v7796_v62 = vsel %vm7789_vm9, %v7742_v49, %v7744_v38 }
 0x5cf   : > { %8479 = vrot.lane.b32.xlu1 %v19996_v11, %s16239_s13  ;;  %v7797_v41 = vsel %vm7789_vm9, %v7744_v38, %v7746_v2 }
 0x5d0   : > { %7988 = vmatprep.subr.bf16.mxu0 %v7797_v41 }
 0x5d1   : > { %7989 = vmatpush1.bf16.msra.mxu0 %v7796_v62  ;;  %v7780_v39 = vpop.permute.xlu1 %7779 }
 0x5d2   : > { %v7812_v31 = vsel %vm7789_vm9, %v7778_v54, %v7780_v39  ;;  %v7782_v36 = vpop.permute.xlu0 %7781  ;;  %8463 = vrot.lane.b32.xlu0 %v20007_v8, %s16239_s13 }
 0x5d3   : > { %8461 = vrot.lane.b32.xlu1 %v20005_v25, %s16239_s13  ;;  %v7813_v60 = vsel %vm7789_vm9, %v7780_v39, %v7782_v36  ;;  %v7851_v49 = vsel %vm1616_vm1, %v7812_v31, 0 }
 0x5d4   : > { %14391 = vmatprep.subr.msk.bf16.mxu1 %vm1616_vm1, %v7813_v60 }
 0x5d5   : > { %7952 = vmatpush1.bf16.msra.mxu1 %v7851_v49  ;;  %v7764_v10 = vpop.permute.xlu1 %7763 }
 0x5d6   : > { %v7766_v22 = vpop.permute.xlu0 %7765  ;;  %8447 = vrot.lane.b32.xlu0 %v20019_v37, %s16239_s13  ;;  %v7805_v25 = vsel %vm7789_vm9, %v7762_v32, %v7764_v10  ;;  %15139 = vmatprep.subr.bf16.mxu1 %v22674_v5 }
 0x5d7   : > { %8445 = vrot.lane.b32.xlu1 %v20016_v48, %s16239_s13  ;;  %v7806_v8 = vsel %vm7789_vm9, %v7764_v10, %v7766_v22 }
 0x5d8   : > { %14392 = vmatmul.mubr.msk.bf16.vlgmr.msra.gmra.mrb[188].mxu1 %vm1898_vm10, %v20307_v57  ;;  %7990 = vmatprep.subr.bf16.mxu0 %v7806_v8 }
 0x5d9   : > { %7991 = vmatpush1.bf16.msra.mxu0 %v7805_v25  ;;  %v7748_v16 = vpop.permute.xlu1 %7747  ;;  %15145 = vmatprep.mubr.msk.bf16.mxu1 %vm16227_vm11, %v22674_v5 }
 0x5da   : > { %v7798_v48 = vsel %vm7789_vm9, %v7746_v2, %v7748_v16  ;;  %v7784_v54 = vpop.permute.xlu0 %7783  ;;  %8483 = vrot.lane.b32.xlu0 %v20032_v26, %s16239_s13 }
 0x5db   : > { %8481 = vrot.lane.b32.xlu1 %v20028_v1, %s16239_s13  ;;  %15140 = vmatpush3.bf16.msra.mxu1 %v7798_v48  ;;  %v7814_v37 = vsel %vm7789_vm9, %v7782_v36, %v7784_v54 }
 0x5dc   : > { %15141 = vmatprep.subr.bf16.mxu1 %v22674_v5  ;;  %v7857_v51 = vsel %vm1616_vm1, %v7814_v37, 0 }
 0x5dd   : > { %v7786_v30 = vpop.permute.xlu1 %7785 }
 0x5de   : > { %v6717_v3 = vpop.f32.mrb[148].mxu0  ;;  %v7768_v24 = vpop.permute.xlu0 %7767  ;;  %8467 = vrot.lane.b32.xlu0 %v20045_v55, %s16239_s13  ;;  %v7815_v32 = vsel %vm7789_vm9, %v7784_v54, %v7786_v30 }
 0x5df   : > { %8465 = vrot.lane.b32.xlu1 %v20041_v42, %s16239_s13  ;;  %v20528_v14 = vadd.f32 %v6717_v3, %v20365_v28  ;;  %v7807_v12 = vsel %vm7789_vm9, %v7766_v22, %v7768_v24  ;;  %v6719_v7 = vpop.f32.mrb[149].mxu0  ;;  %14393 = vmatprep.subr.msk.bf16.mxu0 %vm1616_vm1, %v7815_v32 }
 0x5e0   : > { %v20534_v27 = vadd.f32 %v6719_v7, %v20370_v20  ;;  %v6721_v42 = vpop.f32.mrb[150].mxu0  ;;  %15142 = vmatpush3.bf16.msra.mxu1 %v7807_v12  ;;  %7993 = vmatpush1.bf16.msra.mxu0 %v7857_v51 }
 0x5e1   : > { %v6722_v55 = vpop.f32.mrb[151].mxu0  ;;  %v8083_v38 = vpop.permute.xlu1 %8082  ;;  %15143 = vmatprep.subr.bf16.mxu1 %v22674_v5 }
 0x5e2   : > { %v8085_v28 = vpop.permute.xlu0 %8084  ;;  %8485 = vrot.lane.b32.xlu0 %v20063_v50, %s16239_s13 }
 0x5e3   : > { %8449 = vrot.lane.b32.xlu1 %v20058_v43, %s16239_s13  ;;  %14394 = vmatmul.mubr.msk.bf16.vlgmr.msra.gmra.mrb[184].mxu0 %vm1898_vm10, %v20307_v57  ;;  %v8142_v20 = vsel %vm8140_vm2, %v8083_v38, %v8085_v28 }
 0x5e4   : > { %8216 = vmatprep.subr.bf16.mxu0 %v8142_v20  ;;  %8248 = vmatprep.mubr.bf16.mxu0 %v22614_v6 }
 0x5e5   : > { %v8081_v58 = vpop.permute.xlu1 %8080 }
 0x5e6   : > { %v8141_v43 = vsel %vm8140_vm2, %v8081_v58, %v8083_v38  ;;  %v7788_v2 = vpop.permute.xlu0 %7787  ;;  %8469 = vrot.lane.b32.xlu0 %v20081_v46, %s16239_s13 }
 0x5e7   : > { %8487 = vrot.lane.b32.xlu1 %v20076_v0, %s16239_s13  ;;  %v7816_v62 = vsel %vm7789_vm9, %v7786_v30, %v7788_v2  ;;  %v6758_v41 = vpop.f32.mrb[156].mxu1  ;;  %8217 = vmatpush1.bf16.msra.mxu0 %v8141_v43  ;;  %vm8491_vm9 = vcmask 359424  }
 0x5e8   : > { %v7863_v39 = vsel %vm1616_vm1, %v7816_v62, 0  ;;  %v20553_v31 = vadd.f32 %v6758_v41, %v20391_v47  ;;  %v6760_v36 = vpop.f32.mrb[157].mxu1  ;;  %v16063_v41 = vld [vmem:[#allocation6 + $0x24] ss:$56 sps:$4 sm:$0xff]  }
 0x5e9   : > { %v20556_v60 = vadd.f32 %v6760_v36, %v20394_v40  ;;  %v6762_v49 = vpop.f32.mrb[158].mxu1  ;;  %15144 = vmatpush3.bf16.msra.mxu1 %v7863_v39  ;;  %v8103_v10 = vpop.permute.xlu1 %8102 }
 0x5ea   : > { %v6763_v46 = vpop.f32.mrb[159].mxu1  ;;  %v8105_v22 = vpop.permute.xlu0 %8104  ;;  %8792 = vrot.lane.b32.xlu0 %v20396_v13, %s16234_s6 }
 0x5eb   : > { %8790 = vrot.lane.b32.xlu1 %v20384_v4, %s16234_s6  ;;  %v8151_v25 = vsel %vm8140_vm2, %v8103_v10, %v8105_v22 }
 0x5ec   : > { %15146 = vmatmul.mubr.msk.bf16.vlgmr.msra.gmra.mrb[192].mxu1 %vm1898_vm10, %v20307_v57  ;;  %8218 = vmatprep.subr.bf16.mxu0 %v8151_v25 }
 0x5ed   : > { %v8101_v47 = vpop.permute.xlu1 %8100  ;;  %8289 = vmatprep.mubr.bf16.mxu1 %v22614_v6 }
 0x5ee   : > { %v8150_v40 = vsel %vm8140_vm2, %v8101_v47, %v8103_v10  ;;  %v8087_v4 = vpop.permute.xlu0 %8086  ;;  %8489 = vrot.lane.b32.xlu0 %v20098_v33, %s16239_s13 }
 0x5ef   : > { %8788 = vrot.lane.b32.xlu1 %v20406_v35, %s16234_s6  ;;  %8219 = vmatpush1.bf16.msra.mxu0 %v8150_v40  ;;  %v8143_v48 = vsel %vm8140_vm2, %v8085_v28, %v8087_v4 }
 0x5f1   : > { %v8089_v13 = vpop.permute.xlu1 %8088 }
 0x5f2   : > { %v8121_v8 = vpop.permute.xlu0 %8120  ;;  %8812 = vrot.lane.b32.xlu0 %v20416_v19, %s16234_s6  ;;  %v8144_v16 = vsel %vm8140_vm2, %v8087_v4, %v8089_v13 }
 0x5f3   : > { %8810 = vrot.lane.b32.xlu1 %v20410_v61, %s16234_s6  ;;  %v6799_v35 = vpop.f32.mrb[152].mxu0  ;;  %8257 = vmatprep.subr.bf16.mxu1 %v8144_v16 }
 0x5f4   : > { %v20578_v54 = vadd.f32 %v6799_v35, %v20426_v21  ;;  %v6801_v37 = vpop.f32.mrb[153].mxu0  ;;  %8258 = vmatpush1.bf16.msra.mxu1 %v8143_v48  ;;  %v16064_v35 = vld [vmem:[#allocation6 + $0x90] ss:$56 sps:$4 sm:$0xff]  }
 0x5f5   : > { %v20581_v30 = vadd.f32 %v6801_v37, %v20429_v23  ;;  %v6803_v3 = vpop.f32.mrb[154].mxu0  ;;  %v8123_v61 = vpop.permute.xlu1 %8122  ;;  %v16065_v37 = vld [vmem:[#allocation6 + $0x94] ss:$56 sps:$4 sm:$0xff]  }
 0x5f6   : > { %v8159_v19 = vsel %vm8140_vm2, %v8121_v8, %v8123_v61  ;;  %v6804_v24 = vpop.f32.mrb[155].mxu0  ;;  %v8125_v32 = vpop.permute.xlu0 %8124  ;;  %8794 = vrot.lane.b32.xlu0 %v20421_v52, %s16234_s6 }
 0x5f7   : > { %8808 = vrot.lane.b32.xlu1 %v20436_v18, %s16234_s6  ;;  %v8160_v21 = vsel %vm8140_vm2, %v8123_v61, %v8125_v32  ;;  %v8190_v12 = vsel %vm1616_vm1, %v8159_v19, 0  ;;  %v16066_v61 = vld [vmem:[#allocation6 + $0x28] ss:$56 sps:$4 sm:$0xff]   ;;  %v16067_v24 = vld [vmem:[#allocation6 + $0x2c] ss:$56 sps:$4 sm:$0xff]  }
 0x5f8   : > { %14396 = vmatprep.subr.msk.bf16.mxu0 %vm1616_vm1, %v8160_v21 }
 0x5f9   : > { %8221 = vmatpush1.bf16.msra.mxu0 %v8190_v12  ;;  %v8107_v23 = vpop.permute.xlu1 %8106 }
 0x5fa   : > { %v8109_v7 = vpop.permute.xlu0 %8108  ;;  %8828 = vrot.lane.b32.xlu0 %v19938_v15, %s16234_s6  ;;  %v8152_v18 = vsel %vm8140_vm2, %v8105_v22, %v8107_v23 }
 0x5fb   : > { %8796 = vrot.lane.b32.xlu1 %v20431_v34, %s16234_s6  ;;  %v8153_v51 = vsel %vm8140_vm2, %v8107_v23, %v8109_v7 }
 0x5fc   : > { %8259 = vmatprep.subr.bf16.mxu1 %v8153_v51 }
 0x5fd   : > { %8260 = vmatpush1.bf16.msra.mxu1 %v8152_v18  ;;  %v8091_v52 = vpop.permute.xlu1 %8090 }
 0x5fe   : > { %v8093_v42 = vpop.permute.xlu0 %8092  ;;  %v6840_v55 = vpop.f32.mrb[160].mxu1  ;;  %8832 = vrot.lane.b32.xlu0 %v19954_v17, %s16234_s6  ;;  %v8145_v17 = vsel %vm8140_vm2, %v8089_v13, %v8091_v52 }
 0x5ff   : > { %8830 = vrot.lane.b32.xlu1 %v19943_v63, %s16234_s6  ;;  %v20602_v34 = vadd.f32 %v6840_v55, %v20450_v9  ;;  %v6842_v38 = vpop.f32.mrb[161].mxu1  ;;  %v8146_v15 = vsel %vm8140_vm2, %v8091_v52, %v8093_v42  ;;  %v1651_v9 = vld [vmem:[%s22429_s3 + $0x18] sm:$0xff] }
 0x600   : > { %v20606_v28 = vadd.f32 %v6842_v38, %v20455_v29  ;;  %8298 = vmatprep.subr.bf16.mxu0 %v8146_v15  ;;  %v6844_v20 = vpop.f32.mrb[162].mxu1  ;;  %v20626_v39 = vcombine.low %v1651_v9, %v1651_v9  ;;  %v16069_v15 = vld [vmem:[#allocation6 + $0x9c] ss:$56 sps:$4 sm:$0xff]  }
 0x601   : > { %v20608_v58 = vpop.permute.xlu1 %8078  ;;  %v6845_v43 = vpop.f32.mrb[163].mxu1 }
 0x602   : > { %v8127_v63 = vpop.permute.xlu0 %8126  ;;  %14397 = vmatmul.mubr.msk.bf16.vlgmr.msra.gmra.mrb[188].mxu0 %vm1898_vm10, %v20608_v58  ;;  %8816 = vrot.lane.b32.xlu0 %v20466_v45, %s16234_s6  ;;  %v16070_v43 = vld [vmem:[#allocation6 + $0x30] ss:$56 sps:$4 sm:$0xff]  }
 0x603   : > { %8814 = vrot.lane.b32.xlu1 %v20459_v53, %s16234_s6  ;;  %8299 = vmatpush1.bf16.msra.mxu0 %v8145_v17  ;;  %v8161_v29 = vsel %vm8140_vm2, %v8125_v32, %v8127_v63 }
 0x604   : > { %8330 = vmatprep.mubr.bf16.mxu0 %v22614_v6  ;;  %v8196_v10 = vsel %vm1616_vm1, %v8161_v29, 0 }
 0x605   : > { %v8129_v2 = vpop.permute.xlu1 %8128 }
 0x606   : > { %v8111_v53 = vpop.permute.xlu0 %8110  ;;  %v6881_v62 = vpop.f32.mrb[156].mxu0  ;;  %8800 = vrot.lane.b32.xlu0 %v16063_v41, %s16234_s6  ;;  %v8162_v45 = vsel %vm8140_vm2, %v8127_v63, %v8129_v2 }
 0x607   : > { %8798 = vrot.lane.b32.xlu1 %v20471_v59, %s16234_s6  ;;  %v20629_v36 = vadd.f32 %v6881_v62, %v20484_v56  ;;  %v15117_v49 = vpop.f32.mrb[157].mxu0  ;;  %14398 = vmatprep.subr.msk.bf16.mxu1 %vm1616_vm1, %v8162_v45  ;;  %v8154_v56 = vsel %vm8140_vm2, %v8109_v7, %v8111_v53 }
 0x608   : > { %v6884_v46 = vpop.f32.mrb[158].mxu0  ;;  %8262 = vmatpush1.bf16.msra.mxu1 %v8196_v10 }
 0x609   : > { %v8113_v59 = vpop.permute.xlu1 %8112  ;;  %v15118_v22 = vpop.f32.mrb[159].mxu0 }
 0x60a   : > { %v8095_v25 = vpop.permute.xlu0 %8094  ;;  %8785 = vrot.lane.b32.xlu0 %v20626_v39, %s16213_s15  ;;  %v8155_v47 = vsel %vm8140_vm2, %v8111_v53, %v8113_v59 }
 0x60b   : > { %8783 = vrot.lane.b32.xlu1 %v20307_v57, %s16213_s15  ;;  %14399 = vmatmul.mubr.msk.bf16.vlgmr.msra.gmra.mrb[196].mxu1 %vm1898_vm10, %v20608_v58  ;;  %v8147_v13 = vsel %vm8140_vm2, %v8093_v42, %v8095_v25  ;;  %s16240_s15 = smov 52  }
 0x60c   : > { %8300 = vmatprep.subr.bf16.mxu0 %v8155_v47  ;;  %8371 = vmatprep.mubr.bf16.mxu1 %v22614_v6  ;;  %v16071_v47 = vld [vmem:[#allocation6 + $0xa0] ss:$56 sps:$4 sm:$0xff]  }
 0x60d   : > { %8301 = vmatpush1.bf16.msra.mxu0 %v8154_v56  ;;  %v8097_v40 = vpop.permute.xlu1 %8096 }
 0x60e   : > { %v8131_v57 = vpop.permute.xlu0 %8130  ;;  %8836 = vrot.lane.b32.xlu0 %v19996_v11, %s16234_s6  ;;  %v8148_v4 = vsel %vm8140_vm2, %v8095_v25, %v8097_v40 }
 0x60f   : > { %8834 = vrot.lane.b32.xlu1 %v19992_v44, %s16234_s6  ;;  %8339 = vmatprep.subr.bf16.mxu1 %v8148_v4  ;;  %v8163_v8 = vsel %vm8140_vm2, %v8129_v2, %v8131_v57 }
 0x610   : > { %8340 = vmatpush1.bf16.msra.mxu1 %v8147_v13  ;;  %v8202_v11 = vsel %vm1616_vm1, %v8163_v8, 0 }
 0x611   : > { %v8133_v16 = vpop.permute.xlu1 %8132 }
 0x612   : > { %v8115_v48 = vpop.permute.xlu0 %8114  ;;  %8820 = vrot.lane.b32.xlu0 %v16065_v37, %s16234_s6  ;;  %v8164_v44 = vsel %vm8140_vm2, %v8131_v57, %v8133_v16  ;;  %v20714_v57 = vld [vmem:[#allocation6 + $0x10] ss:$56 sps:$4 sm:$0xff]  }
 0x613   : > { %8818 = vrot.lane.b32.xlu1 %v16064_v35, %s16234_s6  ;;  %14400 = vmatprep.subr.msk.bf16.mxu0 %vm1616_vm1, %v8164_v44  ;;  %v8156_v12 = vsel %vm8140_vm2, %v8113_v59, %v8115_v48  ;;  %v20726_v35 = vld [vmem:[#allocation6 + $0x84] ss:$56 sps:$4 sm:$0xff]  }
 0x614   : > { %8303 = vmatpush1.bf16.msra.mxu0 %v8202_v11 }
 0x615   : > { %v8117_v3 = vpop.permute.xlu1 %8116  ;;  %15149 = vmatprep.subr.bf16.mxu0 %v22674_v5 }
 0x616   : > { %v8099_v19 = vpop.permute.xlu0 %8098  ;;  %8804 = vrot.lane.b32.xlu0 %v16067_v24, %s16234_s6  ;;  %v8157_v32 = vsel %vm8140_vm2, %v8115_v48, %v8117_v3  ;;  %v20728_v48 = vld [vmem:[#allocation6 + $0x88] ss:$56 sps:$4 sm:$0xff]  }
 0x617   : > { %8802 = vrot.lane.b32.xlu1 %v16066_v61, %s16234_s6  ;;  %v8149_v21 = vsel %vm8140_vm2, %v8097_v40, %v8099_v19  ;;  %14401 = vmatmul.mubr.msk.bf16.vlgmr.msra.gmra.mrb[192].mxu0 %vm1898_vm10, %v20608_v58  ;;  %v20737_v61 = vld [vmem:[#allocation6 + $0x1c] ss:$56 sps:$4 sm:$0xff]  }
 0x618   : > { %8341 = vmatprep.subr.bf16.mxu1 %v8157_v32  ;;  %15150 = vmatpush3.bf16.msra.mxu0 %v8149_v21  ;;  %v20743_v21 = vld [vmem:[#allocation6 + $0x20] ss:$56 sps:$4 sm:$0xff]  }
 0x619   : > { %8342 = vmatpush1.bf16.msra.mxu1 %v8156_v12  ;;  %v8135_v23 = vpop.permute.xlu1 %8134  ;;  %15151 = vmatprep.subr.bf16.mxu0 %v22674_v5 }
 0x61a   : > { %v8165_v7 = vsel %vm8140_vm2, %v8133_v16, %v8135_v23  ;;  %v8137_v18 = vpop.permute.xlu0 %8136  ;;  %8840 = vrot.lane.b32.xlu0 %v20032_v26, %s16234_s6  ;;  %15155 = vmatprep.mubr.msk.bf16.mxu0 %vm16227_vm11, %v22674_v5 }
 0x61b   : > { %8838 = vrot.lane.b32.xlu1 %v20028_v1, %s16234_s6  ;;  %v8166_v51 = vsel %vm8140_vm2, %v8135_v23, %v8137_v18  ;;  %v8208_v52 = vsel %vm1616_vm1, %v8165_v7, 0  ;;  %v16068_v1 = vld [vmem:[#allocation6 + $0x98] ss:$56 sps:$4 sm:$0xff]  }
 0x61c   : > { %14402 = vmatprep.subr.msk.bf16.mxu1 %vm1616_vm1, %v8166_v51  ;;  %v9156_v7 = vld [vmem:[#allocation6 + $0xf0] sm:$0xff]  ;;  %v20752_v51 = vld [vmem:[#allocation6 + $0x80] ss:$56 sps:$4 sm:$0xff]  }
 0x61d   : > { %8344 = vmatpush1.bf16.msra.mxu1 %v8208_v52  ;;  %v8119_v42 = vpop.permute.xlu1 %8118  ;;  %v20754_v52 = vcombine.low %v9156_v7, %v9156_v7 }
 0x61e   : > { %v8158_v55 = vsel %vm8140_vm2, %v8117_v3, %v8119_v42  ;;  %v8434_v38 = vpop.permute.xlu0 %8433  ;;  %8824 = vrot.lane.b32.xlu0 %v16069_v15, %s16234_s6 }
 0x61f   : > { %8822 = vrot.lane.b32.xlu1 %v16068_v1, %s16234_s6  ;;  %15152 = vmatpush3.bf16.msra.mxu0 %v8158_v55  ;;  %v9157_v1 = vld [vmem:[#allocation6 + $0xf8] sm:$0xff] }
 0x620   : > { %14403 = vmatmul.mubr.msk.bf16.vlgmr.msra.gmra.mrb[200].mxu1 %vm1898_vm10, %v20608_v58  ;;  %15153 = vmatprep.subr.bf16.mxu0 %v22674_v5 }
 0x621   : > { %v8436_v26 = vpop.permute.xlu1 %8435  ;;  %v7068_v20 = vpop.f32.mrb[164].mxu1  ;;  %8599 = vmatprep.mubr.bf16.mxu1 %v22614_v6 }
 0x622   : > { %v20682_v63 = vadd.f32 %v7068_v20, %v20528_v14  ;;  %v8139_v17 = vpop.permute.xlu0 %8138  ;;  %v7070_v9 = vpop.f32.mrb[165].mxu1  ;;  %8842 = vrot.lane.b32.xlu0 %v20063_v50, %s16234_s6  ;;  %v8493_v29 = vsel %vm8491_vm9, %v8434_v38, %v8436_v26  ;;  %v20762_v20 = vcombine.high %v9156_v7, %v9156_v7  ;;  %v20822_v7 = vld [vmem:[#allocation6 + $0x94] ss:$56 sps:$4 sm:$0xff]  }
 0x623   : > { %8806 = vrot.lane.b32.xlu1 %v16070_v43, %s16234_s6  ;;  %v8167_v2 = vsel %vm8140_vm2, %v8137_v18, %v8139_v17  ;;  %v20689_v53 = vadd.f32 %v7070_v9, %v20534_v27  ;;  %v7109_v62 = vpop.f32.mrb[160].mxu0  ;;  %v7072_v41 = vpop.f32.mrb[166].mxu1  ;;  %8567 = vmatprep.subr.bf16.mxu1 %v8493_v29  ;;  %v20767_v9 = vcombine.low %v9157_v1, %v9157_v1 }
 0x624   : > { %v8214_v45 = vsel %vm1616_vm1, %v8167_v2, 0  ;;  %v20693_v14 = vadd.f32 %v7109_v62, %v20553_v31  ;;  %v7111_v49 = vpop.f32.mrb[161].mxu0  ;;  %v7073_v10 = vpop.f32.mrb[167].mxu1  ;;  %v20702_v31 = vld [vmem:[#allocation6 + $0x14] ss:$56 sps:$4 sm:$0xff]  }
 0x625   : > { %v20696_v46 = vadd.f32 %v7111_v49, %v20556_v60  ;;  %v7113_v50 = vpop.f32.mrb[162].mxu0  ;;  %15154 = vmatpush3.bf16.msra.mxu0 %v8214_v45  ;;  %v8432_v59 = vpop.permute.xlu1 %8431  ;;  %v20706_v60 = vld [vmem:[#allocation6 + $0x18] ss:$56 sps:$4 sm:$0xff]   ;;  %v20777_v49 = vld [vmem:[#allocation6 + $0x8c] ss:$56 sps:$4 sm:$0xff]  }
 0x626   : > { %v8492_v27 = vsel %vm8491_vm9, %v8432_v59, %v8434_v38  ;;  %v7114_v22 = vpop.f32.mrb[163].mxu0  ;;  %v8454_v25 = vpop.permute.xlu0 %8453  ;;  %8826 = vrot.lane.b32.xlu0 %v16071_v47, %s16234_s6  ;;  %v20780_v50 = vld [vmem:[#allocation6 + $0x90] ss:$56 sps:$4 sm:$0xff]   ;;  %v20795_v47 = vld [vmem:[#allocation6 + $0x24] ss:$56 sps:$4 sm:$0xff]  }
 0x627   : > { %8844 = vrot.lane.b32.xlu1 %v20076_v0, %s16234_s6  ;;  %8568 = vmatpush1.bf16.msra.mxu1 %v8492_v27 }
 0x628   : > { %15156 = vmatmul.mubr.msk.bf16.vlgmr.msra.gmra.mrb[196].mxu0 %vm1898_vm10, %v20608_v58 }
 0x629   : > { %v8456_v56 = vpop.permute.xlu1 %8455  ;;  %8640 = vmatprep.mubr.bf16.mxu0 %v22614_v6 }
 0x62a   : > { %v8438_v0 = vpop.permute.xlu0 %8437  ;;  %9272 = vrot.lane.b32.xlu0 %v20706_v60, %s16230_s30  ;;  %v8502_v40 = vsel %vm8491_vm9, %v8454_v25, %v8456_v56 }
 0x62b   : > { %9270 = vrot.lane.b32.xlu1 %v20702_v31, %s16230_s30  ;;  %8569 = vmatprep.subr.bf16.mxu1 %v8502_v40  ;;  %v8494_v16 = vsel %vm8491_vm9, %v8436_v26, %v8438_v0  ;;  %v9158_v40 = vld [vmem:[#allocation6 + $0x100] sm:$0xff] }
 0x62d   : > { %v20716_v4 = vpop.permute.xlu1 %8439 }
 0x62e   : > { %v8452_v58 = vpop.permute.xlu0 %8451  ;;  %9268 = vrot.lane.b32.xlu0 %v20714_v57, %s16230_s30  ;;  %v8495_v13 = vsel %vm8491_vm9, %v8438_v0, %v20716_v4 }
 0x62f   : > { %8846 = vrot.lane.b32.xlu1 %v20098_v33, %s16234_s6  ;;  %v8501_v8 = vsel %vm8491_vm9, %v8452_v58, %v8454_v25  ;;  %8608 = vmatprep.subr.bf16.mxu0 %v8495_v13 }
 0x630   : > { %8570 = vmatpush1.bf16.msra.mxu1 %v8501_v8  ;;  %8609 = vmatpush1.bf16.msra.mxu0 %v8494_v16 }
 0x631   : > { %v8472_v37 = vpop.permute.xlu1 %8471 }
 0x632   : > { %v8474_v33 = vpop.permute.xlu0 %8473  ;;  %v7150_v44 = vpop.f32.mrb[168].mxu1  ;;  %9292 = vrot.lane.b32.xlu0 %v20728_v48, %s16230_s30 }
 0x633   : > { %9290 = vrot.lane.b32.xlu1 %v20726_v35, %s16230_s30  ;;  %v20735_v11 = vadd.f32 %v7150_v44, %v20578_v54  ;;  %v7152_v3 = vpop.f32.mrb[169].mxu1  ;;  %v8510_v19 = vsel %vm8491_vm9, %v8472_v37, %v8474_v33 }
 0x634   : > { %v20741_v24 = vadd.f32 %v7152_v3, %v20581_v30  ;;  %v7154_v32 = vpop.f32.mrb[170].mxu1  ;;  %v8541_v30 = vsel %vm1616_vm1, %v8510_v19, 0  ;;  %v20813_v3 = vcombine.low %v9158_v40, %v9158_v40 }
 0x635   : > { %v8476_v12 = vpop.permute.xlu1 %8475  ;;  %v7155_v23 = vpop.f32.mrb[171].mxu1 }
 0x636   : > { %v8458_v18 = vpop.permute.xlu0 %8457  ;;  %9276 = vrot.lane.b32.xlu0 %v20743_v21, %s16230_s30  ;;  %v8511_v54 = vsel %vm8491_vm9, %v8474_v33, %v8476_v12  ;;  %v20811_v33 = vcombine.high %v9157_v1, %v9157_v1 }
 0x637   : > { %9274 = vrot.lane.b32.xlu1 %v20737_v61, %s16230_s30  ;;  %14405 = vmatprep.subr.msk.bf16.mxu1 %vm1616_vm1, %v8511_v54  ;;  %v8503_v26 = vsel %vm8491_vm9, %v8456_v56, %v8458_v18  ;;  %v20797_v56 = vld [vmem:[#allocation6 + $0x28] ss:$56 sps:$4 sm:$0xff]  }
 0x638   : > { %8572 = vmatpush1.bf16.msra.mxu1 %v8541_v30 }
 0x639   : > { %v8460_v42 = vpop.permute.xlu1 %8459 }
 0x63a   : > { %v8442_v55 = vpop.permute.xlu0 %8441  ;;  %9308 = vrot.lane.b32.xlu0 %v20754_v52, %s16230_s30  ;;  %v8504_v38 = vsel %vm8491_vm9, %v8458_v18, %v8460_v42 }
 0x63b   : > { %9288 = vrot.lane.b32.xlu1 %v20752_v51, %s16230_s30  ;;  %v7191_v15 = vpop.f32.mrb[164].mxu0  ;;  %8610 = vmatprep.subr.bf16.mxu0 %v8504_v38  ;;  %v8496_v22 = vsel %vm8491_vm9, %v20716_v4, %v8442_v55  ;;  %v20834_v38 = vld [vmem:[#allocation6 + $0x2c] ss:$56 sps:$4 sm:$0xff]  }
 0x63c   : > { %v20765_v43 = vadd.f32 %v7191_v15, %v20602_v34  ;;  %v7193_v17 = vpop.f32.mrb[165].mxu0  ;;  %8611 = vmatpush1.bf16.msra.mxu0 %v8503_v26 }
 0x63d   : > { %v20770_v29 = vadd.f32 %v7193_v17, %v20606_v28  ;;  %v7195_v2 = vpop.f32.mrb[166].mxu0  ;;  %v8444_v62 = vpop.permute.xlu1 %8443 }
 0x63e   : > { %v7196_v41 = vpop.f32.mrb[167].mxu0  ;;  %v8478_v45 = vpop.permute.xlu0 %8477  ;;  %9312 = vrot.lane.b32.xlu0 %v20767_v9, %s16230_s30  ;;  %v8497_v34 = vsel %vm8491_vm9, %v8442_v55, %v8444_v62  ;;  %v20831_v55 = vld [vmem:[#allocation6 + $0x98] ss:$56 sps:$4 sm:$0xff]  }
 0x63f   : > { %9310 = vrot.lane.b32.xlu1 %v20762_v20, %s16230_s30  ;;  %8649 = vmatprep.subr.bf16.mxu1 %v8497_v34  ;;  %v8512_v10 = vsel %vm8491_vm9, %v8476_v12, %v8478_v45  ;;  %v20847_v41 = vcombine.high %v9158_v40, %v9158_v40 }
 0x640   : > { %v8547_v25 = vsel %vm1616_vm1, %v8512_v10, 0 }
 0x641   : > { %v8480_v28 = vpop.permute.xlu1 %8479 }
 0x642   : > { %v20784_v59 = vpop.permute.xlu0 %8429  ;;  %9296 = vrot.lane.b32.xlu0 %v20780_v50, %s16230_s30  ;;  %v8513_v27 = vsel %vm8491_vm9, %v8478_v45, %v8480_v28  ;;  %v9159_v45 = vld [vmem:[#allocation6 + $0x108] sm:$0xff] }
 0x643   : > { %9294 = vrot.lane.b32.xlu1 %v20777_v49, %s16230_s30  ;;  %14406 = vmatmul.mubr.msk.bf16.vlgmr.msra.gmra.mrb[204].mxu1 %vm1898_vm10, %v20784_v59 }
 0x644   : > { %14407 = vmatprep.subr.msk.bf16.mxu0 %vm1616_vm1, %v8513_v27  ;;  %8650 = vmatpush1.bf16.msra.mxu1 %v8496_v22  ;;  %v20856_v27 = vcombine.low %v9159_v45, %v9159_v45 }
 0x645   : > { %8613 = vmatpush1.bf16.msra.mxu0 %v8547_v25  ;;  %v8462_v0 = vpop.permute.xlu1 %8461  ;;  %8681 = vmatprep.mubr.bf16.mxu1 %v22614_v6  ;;  %v20860_v25 = vld [vmem:[#allocation6 + $0x9c] ss:$56 sps:$4 sm:$0xff]  }
 0x646   : > { %v8464_v58 = vpop.permute.xlu0 %8463  ;;  %v7232_v13 = vpop.f32.mrb[172].mxu1  ;;  %9280 = vrot.lane.b32.xlu0 %v20797_v56, %s16230_s30  ;;  %v8505_v4 = vsel %vm8491_vm9, %v8460_v42, %v8462_v0 }
 0x647   : > { %9278 = vrot.lane.b32.xlu1 %v20795_v47, %s16230_s30  ;;  %v20806_v8 = vadd.f32 %v7232_v13, %v20629_v36  ;;  %v15127_v16 = vpop.f32.mrb[173].mxu1  ;;  %v8506_v37 = vsel %vm8491_vm9, %v8462_v0, %v8464_v58 }
 0x648   : > { %14408 = vmatmul.mubr.msk.bf16.vlgmr.msra.gmra.mrb[200].mxu0 %vm1898_vm10, %v20784_v59  ;;  %8651 = vmatprep.subr.bf16.mxu1 %v8506_v37  ;;  %v7235_v44 = vpop.f32.mrb[174].mxu1 }
 0x649   : > { %8722 = vmatprep.mubr.bf16.mxu0 %v22614_v6  ;;  %8652 = vmatpush1.bf16.msra.mxu1 %v8505_v4  ;;  %v8446_v19 = vpop.permute.xlu1 %8445  ;;  %v15128_v32 = vpop.f32.mrb[175].mxu1 }
 0x64a   : > { %v8448_v36 = vpop.permute.xlu0 %8447  ;;  %9316 = vrot.lane.b32.xlu0 %v20813_v3, %s16230_s30  ;;  %v8498_v12 = vsel %vm8491_vm9, %v8444_v62, %v8446_v19  ;;  %v20843_v62 = vld [vmem:[#allocation6 + $0x30] ss:$56 sps:$4 sm:$0xff]  }
 0x64b   : > { %9314 = vrot.lane.b32.xlu1 %v20811_v33, %s16230_s30  ;;  %v8499_v23 = vsel %vm8491_vm9, %v8446_v19, %v8448_v36  ;;  %v20873_v19 = vld [vmem:[#allocation6 + $0xa0] ss:$56 sps:$4 sm:$0xff]  }
 0x64c   : > { %8690 = vmatprep.subr.bf16.mxu0 %v8499_v23 }
 0x64d   : > { %8691 = vmatpush1.bf16.msra.mxu0 %v8498_v12  ;;  %v8482_v18 = vpop.permute.xlu1 %8481  ;;  %v20878_v12 = vld [vmem:[#allocation6 + $0x34] ss:$56 sps:$4 sm:$0xff]  }
 0x64e   : > { %v8514_v54 = vsel %vm8491_vm9, %v8480_v28, %v8482_v18  ;;  %v8484_v30 = vpop.permute.xlu0 %8483  ;;  %9298 = vrot.lane.b32.xlu0 %v20822_v7, %s16230_s30 }
 0x64f   : > { %9161 = vrot.lane.b32.xlu1 %v20626_v39, %s16214_s16  ;;  %v8515_v42 = vsel %vm8491_vm9, %v8482_v18, %v8484_v30  ;;  %v8553_v1 = vsel %vm1616_vm1, %v8514_v54, 0  ;;  %v9160_v18 = vld [vmem:[#allocation6 + $0x110] sm:$0xff] }
 0x650   : > { %14409 = vmatprep.subr.msk.bf16.mxu1 %vm1616_vm1, %v8515_v42  ;;  %v20890_v42 = vcombine.low %v9160_v18, %v9160_v18 }
 0x651   : > { %8654 = vmatpush1.bf16.msra.mxu1 %v8553_v1  ;;  %v8466_v15 = vpop.permute.xlu1 %8465 }
 0x652   : > { %v8468_v26 = vpop.permute.xlu0 %8467  ;;  %9282 = vrot.lane.b32.xlu0 %v20834_v38, %s16230_s30  ;;  %v8507_v17 = vsel %vm8491_vm9, %v8464_v58, %v8466_v15  ;;  %15159 = vmatprep.subr.bf16.mxu1 %v22674_v5 }
 0x653   : > { %9300 = vrot.lane.b32.xlu1 %v20831_v55, %s16230_s30  ;;  %v8508_v2 = vsel %vm8491_vm9, %v8466_v15, %v8468_v26 }
 0x654   : > { %14410 = vmatmul.mubr.msk.bf16.vlgmr.msra.gmra.mrb[208].mxu1 %vm1898_vm10, %v20784_v59  ;;  %8692 = vmatprep.subr.bf16.mxu0 %v8508_v2 }
 0x655   : > { %8693 = vmatpush1.bf16.msra.mxu0 %v8507_v17  ;;  %v8450_v34 = vpop.permute.xlu1 %8449  ;;  %15165 = vmatprep.mubr.msk.bf16.mxu1 %vm16227_vm11, %v22674_v5 }
 0x656   : > { %v8500_v10 = vsel %vm8491_vm9, %v8448_v36, %v8450_v34  ;;  %v8486_v28 = vpop.permute.xlu0 %8485  ;;  %9318 = vrot.lane.b32.xlu0 %v20847_v41, %s16230_s30 }
 0x657   : > { %9284 = vrot.lane.b32.xlu1 %v20843_v62, %s16230_s30  ;;  %15160 = vmatpush3.bf16.msra.mxu1 %v8500_v10  ;;  %v8516_v22 = vsel %vm8491_vm9, %v8484_v30, %v8486_v28  ;;  %v20888_v30 = vcombine.high %v9159_v45, %v9159_v45  ;;  %v20899_v45 = vld [vmem:[#allocation6 + $0xa4] ss:$56 sps:$4 sm:$0xff]  }
 0x658   : > { %15161 = vmatprep.subr.bf16.mxu1 %v22674_v5  ;;  %v8559_v44 = vsel %vm1616_vm1, %v8516_v22, 0 }
 0x659   : > { %v8488_v0 = vpop.permute.xlu1 %8487 }
 0x65a   : > { %v7548_v40 = vpop.f32.mrb[168].mxu0  ;;  %v8470_v58 = vpop.permute.xlu0 %8469  ;;  %9302 = vrot.lane.b32.xlu0 %v20860_v25, %s16230_s30  ;;  %v8517_v13 = vsel %vm8491_vm9, %v8486_v28, %v8488_v0 }
 0x65b   : > { %9320 = vrot.lane.b32.xlu1 %v20856_v27, %s16230_s30  ;;  %v20868_v4 = vadd.f32 %v7548_v40, %v20682_v63  ;;  %v8509_v16 = vsel %vm8491_vm9, %v8468_v26, %v8470_v58  ;;  %v7550_v37 = vpop.f32.mrb[169].mxu0  ;;  %14411 = vmatprep.subr.msk.bf16.mxu0 %vm1616_vm1, %v8517_v13 }
 0x65c   : > { %v20876_v32 = vadd.f32 %v7550_v37, %v20689_v53  ;;  %v7552_v36 = vpop.f32.mrb[170].mxu0  ;;  %15162 = vmatpush3.bf16.msra.mxu1 %v8509_v16  ;;  %8695 = vmatpush1.bf16.msra.mxu0 %v8559_v44  ;;  %v20921_v44 = vcombine.high %v9160_v18, %v9160_v18 }
 0x65d   : > { %v7553_v23 = vpop.f32.mrb[171].mxu0  ;;  %v8791_v63 = vpop.permute.xlu1 %8790  ;;  %15163 = vmatprep.subr.bf16.mxu1 %v22674_v5 }
 0x65e   : > { %v8793_v54 = vpop.permute.xlu0 %8792  ;;  %9286 = vrot.lane.b32.xlu0 %v20878_v12, %s16230_s30 }
 0x65f   : > { %9304 = vrot.lane.b32.xlu1 %v20873_v19, %s16230_s30  ;;  %14412 = vmatmul.mubr.msk.bf16.vlgmr.msra.gmra.mrb[204].mxu0 %vm1898_vm10, %v20784_v59  ;;  %v8849_v53 = vsel %vm6194_vm12, %v8791_v63, %v8793_v54 }
 0x660   : > { %8923 = vmatprep.subr.bf16.mxu0 %v8849_v53  ;;  %8955 = vmatprep.mubr.bf16.mxu0 %v22614_v6 }
 0x661   : > { %v8789_v1 = vpop.permute.xlu1 %8788 }
 0x662   : > { %v8848_v15 = vsel %vm6194_vm12, %v8789_v1, %v8791_v63  ;;  %v8490_v26 = vpop.permute.xlu0 %8489  ;;  %9324 = vrot.lane.b32.xlu0 %v20890_v42, %s16230_s30 }
 0x663   : > { %9322 = vrot.lane.b32.xlu1 %v20888_v30, %s16230_s30  ;;  %v8518_v17 = vsel %vm8491_vm9, %v8488_v0, %v8490_v26  ;;  %v7589_v2 = vpop.f32.mrb[176].mxu1  ;;  %8924 = vmatpush1.bf16.msra.mxu0 %v8848_v15 }
 0x664   : > { %v8565_v34 = vsel %vm1616_vm1, %v8518_v17, 0  ;;  %v20903_v10 = vadd.f32 %v7589_v2, %v20693_v14  ;;  %v7591_v28 = vpop.f32.mrb[177].mxu1 }
 0x665   : > { %v20906_v22 = vadd.f32 %v7591_v28, %v20696_v46  ;;  %v7593_v40 = vpop.f32.mrb[178].mxu1  ;;  %15164 = vmatpush3.bf16.msra.mxu1 %v8565_v34  ;;  %v8811_v58 = vpop.permute.xlu1 %8810 }
 0x666   : > { %v7594_v0 = vpop.f32.mrb[179].mxu1  ;;  %v8813_v13 = vpop.permute.xlu0 %8812  ;;  %9620 = vrot.lane.b32.xlu0 %v20702_v31, %s16240_s15 }
 0x667   : > { %9306 = vrot.lane.b32.xlu1 %v20899_v45, %s16230_s30  ;;  %v8858_v16 = vsel %vm6194_vm12, %v8811_v58, %v8813_v13 }
 0x668   : > { %15166 = vmatmul.mubr.msk.bf16.vlgmr.msra.gmra.mrb[212].mxu1 %vm1898_vm10, %v20784_v59  ;;  %8925 = vmatprep.subr.bf16.mxu0 %v8858_v16 }
 0x669   : > { %v8809_v14 = vpop.permute.xlu1 %8808  ;;  %8996 = vmatprep.mubr.bf16.mxu1 %v22614_v6 }
 0x66a   : > { %v8857_v46 = vsel %vm6194_vm12, %v8809_v14, %v8811_v58  ;;  %v8795_v37 = vpop.permute.xlu0 %8794  ;;  %9618 = vrot.lane.b32.xlu0 %v20714_v57, %s16240_s15 }
 0x66b   : > { %9622 = vrot.lane.b32.xlu1 %v20706_v60, %s16240_s15  ;;  %8926 = vmatpush1.bf16.msra.mxu0 %v8857_v46  ;;  %v8850_v53 = vsel %vm6194_vm12, %v8793_v54, %v8795_v37 }
 0x66d   : > { %v8797_v36 = vpop.permute.xlu1 %8796 }
 0x66e   : > { %v8829_v59 = vpop.permute.xlu0 %8828  ;;  %9640 = vrot.lane.b32.xlu0 %v20726_v35, %s16240_s15  ;;  %v8851_v23 = vsel %vm6194_vm12, %v8795_v37, %v8797_v36 }
 0x66f   : > { %9326 = vrot.lane.b32.xlu1 %v20921_v44, %s16230_s30  ;;  %v7630_v63 = vpop.f32.mrb[172].mxu0  ;;  %8964 = vmatprep.subr.bf16.mxu1 %v8851_v23 }
 0x670   : > { %v20930_v1 = vadd.f32 %v7630_v63, %v20735_v11  ;;  %v7632_v15 = vpop.f32.mrb[173].mxu0  ;;  %8965 = vmatpush1.bf16.msra.mxu1 %v8850_v53 }
 0x671   : > { %v20933_v18 = vadd.f32 %v7632_v15, %v20741_v24  ;;  %v7634_v26 = vpop.f32.mrb[174].mxu0  ;;  %v8831_v17 = vpop.permute.xlu1 %8830 }
 0x672   : > { %v8866_v2 = vsel %vm6194_vm12, %v8829_v59, %v8831_v17  ;;  %v7635_v34 = vpop.f32.mrb[175].mxu0  ;;  %v8833_v28 = vpop.permute.xlu0 %8832  ;;  %9638 = vrot.lane.b32.xlu0 %v20752_v51, %s16240_s15 }
 0x673   : > { %9642 = vrot.lane.b32.xlu1 %v20728_v48, %s16240_s15  ;;  %v8867_v11 = vsel %vm6194_vm12, %v8831_v17, %v8833_v28  ;;  %v8897_v54 = vsel %vm1616_vm1, %v8866_v2, 0 }
 0x674   : > { %14415 = vmatprep.subr.msk.bf16.mxu0 %vm1616_vm1, %v8867_v11 }
 0x675   : > { %8928 = vmatpush1.bf16.msra.mxu0 %v8897_v54  ;;  %v8815_v24 = vpop.permute.xlu1 %8814 }
 0x676   : > { %v8817_v40 = vpop.permute.xlu0 %8816  ;;  %9626 = vrot.lane.b32.xlu0 %v20743_v21, %s16240_s15  ;;  %v8859_v58 = vsel %vm6194_vm12, %v8813_v13, %v8815_v24 }
 0x677   : > { %9624 = vrot.lane.b32.xlu1 %v20737_v61, %s16240_s15  ;;  %v8860_v0 = vsel %vm6194_vm12, %v8815_v24, %v8817_v40 }
 0x678   : > { %8966 = vmatprep.subr.bf16.mxu1 %v8860_v0 }
 0x679   : > { %8967 = vmatpush1.bf16.msra.mxu1 %v8859_v58  ;;  %v8799_v16 = vpop.permute.xlu1 %8798 }
 0x67a   : > { %v8801_v14 = vpop.permute.xlu0 %8800  ;;  %v7671_v46 = vpop.f32.mrb[180].mxu1  ;;  %9660 = vrot.lane.b32.xlu0 %v20762_v20, %s16240_s15 }
 0x67b   : > { %9658 = vrot.lane.b32.xlu1 %v20754_v52, %s16240_s15  ;;  %v20954_v37 = vadd.f32 %v7671_v46, %v20765_v43  ;;  %v7673_v59 = vpop.f32.mrb[181].mxu1  ;;  %v8853_v23 = vsel %vm6194_vm12, %v8799_v16, %v8801_v14 }
 0x67c   : > { %v20958_v13 = vadd.f32 %v7673_v59, %v20770_v29  ;;  %9005 = vmatprep.subr.bf16.mxu0 %v8853_v23  ;;  %v7675_v63 = vpop.f32.mrb[182].mxu1  ;;  %v8852_v29 = vsel %vm6194_vm12, %v8797_v36, %v8799_v16 }
 0x67d   : > { %v8784_v53 = vpop.permute.xlu1 %8783  ;;  %v7676_v15 = vpop.f32.mrb[183].mxu1 }
 0x67e   : > { %v8786_v26 = vpop.permute.xlu0 %8785  ;;  %9644 = vrot.lane.b32.xlu0 %v20777_v49, %s16240_s15 }
 0x67f   : > { %9662 = vrot.lane.b32.xlu1 %v20767_v9, %s16240_s15  ;;  %v20965_v43 = vsel %vm267_vm0, %v8784_v53, %v8786_v26  ;;  %vm9678_vm0 = vcmask 424960  }
 0x680   : > { %14416 = vmatmul.mubr.msk.bf16.vlgmr.msra.gmra.mrb[208].mxu0 %vm1898_vm10, %v20965_v43 }
 0x681   : > { %9006 = vmatpush1.bf16.msra.mxu0 %v8852_v29  ;;  %v8835_v17 = vpop.permute.xlu1 %8834  ;;  %9037 = vmatprep.mubr.bf16.mxu0 %v22614_v6 }
 0x682   : > { %v8868_v2 = vsel %vm6194_vm12, %v8833_v28, %v8835_v17  ;;  %v8837_v34 = vpop.permute.xlu0 %8836  ;;  %v7712_v11 = vpop.f32.mrb[176].mxu0  ;;  %9628 = vrot.lane.b32.xlu0 %v20795_v47, %s16240_s15 }
 0x683   : > { %9646 = vrot.lane.b32.xlu1 %v20780_v50, %s16240_s15  ;;  %v20977_v54 = vadd.f32 %v7712_v11, %v20806_v8  ;;  %v15137_v24 = vpop.f32.mrb[177].mxu0  ;;  %v8869_v36 = vsel %vm6194_vm12, %v8835_v17, %v8837_v34  ;;  %v8903_v58 = vsel %vm1616_vm1, %v8868_v2, 0 }
 0x684   : > { %14417 = vmatprep.subr.msk.bf16.mxu1 %vm1616_vm1, %v8869_v36  ;;  %v7715_v0 = vpop.f32.mrb[178].mxu0 }
 0x685   : > { %8969 = vmatpush1.bf16.msra.mxu1 %v8903_v58  ;;  %v8819_v28 = vpop.permute.xlu1 %8818  ;;  %v15138_v16 = vpop.f32.mrb[179].mxu0 }
 0x686   : > { %v8821_v46 = vpop.permute.xlu0 %8820  ;;  %9616 = vrot.lane.b32.xlu0 %v20626_v39, %s16215_s17  ;;  %v8861_v8 = vsel %vm6194_vm12, %v8817_v40, %v8819_v28 }
 0x687   : > { %9630 = vrot.lane.b32.xlu1 %v20797_v56, %s16240_s15  ;;  %v8862_v59 = vsel %vm6194_vm12, %v8819_v28, %v8821_v46 }
 0x688   : > { %14418 = vmatmul.mubr.msk.bf16.vlgmr.msra.gmra.mrb[216].mxu1 %vm1898_vm10, %v20965_v43  ;;  %9007 = vmatprep.subr.bf16.mxu0 %v8862_v59 }
 0x689   : > { %9008 = vmatpush1.bf16.msra.mxu0 %v8861_v8  ;;  %v8803_v23 = vpop.permute.xlu1 %8802  ;;  %9078 = vmatprep.mubr.bf16.mxu1 %v22614_v6 }
 0x68a   : > { %v8805_v63 = vpop.permute.xlu0 %8804  ;;  %9666 = vrot.lane.b32.xlu0 %v20813_v3, %s16240_s15  ;;  %v8854_v53 = vsel %vm6194_vm12, %v8801_v14, %v8803_v23 }
 0x68b   : > { %9664 = vrot.lane.b32.xlu1 %v20811_v33, %s16240_s15  ;;  %v8855_v40 = vsel %vm6194_vm12, %v8803_v23, %v8805_v63 }
 0x68c   : > { %9046 = vmatprep.subr.bf16.mxu1 %v8855_v40 }
 0x68d   : > { %9047 = vmatpush1.bf16.msra.mxu1 %v8854_v53  ;;  %v8839_v15 = vpop.permute.xlu1 %8838 }
 0x68e   : > { %v8870_v26 = vsel %vm6194_vm12, %v8837_v34, %v8839_v15  ;;  %v8841_v29 = vpop.permute.xlu0 %8840  ;;  %9650 = vrot.lane.b32.xlu0 %v20831_v55, %s16240_s15 }
 0x68f   : > { %9648 = vrot.lane.b32.xlu1 %v20822_v7, %s16240_s15  ;;  %v8871_v17 = vsel %vm6194_vm12, %v8839_v15, %v8841_v29  ;;  %v8909_v14 = vsel %vm1616_vm1, %v8870_v26, 0 }
 0x690   : > { %14419 = vmatprep.subr.msk.bf16.mxu0 %vm1616_vm1, %v8871_v17 }
 0x691   : > { %9010 = vmatpush1.bf16.msra.mxu0 %v8909_v14  ;;  %v8823_v2 = vpop.permute.xlu1 %8822 }
 0x692   : > { %v8825_v11 = vpop.permute.xlu0 %8824  ;;  %9634 = vrot.lane.b32.xlu0 %v20843_v62, %s16240_s15  ;;  %v8863_v34 = vsel %vm6194_vm12, %v8821_v46, %v8823_v2  ;;  %15169 = vmatprep.subr.bf16.mxu0 %v22674_v5 }
 0x693   : > { %9632 = vrot.lane.b32.xlu1 %v20834_v38, %s16240_s15  ;;  %v7899_v24 = vpop.f32.mrb[184].mxu1  ;;  %v8864_v36 = vsel %vm6194_vm12, %v8823_v2, %v8825_v11 }
 0x694   : > { %v21013_v58 = vadd.f32 %v7899_v24, %v20868_v4  ;;  %v7901_v0 = vpop.f32.mrb[185].mxu1  ;;  %14420 = vmatmul.mubr.msk.bf16.vlgmr.msra.gmra.mrb[212].mxu0 %vm1898_vm10, %v20965_v43  ;;  %9048 = vmatprep.subr.bf16.mxu1 %v8864_v36 }
 0x695   : > { %v21018_v28 = vadd.f32 %v7901_v0, %v20876_v32  ;;  %9049 = vmatpush1.bf16.msra.mxu1 %v8863_v34  ;;  %v8807_v16 = vpop.permute.xlu1 %8806  ;;  %v7903_v46 = vpop.f32.mrb[186].mxu1  ;;  %15175 = vmatprep.mubr.msk.bf16.mxu0 %vm16227_vm11, %v22674_v5 }
 0x696   : > { %v8856_v8 = vsel %vm6194_vm12, %v8805_v63, %v8807_v16  ;;  %v8843_v59 = vpop.permute.xlu0 %8842  ;;  %9670 = vrot.lane.b32.xlu0 %v20856_v27, %s16240_s15  ;;  %v7904_v4 = vpop.f32.mrb[187].mxu1 }
 0x697   : > { %9668 = vrot.lane.b32.xlu1 %v20847_v41, %s16240_s15  ;;  %15170 = vmatpush3.bf16.msra.mxu0 %v8856_v8  ;;  %v8872_v32 = vsel %vm6194_vm12, %v8841_v29, %v8843_v59 }
 0x698   : > { %15171 = vmatprep.subr.bf16.mxu0 %v22674_v5  ;;  %v8915_v15 = vsel %vm1616_vm1, %v8872_v32, 0 }
 0x699   : > { %v8845_v23 = vpop.permute.xlu1 %8844 }
 0x69a   : > { %v8827_v53 = vpop.permute.xlu0 %8826  ;;  %9654 = vrot.lane.b32.xlu0 %v20873_v19, %s16240_s15  ;;  %v8873_v63 = vsel %vm6194_vm12, %v8843_v59, %v8845_v23 }
 0x69b   : > { %9652 = vrot.lane.b32.xlu1 %v20860_v25, %s16240_s15  ;;  %v8865_v40 = vsel %vm6194_vm12, %v8825_v11, %v8827_v53  ;;  %14421 = vmatprep.subr.msk.bf16.mxu1 %vm1616_vm1, %v8873_v63 }
 0x69c   : > { %15172 = vmatpush3.bf16.msra.mxu0 %v8865_v40  ;;  %9051 = vmatpush1.bf16.msra.mxu1 %v8915_v15 }
 0x69d   : > { %v9271_v26 = vpop.permute.xlu1 %9270  ;;  %15173 = vmatprep.subr.bf16.mxu0 %v22674_v5 }
 0x69e   : > { %v9273_v29 = vpop.permute.xlu0 %9272  ;;  %9672 = vrot.lane.b32.xlu0 %v20888_v30, %s16240_s15 }
 0x69f   : > { %9636 = vrot.lane.b32.xlu1 %v20878_v12, %s16240_s15  ;;  %v7940_v17 = vpop.f32.mrb[180].mxu0  ;;  %14422 = vmatmul.mubr.msk.bf16.vlgmr.msra.gmra.mrb[220].mxu1 %vm1898_vm10, %v20965_v43  ;;  %v9329_v14 = vsel %vm5066_vm13, %v9271_v26, %v9273_v29 }
 0x6a0   : > { %v21046_v2 = vadd.f32 %v7940_v17, %v20903_v10  ;;  %v7942_v11 = vpop.f32.mrb[181].mxu0  ;;  %9403 = vmatprep.subr.bf16.mxu1 %v9329_v14  ;;  %9435 = vmatprep.mubr.bf16.mxu1 %v22614_v6 }
 0x6a1   : > { %v21050_v34 = vadd.f32 %v7942_v11, %v20906_v22  ;;  %v8847_v24 = vpop.permute.xlu1 %8846  ;;  %v7944_v36 = vpop.f32.mrb[182].mxu0 }
 0x6a2   : > { %v8874_v0 = vsel %vm6194_vm12, %v8845_v23, %v8847_v24  ;;  %v9269_v16 = vpop.permute.xlu0 %9268  ;;  %9656 = vrot.lane.b32.xlu0 %v20899_v45, %s16240_s15  ;;  %v7945_v10 = vpop.f32.mrb[183].mxu0  ;;  %vm10385_vm12 = vcmask 228352  }
 0x6a3   : > { %9674 = vrot.lane.b32.xlu1 %v20890_v42, %s16240_s15  ;;  %v8921_v46 = vsel %vm1616_vm1, %v8874_v0, 0  ;;  %v9328_v8 = vsel %vm5066_vm13, %v9269_v16, %v9271_v26 }
 0x6a4   : > { %9404 = vmatpush1.bf16.msra.mxu1 %v9328_v8  ;;  %15174 = vmatpush3.bf16.msra.mxu0 %v8921_v46 }
 0x6a5   : > { %v9291_v22 = vpop.permute.xlu1 %9290 }
 0x6a6   : > { %v9293_v59 = vpop.permute.xlu0 %9292  ;;  %9978 = vrot.lane.b32.xlu0 %v20706_v60, %s16237_s21 }
 0x6a7   : > { %9976 = vrot.lane.b32.xlu1 %v20702_v31, %s16237_s21  ;;  %15176 = vmatmul.mubr.msk.bf16.vlgmr.msra.gmra.mrb[216].mxu0 %vm1898_vm10, %v20965_v43  ;;  %v9338_v4 = vsel %vm5066_vm13, %v9291_v22, %v9293_v59 }
 0x6a8   : > { %9405 = vmatprep.subr.bf16.mxu1 %v9338_v4  ;;  %9476 = vmatprep.mubr.bf16.mxu0 %v22614_v6 }
 0x6a9   : > { %v9275_v32 = vpop.permute.xlu1 %9274 }
 0x6aa   : > { %v21069_v23 = vpop.permute.xlu0 %9276  ;;  %9974 = vrot.lane.b32.xlu0 %v20714_v57, %s16237_s21  ;;  %v9330_v31 = vsel %vm5066_vm13, %v9273_v29, %v9275_v32 }
 0x6ab   : > { %9676 = vrot.lane.b32.xlu1 %v20921_v44, %s16240_s15  ;;  %v7981_v60 = vpop.f32.mrb[188].mxu1  ;;  %v9331_v43 = vsel %vm5066_vm13, %v9275_v32, %v21069_v23 }
 0x6ac   : > { %v21077_v53 = vadd.f32 %v7981_v60, %v20930_v1  ;;  %v7983_v63 = vpop.f32.mrb[189].mxu1  ;;  %9444 = vmatprep.subr.bf16.mxu0 %v9331_v43 }
 0x6ad   : > { %v21080_v40 = vadd.f32 %v7983_v63, %v20933_v18  ;;  %9445 = vmatpush1.bf16.msra.mxu0 %v9330_v31  ;;  %v9289_v15 = vpop.permute.xlu1 %9288  ;;  %v7985_v57 = vpop.f32.mrb[190].mxu1 }
 0x6ae   : > { %v9337_v26 = vsel %vm5066_vm13, %v9289_v15, %v9291_v22  ;;  %v9309_v29 = vpop.permute.xlu0 %9308  ;;  %9998 = vrot.lane.b32.xlu0 %v20728_v48, %s16237_s21  ;;  %v7986_v17 = vpop.f32.mrb[191].mxu1 }
 0x6af   : > { %9996 = vrot.lane.b32.xlu1 %v20726_v35, %s16237_s21  ;;  %9406 = vmatpush1.bf16.msra.mxu1 %v9337_v26 }
 0x6b1   : > { %v9311_v1 = vpop.permute.xlu1 %9310 }
 0x6b2   : > { %v9346_v18 = vsel %vm5066_vm13, %v9309_v29, %v9311_v1  ;;  %v9313_v14 = vpop.permute.xlu0 %9312  ;;  %9982 = vrot.lane.b32.xlu0 %v20743_v21, %s16237_s21 }
 0x6b3   : > { %9980 = vrot.lane.b32.xlu1 %v20737_v61, %s16237_s21  ;;  %v9347_v35 = vsel %vm5066_vm13, %v9311_v1, %v9313_v14  ;;  %v9377_v11 = vsel %vm1616_vm1, %v9346_v18, 0 }
 0x6b4   : > { %14454 = vmatprep.subr.msk.bf16.mxu1 %vm1616_vm1, %v9347_v35 }
 0x6b5   : > { %9408 = vmatpush1.bf16.msra.mxu1 %v9377_v11  ;;  %v9295_v48 = vpop.permute.xlu1 %9294 }
 0x6b6   : > { %v9297_v24 = vpop.permute.xlu0 %9296  ;;  %v8022_v36 = vpop.f32.mrb[184].mxu0  ;;  %10014 = vrot.lane.b32.xlu0 %v20754_v52, %s16237_s21  ;;  %v9339_v61 = vsel %vm5066_vm13, %v9293_v59, %v9295_v48 }
 0x6b7   : > { %9994 = vrot.lane.b32.xlu1 %v20752_v51, %s16237_s21  ;;  %v21101_v21 = vadd.f32 %v8022_v36, %v20954_v37  ;;  %v8024_v0 = vpop.f32.mrb[185].mxu0  ;;  %v9340_v16 = vsel %vm5066_vm13, %v9295_v48, %v9297_v24 }
 0x6b8   : > { %v21105_v10 = vadd.f32 %v8024_v0, %v20958_v13  ;;  %9446 = vmatprep.subr.bf16.mxu0 %v9340_v16  ;;  %v8026_v46 = vpop.f32.mrb[186].mxu0 }
 0x6b9   : > { %9447 = vmatpush1.bf16.msra.mxu0 %v9339_v61  ;;  %v9279_v51 = vpop.permute.xlu1 %9278  ;;  %v8027_v8 = vpop.f32.mrb[187].mxu0 }
 0x6ba   : > { %v9281_v22 = vpop.permute.xlu0 %9280  ;;  %10018 = vrot.lane.b32.xlu0 %v20767_v9, %s16237_s21 }
 0x6bb   : > { %10016 = vrot.lane.b32.xlu1 %v20762_v20, %s16237_s21  ;;  %v9333_v37 = vsel %vm5066_vm13, %v9279_v51, %v9281_v22 }
 0x6bc   : > { %9485 = vmatprep.subr.bf16.mxu1 %v9333_v37 }
 0x6bd   : > { %v9315_v59 = vpop.permute.xlu1 %9314 }
 0x6be   : > { %v9348_v13 = vsel %vm5066_vm13, %v9313_v14, %v9315_v59  ;;  %v9317_v4 = vpop.permute.xlu0 %9316  ;;  %10002 = vrot.lane.b32.xlu0 %v20780_v50, %s16237_s21  ;;  %v9332_v50 = vsel %vm5066_vm13, %v21069_v23, %v9279_v51 }
 0x6bf   : > { %10000 = vrot.lane.b32.xlu1 %v20777_v49, %s16237_s21  ;;  %v8063_v32 = vpop.f32.mrb[192].mxu1  ;;  %v9349_v31 = vsel %vm5066_vm13, %v9315_v59, %v9317_v4  ;;  %v9383_v60 = vsel %vm1616_vm1, %v9348_v13, 0 }
 0x6c0   : > { %v21120_v43 = vadd.f32 %v8063_v32, %v20977_v54  ;;  %14456 = vmatprep.subr.msk.bf16.mxu0 %vm1616_vm1, %v9349_v31  ;;  %v15147_v63 = vpop.f32.mrb[193].mxu1  ;;  %v16072_v54 = vld [vmem:[%s22429_s3 + $0x18] sm:$0xff] }
 0x6c1   : > { %9449 = vmatpush1.bf16.msra.mxu0 %v9383_v60  ;;  %v21123_v15 = vpop.permute.xlu1 %9161  ;;  %v8066_v49 = vpop.f32.mrb[194].mxu1  ;;  %v21136_v26 = vcombine.high %v16072_v54, %v16072_v54 }
 0x6c2   : > { %v9299_v57 = vpop.permute.xlu0 %9298  ;;  %14455 = vmatmul.mubr.msk.bf16.vlgmr.msra.gmra.mrb[224].mxu1 %vm1898_vm10, %v21123_v15  ;;  %9986 = vrot.lane.b32.xlu0 %v20797_v56, %s16237_s21  ;;  %v15148_v29 = vpop.f32.mrb[195].mxu1 }
 0x6c3   : > { %9984 = vrot.lane.b32.xlu1 %v20795_v47, %s16237_s21  ;;  %9486 = vmatpush1.bf16.msra.mxu1 %v9332_v50  ;;  %v9341_v17 = vsel %vm5066_vm13, %v9297_v24, %v9299_v57 }
 0x6c4   : > { %9517 = vmatprep.mubr.bf16.mxu1 %v22614_v6  ;;  %14457 = vmatmul.mubr.msk.bf16.vlgmr.msra.gmra.mrb[220].mxu0 %vm1898_vm10, %v21123_v15 }
 0x6c5   : > { %v9301_v47 = vpop.permute.xlu1 %9300  ;;  %9558 = vmatprep.mubr.bf16.mxu0 %v22614_v6 }
 0x6c6   : > { %v9283_v56 = vpop.permute.xlu0 %9282  ;;  %9971 = vrot.lane.b32.xlu0 %v21136_v26, %s16228_s22  ;;  %v9342_v23 = vsel %vm5066_vm13, %v9299_v57, %v9301_v47 }
 0x6c7   : > { %9969 = vrot.lane.b32.xlu1 %v20626_v39, %s16228_s22  ;;  %9487 = vmatprep.subr.bf16.mxu1 %v9342_v23  ;;  %v9334_v14 = vsel %vm5066_vm13, %v9281_v22, %v9283_v56 }
 0x6c8   : > { %9488 = vmatpush1.bf16.msra.mxu1 %v9341_v17 }
 0x6c9   : > { %v9285_v1 = vpop.permute.xlu1 %9284 }
 0x6ca   : > { %v9319_v18 = vpop.permute.xlu0 %9318  ;;  %10022 = vrot.lane.b32.xlu0 %v20813_v3, %s16237_s21  ;;  %v9335_v39 = vsel %vm5066_vm13, %v9283_v56, %v9285_v1 }
 0x6cb   : > { %10020 = vrot.lane.b32.xlu1 %v20811_v33, %s16237_s21  ;;  %9526 = vmatprep.subr.bf16.mxu0 %v9335_v39  ;;  %v9350_v35 = vsel %vm5066_vm13, %v9317_v4, %v9319_v18 }
 0x6cc   : > { %9527 = vmatpush1.bf16.msra.mxu0 %v9334_v14  ;;  %v9389_v36 = vsel %vm1616_vm1, %v9350_v35, 0  ;;  %v21216_v14 = vld [vmem:[#allocation6 + $0x14] ss:$56 sps:$4 sm:$0xff]   ;;  %v21220_v35 = vld [vmem:[#allocation6 + $0x18] ss:$56 sps:$4 sm:$0xff]  }
 0x6cd   : > { %v9321_v11 = vpop.permute.xlu1 %9320 }
 0x6ce   : > { %v9303_v48 = vpop.permute.xlu0 %9302  ;;  %10006 = vrot.lane.b32.xlu0 %v20831_v55, %s16237_s21  ;;  %v9351_v24 = vsel %vm5066_vm13, %v9319_v18, %v9321_v11 }
 0x6cf   : > { %10004 = vrot.lane.b32.xlu1 %v20822_v7, %s16237_s21  ;;  %14458 = vmatprep.subr.msk.bf16.mxu1 %vm1616_vm1, %v9351_v24  ;;  %v9343_v16 = vsel %vm5066_vm13, %v9301_v47, %v9303_v48 }
 0x6d0   : > { %9490 = vmatpush1.bf16.msra.mxu1 %v9389_v36  ;;  %v21229_v36 = vld [vmem:[#allocation6 + $0x10] ss:$56 sps:$4 sm:$0xff]  }
 0x6d1   : > { %v9305_v61 = vpop.permute.xlu1 %9304  ;;  %15179 = vmatprep.subr.bf16.mxu1 %v22674_v5 }
 0x6d2   : > { %v9287_v0 = vpop.permute.xlu0 %9286  ;;  %9990 = vrot.lane.b32.xlu0 %v20843_v62, %s16237_s21  ;;  %v9344_v7 = vsel %vm5066_vm13, %v9303_v48, %v9305_v61 }
 0x6d3   : > { %9988 = vrot.lane.b32.xlu1 %v20834_v38, %s16237_s21  ;;  %v9336_v55 = vsel %vm5066_vm13, %v9285_v1, %v9287_v0  ;;  %14459 = vmatmul.mubr.msk.bf16.vlgmr.msra.gmra.mrb[228].mxu1 %vm1898_vm10, %v21123_v15 }
 0x6d4   : > { %9528 = vmatprep.subr.bf16.mxu0 %v9344_v7  ;;  %15180 = vmatpush3.bf16.msra.mxu1 %v9336_v55 }
 0x6d5   : > { %9529 = vmatpush1.bf16.msra.mxu0 %v9343_v16  ;;  %v9323_v46 = vpop.permute.xlu1 %9322  ;;  %v8250_v38 = vpop.f32.mrb[188].mxu0  ;;  %15181 = vmatprep.subr.bf16.mxu1 %v22674_v5 }
 0x6d6   : > { %v9352_v62 = vsel %vm5066_vm13, %v9321_v11, %v9323_v46  ;;  %v21177_v51 = vadd.f32 %v8250_v38, %v21013_v58  ;;  %v9325_v8 = vpop.permute.xlu0 %9324  ;;  %v8252_v22 = vpop.f32.mrb[189].mxu0  ;;  %10026 = vrot.lane.b32.xlu0 %v20856_v27, %s16237_s21  ;;  %15185 = vmatprep.mubr.msk.bf16.mxu1 %vm16227_vm11, %v22674_v5 }
 0x6d7   : > { %10024 = vrot.lane.b32.xlu1 %v20847_v41, %s16237_s21  ;;  %v21184_v37 = vadd.f32 %v8252_v22, %v21018_v28  ;;  %v8254_v59 = vpop.f32.mrb[190].mxu0  ;;  %v9353_v13 = vsel %vm5066_vm13, %v9323_v46, %v9325_v8  ;;  %v9395_v4 = vsel %vm1616_vm1, %v9352_v62, 0  ;;  %v21243_v22 = vld [vmem:[#allocation6 + $0x84] ss:$56 sps:$4 sm:$0xff]  }
 0x6d8   : > { %14460 = vmatprep.subr.msk.bf16.mxu0 %vm1616_vm1, %v9353_v13  ;;  %v8255_v58 = vpop.f32.mrb[191].mxu0  ;;  %v21247_v13 = vld [vmem:[#allocation6 + $0x88] ss:$56 sps:$4 sm:$0xff]  }
 0x6d9   : > { %9531 = vmatpush1.bf16.msra.mxu0 %v9395_v4  ;;  %v9307_v32 = vpop.permute.xlu1 %9306  ;;  %v21252_v4 = vld [vmem:[#allocation6 + $0x80] ss:$56 sps:$4 sm:$0xff]  }
 0x6da   : > { %v9345_v31 = vsel %vm5066_vm13, %v9305_v61, %v9307_v32  ;;  %v9621_v60 = vpop.permute.xlu0 %9620  ;;  %10010 = vrot.lane.b32.xlu0 %v20873_v19, %s16237_s21  ;;  %v21256_v32 = vld [vmem:[#allocation6 + $0x1c] ss:$56 sps:$4 sm:$0xff]  }
 0x6db   : > { %10008 = vrot.lane.b32.xlu1 %v20860_v25, %s16237_s21  ;;  %15182 = vmatpush3.bf16.msra.mxu1 %v9345_v31 }
 0x6dc   : > { %14461 = vmatmul.mubr.msk.bf16.vlgmr.msra.gmra.mrb[224].mxu0 %vm1898_vm10, %v21123_v15  ;;  %15183 = vmatprep.subr.bf16.mxu1 %v22674_v5 }
 0x6dd   : > { %v9623_v28 = vpop.permute.xlu1 %9622  ;;  %9786 = vmatprep.mubr.bf16.mxu0 %v22614_v6 }
 0x6de   : > { %v9619_v63 = vpop.permute.xlu0 %9618  ;;  %v8291_v49 = vpop.f32.mrb[196].mxu1  ;;  %10028 = vrot.lane.b32.xlu0 %v20888_v30, %s16237_s21  ;;  %v9680_v57 = vsel %vm9678_vm0, %v9621_v60, %v9623_v28 }
 0x6df   : > { %9992 = vrot.lane.b32.xlu1 %v20878_v12, %s16237_s21  ;;  %v9679_v50 = vsel %vm9678_vm0, %v9619_v63, %v9621_v60  ;;  %v21205_v54 = vadd.f32 %v8291_v49, %v21046_v2  ;;  %v8293_v29 = vpop.f32.mrb[197].mxu1  ;;  %9754 = vmatprep.subr.bf16.mxu0 %v9680_v57 }
 0x6e0   : > { %v21208_v47 = vadd.f32 %v8293_v29, %v21050_v34  ;;  %v8295_v56 = vpop.f32.mrb[198].mxu1  ;;  %9755 = vmatpush1.bf16.msra.mxu0 %v9679_v50 }
 0x6e1   : > { %v9327_v23 = vpop.permute.xlu1 %9326  ;;  %v8296_v17 = vpop.f32.mrb[199].mxu1  ;;  %v21269_v56 = vld [vmem:[#allocation6 + $0x20] ss:$56 sps:$4 sm:$0xff]  }
 0x6e2   : > { %v9354_v1 = vsel %vm5066_vm13, %v9325_v8, %v9327_v23  ;;  %v9641_v18 = vpop.permute.xlu0 %9640  ;;  %10012 = vrot.lane.b32.xlu0 %v20899_v45, %s16237_s21 }
 0x6e3   : > { %10030 = vrot.lane.b32.xlu1 %v20890_v42, %s16237_s21  ;;  %v9401_v2 = vsel %vm1616_vm1, %v9354_v1, 0 }
 0x6e4   : > { %15184 = vmatpush3.bf16.msra.mxu1 %v9401_v2 }
 0x6e5   : > { %v9643_v39 = vpop.permute.xlu1 %9642 }
 0x6e6   : > { %v9639_v34 = vpop.permute.xlu0 %9638  ;;  %10329 = vrot.lane.b32.xlu0 %v21220_v35, %s16241_s20  ;;  %v9689_v11 = vsel %vm9678_vm0, %v9641_v18, %v9643_v39 }
 0x6e7   : > { %10327 = vrot.lane.b32.xlu1 %v21216_v14, %s16241_s20  ;;  %v9688_v48 = vsel %vm9678_vm0, %v9639_v34, %v9641_v18  ;;  %15186 = vmatmul.mubr.msk.bf16.vlgmr.msra.gmra.mrb[232].mxu1 %vm1898_vm10, %v21123_v15 }
 0x6e8   : > { %9756 = vmatprep.subr.bf16.mxu0 %v9689_v11  ;;  %9827 = vmatprep.mubr.bf16.mxu1 %v22614_v6 }
 0x6e9   : > { %9757 = vmatpush1.bf16.msra.mxu0 %v9688_v48  ;;  %v9625_v24 = vpop.permute.xlu1 %9624 }
 0x6ea   : > { %v9627_v61 = vpop.permute.xlu0 %9626  ;;  %v8332_v0 = vpop.f32.mrb[192].mxu0  ;;  %10032 = vrot.lane.b32.xlu0 %v20921_v44, %s16237_s21  ;;  %v9681_v7 = vsel %vm9678_vm0, %v9623_v28, %v9625_v24 }
 0x6eb   : > { %10325 = vrot.lane.b32.xlu1 %v21229_v36, %s16241_s20  ;;  %v21237_v55 = vadd.f32 %v8332_v0, %v21077_v53  ;;  %v8334_v15 = vpop.f32.mrb[193].mxu0  ;;  %v9682_v16 = vsel %vm9678_vm0, %v9625_v24, %v9627_v61 }
 0x6ec   : > { %v21241_v46 = vadd.f32 %v8334_v15, %v21080_v40  ;;  %9795 = vmatprep.subr.bf16.mxu1 %v9682_v16  ;;  %v8336_v38 = vpop.f32.mrb[194].mxu0 }
 0x6ed   : > { %9796 = vmatpush1.bf16.msra.mxu1 %v9681_v7  ;;  %v9659_v62 = vpop.permute.xlu1 %9658  ;;  %v8337_v8 = vpop.f32.mrb[195].mxu0  ;;  %v21291_v7 = vld [vmem:[#allocation6 + $0x8c] ss:$56 sps:$4 sm:$0xff]  }
 0x6ee   : > { %v9661_v59 = vpop.permute.xlu0 %9660  ;;  %10349 = vrot.lane.b32.xlu0 %v21247_v13, %s16241_s20 }
 0x6ef   : > { %10347 = vrot.lane.b32.xlu1 %v21243_v22, %s16241_s20  ;;  %v9697_v53 = vsel %vm9678_vm0, %v9659_v62, %v9661_v59  ;;  %v21296_v62 = vld [vmem:[#allocation6 + $0x90] ss:$56 sps:$4 sm:$0xff]  }
 0x6f0   : > { %v9728_v28 = vsel %vm1616_vm1, %v9697_v53, 0 }
 0x6f1   : > { %v9663_v40 = vpop.permute.xlu1 %9662 }
 0x6f2   : > { %v9645_v58 = vpop.permute.xlu0 %9644  ;;  %10331 = vrot.lane.b32.xlu0 %v21256_v32, %s16241_s20  ;;  %v9698_v31 = vsel %vm9678_vm0, %v9661_v59, %v9663_v40  ;;  %v21303_v59 = vld [vmem:[#allocation6 + $0x24] ss:$56 sps:$4 sm:$0xff]  }
 0x6f3   : > { %10345 = vrot.lane.b32.xlu1 %v21252_v4, %s16241_s20  ;;  %v8373_v60 = vpop.f32.mrb[200].mxu1  ;;  %14463 = vmatprep.subr.msk.bf16.mxu0 %vm1616_vm1, %v9698_v31  ;;  %v9690_v1 = vsel %vm9678_vm0, %v9643_v39, %v9645_v58 }
 0x6f4   : > { %v21264_v63 = vadd.f32 %v8373_v60, %v21101_v21  ;;  %v8375_v49 = vpop.f32.mrb[201].mxu1  ;;  %9759 = vmatpush1.bf16.msra.mxu0 %v9728_v28 }
 0x6f5   : > { %v21267_v57 = vadd.f32 %v8375_v49, %v21105_v10  ;;  %v8377_v50 = vpop.f32.mrb[202].mxu1  ;;  %v9647_v29 = vpop.permute.xlu1 %9646 }
 0x6f6   : > { %v8378_v23 = vpop.f32.mrb[203].mxu1  ;;  %v9629_v17 = vpop.permute.xlu0 %9628  ;;  %10365 = vrot.lane.b32.xlu0 %v20754_v52, %s16241_s20  ;;  %v9691_v21 = vsel %vm9678_vm0, %v9645_v58, %v9647_v29 }
 0x6f7   : > { %10333 = vrot.lane.b32.xlu1 %v21269_v56, %s16241_s20  ;;  %9797 = vmatprep.subr.bf16.mxu1 %v9691_v21  ;;  %v9683_v11 = vsel %vm9678_vm0, %v9627_v61, %v9629_v17  ;;  %v21325_v21 = vld [vmem:[#allocation6 + $0x94] ss:$56 sps:$4 sm:$0xff]  }
 0x6f8   : > { %9798 = vmatpush1.bf16.msra.mxu1 %v9690_v1 }
 0x6f9   : > { %v9631_v10 = vpop.permute.xlu1 %9630 }
 0x6fa   : > { %v21279_v18 = vpop.permute.xlu0 %9616  ;;  %10369 = vrot.lane.b32.xlu0 %v20767_v9, %s16241_s20  ;;  %v9684_v2 = vsel %vm9678_vm0, %v9629_v17, %v9631_v10 }
 0x6fb   : > { %10367 = vrot.lane.b32.xlu1 %v20762_v20, %s16241_s20  ;;  %v8414_v34 = vpop.f32.mrb[196].mxu0  ;;  %14464 = vmatmul.mubr.msk.bf16.vlgmr.msra.gmra.mrb[228].mxu0 %vm1898_vm10, %v21279_v18 }
 0x6fc   : > { %9836 = vmatprep.subr.bf16.mxu0 %v9684_v2  ;;  %v21288_v39 = vadd.f32 %v8414_v34, %v21120_v43  ;;  %v15157_v48 = vpop.f32.mrb[197].mxu0  ;;  %9868 = vmatprep.mubr.bf16.mxu0 %v22614_v6  ;;  %v21332_v34 = vld [vmem:[#allocation6 + $0x98] ss:$56 sps:$4 sm:$0xff]  }
 0x6fd   : > { %9837 = vmatpush1.bf16.msra.mxu0 %v9683_v11  ;;  %v8417_v24 = vpop.f32.mrb[198].mxu0  ;;  %v9665_v0 = vpop.permute.xlu1 %9664  ;;  %v21336_v48 = vld [vmem:[#allocation6 + $0x2c] ss:$56 sps:$4 sm:$0xff]  }
 0x6fe   : > { %v9699_v15 = vsel %vm9678_vm0, %v9663_v40, %v9665_v0  ;;  %v15158_v16 = vpop.f32.mrb[199].mxu0  ;;  %v9667_v38 = vpop.permute.xlu0 %9666  ;;  %10353 = vrot.lane.b32.xlu0 %v21296_v62, %s16241_s20  ;;  %v21307_v40 = vld [vmem:[#allocation6 + $0x28] ss:$56 sps:$4 sm:$0xff]  }
 0x6ff   : > { %10351 = vrot.lane.b32.xlu1 %v21291_v7, %s16241_s20  ;;  %v9700_v43 = vsel %vm9678_vm0, %v9665_v0, %v9667_v38  ;;  %v9734_v61 = vsel %vm1616_vm1, %v9699_v15, 0  ;;  %v21345_v16 = vld [vmem:[#allocation6 + $0x30] ss:$56 sps:$4 sm:$0xff]  }
 0x700   : > { %14465 = vmatprep.subr.msk.bf16.mxu1 %vm1616_vm1, %v9700_v43 }
 0x701   : > { %9800 = vmatpush1.bf16.msra.mxu1 %v9734_v61  ;;  %v9649_v8 = vpop.permute.xlu1 %9648 }
 0x702   : > { %v9651_v53 = vpop.permute.xlu0 %9650  ;;  %10337 = vrot.lane.b32.xlu0 %v21307_v40, %s16241_s20  ;;  %v9692_v58 = vsel %vm9678_vm0, %v9647_v29, %v9649_v8 }
 0x703   : > { %10335 = vrot.lane.b32.xlu1 %v21303_v59, %s16241_s20  ;;  %v9693_v31 = vsel %vm9678_vm0, %v9649_v8, %v9651_v53 }
 0x704   : > { %14466 = vmatmul.mubr.msk.bf16.vlgmr.msra.gmra.mrb[236].mxu1 %vm1898_vm10, %v21279_v18  ;;  %9838 = vmatprep.subr.bf16.mxu0 %v9693_v31 }
 0x705   : > { %9839 = vmatpush1.bf16.msra.mxu0 %v9692_v58  ;;  %v9633_v60 = vpop.permute.xlu1 %9632  ;;  %9909 = vmatprep.mubr.bf16.mxu1 %v22614_v6 }
 0x706   : > { %v9635_v28 = vpop.permute.xlu0 %9634  ;;  %10371 = vrot.lane.b32.xlu0 %v20811_v33, %s16241_s20  ;;  %v9685_v49 = vsel %vm9678_vm0, %v9631_v10, %v9633_v60 }
 0x707   : > { %10323 = vrot.lane.b32.xlu1 %v21136_v26, %s16222_s8  ;;  %v9686_v50 = vsel %vm9678_vm0, %v9633_v60, %v9635_v28 }
 0x708   : > { %9877 = vmatprep.subr.bf16.mxu1 %v9686_v50 }
 0x709   : > { %9878 = vmatpush1.bf16.msra.mxu1 %v9685_v49  ;;  %v9669_v29 = vpop.permute.xlu1 %9668 }
 0x70a   : > { %v9701_v23 = vsel %vm9678_vm0, %v9667_v38, %v9669_v29  ;;  %v9671_v17 = vpop.permute.xlu0 %9670  ;;  %10355 = vrot.lane.b32.xlu0 %v21325_v21, %s16241_s20 }
 0x70b   : > { %10373 = vrot.lane.b32.xlu1 %v20813_v3, %s16241_s20  ;;  %v9702_v1 = vsel %vm9678_vm0, %v9669_v29, %v9671_v17  ;;  %v9740_v10 = vsel %vm1616_vm1, %v9701_v23, 0 }
 0x70c   : > { %14467 = vmatprep.subr.msk.bf16.mxu0 %vm1616_vm1, %v9702_v1 }
 0x70d   : > { %9841 = vmatpush1.bf16.msra.mxu0 %v9740_v10  ;;  %v9653_v2 = vpop.permute.xlu1 %9652 }
 0x70e   : > { %v9655_v11 = vpop.permute.xlu0 %9654  ;;  %10339 = vrot.lane.b32.xlu0 %v21336_v48, %s16241_s20  ;;  %v9694_v24 = vsel %vm9678_vm0, %v9651_v53, %v9653_v2  ;;  %15189 = vmatprep.subr.bf16.mxu0 %v22674_v5 }
 0x70f   : > { %10357 = vrot.lane.b32.xlu1 %v21332_v34, %s16241_s20  ;;  %v9695_v0 = vsel %vm9678_vm0, %v9653_v2, %v9655_v11 }
 0x710   : > { %14468 = vmatmul.mubr.msk.bf16.vlgmr.msra.gmra.mrb[232].mxu0 %vm1898_vm10, %v21279_v18  ;;  %9879 = vmatprep.subr.bf16.mxu1 %v9695_v0 }
 0x711   : > { %9880 = vmatpush1.bf16.msra.mxu1 %v9694_v24  ;;  %v9637_v15 = vpop.permute.xlu1 %9636  ;;  %15195 = vmatprep.mubr.msk.bf16.mxu0 %vm16227_vm11, %v22674_v5 }
 0x712   : > { %v9687_v38 = vsel %vm9678_vm0, %v9635_v28, %v9637_v15  ;;  %v9673_v43 = vpop.permute.xlu0 %9672  ;;  %10375 = vrot.lane.b32.xlu0 %v20847_v41, %s16241_s20 }
 0x713   : > { %10341 = vrot.lane.b32.xlu1 %v21345_v16, %s16241_s20  ;;  %15190 = vmatpush3.bf16.msra.mxu0 %v9687_v38  ;;  %v9703_v61 = vsel %vm9678_vm0, %v9671_v17, %v9673_v43 }
 0x714   : > { %15191 = vmatprep.subr.bf16.mxu0 %v22674_v5  ;;  %v9746_v50 = vsel %vm1616_vm1, %v9703_v61, 0 }
 0x715   : > { %v9675_v8 = vpop.permute.xlu1 %9674 }
 0x716   : > { %v8601_v53 = vpop.f32.mrb[204].mxu1  ;;  %v9657_v58 = vpop.permute.xlu0 %9656  ;;  %10359 = vrot.lane.b32.xlu0 %v20860_v25, %s16241_s20  ;;  %v9704_v31 = vsel %vm9678_vm0, %v9673_v43, %v9675_v8 }
 0x717   : > { %10377 = vrot.lane.b32.xlu1 %v20856_v27, %s16241_s20  ;;  %v21362_v60 = vadd.f32 %v8601_v53, %v21177_v51  ;;  %v9696_v28 = vsel %vm9678_vm0, %v9655_v11, %v9657_v58  ;;  %v8603_v49 = vpop.f32.mrb[205].mxu1  ;;  %14469 = vmatprep.subr.msk.bf16.mxu1 %vm1616_vm1, %v9704_v31 }
 0x718   : > { %v21368_v29 = vadd.f32 %v8603_v49, %v21184_v37  ;;  %v8605_v23 = vpop.f32.mrb[206].mxu1  ;;  %15192 = vmatpush3.bf16.msra.mxu0 %v9696_v28  ;;  %9882 = vmatpush1.bf16.msra.mxu1 %v9746_v50 }
 0x719   : > { %v8606_v17 = vpop.f32.mrb[207].mxu1  ;;  %v9977_v25 = vpop.permute.xlu1 %9976  ;;  %15193 = vmatprep.subr.bf16.mxu0 %v22674_v5 }
 0x71a   : > { %v9979_v51 = vpop.permute.xlu0 %9978  ;;  %10343 = vrot.lane.b32.xlu0 %v20878_v12, %s16241_s20 }
 0x71b   : > { %10361 = vrot.lane.b32.xlu1 %v20873_v19, %s16241_s20  ;;  %v8642_v1 = vpop.f32.mrb[200].mxu0  ;;  %14470 = vmatmul.mubr.msk.bf16.vlgmr.msra.gmra.mrb[240].mxu1 %vm1898_vm10, %v21279_v18  ;;  %v10036_v2 = vsel %vm1898_vm10, %v9977_v25, %v9979_v51 }
 0x71c   : > { %v21376_v10 = vadd.f32 %v8642_v1, %v21205_v54  ;;  %v8644_v37 = vpop.f32.mrb[201].mxu0  ;;  %10110 = vmatprep.subr.bf16.mxu1 %v10036_v2  ;;  %10142 = vmatprep.mubr.bf16.mxu1 %v22614_v6 }
 0x71d   : > { %v21382_v11 = vadd.f32 %v8644_v37, %v21208_v47  ;;  %v8646_v19 = vpop.f32.mrb[202].mxu0  ;;  %v9677_v24 = vpop.permute.xlu1 %9676 }
 0x71e   : > { %v8647_v0 = vpop.f32.mrb[203].mxu0  ;;  %v9705_v12 = vsel %vm9678_vm0, %v9675_v8, %v9677_v24  ;;  %v9975_v54 = vpop.permute.xlu0 %9974  ;;  %10381 = vrot.lane.b32.xlu0 %v20890_v42, %s16241_s20  ;;  %vm22868_vm0 = vcmask 752640  }
 0x71f   : > { %10379 = vrot.lane.b32.xlu1 %v20888_v30, %s16241_s20  ;;  %v9752_v15 = vsel %vm1616_vm1, %v9705_v12, 0  ;;  %v10035_v47 = vsel %vm1898_vm10, %v9975_v54, %v9977_v25 }
 0x720   : > { %10111 = vmatpush1.bf16.msra.mxu1 %v10035_v47  ;;  %15194 = vmatpush3.bf16.msra.mxu0 %v9752_v15 }
 0x721   : > { %v9997_v38 = vpop.permute.xlu1 %9996 }
 0x722   : > { %v9999_v43 = vpop.permute.xlu0 %9998  ;;  %10678 = vrot.lane.b32.xlu0 %v21216_v14, %s16228_s22 }
 0x723   : > { %10363 = vrot.lane.b32.xlu1 %v20899_v45, %s16241_s20  ;;  %15196 = vmatmul.mubr.msk.bf16.vlgmr.msra.gmra.mrb[236].mxu0 %vm1898_vm10, %v21279_v18  ;;  %v10045_v61 = vsel %vm1898_vm10, %v9997_v38, %v9999_v43 }
 0x724   : > { %10112 = vmatprep.subr.bf16.mxu1 %v10045_v61  ;;  %10183 = vmatprep.mubr.bf16.mxu0 %v22614_v6 }
 0x725   : > { %v9981_v8 = vpop.permute.xlu1 %9980 }
 0x726   : > { %v9983_v53 = vpop.permute.xlu0 %9982  ;;  %10383 = vrot.lane.b32.xlu0 %v20921_v44, %s16241_s20  ;;  %v10037_v45 = vsel %vm1898_vm10, %v9979_v51, %v9981_v8 }
 0x727   : > { %10680 = vrot.lane.b32.xlu1 %v21220_v35, %s16228_s22  ;;  %v8683_v58 = vpop.f32.mrb[208].mxu1  ;;  %v10038_v14 = vsel %vm1898_vm10, %v9981_v8, %v9983_v53 }
 0x728   : > { %v21407_v18 = vadd.f32 %v8683_v58, %v21237_v55  ;;  %v8685_v31 = vpop.f32.mrb[209].mxu1  ;;  %10151 = vmatprep.subr.bf16.mxu0 %v10038_v14 }
 0x729   : > { %v21410_v28 = vadd.f32 %v8685_v31, %v21241_v46  ;;  %v8687_v49 = vpop.f32.mrb[210].mxu1  ;;  %10152 = vmatpush1.bf16.msra.mxu0 %v10037_v45  ;;  %v9995_v35 = vpop.permute.xlu1 %9994 }
 0x72a   : > { %v10044_v50 = vsel %vm1898_vm10, %v9995_v35, %v9997_v38  ;;  %v8688_v23 = vpop.f32.mrb[211].mxu1  ;;  %v10015_v17 = vpop.permute.xlu0 %10014  ;;  %10698 = vrot.lane.b32.xlu0 %v21243_v22, %s16228_s22 }
 0x72b   : > { %10676 = vrot.lane.b32.xlu1 %v21229_v36, %s16228_s22  ;;  %10113 = vmatpush1.bf16.msra.mxu1 %v10044_v50 }
 0x72d   : > { %v10017_v55 = vpop.permute.xlu1 %10016 }
 0x72e   : > { %v10053_v46 = vsel %vm1898_vm10, %v10015_v17, %v10017_v55  ;;  %v10019_v25 = vpop.permute.xlu0 %10018  ;;  %10682 = vrot.lane.b32.xlu0 %v21256_v32, %s16228_s22 }
 0x72f   : > { %10700 = vrot.lane.b32.xlu1 %v21247_v13, %s16228_s22  ;;  %v10054_v36 = vsel %vm1898_vm10, %v10017_v55, %v10019_v25  ;;  %v10084_v51 = vsel %vm1616_vm1, %v10053_v46, 0  ;;  %v22850_v46 = vld [vmem:[#allocation10_spill] sm:$0xff] }
 0x730   : > { %14473 = vmatprep.subr.msk.bf16.mxu1 %vm1616_vm1, %v10054_v36 }
 0x731   : > { %10115 = vmatpush1.bf16.msra.mxu1 %v10084_v51  ;;  %v10001_v1 = vpop.permute.xlu1 %10000 }
 0x732   : > { %v10003_v22 = vpop.permute.xlu0 %10002  ;;  %v8724_v37 = vpop.f32.mrb[204].mxu0  ;;  %10696 = vrot.lane.b32.xlu0 %v21252_v4, %s16228_s22  ;;  %v10046_v13 = vsel %vm1898_vm10, %v9999_v43, %v10001_v1 }
 0x733   : > { %10684 = vrot.lane.b32.xlu1 %v21269_v56, %s16228_s22  ;;  %v21431_v32 = vadd.f32 %v8724_v37, %v21264_v63  ;;  %v8726_v2 = vpop.f32.mrb[205].mxu0  ;;  %v10047_v19 = vsel %vm1898_vm10, %v10001_v1, %v10003_v22 }
 0x734   : > { %v21435_v24 = vadd.f32 %v8726_v2, %v21267_v57  ;;  %10153 = vmatprep.subr.bf16.mxu0 %v10047_v19  ;;  %v8728_v0 = vpop.f32.mrb[206].mxu0 }
 0x735   : > { %10154 = vmatpush1.bf16.msra.mxu0 %v10046_v13  ;;  %v9985_v56 = vpop.permute.xlu1 %9984  ;;  %v8729_v12 = vpop.f32.mrb[207].mxu0 }
 0x736   : > { %v9987_v4 = vpop.permute.xlu0 %9986  ;;  %10718 = vrot.lane.b32.xlu0 %v20762_v20, %s16228_s22  ;;  %v10039_v20 = vsel %vm1898_vm10, %v9983_v53, %v9985_v56 }
 0x737   : > { %10716 = vrot.lane.b32.xlu1 %v20754_v52, %s16228_s22  ;;  %v10040_v63 = vsel %vm1898_vm10, %v9985_v56, %v9987_v4 }
 0x738   : > { %10192 = vmatprep.subr.bf16.mxu1 %v10040_v63  ;;  %v16090_v63 = vld [vmem:[#allocation6 + $0xa0] ss:$56 sps:$4 sm:$0xff]  }
 0x739   : > { %v9970_v54 = vpop.permute.xlu1 %9969 }
 0x73a   : > { %v9972_v57 = vpop.permute.xlu0 %9971  ;;  %10702 = vrot.lane.b32.xlu0 %v21291_v7, %s16228_s22 }
 0x73b   : > { %10720 = vrot.lane.b32.xlu1 %v20767_v9, %s16228_s22  ;;  %v21447_v15 = vsel %vm3945_vm4, %v9970_v54, %v9972_v57  ;;  %v8765_v47 = vpop.f32.mrb[212].mxu1 }
 0x73c   : > { %v21450_v52 = vadd.f32 %v8765_v47, %v21288_v39  ;;  %v15167_v38 = vpop.f32.mrb[213].mxu1  ;;  %14474 = vmatmul.mubr.msk.bf16.vlgmr.msra.gmra.mrb[244].mxu1 %vm1898_vm10, %v21447_v15 }
 0x73d   : > { %10193 = vmatpush1.bf16.msra.mxu1 %v10039_v20  ;;  %v8768_v43 = vpop.f32.mrb[214].mxu1  ;;  %v10021_v9 = vpop.permute.xlu1 %10020  ;;  %10224 = vmatprep.mubr.bf16.mxu1 %v22614_v6 }
 0x73e   : > { %v10055_v7 = vsel %vm1898_vm10, %v10019_v25, %v10021_v9  ;;  %v15168_v61 = vpop.f32.mrb[215].mxu1  ;;  %v10023_v8 = vpop.permute.xlu0 %10022  ;;  %10686 = vrot.lane.b32.xlu0 %v21303_v59, %s16228_s22 }
 0x73f   : > { %10704 = vrot.lane.b32.xlu1 %v21296_v62, %s16228_s22  ;;  %v10056_v39 = vsel %vm1898_vm10, %v10021_v9, %v10023_v8  ;;  %v10090_v45 = vsel %vm1616_vm1, %v10055_v7, 0 }
 0x740   : > { %14475 = vmatprep.subr.msk.bf16.mxu0 %vm1616_vm1, %v10056_v39 }
 0x741   : > { %10156 = vmatpush1.bf16.msra.mxu0 %v10090_v45  ;;  %v10005_v53 = vpop.permute.xlu1 %10004 }
 0x742   : > { %v10007_v62 = vpop.permute.xlu0 %10006  ;;  %10722 = vrot.lane.b32.xlu0 %v20811_v33, %s16228_s22  ;;  %v10048_v58 = vsel %vm1898_vm10, %v10003_v22, %v10005_v53 }
 0x743   : > { %10688 = vrot.lane.b32.xlu1 %v21307_v40, %s16228_s22  ;;  %v10049_v59 = vsel %vm1898_vm10, %v10005_v53, %v10007_v62 }
 0x744   : > { %14476 = vmatmul.mubr.msk.bf16.vlgmr.msra.gmra.mrb[240].mxu0 %vm1898_vm10, %v21447_v15  ;;  %10194 = vmatprep.subr.bf16.mxu1 %v10049_v59 }
 0x745   : > { %10195 = vmatpush1.bf16.msra.mxu1 %v10048_v58  ;;  %v9989_v14 = vpop.permute.xlu1 %9988  ;;  %10265 = vmatprep.mubr.bf16.mxu0 %v22614_v6 }
 0x746   : > { %v9991_v31 = vpop.permute.xlu0 %9990  ;;  %10674 = vrot.lane.b32.xlu0 %v21136_v26, %s16230_s30  ;;  %v10041_v40 = vsel %vm1898_vm10, %v9987_v4, %v9989_v14  ;;  %v16089_v4 = vld [vmem:[#allocation6 + $0x9c] ss:$56 sps:$4 sm:$0xff]  }
 0x747   : > { %10724 = vrot.lane.b32.xlu1 %v20813_v3, %s16228_s22  ;;  %v10042_v33 = vsel %vm1898_vm10, %v9989_v14, %v9991_v31  ;;  %v16091_v14 = vld [vmem:[#allocation6 + $0x34] ss:$56 sps:$4 sm:$0xff]  }
 0x748   : > { %10233 = vmatprep.subr.bf16.mxu0 %v10042_v33 }
 0x749   : > { %10234 = vmatpush1.bf16.msra.mxu0 %v10041_v40  ;;  %v10025_v49 = vpop.permute.xlu1 %10024 }
 0x74a   : > { %v10057_v35 = vsel %vm1898_vm10, %v10023_v8, %v10025_v49  ;;  %v10027_v50 = vpop.permute.xlu0 %10026  ;;  %10708 = vrot.lane.b32.xlu0 %v21332_v34, %s16228_s22 }
 0x74b   : > { %10706 = vrot.lane.b32.xlu1 %v21325_v21, %s16228_s22  ;;  %v10058_v3 = vsel %vm1898_vm10, %v10025_v49, %v10027_v50  ;;  %v10096_v26 = vsel %vm1616_vm1, %v10057_v35, 0 }
 0x74c   : > { %14477 = vmatprep.subr.msk.bf16.mxu1 %vm1616_vm1, %v10058_v3 }
 0x74d   : > { %10197 = vmatpush1.bf16.msra.mxu1 %v10096_v26  ;;  %v10009_v23 = vpop.permute.xlu1 %10008 }
 0x74e   : > { %v10011_v17 = vpop.permute.xlu0 %10010  ;;  %10692 = vrot.lane.b32.xlu0 %v21345_v16, %s16228_s22  ;;  %v10050_v21 = vsel %vm1898_vm10, %v10007_v62, %v10009_v23  ;;  %15199 = vmatprep.subr.bf16.mxu1 %v22674_v5  ;;  %v22851_v16 = vld [vmem:[#allocation12_spill] sm:$0xff]  ;;  %v22852_v62 = vld [vmem:[#allocation11_spill] sm:$0xff] }
 0x74f   : > { %10690 = vrot.lane.b32.xlu1 %v21336_v48, %s16228_s22  ;;  %v10051_v34 = vsel %vm1898_vm10, %v10009_v23, %v10011_v17 }
 0x750   : > { %14478 = vmatmul.mubr.msk.bf16.vlgmr.msra.gmra.mrb[248].mxu1 %vm1898_vm10, %v21447_v15  ;;  %10235 = vmatprep.subr.bf16.mxu0 %v10051_v34 }
 0x751   : > { %10236 = vmatpush1.bf16.msra.mxu0 %v10050_v21  ;;  %v9993_v55 = vpop.permute.xlu1 %9992  ;;  %15205 = vmatprep.mubr.msk.bf16.mxu1 %vm16227_vm11, %v22674_v5 }
 0x752   : > { %v10043_v48 = vsel %vm1898_vm10, %v9991_v31, %v9993_v55  ;;  %v10029_v25 = vpop.permute.xlu0 %10028  ;;  %15432 = vrot.lane.b32.xlu0 %v22851_v16, %s16218_s26 }
 0x753   : > { %15427 = vrot.lane.b32.xlu1 %v22850_v46, %s16218_s26  ;;  %v8957_v36 = vpop.f32.mrb[208].mxu0  ;;  %15200 = vmatpush3.bf16.msra.mxu1 %v10043_v48  ;;  %v10059_v51 = vsel %vm1898_vm10, %v10027_v50, %v10029_v25 }
 0x754   : > { %v21505_v1 = vadd.f32 %v8957_v36, %v21362_v60  ;;  %v8959_v22 = vpop.f32.mrb[209].mxu0  ;;  %15201 = vmatprep.subr.bf16.mxu1 %v22674_v5  ;;  %v10102_v12 = vsel %vm1616_vm1, %v10059_v51, 0 }
 0x755   : > { %v21509_v37 = vadd.f32 %v8959_v22, %v21368_v29  ;;  %v8961_v13 = vpop.f32.mrb[210].mxu0  ;;  %v10031_v2 = vpop.permute.xlu1 %10030 }
 0x756   : > { %v8962_v19 = vpop.f32.mrb[211].mxu0  ;;  %v10013_v0 = vpop.permute.xlu0 %10012  ;;  %10728 = vrot.lane.b32.xlu0 %v20856_v27, %s16228_s22  ;;  %v10060_v56 = vsel %vm1898_vm10, %v10029_v25, %v10031_v2 }
 0x757   : > { %10726 = vrot.lane.b32.xlu1 %v20847_v41, %s16228_s22  ;;  %v10052_v60 = vsel %vm1898_vm10, %v10011_v17, %v10013_v0  ;;  %14479 = vmatprep.subr.msk.bf16.mxu0 %vm1616_vm1, %v10060_v56  ;;  %v22853_v0 = vld [vmem:[#allocation15_spill] sm:$0xff] }
 0x758   : > { %15202 = vmatpush3.bf16.msra.mxu1 %v10052_v60  ;;  %10238 = vmatpush1.bf16.msra.mxu0 %v10102_v12 }
 0x759   : > { %v10328_v29 = vpop.permute.xlu1 %10327  ;;  %15203 = vmatprep.subr.bf16.mxu1 %v22674_v5 }
 0x75a   : > { %v10330_v41 = vpop.permute.xlu0 %10329  ;;  %10712 = vrot.lane.b32.xlu0 %v16090_v63, %s16228_s22 }
 0x75b   : > { %10710 = vrot.lane.b32.xlu1 %v16089_v4, %s16228_s22  ;;  %v8998_v27 = vpop.f32.mrb[216].mxu1  ;;  %14480 = vmatmul.mubr.msk.bf16.vlgmr.msra.gmra.mrb[244].mxu0 %vm1898_vm10, %v21447_v15  ;;  %v10387_v54 = vsel %vm10385_vm12, %v10328_v29, %v10330_v41 }
 0x75c   : > { %v21526_v57 = vadd.f32 %v8998_v27, %v21376_v10  ;;  %v9000_v47 = vpop.f32.mrb[217].mxu1  ;;  %10461 = vmatprep.subr.bf16.mxu0 %v10387_v54  ;;  %10493 = vmatprep.mubr.bf16.mxu0 %v22614_v6 }
 0x75d   : > { %v21530_v38 = vadd.f32 %v9000_v47, %v21382_v11  ;;  %v9002_v20 = vpop.f32.mrb[218].mxu1  ;;  %v10326_v43 = vpop.permute.xlu1 %10325 }
 0x75e   : > { %v10386_v9 = vsel %vm10385_vm12, %v10326_v43, %v10328_v29  ;;  %v9003_v7 = vpop.f32.mrb[219].mxu1  ;;  %v10033_v61 = vpop.permute.xlu0 %10032  ;;  %15442 = vrot.lane.b32.xlu0 %v22851_v16, %s16217_s25  ;;  %v22854_v43 = vld [vmem:[#allocation18_spill] sm:$0xff] }
 0x75f   : > { %15437 = vrot.lane.b32.xlu1 %v22850_v46, %s16217_s25  ;;  %v10061_v10 = vsel %vm1898_vm10, %v10031_v2, %v10033_v61  ;;  %10462 = vmatpush1.bf16.msra.mxu0 %v10386_v9  ;;  %v16092_v2 = vld [vmem:[#allocation6 + $0xa4] ss:$56 sps:$4 sm:$0xff]  }
 0x760   : > { %v10108_v8 = vsel %vm1616_vm1, %v10061_v10, 0 }
 0x761   : > { %15204 = vmatpush3.bf16.msra.mxu1 %v10108_v8  ;;  %v10348_v11 = vpop.permute.xlu1 %10347 }
 0x762   : > { %v10350_v39 = vpop.permute.xlu0 %10349  ;;  %15452 = vrot.lane.b32.xlu0 %v22851_v16, %s16220_s28 }
 0x763   : > { %15447 = vrot.lane.b32.xlu1 %v22850_v46, %s16220_s28  ;;  %v10396_v45 = vsel %vm10385_vm12, %v10348_v11, %v10350_v39 }
 0x764   : > { %15206 = vmatmul.mubr.msk.bf16.vlgmr.msra.gmra.mrb[252].mxu1 %vm1898_vm10, %v21447_v15  ;;  %10463 = vmatprep.subr.bf16.mxu0 %v10396_v45  ;;  %v22855_v45 = vld [vmem:[#allocation14_spill] sm:$0xff] }
 0x765   : > { %v10346_v53 = vpop.permute.xlu1 %10345  ;;  %10534 = vmatprep.mubr.bf16.mxu1 %v22614_v6 }
 0x766   : > { %v10395_v58 = vsel %vm10385_vm12, %v10346_v53, %v10348_v11  ;;  %v10332_v59 = vpop.permute.xlu0 %10331  ;;  %10694 = vrot.lane.b32.xlu0 %v16091_v14, %s16228_s22  ;;  %v22856_v53 = vld [vmem:[#allocation16_spill] sm:$0xff] }
 0x767   : > { %15457 = vrot.lane.b32.xlu1 %v22852_v62, %s16218_s26  ;;  %v9039_v31 = vpop.f32.mrb[212].mxu0  ;;  %10464 = vmatpush1.bf16.msra.mxu0 %v10395_v58 }
 0x768   : > { %v21552_v40 = vadd.f32 %v9039_v31, %v21407_v18  ;;  %v9041_v33 = vpop.f32.mrb[213].mxu0  ;;  %v10388_v18 = vsel %vm10385_vm12, %v10330_v41, %v10332_v59 }
 0x769   : > { %v21555_v15 = vadd.f32 %v9041_v33, %v21410_v28  ;;  %v9043_v49 = vpop.f32.mrb[214].mxu0  ;;  %v10334_v35 = vpop.permute.xlu1 %10333 }
 0x76a   : > { %v9044_v50 = vpop.f32.mrb[215].mxu0  ;;  %v10366_v3 = vpop.permute.xlu0 %10365  ;;  %10732 = vrot.lane.b32.xlu0 %v20890_v42, %s16228_s22  ;;  %v10389_v26 = vsel %vm10385_vm12, %v10332_v59, %v10334_v35 }
 0x76b   : > { %10730 = vrot.lane.b32.xlu1 %v20888_v30, %s16228_s22  ;;  %10502 = vmatprep.subr.bf16.mxu1 %v10389_v26 }
 0x76c   : > { %10503 = vmatpush1.bf16.msra.mxu1 %v10388_v18  ;;  %v22857_v18 = vld [vmem:[#allocation13_spill] sm:$0xff] }
 0x76d   : > { %v10368_v23 = vpop.permute.xlu1 %10367 }
 0x76e   : > { %v10404_v28 = vsel %vm10385_vm12, %v10366_v3, %v10368_v23  ;;  %v10370_v17 = vpop.permute.xlu0 %10369  ;;  %15467 = vrot.lane.b32.xlu0 %v22851_v16, %s16219_s27 }
 0x76f   : > { %15462 = vrot.lane.b32.xlu1 %v22850_v46, %s16219_s27  ;;  %v10405_v30 = vsel %vm10385_vm12, %v10368_v23, %v10370_v17  ;;  %v10435_v42 = vsel %vm1616_vm1, %v10404_v28, 0  ;;  %v22858_v23 = vld [vmem:[#allocation17_spill] sm:$0xff] }
 0x770   : > { %14482 = vmatprep.subr.msk.bf16.mxu0 %vm1616_vm1, %v10405_v30  ;;  %v15541_v28 = vpack.i.bf16 %v22858_v23, %v22857_v18 }
 0x771   : > { %10466 = vmatpush1.bf16.msra.mxu0 %v10435_v42  ;;  %v10352_v21 = vpop.permute.xlu1 %10351 }
 0x772   : > { %v10354_v34 = vpop.permute.xlu0 %10353  ;;  %v9080_v55 = vpop.f32.mrb[220].mxu1  ;;  %15477 = vrot.lane.b32.xlu0 %v22852_v62, %s16220_s28  ;;  %v10397_v46 = vsel %vm10385_vm12, %v10350_v39, %v10352_v21 }
 0x773   : > { %15472 = vrot.lane.b32.xlu1 %v22852_v62, %s16217_s25  ;;  %v21577_v48 = vadd.f32 %v9080_v55, %v21431_v32  ;;  %v9082_v25 = vpop.f32.mrb[221].mxu1  ;;  %v10398_v16 = vsel %vm10385_vm12, %v10352_v21, %v10354_v34 }
 0x774   : > { %v21581_v36 = vadd.f32 %v9082_v25, %v21435_v24  ;;  %10504 = vmatprep.subr.bf16.mxu1 %v10398_v16  ;;  %v9084_v51 = vpop.f32.mrb[222].mxu1 }
 0x775   : > { %10505 = vmatpush1.bf16.msra.mxu1 %v10397_v46  ;;  %v10336_v22 = vpop.permute.xlu1 %10335  ;;  %v9085_v13 = vpop.f32.mrb[223].mxu1 }
 0x776   : > { %v10338_v19 = vpop.permute.xlu0 %10337  ;;  %15482 = vrot.lane.b32.xlu0 %v22853_v0, %s16218_s26  ;;  %v10390_v12 = vsel %vm10385_vm12, %v10334_v35, %v10336_v22 }
 0x777   : > { %10714 = vrot.lane.b32.xlu1 %v16092_v2, %s16228_s22  ;;  %v10391_v32 = vsel %vm10385_vm12, %v10336_v22, %v10338_v19 }
 0x778   : > { %10543 = vmatprep.subr.bf16.mxu0 %v10391_v32 }
 0x779   : > { %v21587_v56 = vpop.permute.xlu1 %10323 }
 0x77a   : > { %v10372_v24 = vpop.permute.xlu0 %10371  ;;  %v9121_v60 = vpop.f32.mrb[216].mxu0  ;;  %14483 = vmatmul.mubr.msk.bf16.vlgmr.msra.gmra.mrb[248].mxu0 %vm1898_vm10, %v21587_v56  ;;  %15487 = vrot.lane.b32.xlu0 %v22852_v62, %s16219_s27  ;;  %v15521_v62 = vpack.i.bf16 %v22856_v53, %v22855_v45 }
 0x77b   : > { %10734 = vrot.lane.b32.xlu1 %v20921_v44, %s16228_s22  ;;  %v21597_v29 = vadd.f32 %v9121_v60, %v21450_v52  ;;  %10544 = vmatpush1.bf16.msra.mxu0 %v10390_v12  ;;  %v15177_v4 = vpop.f32.mrb[217].mxu0  ;;  %v10406_v41 = vsel %vm10385_vm12, %v10370_v17, %v10372_v24 }
 0x77c   : > { %10575 = vmatprep.mubr.bf16.mxu0 %v22614_v6  ;;  %v9124_v44 = vpop.f32.mrb[218].mxu0  ;;  %v10441_v52 = vsel %vm1616_vm1, %v10406_v41, 0 }
 0x77d   : > { %v10374_v63 = vpop.permute.xlu1 %10373  ;;  %v15178_v27 = vpop.f32.mrb[219].mxu0 }
 0x77e   : > { %v10356_v54 = vpop.permute.xlu0 %10355  ;;  %15497 = vrot.lane.b32.xlu0 %v22853_v0, %s16220_s28  ;;  %v10407_v47 = vsel %vm10385_vm12, %v10372_v24, %v10374_v63 }
 0x77f   : > { %15492 = vrot.lane.b32.xlu1 %v22853_v0, %s16217_s25  ;;  %14484 = vmatprep.subr.msk.bf16.mxu1 %vm1616_vm1, %v10407_v47  ;;  %v10399_v61 = vsel %vm10385_vm12, %v10354_v34, %v10356_v54  ;;  %v246_v47 = vld [vmem:[%s22430_s4 + $0x20] sm:$0xff] }
 0x780   : > { %10507 = vmatpush1.bf16.msra.mxu1 %v10441_v52 }
 0x781   : > { %v10358_v20 = vpop.permute.xlu1 %10357 }
 0x782   : > { %v10340_v9 = vpop.permute.xlu0 %10339  ;;  %15507 = vrot.lane.b32.xlu0 %v22853_v0, %s16219_s27  ;;  %v10400_v7 = vsel %vm10385_vm12, %v10356_v54, %v10358_v20  ;;  %v15546_v0 = vpack.i.bf16 %v22857_v18, %v22856_v53 }
 0x783   : > { %15502 = vrot.lane.b32.xlu1 %v22854_v43, %s16218_s26  ;;  %14485 = vmatmul.mubr.msk.bf16.vlgmr.msra.gmra.mrb[0].mxu1 %vm1898_vm10, %v21587_v56  ;;  %v10392_v39 = vsel %vm10385_vm12, %v10338_v19, %v10340_v9 }
 0x784   : > { %10545 = vmatprep.subr.bf16.mxu0 %v10400_v7  ;;  %10616 = vmatprep.mubr.bf16.mxu1 %v22614_v6 }
 0x785   : > { %10546 = vmatpush1.bf16.msra.mxu0 %v10399_v61  ;;  %v10342_v10 = vpop.permute.xlu1 %10341 }
 0x786   : > { %v10376_v8 = vpop.permute.xlu0 %10375  ;;  %15517 = vrot.lane.b32.xlu0 %v22854_v43, %s16220_s28  ;;  %v10393_v11 = vsel %vm10385_vm12, %v10340_v9, %v10342_v10 }
 0x787   : > { %15512 = vrot.lane.b32.xlu1 %v22854_v43, %s16217_s25  ;;  %10584 = vmatprep.subr.bf16.mxu1 %v10393_v11  ;;  %v10408_v58 = vsel %vm10385_vm12, %v10374_v63, %v10376_v8 }
 0x788   : > { %10585 = vmatpush1.bf16.msra.mxu1 %v10392_v39  ;;  %v10447_v33 = vsel %vm1616_vm1, %v10408_v58, 0 }
 0x789   : > { %v10378_v59 = vpop.permute.xlu1 %10377 }
 0x78a   : > { %v10360_v14 = vpop.permute.xlu0 %10359  ;;  %15527 = vrot.lane.b32.xlu0 %v22854_v43, %s16219_s27  ;;  %v10409_v31 = vsel %vm10385_vm12, %v10376_v8, %v10378_v59 }
 0x78b   : > { %15522 = vrot.lane.b32.xlu1 %v15521_v62, %s16218_s26  ;;  %14486 = vmatprep.subr.msk.bf16.mxu0 %vm1616_vm1, %v10409_v31  ;;  %v10401_v26 = vsel %vm10385_vm12, %v10358_v20, %v10360_v14 }
 0x78c   : > { %10548 = vmatpush1.bf16.msra.mxu0 %v10447_v33 }
 0x78d   : > { %v10362_v49 = vpop.permute.xlu1 %10361  ;;  %15209 = vmatprep.subr.bf16.mxu0 %v22674_v5 }
 0x78e   : > { %v10344_v35 = vpop.permute.xlu0 %10343  ;;  %15537 = vrot.lane.b32.xlu0 %v15521_v62, %s16220_s28  ;;  %v10402_v50 = vsel %vm10385_vm12, %v10360_v14, %v10362_v49 }
 0x78f   : > { %15532 = vrot.lane.b32.xlu1 %v15521_v62, %s16217_s25  ;;  %v10394_v3 = vsel %vm10385_vm12, %v10342_v10, %v10344_v35  ;;  %14487 = vmatmul.mubr.msk.bf16.vlgmr.msra.gmra.mrb[252].mxu0 %vm1898_vm10, %v21587_v56 }
 0x790   : > { %10586 = vmatprep.subr.bf16.mxu1 %v10402_v50  ;;  %15210 = vmatpush3.bf16.msra.mxu0 %v10394_v3 }
 0x791   : > { %10587 = vmatpush1.bf16.msra.mxu1 %v10401_v26  ;;  %v10380_v17 = vpop.permute.xlu1 %10379  ;;  %15211 = vmatprep.subr.bf16.mxu0 %v22674_v5 }
 0x792   : > { %v10410_v30 = vsel %vm10385_vm12, %v10378_v59, %v10380_v17  ;;  %v10382_v42 = vpop.permute.xlu0 %10381  ;;  %11269 = vrot.lane.b32.xlu0 %v22855_v45, %s16219_s27  ;;  %15215 = vmatprep.mubr.msk.bf16.mxu0 %vm16227_vm11, %v22674_v5 }
 0x793   : > { %15542 = vrot.lane.b32.xlu1 %v15541_v28, %s16218_s26  ;;  %v10411_v21 = vsel %vm10385_vm12, %v10380_v17, %v10382_v42  ;;  %v10453_v34 = vsel %vm1616_vm1, %v10410_v30, 0 }
 0x794   : > { %14488 = vmatprep.subr.msk.bf16.mxu1 %vm1616_vm1, %v10411_v21 }
 0x795   : > { %10589 = vmatpush1.bf16.msra.mxu1 %v10453_v34  ;;  %v10364_v55 = vpop.permute.xlu1 %10363  ;;  %v9437_v46 = vpop.f32.mrb[224].mxu1 }
 0x796   : > { %v10403_v25 = vsel %vm10385_vm12, %v10362_v49, %v10364_v55  ;;  %v21656_v16 = vadd.f32 %v9437_v46, %v21505_v1  ;;  %v10679_v51 = vpop.permute.xlu0 %10678  ;;  %v9439_v22 = vpop.f32.mrb[225].mxu1  ;;  %11218 = vrot.lane.b32.xlu0 %v22857_v18, %s16220_s28 }
 0x797   : > { %11163 = vrot.lane.b32.xlu1 %v22857_v18, %s16217_s25  ;;  %v21661_v13 = vadd.f32 %v9439_v22, %v21509_v37  ;;  %v9478_v2 = vpop.f32.mrb[220].mxu0  ;;  %v9441_v19 = vpop.f32.mrb[226].mxu1  ;;  %15212 = vmatpush3.bf16.msra.mxu0 %v10403_v25 }
 0x798   : > { %v21666_v32 = vadd.f32 %v9478_v2, %v21526_v57  ;;  %v9480_v24 = vpop.f32.mrb[221].mxu0  ;;  %14489 = vmatmul.mubr.msk.bf16.vlgmr.msra.gmra.mrb[4].mxu1 %vm1898_vm10, %v21587_v56  ;;  %v9442_v1 = vpop.f32.mrb[227].mxu1  ;;  %15213 = vmatprep.subr.bf16.mxu0 %v22674_v5 }
 0x799   : > { %v21672_v60 = vadd.f32 %v9480_v24, %v21530_v38  ;;  %v9482_v37 = vpop.f32.mrb[222].mxu0  ;;  %v10681_v12 = vpop.permute.xlu1 %10680  ;;  %10843 = vmatprep.mubr.bf16.mxu1 %v22614_v6 }
 0x79a   : > { %v9483_v4 = vpop.f32.mrb[223].mxu0  ;;  %v10384_v41 = vpop.permute.xlu0 %10383  ;;  %11165 = vrot.lane.b32.xlu0 %v22858_v23, %s16217_s25  ;;  %v10737_v57 = vsel %vm3945_vm4, %v10679_v51, %v10681_v12 }
 0x79b   : > { %15547 = vrot.lane.b32.xlu1 %v15546_v0, %s16219_s27  ;;  %v10412_v44 = vsel %vm10385_vm12, %v10382_v42, %v10384_v41  ;;  %10811 = vmatprep.subr.bf16.mxu1 %v10737_v57  ;;  %vm22869_vm12 = vmmov %vm22868_vm0 }
 0x79c   : > { %v10459_v63 = vsel %vm1616_vm1, %v10412_v44, 0 }
 0x79d   : > { %15214 = vmatpush3.bf16.msra.mxu0 %v10459_v63  ;;  %v10677_v38 = vpop.permute.xlu1 %10676 }
 0x79e   : > { %v10736_v27 = vsel %vm3945_vm4, %v10677_v38, %v10679_v51  ;;  %v10699_v54 = vpop.permute.xlu0 %10698  ;;  %11275 = vrot.lane.b32.xlu0 %v22858_v23, %s16219_s27 }
 0x79f   : > { %11220 = vrot.lane.b32.xlu1 %v22858_v23, %s16220_s28  ;;  %10812 = vmatpush1.bf16.msra.mxu1 %v10736_v27 }
 0x7a0   : > { %15216 = vmatmul.mubr.msk.bf16.vlgmr.msra.gmra.mrb[0].mxu0 %vm1898_vm10, %v21587_v56 }
 0x7a1   : > { %v10701_v52 = vpop.permute.xlu1 %10700  ;;  %10884 = vmatprep.mubr.bf16.mxu0 %v22614_v6 }
 0x7a2   : > { %v10683_v20 = vpop.permute.xlu0 %10682  ;;  %v10746_v43 = vsel %vm3945_vm4, %v10699_v54, %v10701_v52 }
 0x7a3   : > { %11601 = vperm.xlu1 %15285, %v246_v47   ;;  %10813 = vmatprep.subr.bf16.mxu1 %v10746_v43  ;;  %v10738_v56 = vsel %vm3945_vm4, %v10681_v12, %v10683_v20 }
 0x7a5   : > { %v10685_v9 = vpop.permute.xlu1 %10684 }
 0x7a6   : > { %v10697_v7 = vpop.permute.xlu0 %10696  ;;  %v9519_v61 = vpop.f32.mrb[228].mxu1  ;;  %v10739_v10 = vsel %vm3945_vm4, %v10683_v20, %v10685_v9 }
 0x7a7   : > { %v10745_v8 = vsel %vm3945_vm4, %v10697_v7, %v10699_v54  ;;  %v21696_v11 = vadd.f32 %v9519_v61, %v21552_v40  ;;  %v9521_v39 = vpop.f32.mrb[229].mxu1  ;;  %10852 = vmatprep.subr.bf16.mxu0 %v10739_v10 }
 0x7a8   : > { %v21700_v45 = vadd.f32 %v9521_v39, %v21555_v15  ;;  %10814 = vmatpush1.bf16.msra.mxu1 %v10745_v8  ;;  %v9523_v53 = vpop.f32.mrb[230].mxu1  ;;  %10853 = vmatpush1.bf16.msra.mxu0 %v10738_v56 }
 0x7a9   : > { %v10717_v62 = vpop.permute.xlu1 %10716  ;;  %v9524_v58 = vpop.f32.mrb[231].mxu1 }
 0x7aa   : > { %v10719_v59 = vpop.permute.xlu0 %10718 }
 0x7ab   : > { %v10754_v14 = vsel %vm3945_vm4, %v10717_v62, %v10719_v59 }
 0x7ac   : > { %v10785_v35 = vsel %vm1616_vm1, %v10754_v14, 0 }
 0x7ad   : > { %v10721_v31 = vpop.permute.xlu1 %10720 }
 0x7ae   : > { %v10703_v33 = vpop.permute.xlu0 %10702  ;;  %v10755_v40 = vsel %vm3945_vm4, %v10719_v59, %v10721_v31 }
 0x7af   : > { %v9560_v49 = vpop.f32.mrb[224].mxu0  ;;  %14491 = vmatprep.subr.msk.bf16.mxu1 %vm1616_vm1, %v10755_v40  ;;  %v10747_v30 = vsel %vm3945_vm4, %v10701_v52, %v10703_v33 }
 0x7b0   : > { %v21707_v15 = vadd.f32 %v9560_v49, %v21577_v48  ;;  %v9562_v50 = vpop.f32.mrb[225].mxu0  ;;  %10816 = vmatpush1.bf16.msra.mxu1 %v10785_v35 }
 0x7b1   : > { %v21710_v3 = vadd.f32 %v9562_v50, %v21581_v36  ;;  %v9564_v26 = vpop.f32.mrb[226].mxu0  ;;  %v10705_v18 = vpop.permute.xlu1 %10704 }
 0x7b2   : > { %v9565_v23 = vpop.f32.mrb[227].mxu0  ;;  %v10687_v28 = vpop.permute.xlu0 %10686  ;;  %v10748_v17 = vsel %vm3945_vm4, %v10703_v33, %v10705_v18 }
 0x7b3   : > { %10854 = vmatprep.subr.bf16.mxu0 %v10748_v17  ;;  %v10740_v22 = vsel %vm3945_vm4, %v10685_v9, %v10687_v28 }
 0x7b4   : > { %10855 = vmatpush1.bf16.msra.mxu0 %v10747_v30 }
 0x7b5   : > { %v10689_v42 = vpop.permute.xlu1 %10688 }
 0x7b6   : > { %v10723_v21 = vpop.permute.xlu0 %10722  ;;  %v10741_v48 = vsel %vm3945_vm4, %v10687_v28, %v10689_v42 }
 0x7b7   : > { %10893 = vmatprep.subr.bf16.mxu1 %v10741_v48  ;;  %v10756_v34 = vsel %vm3945_vm4, %v10721_v31, %v10723_v21 }
 0x7b8   : > { %v10791_v19 = vsel %vm1616_vm1, %v10756_v34, 0 }
 0x7b9   : > { %v10725_v55 = vpop.permute.xlu1 %10724 }
 0x7ba   : > { %v21716_v36 = vpop.permute.xlu0 %10674  ;;  %v9601_v46 = vpop.f32.mrb[232].mxu1  ;;  %v10757_v25 = vsel %vm3945_vm4, %v10723_v21, %v10725_v55 }
 0x7bb   : > { %v21720_v51 = vadd.f32 %v9601_v46, %v21597_v29  ;;  %14492 = vmatmul.mubr.msk.bf16.vlgmr.msra.gmra.mrb[8].mxu1 %vm1898_vm10, %v21716_v36  ;;  %v15187_v2 = vpop.f32.mrb[233].mxu1  ;;  %14493 = vmatprep.subr.msk.bf16.mxu0 %vm1616_vm1, %v10757_v25 }
 0x7bc   : > { %10894 = vmatpush1.bf16.msra.mxu1 %v10740_v22  ;;  %v9604_v0 = vpop.f32.mrb[234].mxu1  ;;  %10857 = vmatpush1.bf16.msra.mxu0 %v10791_v19 }
 0x7bd   : > { %v10707_v24 = vpop.permute.xlu1 %10706  ;;  %v15188_v1 = vpop.f32.mrb[235].mxu1  ;;  %10925 = vmatprep.mubr.bf16.mxu1 %v22614_v6 }
 0x7be   : > { %v10709_v37 = vpop.permute.xlu0 %10708  ;;  %v10749_v29 = vsel %vm3945_vm4, %v10705_v18, %v10707_v24 }
 0x7bf   : > { %14494 = vmatmul.mubr.msk.bf16.vlgmr.msra.gmra.mrb[4].mxu0 %vm1898_vm10, %v21716_v36  ;;  %v10750_v12 = vsel %vm3945_vm4, %v10707_v24, %v10709_v37 }
 0x7c0   : > { %10895 = vmatprep.subr.bf16.mxu1 %v10750_v12  ;;  %10966 = vmatprep.mubr.bf16.mxu0 %v22614_v6 }
 0x7c1   : > { %10896 = vmatpush1.bf16.msra.mxu1 %v10749_v29  ;;  %v10691_v4 = vpop.permute.xlu1 %10690 }
 0x7c2   : > { %v10693_v41 = vpop.permute.xlu0 %10692  ;;  %v10742_v57 = vsel %vm3945_vm4, %v10689_v42, %v10691_v4 }
 0x7c3   : > { %v10743_v44 = vsel %vm3945_vm4, %v10691_v4, %v10693_v41 }
 0x7c4   : > { %10934 = vmatprep.subr.bf16.mxu0 %v10743_v44 }
 0x7c5   : > { %10935 = vmatpush1.bf16.msra.mxu0 %v10742_v57  ;;  %v15428_v63 = vpop.permute.xlu1 %15427 }
 0x7c6   : > { %v15430_v38 = vunpack.i.h.bf16 %v15428_v63  ;;  %v15429_v27 = vunpack.i.l.bf16 %v15428_v63  ;;  %v15433_v54 = vpop.permute.xlu0 %15432 }
 0x7c7   : > { %v15434_v47 = vunpack.i.l.bf16 %v15433_v54  ;;  %v15435_v48 = vunpack.i.h.bf16 %v15433_v54 }
 0x7c8   : > { %v11112_v52 = vsel %vm1190_vm6, %v15429_v27, %v15430_v38 }
 0x7c9   : > { %v11113_v20 = vsel %vm1190_vm6, %v15430_v38, %v15434_v47  ;;  %v10727_v43 = vpop.permute.xlu1 %10726  ;;  %v11114_v29 = vsel %vm1190_vm6, %v15434_v47, %v15435_v48  ;;  %v11564_v38 = vld [vmem:[#allocation7] sm:$0xff] }
 0x7ca   : > { %v21737_v9 = vpack.c.bf16 %v11113_v20, %v11112_v52  ;;  %v10758_v7 = vsel %vm3945_vm4, %v10725_v55, %v10727_v43  ;;  %v10729_v61 = vpop.permute.xlu0 %10728 }
 0x7cb   : > { %v10797_v10 = vsel %vm1616_vm1, %v10758_v7, 0  ;;  %v10759_v8 = vsel %vm3945_vm4, %v10727_v43, %v10729_v61 }
 0x7cc   : > { %14495 = vmatprep.subr.msk.bf16.mxu1 %vm1616_vm1, %v10759_v8  ;;  %v14535_v43 = vcombine.low %v11564_v38, %v21737_v9 }
 0x7cd   : > { %10898 = vmatpush1.bf16.msra.mxu1 %v10797_v10  ;;  %v10711_v39 = vpop.permute.xlu1 %10710 }
 0x7ce   : > { %v10751_v56 = vsel %vm3945_vm4, %v10709_v37, %v10711_v39  ;;  %v9788_v53 = vpop.f32.mrb[228].mxu0  ;;  %v21744_v62 = vpop.permute.xlu0 %10712  ;;  %15219 = vmatprep.subr.bf16.mxu1 %v22674_v5 }
 0x7cf   : > { %v21748_v58 = vadd.f32 %v9788_v53, %v21656_v16  ;;  %v9790_v59 = vpop.f32.mrb[229].mxu0  ;;  %v10752_v14 = vsel %vm3945_vm4, %v10711_v39, %v21744_v62 }
 0x7d0   : > { %v21753_v31 = vadd.f32 %v9790_v59, %v21661_v13  ;;  %v9792_v33 = vpop.f32.mrb[230].mxu0  ;;  %14496 = vmatmul.mubr.msk.bf16.vlgmr.msra.gmra.mrb[12].mxu1 %vm1898_vm10, %v21716_v36  ;;  %10936 = vmatprep.subr.bf16.mxu0 %v10752_v14 }
 0x7d1   : > { %v9793_v40 = vpop.f32.mrb[231].mxu0  ;;  %10937 = vmatpush1.bf16.msra.mxu0 %v10751_v56  ;;  %v15438_v49 = vpop.permute.xlu1 %15437  ;;  %15225 = vmatprep.mubr.msk.bf16.mxu1 %vm16227_vm11, %v22674_v5 }
 0x7d2   : > { %v15440_v16 = vunpack.i.h.bf16 %v15438_v49  ;;  %v15439_v35 = vunpack.i.l.bf16 %v15438_v49  ;;  %v21759_v50 = vpop.permute.xlu0 %15442 }
 0x7d3   : > { %v15444_v26 = vunpack.i.l.bf16 %v21759_v50 }
 0x7d4   : > { %v21763_v13 = vsel %vm1246_vm5, %v15439_v35, %v15440_v16 }
 0x7d5   : > { %v11168_v18 = vsel %vm1246_vm5, %v15440_v16, %v15444_v26  ;;  %v15448_v23 = vpop.permute.xlu1 %15447 }
 0x7d6   : > { %v15450_v28 = vunpack.i.h.bf16 %v15448_v23  ;;  %v15449_v17 = vunpack.i.l.bf16 %v15448_v23  ;;  %v21768_v30 = vpop.permute.xlu0 %15452 }
 0x7d7   : > { %v15454_v42 = vunpack.i.l.bf16 %v21768_v30  ;;  %v9829_v21 = vpop.f32.mrb[236].mxu1  ;;  %v15455_v53 = vunpack.i.h.bf16 %v21768_v30 }
 0x7d8   : > { %v11222_v34 = vsel %vm1302_vm8, %v15449_v17, %v15450_v28  ;;  %v21773_v55 = vadd.f32 %v9829_v21, %v21666_v32  ;;  %v9831_v46 = vpop.f32.mrb[237].mxu1 }
 0x7d9   : > { %v11223_v25 = vsel %vm1302_vm8, %v15450_v28, %v15454_v42  ;;  %v21777_v22 = vadd.f32 %v9831_v46, %v21672_v60  ;;  %v9833_v2 = vpop.f32.mrb[238].mxu1  ;;  %v21779_v19 = vpop.permute.xlu1 %15457  ;;  %v16118_v35 = vpack.c.bf16 %v11222_v34, %v21763_v13  ;;  %v21826_v17 = vsel %vm1302_vm8, %v15454_v42, %v15455_v53 }
 0x7da   : > { %v15459_v0 = vunpack.i.l.bf16 %v21779_v19  ;;  %v9834_v24 = vpop.f32.mrb[239].mxu1  ;;  %v10695_v1 = vpop.permute.xlu0 %10694  ;;  %v16117_v56 = vpack.c.bf16 %v11223_v25, %v11168_v18  ;;  %v15460_v30 = vunpack.i.h.bf16 %v21779_v19  ;;  %v21846_v2 = vld [vmem:[%s22429_s3 + $0x40] sm:$0xf] }
 0x7db   : > { %v10744_v37 = vsel %vm3945_vm4, %v10693_v41, %v10695_v1  ;;  %v14536_v41 = vcombine.high %v11564_v38, %v21737_v9 }
 0x7dc   : > { %v11115_v32 = vsel %vm1190_vm6, %v15435_v48, %v15459_v0  ;;  %15220 = vmatpush3.bf16.msra.mxu1 %v10744_v37  ;;  %v11116_v34 = vsel %vm1190_vm6, %v15459_v0, %v15460_v30 }
 0x7dd   : > { %v21785_v12 = vpack.c.bf16 %v11115_v32, %v11114_v29  ;;  %v10731_v4 = vpop.permute.xlu1 %10730  ;;  %15221 = vmatprep.subr.bf16.mxu1 %v22674_v5  ;;  %v11565_v29 = vld [vmem:[#allocation7 + $0x8] sm:$0xff] }
 0x7de   : > { %v10760_v60 = vsel %vm3945_vm4, %v10729_v61, %v10731_v4  ;;  %v10733_v57 = vpop.permute.xlu0 %10732  ;;  %v15445_v61 = vunpack.i.h.bf16 %v21759_v50 }
 0x7df   : > { %v10803_v44 = vsel %vm1616_vm1, %v10760_v60, 0  ;;  %v10761_v63 = vsel %vm3945_vm4, %v10731_v4, %v10733_v57 }
 0x7e0   : > { %14497 = vmatprep.subr.msk.bf16.mxu0 %vm1616_vm1, %v10761_v63  ;;  %v11566_v63 = vld [vmem:[#allocation7 + $0x10] sm:$0xff] }
 0x7e1   : > { %10939 = vmatpush1.bf16.msra.mxu0 %v10803_v44  ;;  %v15463_v27 = vpop.permute.xlu1 %15462  ;;  %v14538_v44 = vcombine.high %v11565_v29, %v21785_v12 }
 0x7e2   : > { %v15465_v54 = vunpack.i.h.bf16 %v15463_v27  ;;  %v15464_v47 = vunpack.i.l.bf16 %v15463_v27  ;;  %v21793_v52 = vpop.permute.xlu0 %15467  ;;  %11824 = vmatprep.subr.bf16.mxu0 %v14536_v41 }
 0x7e3   : > { %v15469_v20 = vunpack.i.l.bf16 %v21793_v52  ;;  %v9870_v7 = vpop.f32.mrb[232].mxu0  ;;  %v15470_v46 = vunpack.i.h.bf16 %v21793_v52 }
 0x7e4   : > { %v11277_v10 = vsel %vm1358_vm7, %v15464_v47, %v15465_v54  ;;  %v21800_v8 = vadd.f32 %v9870_v7, %v21696_v11  ;;  %v9872_v39 = vpop.f32.mrb[233].mxu0  ;;  %14498 = vmatmul.mubr.msk.bf16.vlgmr.msra.gmra.mrb[8].mxu0 %vm1898_vm10, %v21716_v36 }
 0x7e5   : > { %v11278_v59 = vsel %vm1358_vm7, %v15465_v54, %v15469_v20  ;;  %v21809_v9 = vadd.f32 %v9872_v39, %v21700_v45  ;;  %v9874_v14 = vpop.f32.mrb[234].mxu0  ;;  %11825 = vmatpush1.bf16.msra.mxu0 %v14535_v43  ;;  %v21811_v33 = vpop.permute.xlu1 %15472  ;;  %11856 = vmatprep.mubr.bf16.mxu0 %v22614_v6  ;;  %v21822_v45 = vsel %vm1246_vm5, %v15444_v26, %v15445_v61 }
 0x7e6   : > { %v15474_v11 = vunpack.i.l.bf16 %v21811_v33  ;;  %v9875_v40 = vpop.f32.mrb[235].mxu0  ;;  %v21815_v49 = vpop.permute.xlu0 %15477  ;;  %11826 = vmatprep.subr.bf16.mxu0 %v16117_v56  ;;  %v16119_v23 = vpack.c.bf16 %v11278_v59, %v11278_v59  ;;  %v16120_v28 = vpack.c.bf16 %v11277_v10, %v11277_v10  ;;  %v15475_v38 = vunpack.i.h.bf16 %v21811_v33 }
 0x7e7   : > { %v15479_v16 = vunpack.i.l.bf16 %v21815_v49  ;;  %v15480_v47 = vunpack.i.h.bf16 %v21815_v49  ;;  %v14537_v39 = vcombine.low %v11565_v29, %v21785_v12 }
 0x7e8   : > { %v11170_v18 = vsel %vm1246_vm5, %v15445_v61, %v15474_v11  ;;  %v11783_v42 = vsel %vm1616_vm1, %v16120_v28, 0 }
 0x7e9   : > { %v11225_v21 = vsel %vm1302_vm8, %v15455_v53, %v15479_v16  ;;  %11827 = vmatpush1.bf16.msra.mxu0 %v16118_v35  ;;  %v10715_v48 = vpop.permute.xlu1 %10714  ;;  %v11226_v14 = vsel %vm1302_vm8, %v15479_v16, %v15480_v47 }
 0x7ea   : > { %v10753_v13 = vsel %vm3945_vm4, %v21744_v62, %v10715_v48  ;;  %v21832_v50 = vpop.permute.xlu0 %15482  ;;  %14577 = vmatprep.subr.msk.bf16.mxu0 %vm1616_vm1, %v16119_v23  ;;  %v16121_v52 = vpack.c.bf16 %v11225_v21, %v11170_v18 }
 0x7eb   : > { %v15484_v26 = vunpack.i.l.bf16 %v21832_v50  ;;  %15222 = vmatpush3.bf16.msra.mxu1 %v10753_v13  ;;  %v15485_v53 = vunpack.i.h.bf16 %v21832_v50 }
 0x7ec   : > { %15223 = vmatprep.subr.bf16.mxu1 %v22674_v5 }
 0x7ed   : > { %v11117_v25 = vsel %vm1190_vm6, %v15460_v30, %v15484_v26  ;;  %v10735_v62 = vpop.permute.xlu1 %10734  ;;  %11829 = vmatpush1.bf16.msra.mxu0 %v11783_v42  ;;  %v11118_v48 = vsel %vm1190_vm6, %v15484_v26, %v15485_v53  ;;  %v11567_v26 = vld [vmem:[#allocation7 + $0x18] sm:$0xff] }
 0x7ee   : > { %v14789_v19 = vpack.c.bf16 %v11117_v25, %v11116_v34  ;;  %v10762_v24 = vsel %vm3945_vm4, %v10733_v57, %v10735_v62  ;;  %v15488_v1 = vpop.permute.xlu0 %15487  ;;  %v9911_v37 = vpop.f32.mrb[240].mxu1 }
 0x7ef   : > { %v10809_v0 = vsel %vm1616_vm1, %v10762_v24, 0  ;;  %v15489_v32 = vunpack.i.l.bf16 %v15488_v1  ;;  %v21851_v4 = vadd.f32 %v9911_v37, %v21707_v15  ;;  %v9913_v60 = vpop.f32.mrb[241].mxu1  ;;  %v11279_v15 = vsel %vm1358_vm7, %v15469_v20, %v15470_v46 }
 0x7f0   : > { %v21856_v41 = vadd.f32 %v9913_v60, %v21710_v3  ;;  %v9915_v27 = vpop.f32.mrb[242].mxu1  ;;  %15224 = vmatpush3.bf16.msra.mxu1 %v10809_v0  ;;  %14578 = vmatmul.mubr.msk.bf16.vlgmr.msra.gmra.mrb[12].mxu0 %vm1898_vm10, %v21846_v2  ;;  %v14539_v57 = vcombine.low %v11566_v63, %v14789_v19  ;;  %v14540_v54 = vcombine.high %v11566_v63, %v14789_v19  ;;  %v15490_v33 = vunpack.i.h.bf16 %v15488_v1 }
 0x7f1   : > { %v11280_v43 = vsel %vm1358_vm7, %v15470_v46, %v15489_v32  ;;  %v15493_v7 = vpop.permute.xlu1 %15492  ;;  %v9916_v61 = vpop.f32.mrb[243].mxu1  ;;  %11865 = vmatprep.subr.bf16.mxu1 %v14538_v44  ;;  %11938 = vmatprep.mubr.bf16.mxu0 %v22614_v6  ;;  %v11171_v20 = vsel %vm1246_vm5, %v15474_v11, %v15475_v38  ;;  %v16122_v11 = vpack.c.bf16 %v21826_v17, %v21822_v45 }
 0x7f2   : > { %v15494_v3 = vunpack.i.l.bf16 %v15493_v7  ;;  %v15498_v10 = vpop.permute.xlu0 %15497  ;;  %11906 = vmatprep.subr.bf16.mxu0 %v14540_v54  ;;  %v15495_v49 = vunpack.i.h.bf16 %v15493_v7  ;;  %v16123_v16 = vpack.c.bf16 %v11280_v43, %v11280_v43  ;;  %v16124_v21 = vpack.c.bf16 %v11279_v15, %v11279_v15 }
 0x7f3   : > { %v15499_v56 = vunpack.i.l.bf16 %v15498_v10  ;;  %15226 = vmatmul.mubr.msk.bf16.vlgmr.msra.gmra.mrb[16].mxu1 %vm1898_vm10, %v21716_v36  ;;  %11907 = vmatpush1.bf16.msra.mxu0 %v14539_v57  ;;  %v16125_v34 = vpack.c.bf16 %v11226_v14, %v11171_v20  ;;  %v11281_v45 = vsel %vm1358_vm7, %v15489_v32, %v15490_v33  ;;  %v15500_v17 = vunpack.i.h.bf16 %v15498_v10 }
 0x7f4   : > { %v11172_v59 = vsel %vm1246_vm5, %v15475_v38, %v15494_v3  ;;  %11866 = vmatpush1.bf16.msra.mxu1 %v14537_v39  ;;  %11897 = vmatprep.mubr.bf16.mxu1 %v22614_v6  ;;  %v11173_v1 = vsel %vm1246_vm5, %v15494_v3, %v15495_v49  ;;  %v11789_v29 = vsel %vm1616_vm1, %v16124_v21, 0  ;;  %v16128_v63 = vpack.c.bf16 %v11281_v45, %v11281_v45 }
 0x7f5   : > { %v11227_v40 = vsel %vm1302_vm8, %v15480_v47, %v15499_v56  ;;  %v15503_v12 = vpop.permute.xlu1 %15502  ;;  %11867 = vmatprep.subr.bf16.mxu1 %v16121_v52  ;;  %v11228_v38 = vsel %vm1302_vm8, %v15499_v56, %v15500_v17 }
 0x7f6   : > { %v15504_v36 = vunpack.i.l.bf16 %v15503_v12  ;;  %v15508_v35 = vpop.permute.xlu0 %15507  ;;  %v9952_v18 = vpop.f32.mrb[236].mxu0  ;;  %v16126_v46 = vpack.c.bf16 %v11227_v40, %v11172_v59  ;;  %v15505_v32 = vunpack.i.h.bf16 %v15503_v12  ;;  %v11795_v7 = vsel %vm1616_vm1, %v16128_v63, 0 }
 0x7f7   : > { %v15509_v23 = vunpack.i.l.bf16 %v15508_v35  ;;  %v21878_v28 = vadd.f32 %v9952_v18, %v21720_v51  ;;  %v15197_v30 = vpop.f32.mrb[237].mxu0  ;;  %v15510_v27 = vunpack.i.h.bf16 %v15508_v35 }
 0x7f8   : > { %v11119_v13 = vsel %vm1190_vm6, %v15485_v53, %v15504_v36  ;;  %v9955_v42 = vpop.f32.mrb[238].mxu0  ;;  %11868 = vmatpush1.bf16.msra.mxu1 %v16122_v11  ;;  %11908 = vmatprep.subr.bf16.mxu0 %v16126_v46  ;;  %v11120_v3 = vsel %vm1190_vm6, %v15504_v36, %v15505_v32  ;;  %v11568_v36 = vld [vmem:[#allocation7 + $0x20] sm:$0xff] }
 0x7f9   : > { %v14790_v25 = vpack.c.bf16 %v11119_v13, %v11118_v48  ;;  %v11282_v51 = vsel %vm1358_vm7, %v15490_v33, %v15509_v23  ;;  %v15513_v62 = vpop.permute.xlu1 %15512  ;;  %v15198_v19 = vpop.f32.mrb[239].mxu0  ;;  %14579 = vmatprep.subr.msk.bf16.mxu1 %vm1616_vm1, %v16123_v16  ;;  %11909 = vmatpush1.bf16.msra.mxu0 %v16125_v34  ;;  %v11283_v52 = vsel %vm1358_vm7, %v15509_v23, %v15510_v27 }
 0x7fa   : > { %v15514_v24 = vunpack.i.l.bf16 %v15513_v62  ;;  %v15518_v50 = vpop.permute.xlu0 %15517  ;;  %v16127_v44 = vpack.c.bf16 %v11282_v51, %v11282_v51  ;;  %v15515_v10 = vunpack.i.h.bf16 %v15513_v62  ;;  %v16132_v48 = vpack.c.bf16 %v11283_v52, %v11283_v52 }
 0x7fb   : > { %v15519_v37 = vunpack.i.l.bf16 %v15518_v50  ;;  %v14542_v0 = vcombine.high %v11567_v26, %v14790_v25  ;;  %v14541_v43 = vcombine.low %v11567_v26, %v14790_v25  ;;  %v15520_v20 = vunpack.i.h.bf16 %v15518_v50 }
 0x7fc   : > { %v11174_v60 = vsel %vm1246_vm5, %v15495_v49, %v15514_v24  ;;  %11870 = vmatpush1.bf16.msra.mxu1 %v11789_v29  ;;  %14581 = vmatprep.subr.msk.bf16.mxu0 %vm1616_vm1, %v16127_v44  ;;  %v16130_v49 = vpack.c.bf16 %v11228_v38, %v11173_v1  ;;  %v11175_v30 = vsel %vm1246_vm5, %v15514_v24, %v15515_v10  ;;  %v11801_v50 = vsel %vm1616_vm1, %v16132_v48, 0 }
 0x7fd   : > { %v11229_v57 = vsel %vm1302_vm8, %v15500_v17, %v15519_v37  ;;  %v15523_v54 = vpop.permute.xlu1 %15522  ;;  %11947 = vmatprep.subr.bf16.mxu1 %v14542_v0  ;;  %11911 = vmatpush1.bf16.msra.mxu0 %v11795_v7  ;;  %v11230_v13 = vsel %vm1302_vm8, %v15519_v37, %v15520_v20 }
 0x7fe   : > { %v15524_v15 = vunpack.i.l.bf16 %v15523_v54  ;;  %v15528_v47 = vpop.permute.xlu0 %15527  ;;  %v16129_v56 = vpack.c.bf16 %v11229_v57, %v11174_v60  ;;  %v15525_v33 = vunpack.i.h.bf16 %v15523_v54  ;;  %v16133_v37 = vpack.c.bf16 %v11230_v13, %v11175_v30  ;;  %v11569_v54 = vld [vmem:[#allocation7 + $0x28] sm:$0xff] }
 0x7ff   : > { %v15529_v61 = vunpack.i.l.bf16 %v15528_v47  ;;  %14580 = vmatmul.mubr.msk.bf16.vlgmr.msra.gmra.mrb[20].mxu1 %vm1898_vm10, %v21846_v2  ;;  %v15530_v35 = vunpack.i.h.bf16 %v15528_v47 }
 0x800   : > { %v11121_v39 = vsel %vm1190_vm6, %v15505_v32, %v15524_v15  ;;  %11948 = vmatpush1.bf16.msra.mxu1 %v14541_v43  ;;  %11979 = vmatprep.mubr.bf16.mxu1 %v22614_v6  ;;  %v11122_v62 = vsel %vm1190_vm6, %v15524_v15, %v15525_v33 }
 0x801   : > { %v14791_v53 = vpack.c.bf16 %v11121_v39, %v11120_v3  ;;  %v11284_v59 = vsel %vm1358_vm7, %v15510_v27, %v15529_v61  ;;  %v15533_v14 = vpop.permute.xlu1 %15532  ;;  %14582 = vmatmul.mubr.msk.bf16.vlgmr.msra.gmra.mrb[16].mxu0 %vm1898_vm10, %v21846_v2  ;;  %11949 = vmatprep.subr.bf16.mxu1 %v16129_v56  ;;  %v11285_v19 = vsel %vm1358_vm7, %v15529_v61, %v15530_v35 }
 0x802   : > { %v15534_v40 = vunpack.i.l.bf16 %v15533_v14  ;;  %v15538_v12 = vpop.permute.xlu0 %15537  ;;  %12020 = vmatprep.mubr.bf16.mxu0 %v22614_v6  ;;  %v16131_v21 = vpack.c.bf16 %v11284_v59, %v11284_v59  ;;  %v15535_v42 = vunpack.i.h.bf16 %v15533_v14  ;;  %v16136_v15 = vpack.c.bf16 %v11285_v19, %v11285_v19 }
 0x803   : > { %v15539_v11 = vunpack.i.l.bf16 %v15538_v12  ;;  %v14543_v18 = vcombine.low %v11568_v36, %v14791_v53  ;;  %v14544_v23 = vcombine.high %v11568_v36, %v14791_v53  ;;  %v15540_v45 = vunpack.i.h.bf16 %v15538_v12 }
 0x804   : > { %v11176_v16 = vsel %vm1246_vm5, %v15515_v10, %v15534_v40  ;;  %11950 = vmatpush1.bf16.msra.mxu1 %v16130_v49  ;;  %v11177_v60 = vsel %vm1246_vm5, %v15534_v40, %v15535_v42  ;;  %v11807_v59 = vsel %vm1616_vm1, %v16136_v15, 0 }
 0x805   : > { %v11231_v34 = vsel %vm1302_vm8, %v15520_v20, %v15539_v11  ;;  %v15543_v46 = vpop.permute.xlu1 %15542  ;;  %11988 = vmatprep.subr.bf16.mxu0 %v14544_v23  ;;  %14583 = vmatprep.subr.msk.bf16.mxu1 %vm1616_vm1, %v16131_v21  ;;  %v11232_v27 = vsel %vm1302_vm8, %v15539_v11, %v15540_v45 }
 0x806   : > { %v15545_v17 = vunpack.i.h.bf16 %v15543_v46  ;;  %v15544_v25 = vunpack.i.l.bf16 %v15543_v46  ;;  %v11270_v51 = vpop.permute.xlu0 %11269  ;;  %11989 = vmatpush1.bf16.msra.mxu0 %v14543_v18  ;;  %v16134_v44 = vpack.c.bf16 %v11231_v34, %v11176_v16  ;;  %v16138_v18 = vpack.c.bf16 %v11232_v27, %v11177_v60 }
 0x807   : > { %v11286_v24 = vsel %vm1358_vm7, %v15530_v35, %v11270_v51 }
 0x808   : > { %v11123_v26 = vsel %vm1190_vm6, %v15525_v33, %v15544_v25  ;;  %v11124_v1 = vsel %vm1190_vm6, %v15544_v25, %v15545_v17  ;;  %11952 = vmatpush1.bf16.msra.mxu1 %v11801_v50  ;;  %v16135_v57 = vpack.c.bf16 %v11286_v24, %v11286_v24  ;;  %11990 = vmatprep.subr.bf16.mxu0 %v16134_v44  ;;  %vm22862_vm6 = vcmask 949248  }
 0x809   : > { %v14792_v29 = vpack.c.bf16 %v11123_v26, %v11122_v62  ;;  %v14793_v0 = vpack.c.bf16 %v15545_v17, %v11124_v1  ;;  %v11164_v32 = vpop.permute.xlu1 %11163  ;;  %vm22865_vm4 = vmmov %vm22862_vm6 }
 0x80a   : > { %v11178_v63 = vsel %vm1246_vm5, %v15535_v42, %v11164_v32  ;;  %v11219_v38 = vpop.permute.xlu0 %11218  ;;  %11991 = vmatpush1.bf16.msra.mxu0 %v16133_v37  ;;  %vm22866_vm2 = vmmov %vm22865_vm4 }
 0x80b   : > { %11541 = vst.msk [vmem:[#allocation7 + $0x68] sm:$0xff] %vm16605_vm3, %v14793_v0  ;;  %v11233_v43 = vsel %vm1302_vm8, %v15540_v45, %v11219_v38  ;;  %14584 = vmatmul.mubr.msk.bf16.vlgmr.msra.gmra.mrb[24].mxu1 %vm1898_vm10, %v21846_v2  ;;  %v14545_v7 = vcombine.low %v11569_v54, %v14792_v29  ;;  %v14546_v61 = vcombine.high %v11569_v54, %v14792_v29 }
 0x80c   : > { %12061 = vmatprep.mubr.bf16.mxu1 %v22614_v6  ;;  %14585 = vmatprep.subr.msk.bf16.mxu0 %vm1616_vm1, %v16135_v57  ;;  %v16137_v52 = vpack.c.bf16 %v11233_v43, %v11178_v63 }
 0x80d   : > { %v15548_v3 = vpop.permute.xlu1 %15547  ;;  %12029 = vmatprep.subr.bf16.mxu1 %v14546_v61 }
 0x80e   : > { %v15550_v10 = vunpack.i.h.bf16 %v15548_v3  ;;  %v15549_v39 = vunpack.i.l.bf16 %v15548_v3  ;;  %v11166_v56 = vpop.permute.xlu0 %11165  ;;  %12030 = vmatpush1.bf16.msra.mxu1 %v14545_v7  ;;  %11993 = vmatpush1.bf16.msra.mxu0 %v11807_v59 }
 0x80f   : > { %v11179_v20 = vsel %vm1246_vm5, %v11164_v32, %v11166_v56  ;;  %v10144_v53 = vpop.f32.mrb[244].mxu1  ;;  %12031 = vmatprep.subr.bf16.mxu1 %v16137_v52 }
 0x810   : > { %v11287_v14 = vsel %vm1358_vm7, %v11270_v51, %v15549_v39  ;;  %v11288_v33 = vsel %vm1358_vm7, %v15549_v39, %v15550_v10  ;;  %v14800_v40 = vpack.c.bf16 %v11166_v56, %v11179_v20  ;;  %v21930_v12 = vadd.f32 %v10144_v53, %v21748_v58  ;;  %v10146_v49 = vpop.f32.mrb[245].mxu1 }
 0x811   : > { %v21933_v36 = vadd.f32 %v10146_v49, %v21753_v31  ;;  %v10148_v35 = vpop.f32.mrb[246].mxu1  ;;  %v11221_v11 = vpop.permute.xlu1 %11220  ;;  %14586 = vmatmul.mubr.msk.bf16.vlgmr.msra.gmra.mrb[20].mxu0 %vm1898_vm10, %v21846_v2  ;;  %v16139_v31 = vpack.c.bf16 %v11288_v33, %v11288_v33  ;;  %v16140_v34 = vpack.c.bf16 %v11287_v14, %v11287_v14 }
 0x812   : > { %11548 = vst.msk [vmem:[#allocation7 + $0xa0] sm:$0xff] %vm16605_vm3, %v14800_v40  ;;  %v11234_v23 = vsel %vm1302_vm8, %v11219_v38, %v11221_v11  ;;  %v10149_v30 = vpop.f32.mrb[247].mxu1  ;;  %v11276_v16 = vpop.permute.xlu0 %11275  ;;  %v15932_v21 = vld [vmem:[#allocation7 + $0x30] ss:$56 sps:$4 sm:$0xff]   ;;  %v15934_v48 = vld [vmem:[#allocation7 + $0x34] ss:$56 sps:$4 sm:$0xff]   ;;  %12032 = vmatpush1.bf16.msra.mxu1 %v16138_v18  ;;  %12102 = vmatprep.mubr.bf16.mxu0 %v22614_v6 }
 0x813   : > { %v14807_v58 = vpack.c.bf16 %v11221_v11, %v11234_v23  ;;  %v11289_v13 = vsel %vm1358_vm7, %v15550_v10, %v11276_v16  ;;  %12070 = vmatprep.subr.bf16.mxu0 %v15934_v48  ;;  %14587 = vmatprep.subr.msk.bf16.mxu1 %vm1616_vm1, %v16139_v31  ;;  %v11813_v46 = vsel %vm1616_vm1, %v16140_v34, 0  ;;  %vm22863_vm7 = vmmov %vm22862_vm6  ;;  %vm22864_vm8 = vcmask 850944  }
 0x814   : > { %v14814_v42 = vpack.c.bf16 %v11276_v16, %v11289_v13  ;;  %12071 = vmatpush1.bf16.msra.mxu0 %v15932_v21  ;;  %vm22867_vm9 = vmmov %vm22864_vm8 }
 0x815   : > { %11555 = vst.msk [vmem:[#allocation7 + $0xd8] sm:$0xff] %vm16605_vm3, %v14807_v58 }
 0x816   : > { %11562 = vst.msk [vmem:[#allocation7 + $0x110] sm:$0xff] %vm16605_vm3, %v14814_v42  ;;  %12034 = vmatpush1.bf16.msra.mxu1 %v11813_v46  ;;  %vm12622_vm3 = vcmask 523268  }
 0x817   : > { %v10185_v45 = vpop.f32.mrb[240].mxu0  ;;  %vm22086_vm5 = vmor %vm12622_vm3, %vm1616_vm1 }
 0x818   : > { %v10316_v17 = vadd.f32 %v10185_v45, %v21773_v55  ;;  %v10187_v25 = vpop.f32.mrb[241].mxu0  ;;  %vm22870_vm3 = vmmov %vm22868_vm0 }
 0x819   : > { %v10317_v51 = vadd.f32 %v10187_v25, %v21777_v22  ;;  %v10189_v62 = vpop.f32.mrb[242].mxu0  ;;  %14588 = vmatmul.mubr.msk.bf16.vlgmr.msra.gmra.mrb[28].mxu1 %vm1898_vm10, %v21846_v2 }
 0x81a   : > { %v10190_v19 = vpop.f32.mrb[243].mxu0  ;;  %12946 = vmatprep.mubr.bf16.mxu1 %v22614_v6 }
 0x81c   : > { %v15935_v24 = vld [vmem:[#allocation7 + $0xa0] ss:$56 sps:$4 sm:$0xff]   ;;  %v15937_v50 = vld [vmem:[#allocation7 + $0xa4] ss:$56 sps:$4 sm:$0xff]  }
 0x81d   : > { %v11598_v26 = vld [vmem:[#allocation7 + $0x110] sm:$0xff]  ;;  %12072 = vmatprep.subr.bf16.mxu0 %v15937_v50 }
 0x81e   : > { %v14576_v1 = vcombine.high %v11598_v26, %v11598_v26  ;;  %v14575_v37 = vcombine.low %v11598_v26, %v11598_v26  ;;  %12073 = vmatpush1.bf16.msra.mxu0 %v15935_v24 }
 0x820   : > { %14589 = vmatprep.subr.msk.bf16.mxu0 %vm1616_vm1, %v14576_v1  ;;  %v11819_v55 = vsel %vm1616_vm1, %v14575_v37, 0 }
 0x822   : > { %12075 = vmatpush1.bf16.msra.mxu0 %v11819_v55 }
 0x823   : > { %v10226_v29 = vpop.f32.mrb[248].mxu1 }
 0x824   : > { %v10318_v22 = vadd.f32 %v10226_v29, %v21800_v8  ;;  %v10228_v0 = vpop.f32.mrb[249].mxu1 }
 0x825   : > { %v10319_v32 = vadd.f32 %v10228_v0, %v21809_v9  ;;  %v10230_v60 = vpop.f32.mrb[250].mxu1  ;;  %14590 = vmatmul.mubr.msk.bf16.vlgmr.msra.gmra.mrb[24].mxu0 %vm1898_vm10, %v21846_v2 }
 0x826   : > { %v10231_v44 = vpop.f32.mrb[251].mxu1  ;;  %12987 = vmatprep.mubr.bf16.mxu0 %v22614_v6 }
 0x82e   : > { %v10267_v63 = vpop.f32.mrb[244].mxu0 }
 0x82f   : > { %v10320_v38 = vadd.f32 %v10267_v63, %v21851_v4  ;;  %v10269_v27 = vpop.f32.mrb[245].mxu0 }
 0x830   : > { %v10321_v57 = vadd.f32 %v10269_v27, %v21856_v41  ;;  %v10271_v54 = vpop.f32.mrb[246].mxu0  ;;  %v21981_v27 = vpop.permute.xlu1 %11601 }
 0x831   : > { %v10272_v15 = vpop.f32.mrb[247].mxu0 }
 0x837   : > { %v10308_v47 = vpop.f32.mrb[252].mxu1 }
 0x838   : > { %v10322_v8 = vadd.f32 %v10308_v47, %v21878_v28  ;;  %v15207_v43 = vpop.f32.mrb[253].mxu1 }
 0x839   : > { %v10311_v9 = vpop.f32.mrb[254].mxu1 }
 0x83a   : > { %v15208_v7 = vpop.f32.mrb[255].mxu1 }
 0x84d   : > { %v10495_v61 = vpop.f32.mrb[248].mxu0 }
 0x84e   : > { %v10665_v3 = vadd.f32 %v10495_v61, %v21930_v12  ;;  %v10497_v2 = vpop.f32.mrb[249].mxu0 }
 0x84f   : > { %v10666_v10 = vadd.f32 %v10497_v2, %v21933_v36  ;;  %v10499_v39 = vpop.f32.mrb[250].mxu0 }
 0x850   : > { %v10500_v56 = vpop.f32.mrb[251].mxu0 }
 0x856   : > { %v10536_v4 = vpop.f32.mrb[0].mxu1 }
 0x857   : > { %v10667_v52 = vadd.f32 %v10536_v4, %v10316_v17  ;;  %v10538_v20 = vpop.f32.mrb[1].mxu1 }
 0x858   : > { %v10668_v41 = vadd.f32 %v10538_v20, %v10317_v51  ;;  %v10540_v53 = vpop.f32.mrb[2].mxu1 }
 0x859   : > { %v10541_v59 = vpop.f32.mrb[3].mxu1 }
 0x862   : > { %v10577_v14 = vpop.f32.mrb[252].mxu0 }
 0x863   : > { %v10669_v33 = vadd.f32 %v10577_v14, %v10318_v22  ;;  %v10579_v28 = vpop.f32.mrb[253].mxu0 }
 0x864   : > { %v10670_v40 = vadd.f32 %v10579_v28, %v10319_v32  ;;  %v10581_v49 = vpop.f32.mrb[254].mxu0 }
 0x865   : > { %v10582_v35 = vpop.f32.mrb[255].mxu0 }
 0x86b   : > { %v10618_v11 = vpop.f32.mrb[4].mxu1 }
 0x86c   : > { %v10671_v18 = vadd.f32 %v10618_v11, %v10320_v38  ;;  %v10620_v12 = vpop.f32.mrb[5].mxu1 }
 0x86d   : > { %v10672_v23 = vadd.f32 %v10620_v12, %v10321_v57  ;;  %v10622_v30 = vpop.f32.mrb[6].mxu1 }
 0x86e   : > { %v10623_v36 = vpop.f32.mrb[7].mxu1 }
 0x873   : > { %v10659_v16 = vpop.f32.mrb[0].mxu0 }
 0x874   : > { %v10673_v21 = vadd.f32 %v10659_v16, %v10322_v8  ;;  %v15217_v48 = vpop.f32.mrb[1].mxu0 }
 0x875   : > { %v10662_v58 = vpop.f32.mrb[2].mxu0 }
 0x876   : > { %v15218_v13 = vpop.f32.mrb[3].mxu0 }
 0x88e   : > { %v10845_v31 = vpop.f32.mrb[8].mxu1 }
 0x88f   : > { %v21965_v42 = vadd.f32 %v10845_v31, %v10665_v3  ;;  %v10847_v34 = vpop.f32.mrb[9].mxu1 }
 0x890   : > { %v21967_v46 = vadd.f32 %v10847_v34, %v10666_v10  ;;  %v10849_v45 = vpop.f32.mrb[10].mxu1 }
 0x891   : > { %v10850_v17 = vpop.f32.mrb[11].mxu1 }
 0x892   : > { %v10886_v25 = vpop.f32.mrb[4].mxu0 }
 0x893   : > { %v21969_v51 = vadd.f32 %v10886_v25, %v10667_v52  ;;  %v10888_v62 = vpop.f32.mrb[5].mxu0 }
 0x894   : > { %v21971_v19 = vadd.f32 %v10888_v62, %v10668_v41  ;;  %v10890_v24 = vpop.f32.mrb[6].mxu0 }
 0x895   : > { %v10891_v50 = vpop.f32.mrb[7].mxu0 }
 0x8a3   : > { %v10927_v26 = vpop.f32.mrb[12].mxu1 }
 0x8a4   : > { %v21973_v1 = vadd.f32 %v10927_v26, %v10669_v33  ;;  %v10929_v37 = vpop.f32.mrb[13].mxu1 }
 0x8a5   : > { %v21975_v55 = vadd.f32 %v10929_v37, %v10670_v40  ;;  %v10931_v29 = vpop.f32.mrb[14].mxu1 }
 0x8a6   : > { %v10932_v22 = vpop.f32.mrb[15].mxu1 }
 0x8b7   : > { %v10968_v0 = vpop.f32.mrb[8].mxu0 }
 0x8b8   : > { %v21977_v32 = vadd.f32 %v10968_v0, %v10671_v18  ;;  %v10970_v60 = vpop.f32.mrb[9].mxu0 }
 0x8b9   : > { %v21979_v44 = vadd.f32 %v10970_v60, %v10672_v23  ;;  %v10972_v63 = vpop.f32.mrb[10].mxu0 }
 0x8ba   : > { %v10973_v38 = vpop.f32.mrb[11].mxu0 }
 0x8c3   : > { %v11858_v57 = vpop.f32.mrb[12].mxu0 }
 0x8c4   : > { %v21984_v54 = vadd.f32 %v11858_v57, %v21981_v27  ;;  %v11860_v15 = vpop.f32.mrb[13].mxu0 }
 0x8c5   : > { %v21987_v47 = vadd.f32 %v11860_v15, %v21981_v27  ;;  %v11862_v8 = vpop.f32.mrb[14].mxu0 }
 0x8c6   : > { %v11009_v43 = vpop.f32.mrb[16].mxu1  ;;  %v12111_v9 = vmax.f32 %v21984_v54, 0.0  ;;  %v11863_v7 = vpop.f32.mrb[15].mxu0 }
 0x8c7   : > { %v21990_v61 = vadd.f32 %v11009_v43, %v10673_v21  ;;  %v15227_v3 = vpop.f32.mrb[17].mxu1  ;;  %v12112_v2 = vmax.f32 %v21987_v47, 0.0 }
 0x8c8   : > { %v11012_v10 = vpop.f32.mrb[18].mxu1 }
 0x8c9   : > { %v15228_v39 = vpop.f32.mrb[19].mxu1  ;;  %v15551_v56 = vpack.i.bf16 %v12112_v2, %v12111_v9 }
 0x8cb   : > { %15552 = vrot.lane.b32.xlu0 %v15551_v56, %s16221_s19 }
 0x8cf   : > { %15562 = vrot.lane.b32.xlu0 %v15551_v56, %s16222_s8 }
 0x8d2   : > { %v11899_v4 = vpop.f32.mrb[20].mxu1 }
 0x8d3   : > { %v22000_v52 = vadd.f32 %v11899_v4, %v21981_v27  ;;  %v11901_v20 = vpop.f32.mrb[21].mxu1  ;;  %15572 = vrot.lane.b32.xlu0 %v15551_v56, %s16223_s9 }
 0x8d4   : > { %v22004_v41 = vadd.f32 %v11901_v20, %v21981_v27  ;;  %v11903_v53 = vpop.f32.mrb[22].mxu1  ;;  %v11940_v33 = vpop.f32.mrb[16].mxu0 }
 0x8d5   : > { %v12113_v59 = vmax.f32 %v22000_v52, 0.0  ;;  %v11904_v14 = vpop.f32.mrb[23].mxu1  ;;  %v22009_v40 = vadd.f32 %v11940_v33, %v21981_v27  ;;  %v11942_v49 = vpop.f32.mrb[17].mxu0 }
 0x8d6   : > { %v12114_v28 = vmax.f32 %v22004_v41, 0.0  ;;  %v22012_v35 = vadd.f32 %v11942_v49, %v21981_v27  ;;  %v11944_v11 = vpop.f32.mrb[18].mxu0 }
 0x8d7   : > { %v12115_v18 = vmax.f32 %v22009_v40, 0.0  ;;  %v11945_v12 = vpop.f32.mrb[19].mxu0 }
 0x8d8   : > { %v15556_v23 = vpack.i.bf16 %v12114_v28, %v12113_v59  ;;  %v12116_v30 = vmax.f32 %v22012_v35, 0.0 }
 0x8da   : > { %15557 = vrot.lane.b32.xlu1 %v15556_v23, %s16221_s19  ;;  %v15581_v36 = vpack.i.bf16 %v12116_v30, %v12115_v18 }
 0x8dc   : > { %15582 = vrot.lane.b32.xlu0 %v15581_v36, %s16221_s19 }
 0x8de   : > { %v11981_v16 = vpop.f32.mrb[24].mxu1  ;;  %15567 = vrot.lane.b32.xlu1 %v15556_v23, %s16222_s8 }
 0x8df   : > { %v22028_v21 = vadd.f32 %v11981_v16, %v21981_v27  ;;  %v11983_v48 = vpop.f32.mrb[25].mxu1 }
 0x8e0   : > { %v22031_v58 = vadd.f32 %v11983_v48, %v21981_v27  ;;  %v11985_v13 = vpop.f32.mrb[26].mxu1  ;;  %15592 = vrot.lane.b32.xlu0 %v15556_v23, %s16224_s10 }
 0x8e1   : > { %v12117_v31 = vmax.f32 %v22028_v21, 0.0  ;;  %v11986_v34 = vpop.f32.mrb[27].mxu1 }
 0x8e2   : > { %v12118_v45 = vmax.f32 %v22031_v58, 0.0  ;;  %15577 = vrot.lane.b32.xlu1 %v15556_v23, %s16223_s9  ;;  %v247_v23 = vld [vmem:[%s22430_s4 + $0x28] sm:$0xff] }
 0x8e4   : > { %v15606_v17 = vpack.i.bf16 %v12118_v45, %v12117_v31  ;;  %15602 = vrot.lane.b32.xlu0 %v15581_v36, %s16223_s9  ;;  %v12022_v25 = vpop.f32.mrb[20].mxu0 }
 0x8e5   : > { %v22044_v62 = vadd.f32 %v12022_v25, %v21981_v27  ;;  %v12024_v24 = vpop.f32.mrb[21].mxu0 }
 0x8e6   : > { %15587 = vrot.lane.b32.xlu1 %v15551_v56, %s16224_s10  ;;  %v22047_v50 = vadd.f32 %v12024_v24, %v21981_v27  ;;  %v12026_v26 = vpop.f32.mrb[22].mxu0 }
 0x8e7   : > { %v12119_v37 = vmax.f32 %v22044_v62, 0.0  ;;  %v12027_v29 = vpop.f32.mrb[23].mxu0 }
 0x8e8   : > { %15612 = vrot.lane.b32.xlu0 %v15581_v36, %s16224_s10  ;;  %v12120_v22 = vmax.f32 %v22047_v50, 0.0 }
 0x8ea   : > { %15597 = vrot.lane.b32.xlu1 %v15581_v36, %s16222_s8  ;;  %v15626_v0 = vpack.i.bf16 %v12120_v22, %v12119_v37 }
 0x8ec   : > { %v12063_v60 = vpop.f32.mrb[28].mxu1  ;;  %15622 = vrot.lane.b32.xlu0 %v15606_v17, %s16223_s9 }
 0x8ed   : > { %v12064_v63 = vadd.f32 %v12063_v60, %v21981_v27  ;;  %v12065_v38 = vpop.f32.mrb[29].mxu1 }
 0x8ee   : > { %15607 = vrot.lane.b32.xlu1 %v15606_v17, %s16221_s19  ;;  %v12066_v57 = vadd.f32 %v12065_v38, %v21981_v27  ;;  %v12067_v15 = vpop.f32.mrb[30].mxu1 }
 0x8ef   : > { %v22061_v8 = vmax.f32 %v12064_v63, 0.0  ;;  %v12068_v43 = vpop.f32.mrb[31].mxu1 }
 0x8f0   : > { %v22063_v7 = vmax.f32 %v12066_v57, 0.0  ;;  %15632 = vrot.lane.b32.xlu0 %v15606_v17, %s16224_s10 }
 0x8f2   : > { %15617 = vrot.lane.b32.xlu1 %v15606_v17, %s16222_s8  ;;  %v15646_v3 = vpack.i.bf16 %v22063_v7, %v22061_v8 }
 0x8f4   : > { %15642 = vrot.lane.b32.xlu0 %v15626_v0, %s16223_s9 }
 0x8f6   : > { %15627 = vrot.lane.b32.xlu1 %v15626_v0, %s16221_s19 }
 0x8f8   : > { %v12104_v10 = vpop.f32.mrb[24].mxu0  ;;  %15652 = vrot.lane.b32.xlu0 %v15626_v0, %s16224_s10 }
 0x8f9   : > { %v12105_v39 = vadd.f32 %v12104_v10, %v21981_v27  ;;  %v12106_v56 = vpop.f32.mrb[25].mxu0 }
 0x8fa   : > { %15637 = vrot.lane.b32.xlu1 %v15626_v0, %s16222_s8  ;;  %v12107_v4 = vadd.f32 %v12106_v56, %v21981_v27  ;;  %v12108_v20 = vpop.f32.mrb[26].mxu0 }
 0x8fb   : > { %v12123_v53 = vmax.f32 %v12105_v39, 0.0  ;;  %v12109_v14 = vpop.f32.mrb[27].mxu0 }
 0x8fc   : > { %v12124_v33 = vmax.f32 %v12107_v4, 0.0  ;;  %12300 = vrot.lane.b32.xlu0 %v22061_v8, %s16223_s9 }
 0x8fd   : > { %v15661_v49 = vpack.i.bf16 %v12123_v53, %v22063_v7 }
 0x8fe   : > { %15647 = vrot.lane.b32.xlu1 %v15646_v3, %s16221_s19  ;;  %12139 = vst.msk [vmem:[#allocation4 + $0x68] sm:$0xff] %vm3649_vm15, %v12124_v33 }
 0x900   : > { %12356 = vrot.lane.b32.xlu0 %v22061_v8, %s16224_s10 }
 0x902   : > { %15657 = vrot.lane.b32.xlu1 %v15646_v3, %s16222_s8 }
 0x904   : > { %15662 = vrot.lane.b32.xlu0 %v15661_v49, %s16223_s9 }
 0x905   : > { %v12153_v27 = vld [vmem:[#allocation4 + $0x68] sm:$0xff] }
 0x906   : > { %12192 = vrot.lane.b32.xlu1 %v12123_v53, %s16221_s19  ;;  %v14821_v12 = vpack.c.bf16 %v12153_v27, %v12123_v53 }
 0x908   : > { %12194 = vrot.lane.b32.xlu0 %v12153_v27, %s16221_s19  ;;  %12624 = vst.msk [vmem:[#allocation8 + $0x30] sm:$0xff] %vm22086_vm5, %v14821_v12 }
 0x90a   : > { %12248 = vrot.lane.b32.xlu1 %v12123_v53, %s16222_s8 }
 0x90c   : > { %12306 = vrot.lane.b32.xlu0 %v12153_v27, %s16223_s9 }
 0x90e   : > { %15667 = vrot.lane.b32.xlu1 %v15661_v49, %s16224_s10 }
 0x910   : > { %12691 = vperm.xlu0 %15284, %v247_v23  }
 0x912   : > { %12250 = vrot.lane.b32.xlu1 %v12153_v27, %s16222_s8 }
 0x916   : > { %12362 = vrot.lane.b32.xlu1 %v12153_v27, %s16224_s10 }
 0x93d   : > { %v15553_v36 = vpop.permute.xlu0 %15552 }
 0x93e   : > { %v15555_v48 = vunpack.i.h.bf16 %v15553_v36  ;;  %v15554_v13 = vunpack.i.l.bf16 %v15553_v36 }
 0x940   : > { %v12197_v0 = vsel %vm22862_vm6, %v15554_v13, %v15555_v48  ;;  %vm22871_vm6 = vmmov %vm22868_vm0 }
 0x941   : > { %v15563_v16 = vpop.permute.xlu0 %15562  ;;  %v16141_v39 = vpack.c.bf16 %v12197_v0, %v12111_v9 }
 0x942   : > { %v15565_v25 = vunpack.i.h.bf16 %v15563_v16  ;;  %v15564_v24 = vunpack.i.l.bf16 %v15563_v16 }
 0x944   : > { %v12253_v15 = vsel %vm22864_vm8, %v15564_v24, %v15565_v25 }
 0x945   : > { %v15573_v34 = vpop.permute.xlu0 %15572 }
 0x946   : > { %v15575_v4 = vunpack.i.h.bf16 %v15573_v34  ;;  %v15574_v20 = vunpack.i.l.bf16 %v15573_v34 }
 0x948   : > { %v12309_v9 = vsel %vm22868_vm0, %v15574_v20, %v15575_v4 }
 0x949   : > { %v16145_v41 = vpack.c.bf16 %v12309_v9, %v12253_v15 }
 0x94c   : > { %v15558_v17 = vpop.permute.xlu1 %15557 }
 0x94d   : > { %v15559_v26 = vunpack.i.l.bf16 %v15558_v17  ;;  %v15560_v29 = vunpack.i.h.bf16 %v15558_v17 }
 0x94e   : > { %v22103_v63 = vpop.permute.xlu0 %15582 }
 0x94f   : > { %v12198_v60 = vsel %vm22863_vm7, %v15555_v48, %v15559_v26  ;;  %v15584_v57 = vunpack.i.l.bf16 %v22103_v63  ;;  %v12199_v3 = vsel %vm22865_vm4, %v15559_v26, %v15560_v29  ;;  %vm22872_vm7 = vmmov %vm22864_vm8 }
 0x950   : > { %v15568_v38 = vpop.permute.xlu1 %15567  ;;  %v16142_v56 = vpack.c.bf16 %v12198_v60, %v12112_v2  ;;  %v16143_v27 = vpack.c.bf16 %v12199_v3, %v12113_v59  ;;  %vm22873_vm8 = vmmov %vm22872_vm7 }
 0x951   : > { %v15569_v43 = vunpack.i.l.bf16 %v15568_v38  ;;  %v12200_v10 = vsel %vm22866_vm2, %v15560_v29, %v15584_v57  ;;  %v15570_v17 = vunpack.i.h.bf16 %v15568_v38  ;;  %v15585_v38 = vunpack.i.h.bf16 %v22103_v63  ;;  %vm22874_vm4 = vmmov %vm22868_vm0 }
 0x952   : > { %v15593_v14 = vpop.permute.xlu0 %15592  ;;  %12914 = vmatprep.subr.bf16.mxu1 %v16142_v56  ;;  %v16144_v12 = vpack.c.bf16 %v12200_v10, %v12114_v28  ;;  %vm22875_vm2 = vmmov %vm22868_vm0 }
 0x953   : > { %v12254_v53 = vsel %vm22867_vm9, %v15565_v25, %v15569_v43  ;;  %12915 = vmatpush1.bf16.msra.mxu1 %v16141_v39  ;;  %v15595_v13 = vunpack.i.h.bf16 %v15593_v14  ;;  %v15594_v34 = vunpack.i.l.bf16 %v15593_v14  ;;  %v12255_v15 = vsel %vm22872_vm7, %v15569_v43, %v15570_v17 }
 0x954   : > { %v15578_v33 = vpop.permute.xlu1 %15577  ;;  %12955 = vmatprep.subr.bf16.mxu0 %v16144_v12  ;;  %vm22876_vm9 = vcmask 949248  }
 0x955   : > { %v15579_v49 = vunpack.i.l.bf16 %v15578_v33  ;;  %v15580_v54 = vunpack.i.h.bf16 %v15578_v33  ;;  %12956 = vmatpush1.bf16.msra.mxu0 %v16143_v27  ;;  %v12367_v60 = vsel %vm3168_vm14, %v15594_v34, %v15595_v13  ;;  %vm22877_vm0 = vmmov %vm22876_vm9 }
 0x956   : > { %v15603_v2 = vpop.permute.xlu0 %15602 }
 0x957   : > { %v12310_v47 = vsel %vm22869_vm12, %v15575_v4, %v15579_v49  ;;  %v15604_v36 = vunpack.i.l.bf16 %v15603_v2  ;;  %v12311_v52 = vsel %vm22870_vm3, %v15579_v49, %v15580_v54  ;;  %v15605_v10 = vunpack.i.h.bf16 %v15603_v2  ;;  %vm22878_vm12 = vmmov %vm22872_vm7 }
 0x958   : > { %v15588_v23 = vpop.permute.xlu1 %15587  ;;  %v16146_v28 = vpack.c.bf16 %v12310_v47, %v12254_v53  ;;  %v16149_v47 = vpack.c.bf16 %v12311_v52, %v12255_v15  ;;  %vm22879_vm3 = vmmov %vm22872_vm7 }
 0x959   : > { %v15590_v16 = vunpack.i.h.bf16 %v15588_v23  ;;  %v15589_v48 = vunpack.i.l.bf16 %v15588_v23  ;;  %v12312_v59 = vsel %vm22871_vm6, %v15580_v54, %v15604_v36  ;;  %v22136_v54 = vld [vmem:[%s22429_s3 + $0x80] sm:$0xf]  ;;  %v12313_v43 = vsel %vm22874_vm4, %v15604_v36, %v15605_v10  ;;  %vm22880_vm6 = vmmov %vm22875_vm2 }
 0x95a   : > { %v15613_v26 = vpop.permute.xlu0 %15612  ;;  %12916 = vmatprep.subr.bf16.mxu1 %v16146_v28  ;;  %v12201_v23 = vsel %vm22876_vm9, %v15584_v57, %v15585_v38  ;;  %v16152_v36 = vpack.c.bf16 %v12367_v60, %v12367_v60  ;;  %vm22881_vm7 = vmmov %vm22877_vm0 }
 0x95b   : > { %v12365_v25 = vsel %vm3168_vm14, %v15589_v48, %v15590_v16  ;;  %v12366_v24 = vsel %vm3168_vm14, %v15590_v16, %v15594_v34  ;;  %v15614_v0 = vunpack.i.l.bf16 %v15613_v26  ;;  %12917 = vmatpush1.bf16.msra.mxu1 %v16145_v41  ;;  %v15615_v12 = vunpack.i.h.bf16 %v15613_v26  ;;  %vm22883_vm4 = vmmov %vm22877_vm0 }
 0x95c   : > { %v15598_v29 = vpop.permute.xlu1 %15597  ;;  %v16147_v56 = vpack.c.bf16 %v12366_v24, %v12366_v24  ;;  %v16148_v4 = vpack.c.bf16 %v12365_v25, %v12365_v25  ;;  %v16153_v25 = vpack.c.bf16 %v12201_v23, %v12115_v18 }
 0x95d   : > { %v15599_v3 = vunpack.i.l.bf16 %v15598_v29  ;;  %v12368_v39 = vsel %vm3168_vm14, %v15595_v13, %v15614_v0  ;;  %v15600_v16 = vunpack.i.h.bf16 %v15598_v29 }
 0x95e   : > { %v15623_v53 = vpop.permute.xlu0 %15622  ;;  %14668 = vmatprep.subr.msk.bf16.mxu1 %vm1616_vm1, %v16147_v56  ;;  %v12873_v49 = vsel %vm1616_vm1, %v16148_v4, 0  ;;  %v16151_v28 = vpack.c.bf16 %v12368_v39, %v12368_v39  ;;  %v12879_v39 = vsel %vm1616_vm1, %v16152_v36, 0 }
 0x95f   : > { %v12256_v20 = vsel %vm22873_vm8, %v15570_v17, %v15599_v3  ;;  %v15624_v33 = vunpack.i.l.bf16 %v15623_v53  ;;  %12919 = vmatpush1.bf16.msra.mxu1 %v12873_v49  ;;  %v12369_v17 = vsel %vm3168_vm14, %v15614_v0, %v15615_v12  ;;  %v12257_v26 = vsel %vm22878_vm12, %v15599_v3, %v15600_v16  ;;  %vm22882_vm8 = vmmov %vm22875_vm2 }
 0x960   : > { %v15608_v14 = vpop.permute.xlu1 %15607  ;;  %v16150_v2 = vpack.c.bf16 %v12312_v59, %v12256_v20  ;;  %v15625_v59 = vunpack.i.h.bf16 %v15623_v53  ;;  %v16155_v18 = vpack.c.bf16 %v12313_v43, %v12257_v26 }
 0x961   : > { %v15609_v27 = vunpack.i.l.bf16 %v15608_v14  ;;  %v12314_v9 = vsel %vm22875_vm2, %v15605_v10, %v15624_v33  ;;  %v15610_v63 = vunpack.i.h.bf16 %v15608_v14  ;;  %vm22884_vm2 = vmmov %vm22879_vm3 }
 0x962   : > { %v15633_v13 = vpop.permute.xlu0 %15632  ;;  %14669 = vmatmul.mubr.msk.bf16.vlgmr.msra.gmra.mrb[32].mxu1 %vm1898_vm10, %v22136_v54  ;;  %12957 = vmatprep.subr.bf16.mxu0 %v16150_v2  ;;  %v12315_v56 = vsel %vm22880_vm6, %v15624_v33, %v15625_v59  ;;  %vm22885_vm9 = vmmov %vm22884_vm2 }
 0x963   : > { %v12202_v48 = vsel %vm22877_vm0, %v15585_v38, %v15609_v27  ;;  %v15634_v41 = vunpack.i.l.bf16 %v15633_v13  ;;  %12958 = vmatpush1.bf16.msra.mxu0 %v16149_v47  ;;  %13028 = vmatprep.mubr.bf16.mxu1 %v22614_v6  ;;  %v15635_v15 = vunpack.i.h.bf16 %v15633_v13  ;;  %v12203_v40 = vsel %vm22881_vm7, %v15609_v27, %v15610_v63  ;;  %vm22886_vm0 = vmmov %vm22880_vm6 }
 0x964   : > { %v15618_v34 = vpop.permute.xlu1 %15617  ;;  %14670 = vmatprep.subr.msk.bf16.mxu0 %vm1616_vm1, %v16151_v28  ;;  %v16154_v24 = vpack.c.bf16 %v12202_v48, %v12116_v30  ;;  %v16159_v2 = vpack.c.bf16 %v12203_v40, %v12117_v31  ;;  %vm22887_vm12 = vmmov %vm22886_vm0 }
 0x965   : > { %v15619_v52 = vunpack.i.l.bf16 %v15618_v34  ;;  %v12370_v57 = vsel %vm3168_vm14, %v15615_v12, %v15634_v41  ;;  %v15620_v3 = vunpack.i.h.bf16 %v15618_v34  ;;  %v16158_v12 = vpack.c.bf16 %v12369_v17, %v12369_v17  ;;  %vm22890_vm7 = vmmov %vm22884_vm2 }
 0x966   : > { %v15643_v0 = vpop.permute.xlu0 %15642  ;;  %12996 = vmatprep.subr.bf16.mxu1 %v16154_v24  ;;  %v16157_v33 = vpack.c.bf16 %v12370_v57, %v12370_v57  ;;  %v12371_v47 = vsel %vm3168_vm14, %v15634_v41, %v15635_v15 }
 0x967   : > { %v12258_v29 = vsel %vm22879_vm3, %v15600_v16, %v15619_v52  ;;  %v15644_v10 = vunpack.i.l.bf16 %v15643_v0  ;;  %12960 = vmatpush1.bf16.msra.mxu0 %v12879_v39  ;;  %12997 = vmatpush1.bf16.msra.mxu1 %v16153_v25  ;;  %v15645_v20 = vunpack.i.h.bf16 %v15643_v0  ;;  %v12259_v16 = vsel %vm22884_vm2, %v15619_v52, %v15620_v3  ;;  %vm22888_vm3 = vmmov %vm22883_vm4 }
 0x968   : > { %v15628_v60 = vpop.permute.xlu1 %15627  ;;  %v16156_v30 = vpack.c.bf16 %v12314_v9, %v12258_v29  ;;  %v12885_v17 = vsel %vm1616_vm1, %v16158_v12, 0  ;;  %v16161_v58 = vpack.c.bf16 %v12315_v56, %v12259_v16  ;;  %vm22889_vm6 = vmmov %vm22888_vm3  ;;  %v16164_v29 = vpack.c.bf16 %v12371_v47, %v12371_v47 }
 0x969   : > { %v15629_v4 = vunpack.i.l.bf16 %v15628_v60  ;;  %v12316_v35 = vsel %vm22882_vm8, %v15625_v59, %v15644_v10  ;;  %v15630_v43 = vunpack.i.h.bf16 %v15628_v60  ;;  %v12317_v28 = vsel %vm22886_vm0, %v15644_v10, %v15645_v20  ;;  %vm22891_vm8 = vmmov %vm22884_vm2 }
 0x96a   : > { %v15653_v53 = vpop.permute.xlu0 %15652  ;;  %14671 = vmatmul.mubr.msk.bf16.vlgmr.msra.gmra.mrb[28].mxu0 %vm1898_vm10, %v22136_v54  ;;  %12998 = vmatprep.subr.bf16.mxu1 %v16156_v30  ;;  %vm22893_vm2 = vmmov %vm22888_vm3 }
 0x96b   : > { %v12204_v38 = vsel %vm22883_vm4, %v15610_v63, %v15629_v4  ;;  %v15654_v49 = vunpack.i.l.bf16 %v15653_v53  ;;  %12999 = vmatpush1.bf16.msra.mxu1 %v16155_v18  ;;  %13069 = vmatprep.mubr.bf16.mxu0 %v22614_v6  ;;  %v15655_v13 = vunpack.i.h.bf16 %v15653_v53  ;;  %v12205_v21 = vsel %vm22888_vm3, %v15629_v4, %v15630_v43  ;;  %vm22892_vm4 = vmmov %vm22888_vm3 }
 0x96c   : > { %v15638_v14 = vpop.permute.xlu1 %15637  ;;  %14672 = vmatprep.subr.msk.bf16.mxu1 %vm1616_vm1, %v16157_v33  ;;  %v16160_v23 = vpack.c.bf16 %v12204_v38, %v12118_v45  ;;  %v16165_v10 = vpack.c.bf16 %v12205_v21, %v12119_v37  ;;  %vm22896_vm3 = vmmov %vm22893_vm2 }
 0x96d   : > { %v15639_v27 = vunpack.i.l.bf16 %v15638_v14  ;;  %v12372_v9 = vsel %vm3168_vm14, %v15635_v15, %v15654_v49  ;;  %v15640_v45 = vunpack.i.h.bf16 %v15638_v14  ;;  %v12373_v57 = vsel %vm3168_vm14, %v15654_v49, %v15655_v13 }
 0x96e   : > { %v12301_v34 = vpop.permute.xlu0 %12300  ;;  %13037 = vmatprep.subr.bf16.mxu0 %v16160_v23  ;;  %v16163_v25 = vpack.c.bf16 %v12372_v9, %v12372_v9 }
 0x96f   : > { %v12260_v48 = vsel %vm22885_vm9, %v15620_v3, %v15639_v27  ;;  %v12318_v36 = vsel %vm22887_vm12, %v15645_v20, %v12301_v34  ;;  %13001 = vmatpush1.bf16.msra.mxu1 %v12885_v17  ;;  %13038 = vmatpush1.bf16.msra.mxu0 %v16159_v2  ;;  %v12261_v56 = vsel %vm22890_vm7, %v15639_v27, %v15640_v45  ;;  %v12891_v3 = vsel %vm1616_vm1, %v16164_v29, 0  ;;  %vm22894_vm9 = vmmov %vm22886_vm0 }
 0x970   : > { %v15648_v41 = vpop.permute.xlu1 %15647  ;;  %v16162_v31 = vpack.c.bf16 %v12316_v35, %v12260_v48  ;;  %vm22895_vm12 = vmmov %vm22890_vm7  ;;  %v16172_v2 = vpack.c.bf16 %v12373_v57, %v12373_v57 }
 0x971   : > { %v15649_v59 = vunpack.i.l.bf16 %v15648_v41  ;;  %v15650_v0 = vunpack.i.h.bf16 %v15648_v41 }
 0x972   : > { %v12357_v63 = vpop.permute.xlu0 %12356  ;;  %14673 = vmatmul.mubr.msk.bf16.vlgmr.msra.gmra.mrb[36].mxu1 %vm1898_vm10, %v22136_v54  ;;  %13039 = vmatprep.subr.bf16.mxu0 %v16162_v31 }
 0x973   : > { %v12206_v52 = vsel %vm22889_vm6, %v15630_v43, %v15649_v59  ;;  %v12374_v26 = vsel %vm3168_vm14, %v15655_v13, %v12357_v63  ;;  %13040 = vmatpush1.bf16.msra.mxu0 %v16161_v58  ;;  %13110 = vmatprep.mubr.bf16.mxu1 %v22614_v6  ;;  %v12207_v38 = vsel %vm22892_vm4, %v15649_v59, %v15650_v0  ;;  %vm22897_vm6 = vmmov %vm22890_vm7 }
 0x974   : > { %v15658_v24 = vpop.permute.xlu1 %15657  ;;  %14674 = vmatprep.subr.msk.bf16.mxu0 %vm1616_vm1, %v16163_v25  ;;  %v16166_v39 = vpack.c.bf16 %v12206_v52, %v12120_v22  ;;  %v16167_v22 = vpack.c.bf16 %v12317_v28, %v12261_v56  ;;  %v16169_v12 = vpack.c.bf16 %v12374_v26, %v12374_v26  ;;  %v16170_v47 = vpack.c.bf16 %v12207_v38, %v22061_v8  ;;  %vm22898_vm7 = vmmov %vm22886_vm0 }
 0x975   : > { %v15659_v60 = vunpack.i.l.bf16 %v15658_v24  ;;  %v15660_v4 = vunpack.i.h.bf16 %v15658_v24  ;;  %v12897_v28 = vsel %vm1616_vm1, %v16172_v2, 0 }
 0x976   : > { %v15663_v40 = vpop.permute.xlu0 %15662  ;;  %13078 = vmatprep.subr.bf16.mxu1 %v16166_v39 }
 0x977   : > { %v12262_v15 = vsel %vm22891_vm8, %v15640_v45, %v15659_v60  ;;  %v15665_v18 = vunpack.i.h.bf16 %v15663_v40  ;;  %v15664_v30 = vunpack.i.l.bf16 %v15663_v40  ;;  %13042 = vmatpush1.bf16.msra.mxu0 %v12891_v3  ;;  %13079 = vmatpush1.bf16.msra.mxu1 %v16165_v10  ;;  %v12263_v20 = vsel %vm22895_vm12, %v15659_v60, %v15660_v4  ;;  %vm22899_vm8 = vmmov %vm22897_vm6 }
 0x978   : > { %v12193_v35 = vpop.permute.xlu1 %12192  ;;  %v16168_v14 = vpack.c.bf16 %v12318_v36, %v12262_v15 }
 0x979   : > { %v12208_v62 = vsel %vm22893_vm2, %v15650_v0, %v12193_v35  ;;  %v12319_v50 = vsel %vm22894_vm9, %v12301_v34, %v15664_v30  ;;  %v12320_v37 = vsel %vm22886_vm0, %v15664_v30, %v15665_v18 }
 0x97a   : > { %v12195_v53 = vpop.permute.xlu0 %12194  ;;  %14675 = vmatmul.mubr.msk.bf16.vlgmr.msra.gmra.mrb[32].mxu0 %vm1898_vm10, %v22136_v54  ;;  %v16171_v27 = vpack.c.bf16 %v12208_v62, %v22063_v7  ;;  %13080 = vmatprep.subr.bf16.mxu1 %v16168_v14  ;;  %v16173_v7 = vpack.c.bf16 %v12319_v50, %v12263_v20 }
 0x97b   : > { %v12209_v33 = vsel %vm22896_vm3, %v12193_v35, %v12195_v53  ;;  %13151 = vmatprep.mubr.bf16.mxu0 %v22614_v6  ;;  %13081 = vmatpush1.bf16.msra.mxu1 %v16167_v22 }
 0x97c   : > { %v12249_v49 = vpop.permute.xlu1 %12248  ;;  %v14828_v9 = vpack.c.bf16 %v12195_v53, %v12209_v33  ;;  %13119 = vmatprep.subr.bf16.mxu0 %v16171_v27  ;;  %14676 = vmatprep.subr.msk.bf16.mxu1 %vm1616_vm1, %v16169_v12 }
 0x97d   : > { %v12264_v43 = vsel %vm22897_vm6, %v15660_v4, %v12249_v49  ;;  %13120 = vmatpush1.bf16.msra.mxu0 %v16170_v47 }
 0x97e   : > { %12631 = vst.msk [vmem:[#allocation8 + $0x68] sm:$0xff] %vm22086_vm5, %v14828_v9  ;;  %v12307_v23 = vpop.permute.xlu0 %12306  ;;  %v16174_v48 = vpack.c.bf16 %v12320_v37, %v12264_v43 }
 0x97f   : > { %v12321_v8 = vsel %vm22898_vm7, %v15665_v18, %v12307_v23  ;;  %13083 = vmatpush1.bf16.msra.mxu1 %v12897_v28 }
 0x980   : > { %v15668_v16 = vpop.permute.xlu1 %15667  ;;  %v14842_v41 = vpack.c.bf16 %v12307_v23, %v12321_v8  ;;  %13121 = vmatprep.subr.bf16.mxu0 %v16174_v48 }
 0x981   : > { %v15670_v13 = vunpack.i.h.bf16 %v15668_v16  ;;  %v15669_v34 = vunpack.i.l.bf16 %v15668_v16  ;;  %13122 = vmatpush1.bf16.msra.mxu0 %v16173_v7 }
 0x982   : > { %12645 = vst.msk [vmem:[#allocation8 + $0xd8] sm:$0xff] %vm22086_vm5, %v14842_v41  ;;  %14677 = vmatmul.mubr.msk.bf16.vlgmr.msra.gmra.mrb[40].mxu1 %vm1898_vm10, %v22136_v54 }
 0x983   : > { %v12375_v36 = vsel %vm3168_vm14, %v12357_v63, %v15669_v34  ;;  %v12376_v17 = vsel %vm3168_vm14, %v15669_v34, %v15670_v13  ;;  %13192 = vmatprep.mubr.bf16.mxu1 %v22614_v6 }
 0x984   : > { %v12251_v59 = vpop.permute.xlu1 %12250  ;;  %v16175_v52 = vpack.c.bf16 %v12376_v17, %v12376_v17  ;;  %v16176_v57 = vpack.c.bf16 %v12375_v36, %v12375_v36 }
 0x985   : > { %v12265_v21 = vsel %vm22899_vm8, %v12249_v49, %v12251_v59  ;;  %v15940_v31 = vld [vmem:[#allocation8 + $0x30] ss:$56 sps:$4 sm:$0xff]   ;;  %v15942_v45 = vld [vmem:[#allocation8 + $0x34] ss:$56 sps:$4 sm:$0xff]  }
 0x986   : > { %v14835_v58 = vpack.c.bf16 %v12251_v59, %v12265_v21  ;;  %13160 = vmatprep.subr.bf16.mxu1 %v15942_v45  ;;  %14678 = vmatprep.subr.msk.bf16.mxu0 %vm1616_vm1, %v16175_v52  ;;  %v12903_v25 = vsel %vm1616_vm1, %v16176_v57, 0 }
 0x987   : > { %13161 = vmatpush1.bf16.msra.mxu1 %v15940_v31  ;;  %13124 = vmatpush1.bf16.msra.mxu0 %v12903_v25 }
 0x988   : > { %12638 = vst.msk [vmem:[#allocation8 + $0xa0] sm:$0xff] %vm22086_vm5, %v14835_v58  ;;  %v12363_v63 = vpop.permute.xlu1 %12362 }
 0x989   : > { %v12377_v24 = vsel %vm3168_vm14, %v15670_v13, %v12363_v63 }
 0x98a   : > { %v14849_v26 = vpack.c.bf16 %v12363_v63, %v12377_v24  ;;  %14679 = vmatmul.mubr.msk.bf16.vlgmr.msra.gmra.mrb[36].mxu0 %vm1898_vm10, %v22136_v54 }
 0x98b   : > { %13792 = vmatprep.mubr.bf16.mxu0 %v22614_v6 }
 0x98c   : > { %12652 = vst.msk [vmem:[#allocation8 + $0x110] sm:$0xff] %vm22086_vm5, %v14849_v26  ;;  %vm22900_vm5 = vcmask 785408  }
 0x98d   : > { %vm22901_vm4 = vmmov %vm22900_vm5 }
 0x98e   : > { %vm22902_vm2 = vmmov %vm22901_vm4 }
 0x98f   : > { %v15943_v29 = vld [vmem:[#allocation8 + $0xa0] ss:$56 sps:$4 sm:$0xff]   ;;  %v15945_v0 = vld [vmem:[#allocation8 + $0xa4] ss:$56 sps:$4 sm:$0xff]   ;;  %v22231_v11 = vpop.permute.xlu0 %12691  ;;  %vm22903_vm9 = vmmov %vm22902_vm2 }
 0x990   : > { %13162 = vmatprep.subr.bf16.mxu1 %v15945_v0  ;;  %vm22904_vm0 = vmmov %vm22902_vm2 }
 0x991   : > { %13163 = vmatpush1.bf16.msra.mxu1 %v15943_v29  ;;  %vm22905_vm12 = vmmov %vm22904_vm0 }
 0x992   : > { %vm22907_vm3 = vmmov %vm22904_vm0 }
 0x993   : > { %v12688_v60 = vld [vmem:[#allocation8 + $0x110] sm:$0xff]  ;;  %vm22908_vm6 = vmmov %vm22904_vm0 }
 0x994   : > { %v14667_v10 = vcombine.high %v12688_v60, %v12688_v60  ;;  %v14666_v39 = vcombine.low %v12688_v60, %v12688_v60 }
 0x996   : > { %14680 = vmatprep.subr.msk.bf16.mxu1 %vm1616_vm1, %v14667_v10  ;;  %v12909_v56 = vsel %vm1616_vm1, %v14666_v39, 0 }
 0x997   : > { %13165 = vmatpush1.bf16.msra.mxu1 %v12909_v56 }
 0x99a   : > { %14681 = vmatmul.mubr.msk.bf16.vlgmr.msra.gmra.mrb[44].mxu1 %vm1898_vm10, %v22136_v54 }
 0x99b   : > { %13833 = vmatprep.mubr.bf16.mxu1 %v22614_v6 }
 0xa35   : > { %v12948_v4 = vpop.f32.mrb[32].mxu1 }
 0xa36   : > { %v22234_v15 = vadd.f32 %v12948_v4, %v22231_v11  ;;  %v12950_v40 = vpop.f32.mrb[33].mxu1 }
 0xa37   : > { %v22237_v35 = vadd.f32 %v12950_v40, %v22231_v11  ;;  %v12952_v18 = vpop.f32.mrb[34].mxu1 }
 0xa38   : > { %v13201_v30 = vmax.f32 %v22234_v15, 0.0  ;;  %v12953_v3 = vpop.f32.mrb[35].mxu1 }
 0xa39   : > { %v13202_v38 = vmax.f32 %v22237_v35, 0.0 }
 0xa3d   : > { %v12989_v62 = vpop.f32.mrb[28].mxu0 }
 0xa3e   : > { %v12990_v54 = vadd.f32 %v12989_v62, %v22231_v11  ;;  %v12991_v50 = vpop.f32.mrb[29].mxu0 }
 0xa3f   : > { %v12992_v37 = vadd.f32 %v12991_v50, %v22231_v11  ;;  %v12993_v22 = vpop.f32.mrb[30].mxu0 }
 0xa40   : > { %v22243_v20 = vmax.f32 %v12990_v54, 0.0  ;;  %v12994_v53 = vpop.f32.mrb[31].mxu0 }
 0xa41   : > { %v22245_v14 = vmax.f32 %v12992_v37, 0.0 }
 0xa42   : > { %v15671_v49 = vpack.i.bf16 %v22243_v20, %v13202_v38 }
 0xa43   : > { %v15681_v33 = vpack.i.bf16 %v22245_v14, %v22243_v20 }
 0xa44   : > { %15672 = vrot.lane.b32.xlu1 %v15671_v49, %s16225_s11 }
 0xa45   : > { %v13030_v12 = vpop.f32.mrb[36].mxu1 }
 0xa46   : > { %v13031_v47 = vadd.f32 %v13030_v12, %v22231_v11  ;;  %v13032_v27 = vpop.f32.mrb[37].mxu1 }
 0xa47   : > { %v13033_v43 = vadd.f32 %v13032_v27, %v22231_v11  ;;  %v13034_v9 = vpop.f32.mrb[38].mxu1 }
 0xa48   : > { %v22255_v2 = vmax.f32 %v13031_v47, 0.0  ;;  %v13035_v23 = vpop.f32.mrb[39].mxu1  ;;  %15682 = vrot.lane.b32.xlu1 %v15681_v33, %s16214_s16  ;;  %v245_v9 = vld [vmem:[%s22430_s4 + $0x18] sm:$0xff] }
 0xa49   : > { %v22258_v16 = vmax.f32 %v13033_v43, 0.0 }
 0xa4a   : > { %v15676_v8 = vpack.i.bf16 %v22255_v2, %v22245_v14 }
 0xa4b   : > { %v15691_v7 = vpack.i.bf16 %v22258_v16, %v22255_v2 }
 0xa4c   : > { %15677 = vrot.lane.b32.xlu0 %v15676_v8, %s16225_s11  ;;  %15687 = vrot.lane.b32.xlu1 %v15676_v8, %s16224_s10 }
 0xa4d   : > { %v13071_v48 = vpop.f32.mrb[32].mxu0 }
 0xa4e   : > { %v13072_v13 = vadd.f32 %v13071_v48, %v22231_v11  ;;  %v13073_v34 = vpop.f32.mrb[33].mxu0 }
 0xa4f   : > { %v13074_v41 = vadd.f32 %v13073_v34, %v22231_v11  ;;  %v13075_v28 = vpop.f32.mrb[34].mxu0 }
 0xa50   : > { %v22268_v36 = vmax.f32 %v13072_v13, 0.0  ;;  %v13076_v17 = vpop.f32.mrb[35].mxu0  ;;  %15692 = vrot.lane.b32.xlu0 %v15691_v7, %s16214_s16  ;;  %15697 = vrot.lane.b32.xlu1 %v15691_v7, %s16230_s30 }
 0xa51   : > { %v22272_v59 = vmax.f32 %v13074_v41, 0.0 }
 0xa52   : > { %v15701_v21 = vpack.i.bf16 %v22268_v36, %v22258_v16 }
 0xa53   : > { %v15711_v58 = vpack.i.bf16 %v22272_v59, %v22268_v36 }
 0xa54   : > { %15702 = vrot.lane.b32.xlu0 %v15701_v21, %s16224_s10  ;;  %15707 = vrot.lane.b32.xlu1 %v15701_v21, %s16225_s11 }
 0xa55   : > { %v13112_v31 = vpop.f32.mrb[40].mxu1 }
 0xa56   : > { %v13113_v45 = vadd.f32 %v13112_v31, %v22231_v11  ;;  %v13114_v52 = vpop.f32.mrb[41].mxu1 }
 0xa57   : > { %v13115_v57 = vadd.f32 %v13114_v52, %v22231_v11  ;;  %v13116_v63 = vpop.f32.mrb[42].mxu1 }
 0xa58   : > { %15712 = vrot.lane.b32.xlu0 %v15711_v58, %s16230_s30  ;;  %15722 = vrot.lane.b32.xlu1 %v15711_v58, %s16214_s16  ;;  %v13209_v25 = vmax.f32 %v13113_v45, 0.0  ;;  %v13117_v24 = vpop.f32.mrb[43].mxu1 }
 0xa59   : > { %v13210_v26 = vmax.f32 %v13115_v57, 0.0 }
 0xa5a   : > { %v15716_v29 = vpack.i.bf16 %v13209_v25, %v22272_v59  ;;  %v14854_v0 = vpack.c.bf16 %v13209_v25, %v13209_v25 }
 0xa5b   : > { %v15731_v60 = vpack.i.bf16 %v13210_v26, %v13209_v25 }
 0xa5c   : > { %13563 = vst [vmem:[#allocation9 + $0x20] sm:$0xf] %v14854_v0  ;;  %15717 = vrot.lane.b32.xlu0 %v15716_v29, %s16225_s11 }
 0xa5d   : > { %v13153_v10 = vpop.f32.mrb[36].mxu0  ;;  %15732 = vrot.lane.b32.xlu1 %v15731_v60, %s16214_s16 }
 0xa5e   : > { %v13154_v39 = vadd.f32 %v13153_v10, %v22231_v11  ;;  %v13155_v56 = vpop.f32.mrb[37].mxu0 }
 0xa5f   : > { %v13156_v4 = vadd.f32 %v13155_v56, %v22231_v11  ;;  %v13157_v40 = vpop.f32.mrb[38].mxu0 }
 0xa60   : > { %v13211_v18 = vmax.f32 %v13154_v39, 0.0  ;;  %v13158_v3 = vpop.f32.mrb[39].mxu0  ;;  %15727 = vrot.lane.b32.xlu0 %v15716_v29, %s16224_s10 }
 0xa61   : > { %v13212_v62 = vmax.f32 %v13156_v4, 0.0  ;;  %15737 = vrot.lane.b32.xlu1 %v15731_v60, %s16230_s30 }
 0xa62   : > { %v15741_v54 = vpack.i.bf16 %v13211_v18, %v13210_v26 }
 0xa63   : > { %v15751_v50 = vpack.i.bf16 %v13212_v62, %v13211_v18 }
 0xa64   : > { %13345 = vrot.lane.b32.xlu0 %v13210_v26, %s16224_s10 }
 0xa65   : > { %15742 = vrot.lane.b32.xlu1 %v15741_v54, %s16225_s11 }
 0xa68   : > { %13384 = vrot.lane.b32.xlu0 %v13211_v18, %s16230_s30 }
 0xa69   : > { %15752 = vrot.lane.b32.xlu1 %v15751_v50, %s16224_s10 }
 0xa6c   : > { %15747 = vrot.lane.b32.xlu0 %v15751_v50, %s16214_s16 }
 0xa6d   : > { %v13194_v37 = vpop.f32.mrb[44].mxu1 }
 0xa6e   : > { %v13195_v22 = vadd.f32 %v13194_v37, %v22231_v11  ;;  %v13196_v53 = vpop.f32.mrb[45].mxu1 }
 0xa6f   : > { %v13197_v49 = vadd.f32 %v13196_v53, %v22231_v11  ;;  %v13198_v33 = vpop.f32.mrb[46].mxu1  ;;  %v248_v11 = vld [vmem:[%s22430_s4 + $0x30] sm:$0xff] }
 0xa70   : > { %v13213_v12 = vmax.f32 %v13195_v22, 0.0  ;;  %v13199_v47 = vpop.f32.mrb[47].mxu1 }
 0xa71   : > { %v13214_v27 = vmax.f32 %v13197_v49, 0.0 }
 0xa72   : > { %v15756_v43 = vpack.i.bf16 %v13213_v12, %v13212_v62  ;;  %13351 = vrot.lane.b32.xlu0 %v13213_v12, %s16224_s10 }
 0xa73   : > { %13229 = vst.msk [vmem:[#allocation5 + $0x68] sm:$0xff] %vm5066_vm13, %v13214_v27 }
 0xa74   : > { %15757 = vrot.lane.b32.xlu1 %v15756_v43, %s16230_s30 }
 0xa78   : > { %11026 = vperm.xlu1 %15285, %v245_v9  }
 0xa7a   : > { %v13243_v23 = vld [vmem:[#allocation5 + $0x68] sm:$0xff] }
 0xa7b   : > { %13390 = vrot.lane.b32.xlu0 %v13243_v23, %s16230_s30 }
 0xa7f   : > { %13612 = vperm.xlu0 %15284, %v248_v11  }
 0xab6   : > { %v15673_v8 = vpop.permute.xlu1 %15672 }
 0xab7   : > { %v15675_v48 = vunpack.i.h.bf16 %v15673_v8  ;;  %v15674_v13 = vunpack.i.l.bf16 %v15673_v8 }
 0xab9   : > { %v13274_v17 = vsel %vm3649_vm15, %v15674_v13, %v15675_v48 }
 0xaba   : > { %v15683_v7 = vpop.permute.xlu1 %15682  ;;  %v16177_v26 = vpack.c.bf16 %v13274_v17, %v13201_v30 }
 0xabb   : > { %v15685_v21 = vunpack.i.h.bf16 %v15683_v7  ;;  %v15684_v58 = vunpack.i.l.bf16 %v15683_v7 }
 0xabd   : > { %v13314_v0 = vsel %vm22900_vm5, %v15684_v58, %v15685_v21 }
 0xabe   : > { %v15678_v34 = vpop.permute.xlu0 %15677  ;;  %v15688_v41 = vpop.permute.xlu1 %15687 }
 0xabf   : > { %v15679_v28 = vunpack.i.l.bf16 %v15678_v34  ;;  %v15680_v57 = vunpack.i.h.bf16 %v15678_v34  ;;  %v15690_v25 = vunpack.i.h.bf16 %v15688_v41  ;;  %v15689_v24 = vunpack.i.l.bf16 %v15688_v41 }
 0xac1   : > { %v13275_v31 = vsel %vm3649_vm15, %v15675_v48, %v15679_v28  ;;  %v13276_v40 = vsel %vm3649_vm15, %v15679_v28, %v15680_v57  ;;  %v13353_v18 = vsel %vm3168_vm14, %v15689_v24, %v15690_v25 }
 0xac2   : > { %v15693_v45 = vpop.permute.xlu0 %15692  ;;  %v15698_v52 = vpop.permute.xlu1 %15697  ;;  %v16178_v29 = vpack.c.bf16 %v13275_v31, %v13202_v38  ;;  %v16179_v22 = vpack.c.bf16 %v13353_v18, %v13314_v0  ;;  %v16181_v49 = vpack.c.bf16 %v13276_v40, %v22243_v20 }
 0xac3   : > { %v15694_v63 = vunpack.i.l.bf16 %v15693_v45  ;;  %v15695_v3 = vunpack.i.h.bf16 %v15693_v45  ;;  %v15700_v15 = vunpack.i.h.bf16 %v15698_v52  ;;  %v15699_v30 = vunpack.i.l.bf16 %v15698_v52  ;;  %v22342_v45 = vld [vmem:[%s22429_s3 + $0xc0] sm:$0xf] }
 0xac4   : > { %13760 = vmatprep.subr.bf16.mxu0 %v16178_v29 }
 0xac5   : > { %v13315_v60 = vsel %vm22901_vm4, %v15685_v21, %v15694_v63  ;;  %13761 = vmatpush1.bf16.msra.mxu0 %v16177_v26  ;;  %v22323_v12 = vsel %vm22902_vm2, %v15694_v63, %v15695_v3  ;;  %v13392_v47 = vsel %vm5066_vm13, %v15699_v30, %v15700_v15 }
 0xac6   : > { %v15703_v10 = vpop.permute.xlu0 %15702  ;;  %v15708_v39 = vpop.permute.xlu1 %15707  ;;  %v16184_v7 = vpack.c.bf16 %v13392_v47, %v13392_v47 }
 0xac7   : > { %v15704_v56 = vunpack.i.l.bf16 %v15703_v10  ;;  %v15709_v4 = vunpack.i.l.bf16 %v15708_v39  ;;  %v15710_v9 = vunpack.i.h.bf16 %v15708_v39  ;;  %v15705_v13 = vunpack.i.h.bf16 %v15703_v10 }
 0xac8   : > { %v13734_v28 = vsel %vm1616_vm1, %v16184_v7, 0 }
 0xac9   : > { %v13354_v35 = vsel %vm3168_vm14, %v15690_v25, %v15704_v56  ;;  %v13277_v38 = vsel %vm3649_vm15, %v15680_v57, %v15709_v4  ;;  %v13278_v34 = vsel %vm3649_vm15, %v15709_v4, %v15710_v9  ;;  %v13355_v29 = vsel %vm3168_vm14, %v15704_v56, %v15705_v13 }
 0xaca   : > { %v15713_v62 = vpop.permute.xlu0 %15712  ;;  %v15723_v54 = vpop.permute.xlu1 %15722  ;;  %v16180_v53 = vpack.c.bf16 %v13354_v35, %v13315_v60  ;;  %v16182_v33 = vpack.c.bf16 %v13277_v38, %v22245_v14  ;;  %v16185_v24 = vpack.c.bf16 %v13278_v34, %v22255_v2 }
 0xacb   : > { %v15714_v50 = vunpack.i.l.bf16 %v15713_v62  ;;  %v15724_v37 = vunpack.i.l.bf16 %v15723_v54  ;;  %v15725_v23 = vunpack.i.h.bf16 %v15723_v54  ;;  %v15715_v17 = vunpack.i.h.bf16 %v15713_v62 }
 0xacc   : > { %13762 = vmatprep.subr.bf16.mxu0 %v16180_v53  ;;  %13801 = vmatprep.subr.bf16.mxu1 %v16182_v33 }
 0xacd   : > { %v13393_v27 = vsel %vm5066_vm13, %v15700_v15, %v15714_v50  ;;  %v13317_v43 = vsel %vm22903_vm9, %v15695_v3, %v15724_v37  ;;  %13763 = vmatpush1.bf16.msra.mxu0 %v16179_v22  ;;  %13802 = vmatpush1.bf16.msra.mxu1 %v16181_v49  ;;  %v13318_v21 = vsel %vm22904_vm0, %v15724_v37, %v15725_v23 }
 0xace   : > { %v15718_v11 = vpop.permute.xlu0 %15717  ;;  %v16183_v14 = vpack.c.bf16 %v13393_v27, %v13393_v27  ;;  %v13394_v39 = vsel %vm5066_vm13, %v15714_v50, %v15715_v17  ;;  %v16187_v15 = vpack.c.bf16 %v13355_v29, %v22323_v12 }
 0xacf   : > { %v15719_v8 = vunpack.i.l.bf16 %v15718_v11  ;;  %v22328_v20 = vpop.permute.xlu1 %15732  ;;  %v15720_v0 = vunpack.i.h.bf16 %v15718_v11  ;;  %v16192_v27 = vpack.c.bf16 %v13394_v39, %v13394_v39 }
 0xad0   : > { %v15734_v48 = vunpack.i.l.bf16 %v22328_v20  ;;  %14734 = vmatprep.subr.msk.bf16.mxu0 %vm1616_vm1, %v16183_v14 }
 0xad1   : > { %v13279_v41 = vsel %vm3649_vm15, %v15710_v9, %v15719_v8  ;;  %13765 = vmatpush1.bf16.msra.mxu0 %v13734_v28  ;;  %v13280_v30 = vsel %vm3649_vm15, %v15719_v8, %v15720_v0  ;;  %v13740_v28 = vsel %vm1616_vm1, %v16192_v27, 0 }
 0xad2   : > { %v13319_v58 = vsel %vm22905_vm12, %v15725_v23, %v15734_v48  ;;  %v15728_v31 = vpop.permute.xlu0 %15727  ;;  %v16186_v26 = vpack.c.bf16 %v13279_v41, %v22258_v16 }
 0xad3   : > { %v15730_v52 = vunpack.i.h.bf16 %v15728_v31  ;;  %v15729_v57 = vunpack.i.l.bf16 %v15728_v31  ;;  %v15738_v63 = vpop.permute.xlu1 %15737 }
 0xad4   : > { %v15739_v25 = vunpack.i.l.bf16 %v15738_v63  ;;  %v15740_v10 = vunpack.i.h.bf16 %v15738_v63  ;;  %14735 = vmatmul.mubr.msk.bf16.vlgmr.msra.gmra.mrb[40].mxu0 %vm1898_vm10, %v22342_v45  ;;  %13842 = vmatprep.subr.bf16.mxu0 %v16186_v26 }
 0xad5   : > { %v13356_v60 = vsel %vm3168_vm14, %v15705_v13, %v15729_v57  ;;  %13874 = vmatprep.mubr.bf16.mxu0 %v22614_v6  ;;  %v13357_v2 = vsel %vm3168_vm14, %v15729_v57, %v15730_v52  ;;  %13843 = vmatpush1.bf16.msra.mxu0 %v16185_v24  ;;  %v16196_v57 = vpack.c.bf16 %v13280_v30, %v22268_v36 }
 0xad6   : > { %v13395_v4 = vsel %vm5066_vm13, %v15715_v17, %v15739_v25  ;;  %v13346_v40 = vpop.permute.xlu0 %13345  ;;  %v13396_v35 = vsel %vm5066_vm13, %v15739_v25, %v15740_v10  ;;  %v16188_v38 = vpack.c.bf16 %v13356_v60, %v13317_v43  ;;  %v16190_v22 = vpack.c.bf16 %v13357_v2, %v13318_v21 }
 0xad7   : > { %v13358_v16 = vsel %vm3168_vm14, %v15730_v52, %v13346_v40  ;;  %v15743_v56 = vpop.permute.xlu1 %15742  ;;  %v16189_v62 = vpack.c.bf16 %v13395_v4, %v13395_v4  ;;  %v15735_v43 = vunpack.i.h.bf16 %v22328_v20  ;;  %v16195_v13 = vpack.c.bf16 %v13396_v35, %v13396_v35 }
 0xad8   : > { %v15745_v18 = vunpack.i.h.bf16 %v15743_v56  ;;  %v15744_v3 = vunpack.i.l.bf16 %v15743_v56  ;;  %v16191_v53 = vpack.c.bf16 %v13358_v16, %v13319_v58  ;;  %13803 = vmatprep.subr.bf16.mxu1 %v16188_v38 }
 0xad9   : > { %13804 = vmatpush1.bf16.msra.mxu1 %v16187_v15  ;;  %v13746_v17 = vsel %vm1616_vm1, %v16195_v13, 0 }
 0xada   : > { %v13281_v54 = vsel %vm3649_vm15, %v15720_v0, %v15744_v3  ;;  %v13282_v50 = vsel %vm3649_vm15, %v15744_v3, %v15745_v18  ;;  %v13385_v37 = vpop.permute.xlu0 %13384  ;;  %13844 = vmatprep.subr.bf16.mxu0 %v16191_v53  ;;  %14736 = vmatprep.subr.msk.bf16.mxu1 %vm1616_vm1, %v16189_v62  ;;  %vm22906_vm15 = vmmov %vm22904_vm0 }
 0xadb   : > { %v14859_v49 = vpack.c.bf16 %v13282_v50, %v13282_v50  ;;  %v13397_v33 = vsel %vm5066_vm13, %v15740_v10, %v13385_v37  ;;  %v15753_v47 = vpop.permute.xlu1 %15752  ;;  %13845 = vmatpush1.bf16.msra.mxu0 %v16190_v22  ;;  %v16193_v23 = vpack.c.bf16 %v13281_v54, %v22272_v59  ;;  %v13320_v59 = vsel %vm22906_vm15, %v15734_v48, %v15735_v43 }
 0xadc   : > { %v15755_v12 = vunpack.i.h.bf16 %v15753_v47  ;;  %v15754_v9 = vunpack.i.l.bf16 %v15753_v47  ;;  %v16194_v7 = vpack.c.bf16 %v13397_v33, %v13397_v33 }
 0xadd   : > { %13568 = vst [vmem:[#allocation9 + $0x44] sm:$0xf] %v14859_v49  ;;  %13806 = vmatpush1.bf16.msra.mxu1 %v13740_v28 }
 0xade   : > { %v13359_v11 = vsel %vm3168_vm14, %v13346_v40, %v15754_v9  ;;  %v13360_v8 = vsel %vm3168_vm14, %v15754_v9, %v15755_v12  ;;  %v15748_v14 = vpop.permute.xlu0 %15747  ;;  %14738 = vmatprep.subr.msk.bf16.mxu0 %vm1616_vm1, %v16194_v7  ;;  %13883 = vmatprep.subr.bf16.mxu1 %v16193_v23 }
 0xadf   : > { %v15750_v34 = vunpack.i.h.bf16 %v15748_v14  ;;  %v15749_v41 = vunpack.i.l.bf16 %v15748_v14  ;;  %13847 = vmatpush1.bf16.msra.mxu0 %v13746_v17  ;;  %v16197_v29 = vpack.c.bf16 %v13359_v11, %v13320_v59 }
 0xae0   : > { %15229 = vmatprep.subr.bf16.mxu0 %v22674_v5  ;;  %14737 = vmatmul.mubr.msk.bf16.vlgmr.msra.gmra.mrb[48].mxu1 %vm1898_vm10, %v22342_v45 }
 0xae1   : > { %v13321_v21 = vsel %vm22907_vm3, %v15735_v43, %v15749_v41  ;;  %v13322_v58 = vsel %vm22908_vm6, %v15749_v41, %v15750_v34  ;;  %13884 = vmatpush1.bf16.msra.mxu1 %v16196_v57  ;;  %13915 = vmatprep.mubr.bf16.mxu1 %v22614_v6 }
 0xae2   : > { %v14864_v31 = vpack.c.bf16 %v13322_v58, %v13322_v58  ;;  %14739 = vmatmul.mubr.msk.bf16.vlgmr.msra.gmra.mrb[44].mxu0 %vm1898_vm10, %v22342_v45  ;;  %v16198_v0 = vpack.c.bf16 %v13360_v8, %v13321_v21 }
 0xae3   : > { %15235 = vmatprep.mubr.msk.bf16.mxu0 %vm16227_vm11, %v22674_v5 }
 0xae4   : > { %v13352_v52 = vpop.permute.xlu0 %13351  ;;  %13573 = vst [vmem:[#allocation9 + $0x68] sm:$0xf] %v14864_v31  ;;  %v15948_v26 = vld [vmem:[#allocation9 + $0x20] ss:$36 sps:$4 sm:$0xff]   ;;  %13885 = vmatprep.subr.bf16.mxu1 %v16198_v0 }
 0xae5   : > { %v13361_v25 = vsel %vm3168_vm14, %v15755_v12, %v13352_v52  ;;  %15230 = vmatpush3.bf16.msra.mxu0 %v15948_v26  ;;  %13886 = vmatpush1.bf16.msra.mxu1 %v16197_v29 }
 0xae6   : > { %v15758_v63 = vpop.permute.xlu1 %15757  ;;  %v14869_v24 = vpack.c.bf16 %v13361_v25, %v13361_v25  ;;  %15231 = vmatprep.subr.bf16.mxu0 %v22674_v5 }
 0xae7   : > { %v15760_v20 = vunpack.i.h.bf16 %v15758_v63  ;;  %v15759_v48 = vunpack.i.l.bf16 %v15758_v63 }
 0xae8   : > { %13578 = vst [vmem:[#allocation9 + $0x8c] sm:$0xf] %v14869_v24 }
 0xae9   : > { %v13398_v36 = vsel %vm5066_vm13, %v13385_v37, %v15759_v48  ;;  %v13399_v60 = vsel %vm5066_vm13, %v15759_v48, %v15760_v20 }
 0xaea   : > { %v16199_v10 = vpack.c.bf16 %v13399_v60, %v13399_v60  ;;  %v16200_v39 = vpack.c.bf16 %v13398_v36, %v13398_v36 }
 0xaec   : > { %14740 = vmatprep.subr.msk.bf16.mxu1 %vm1616_vm1, %v16199_v10  ;;  %v13752_v6 = vsel %vm1616_vm1, %v16200_v39, 0 }
 0xaed   : > { %v13391_v4 = vpop.permute.xlu0 %13390  ;;  %13888 = vmatpush1.bf16.msra.mxu1 %v13752_v6 }
 0xaee   : > { %v13400_v40 = vsel %vm5066_vm13, %v15760_v20, %v13391_v4 }
 0xaef   : > { %v14874_v2 = vpack.c.bf16 %v13400_v40, %v13400_v40  ;;  %v15949_v16 = vld [vmem:[#allocation9 + $0x68] ss:$36 sps:$4 sm:$0xff]  }
 0xaf0   : > { %15232 = vmatpush3.bf16.msra.mxu0 %v15949_v16  ;;  %14741 = vmatmul.mubr.msk.bf16.vlgmr.msra.gmra.mrb[52].mxu1 %vm1898_vm10, %v22342_v45 }
 0xaf1   : > { %13583 = vst [vmem:[#allocation9 + $0xb0] sm:$0xf] %v14874_v2  ;;  %15233 = vmatprep.subr.bf16.mxu0 %v22674_v5 }
 0xaf7   : > { %v11027_v56 = vpop.permute.xlu1 %11026 }
 0xaf8   : > { %v11029_v18 = vadd.f32 %v11027_v56, %v21965_v42  ;;  %v11030_v3 = vadd.f32 %v11027_v56, %v21967_v46  ;;  %v11031_v15 = vadd.f32 %v11027_v56, %v21969_v51  ;;  %v11032_v30 = vadd.f32 %v11027_v56, %v21971_v19  ;;  %v15950_v35 = vld [vmem:[#allocation9 + $0xb0] ss:$0 sps:$4 sm:$0xff]  }
 0xaf9   : > { %v11033_v38 = vadd.f32 %v11027_v56, %v21973_v1  ;;  %v11034_v62 = vadd.f32 %v11027_v56, %v21975_v55  ;;  %v11035_v54 = vadd.f32 %v11027_v56, %v21977_v32  ;;  %v11036_v5 = vadd.f32 %v11027_v56, %v21979_v44 }
 0xafa   : > { %v11037_v42 = vadd.f32 %v11027_v56, %v21990_v61  ;;  %v11038_v46 = vmax.f32 %v11029_v18, 0.0  ;;  %v11039_v51 = vmax.f32 %v11030_v3, 0.0  ;;  %v11040_v19 = vmax.f32 %v11031_v15, 0.0 }
 0xafb   : > { %v11041_v50 = vmax.f32 %v11032_v30, 0.0  ;;  %v11042_v1 = vmax.f32 %v11033_v38, 0.0  ;;  %v11043_v37 = vmax.f32 %v11034_v62, 0.0  ;;  %v11044_v22 = vmax.f32 %v11035_v54, 0.0 }
 0xafc   : > { %v11045_v55 = vmax.f32 %v11036_v5, 0.0  ;;  %v11046_v53 = vmax.f32 %v11037_v42, 0.0  ;;  %11047 = vst [vmem:[%s16668_s7] sm:$0xff] %v11038_v46  ;;  %11048 = vst [vmem:[%s16668_s7 + $0x8] sm:$0xff] %v11039_v51  ;;  %v13758_v32 = vsel %vm1616_vm1, %v15950_v35, 0 }
 0xafd   : > { %11049 = vst [vmem:[%s16668_s7 + $0x10] sm:$0xff] %v11040_v19  ;;  %11050 = vst [vmem:[%s16668_s7 + $0x18] sm:$0xff] %v11041_v50  ;;  %15234 = vmatpush3.bf16.msra.mxu0 %v13758_v32 }
 0xafe   : > { %11051 = vst [vmem:[%s16668_s7 + $0x20] sm:$0xff] %v11042_v1  ;;  %11052 = vst [vmem:[%s16668_s7 + $0x28] sm:$0xff] %v11043_v37  ;;  %v13613_v44 = vpop.permute.xlu0 %13612 }
 0xaff   : > { %11053 = vst [vmem:[%s16668_s7 + $0x30] sm:$0xff] %v11044_v22  ;;  %11054 = vst [vmem:[%s16668_s7 + $0x38] sm:$0xff] %v11045_v55 }
 0xb00   : > { %11055 = vst [vmem:[%s16668_s7 + $0x40] sm:$0xff] %v11046_v53  ;;  %15236 = vmatmul.mubr.msk.bf16.vlgmr.msra.gmra.mrb[48].mxu0 %vm1898_vm10, %v22342_v45 }
 0xba7   : > { %v13794_v61 = vpop.f32.mrb[40].mxu0 }
 0xba8   : > { %v13795_v49 = vadd.f32 %v13794_v61, %v13613_v44  ;;  %v13796_v33 = vpop.f32.mrb[41].mxu0 }
 0xba9   : > { %v13797_v47 = vadd.f32 %v13796_v33, %v13613_v44  ;;  %v13798_v27 = vpop.f32.mrb[42].mxu0 }
 0xbaa   : > { %v13964_v12 = vmax.f32 %v13795_v49, 0.0  ;;  %v13799_v9 = vpop.f32.mrb[43].mxu0 }
 0xbab   : > { %v13965_v43 = vmax.f32 %v13797_v47, 0.0 }
 0xbac   : > { %13973 = vst [vmem:[%s16668_s7 + $0x90] sm:$0xff] %v13964_v12 }
 0xbad   : > { %13974 = vst [vmem:[%s16668_s7 + $0x98] sm:$0xff] %v13965_v43 }
 0xbb3   : > { %v13835_v23 = vpop.f32.mrb[48].mxu1 }
 0xbb4   : > { %v13836_v11 = vadd.f32 %v13835_v23, %v13613_v44  ;;  %v13837_v8 = vpop.f32.mrb[49].mxu1 }
 0xbb5   : > { %v13876_v14 = vpop.f32.mrb[44].mxu0  ;;  %v13838_v45 = vadd.f32 %v13837_v8, %v13613_v44  ;;  %v13839_v7 = vpop.f32.mrb[50].mxu1 }
 0xbb6   : > { %v13877_v13 = vadd.f32 %v13876_v14, %v13613_v44  ;;  %v13878_v34 = vpop.f32.mrb[45].mxu0  ;;  %v13966_v41 = vmax.f32 %v13836_v11, 0.0  ;;  %v13840_v28 = vpop.f32.mrb[51].mxu1 }
 0xbb7   : > { %v13879_v17 = vadd.f32 %v13878_v34, %v13613_v44  ;;  %v13880_v59 = vpop.f32.mrb[46].mxu0  ;;  %v13967_v21 = vmax.f32 %v13838_v45, 0.0 }
 0xbb8   : > { %v13968_v58 = vmax.f32 %v13877_v13, 0.0  ;;  %v13881_v31 = vpop.f32.mrb[47].mxu0  ;;  %13975 = vst [vmem:[%s16668_s7 + $0xa0] sm:$0xff] %v13966_v41 }
 0xbb9   : > { %v13969_v52 = vmax.f32 %v13879_v17, 0.0  ;;  %13976 = vst [vmem:[%s16668_s7 + $0xa8] sm:$0xff] %v13967_v21 }
 0xbba   : > { %13977 = vst [vmem:[%s16668_s7 + $0xb0] sm:$0xff] %v13968_v58 }
 0xbbb   : > { %13978 = vst [vmem:[%s16668_s7 + $0xb8] sm:$0xff] %v13969_v52 }
 0xbc3   : > { %v13917_v57 = vpop.f32.mrb[52].mxu1 }
 0xbc4   : > { %v13918_v63 = vadd.f32 %v13917_v57, %v13613_v44  ;;  %v13919_v25 = vpop.f32.mrb[53].mxu1 }
 0xbc5   : > { %v13920_v20 = vadd.f32 %v13919_v25, %v13613_v44  ;;  %v13921_v48 = vpop.f32.mrb[54].mxu1 }
 0xbc6   : > { %v13970_v24 = vmax.f32 %v13918_v63, 0.0  ;;  %v13922_v26 = vpop.f32.mrb[55].mxu1 }
 0xbc7   : > { %v13971_v29 = vmax.f32 %v13920_v20, 0.0 }
 0xbc8   : > { %13979 = vst [vmem:[%s16668_s7 + $0xc0] sm:$0xff] %v13970_v24 }
 0xbc9   : > { %13980 = vst [vmem:[%s16668_s7 + $0xc8] sm:$0xff] %v13971_v29 }
 0xbd3   : > { %v13958_v0 = vpop.f32.mrb[48].mxu0 }
 0xbd4   : > { %v13959_v36 = vadd.f32 %v13958_v0, %v13613_v44  ;;  %v15237_v60 = vpop.f32.mrb[49].mxu0 }
 0xbd5   : > { %v13961_v10 = vpop.f32.mrb[50].mxu0 }
 0xbd6   : > { %v13972_v39 = vmax.f32 %v13959_v36, 0.0  ;;  %v15238_v4 = vpop.f32.mrb[51].mxu0 }
 0xbd8   : > { %13981 = vst [vmem:[%s16668_s7 + $0xd0] sm:$0xff] %v13972_v39 }
 0xbd9 PF: > { %s15_s18 = sadd.s32 1, %s16207_s18  }
 0xbda   : > { %p12_p4 = scmp.ge.s32.totalorder %s15_s18, 4  }
 0xbdc   :  { %14 = sbr.rel (!%p12_p4) target bundleno = 1 (0x1), region = 70 }

</bundles_post_ra>
